<compile_context>
chip_gen: v6e
topology: v6e:2x2x1
jax: 0.10.0
libtpu: 0.0.40
codegen_flags: <defaults>
</compile_context>

<pallas_src>
import functools
import numpy as np

import jax
import jax.numpy as jnp
from jax import lax
from jax.experimental import pallas as pl
from jax.experimental.pallas import tpu as pltpu


# ----------------------------- fused Pallas kernel ------------------------------

def _fused_kernel(p1_ref, w1_ref, s1_ref, b1_ref, pool1_ref,
                  w2_ref, s2_ref, b2_ref, pool2_ref,
                  w3_ref, s3_ref, b3_ref, pool3_ref,
                  w4_ref, s4_ref, b4_ref, pool4_ref,
                  wl_ref, bl_ref,
                  o_ref,
                  pad2_ref, pad3_ref, pad4_ref,
                  *, N):
    C = 24
    f32 = jnp.float32

    # ---- Stage 1: conv(3->24) as a single im2col matmul + BN + ReLU + AvgPool(4): 32x32 -> 8x8
    y = jnp.dot(p1_ref[...], w1_ref[...], preferred_element_type=f32)          # (N*1024, 24)
    y = jnp.maximum(y * s1_ref[...] + b1_ref[...], 0.0)
    pad2_ref[...] = jnp.zeros_like(pad2_ref)
    for n in range(N):                                                          # tiny static loop
        pooled = jnp.dot(pool1_ref[...], y[n * 1024:(n + 1) * 1024, :],
                         preferred_element_type=f32)                            # (64, 24)
        pad2_ref[n, 1:9, 1:9, :] = pooled.reshape(8, 8, C)

    # ---- Stages 2..4: 3x3 conv as 9 shifted-tap matmuls on a zero-padded VMEM scratch,
    #      then BN + ReLU + AvgPool(2) as a (block-diagonal over batch) pooling matmul.
    def stage(pad_ref, w_ref, s_ref, b_ref, pool_ref, H, W):
        M = N * H * W
        acc = None
        for t in range(9):
            dy, dx = divmod(t, 3)
            patch = pad_ref[:, dy:dy + H, dx:dx + W, :].reshape(M, C)           # (N*H*W, 24)
            part = jnp.dot(patch, w_ref[t], preferred_element_type=f32)
            acc = part if acc is None else acc + part
        yy = jnp.maximum(acc * s_ref[...] + b_ref[...], 0.0)                    # (M, 24)
        return jnp.dot(pool_ref[...], yy, preferred_element_type=f32)           # (N*Hp*Wp, 24)

    p2 = stage(pad2_ref, w2_ref, s2_ref, b2_ref, pool2_ref, 8, 8)               # (N*16, 24)
    pad3_ref[...] = jnp.zeros_like(pad3_ref)
    pad3_ref[:, 1:5, 1:5, :] = p2.reshape(N, 4, 4, C)

    p3 = stage(pad3_ref, w3_ref, s3_ref, b3_ref, pool3_ref, 4, 4)               # (N*4, 24)
    pad4_ref[...] = jnp.zeros_like(pad4_ref)
    pad4_ref[:, 1:3, 1:3, :] = p3.reshape(N, 2, 2, C)

    feat = stage(pad4_ref, w4_ref, s4_ref, b4_ref, pool4_ref, 2, 2)             # (N, 24)

    # ---- Linear 24 -> 10
    o_ref[...] = jnp.dot(feat, wl_ref[...], preferred_element_type=f32) + bl_ref[...]


# ----------------------------- wrapper helpers ------------------------------

def _im2col_3x3(x_nhwc):
    # (N, H, W, Cin) -> (N*H*W, 9*Cin), column k = (dy*3 + dx)*Cin + ci
    N, H, W, Cin = x_nhwc.shape
    xp = jnp.pad(x_nhwc, ((0, 0), (1, 1), (1, 1), (0, 0)))
    cols = [xp[:, dy:dy + H, dx:dx + W, :].reshape(N * H * W, Cin)
            for dy in range(3) for dx in range(3)]
    return jnp.concatenate(cols, axis=1)


def _pool_matrix(H, W, p):
    # (Hp*Wp, H*W) average-pooling matrix for a single sample, row-major spatial flattening.
    Hp, Wp = H // p, W // p
    P = np.zeros((Hp * Wp, H * W), np.float32)
    inv = 1.0 / (p * p)
    for yo in range(Hp):
        for xo in range(Wp):
            for i in range(p):
                for j in range(p):
                    P[yo * Wp + xo, (yo * p + i) * W + (xo * p + j)] = inv
    return P


@jax.jit
def model_forward(x_nhwc, params):
    N = x_nhwc.shape[0]
    p1 = _im2col_3x3(x_nhwc)                                        # (N*1024, 27)

    # Constant pooling matrices, baked into the jitted graph (stage 1 applied per sample,
    # stages 2-4 block-diagonal over the folded batch).
    pool1 = jnp.asarray(_pool_matrix(32, 32, 4))                                            # (64, 1024)
    pool2 = jnp.asarray(np.kron(np.eye(N, dtype=np.float32), _pool_matrix(8, 8, 2)))        # (N*16, N*64)
    pool3 = jnp.asarray(np.kron(np.eye(N, dtype=np.float32), _pool_matrix(4, 4, 2)))        # (N*4,  N*16)
    pool4 = jnp.asarray(np.kron(np.eye(N, dtype=np.float32), _pool_matrix(2, 2, 2)))        # (N,    N*4)

    vmem = pl.BlockSpec(memory_space=pltpu.MemorySpace.VMEM)
    return pl.pallas_call(
        functools.partial(_fused_kernel, N=N),
        out_shape=jax.ShapeDtypeStruct((N, 10), jnp.float32),
        in_specs=[vmem] * 19,
        out_specs=vmem,
        scratch_shapes=[
            pltpu.VMEM((N, 10, 10, 24), jnp.float32),   # zero-padded input of stage 2
            pltpu.VMEM((N, 6, 6, 24), jnp.float32),     # zero-padded input of stage 3
            pltpu.VMEM((N, 4, 4, 24), jnp.float32),     # zero-padded input of stage 4
        ],
    )(p1,
      params["w1"], params["s1"], params["b1"], pool1,
      params["w2"], params["s2"], params["b2"], pool2,
      params["w3"], params["s3"], params["b3"], pool3,
      params["w4"], params["s4"], params["b4"], pool4,
      params["wl"], params["bl"])


# ----------------------------- parameters / reference ------------------------------

def init_params(key):
    cins = [3, 24, 24, 24]
    cout = 24
    eps = 1e-5
    keys = jax.random.split(key, 5 * len(cins) + 2)

    params = {}
    stages_ref = []
    ki = 0
    for s, cin in enumerate(cins, start=1):
        fan_in = cin * 9
        w_hwio = jax.random.normal(keys[ki], (3, 3, cin, cout), jnp.float32) * (2.0 / fan_in) ** 0.5; ki += 1
        gamma = 1.0 + 0.1 * jax.random.normal(keys[ki], (cout,), jnp.float32); ki += 1
        beta = 0.1 * jax.random.normal(keys[ki], (cout,), jnp.float32); ki += 1
        r_mean = 0.1 * jax.random.normal(keys[ki], (cout,), jnp.float32); ki += 1
        r_var = 0.5 + jax.random.uniform(keys[ki], (cout,), jnp.float32); ki += 1
        scale = gamma / jnp.sqrt(r_var + eps)         # folded BN (eval-mode running stats)
        bias = beta - r_mean * scale
        if s == 1:
            params["w1"] = w_hwio.reshape(9 * cin, cout)        # (27, 24), k = (dy*3+dx)*Cin + ci
        else:
            params[f"w{s}"] = w_hwio.reshape(9, cin, cout)      # (9, 24, 24)
        params[f"s{s}"] = scale.reshape(1, cout)
        params[f"b{s}"] = bias.reshape(1, cout)
        stages_ref.append((w_hwio, scale, bias))

    w_lin = jax.random.normal(keys[ki], (24, 10), jnp.float32) * (1.0 / 24.0) ** 0.5; ki += 1
    b_lin = 0.1 * jax.random.normal(keys[ki], (10,), jnp.float32); ki += 1
    params["wl"] = w_lin
    params["bl"] = b_lin.reshape(1, 10)

    ref_params = {"stages": stages_ref, "wl": w_lin, "bl": b_lin}
    return params, ref_params


def ref_forward(x_nhwc, ref_params):
    y = x_nhwc
    for (w_hwio, scale, bias), p in zip(ref_params["stages"], (4, 2, 2, 2)):
        y = lax.conv_general_dilated(
            y, w_hwio, window_strides=(1, 1), padding="SAME",
            dimension_numbers=("NHWC", "HWIO", "NHWC"))
        y = jnp.maximum(y * scale + bias, 0.0)
        n, h, w, c = y.shape
        y = y.reshape(n, h // p, p, w // p, p, c).mean(axis=(2, 4))
    y = y.reshape(y.shape[0], -1)
    return jnp.dot(y, ref_params["wl"]) + ref_params["bl"]


# ----------------------------- main ------------------------------

if __name__ == "__main__":
    N = 2
    # NHWC input; equivalent PyTorch input is x.transpose -> (2, 3, 32, 32) NCHW.
    x = jax.random.normal(jax.random.PRNGKey(0), (N, 32, 32, 3), jnp.float32)
    params, ref_params = init_params(jax.random.PRNGKey(1))

    out = jax.block_until_ready(model_forward(x, params))
    assert out.shape == (N, 10) and out.dtype == jnp.float32

    ref = ref_forward(x, ref_params)
    # Tolerance accommodates default-precision (bf16-pass) MXU matmuls in the kernel vs the
    # XLA reference; structural bugs would produce errors orders of magnitude larger.
    assert jnp.allclose(out, ref, atol=2e-2, rtol=2e-2), \
        f"mismatch: max abs diff {jnp.max(jnp.abs(out - ref))}"

    print("KERNEL_OK")
</pallas_src>

<mosaic_0001>
module attributes {stable_mosaic.version = 11 : i64} {
  func.func @_fused_kernel(%arg0: memref<2048x27xf32, #tpu.memory_space<vmem>>, %arg1: memref<27x24xf32, #tpu.memory_space<vmem>>, %arg2: memref<1x24xf32, #tpu.memory_space<vmem>>, %arg3: memref<1x24xf32, #tpu.memory_space<vmem>>, %arg4: memref<64x1024xf32, #tpu.memory_space<vmem>>, %arg5: memref<9x24x24xf32, #tpu.memory_space<vmem>>, %arg6: memref<1x24xf32, #tpu.memory_space<vmem>>, %arg7: memref<1x24xf32, #tpu.memory_space<vmem>>, %arg8: memref<32x128xf32, #tpu.memory_space<vmem>>, %arg9: memref<9x24x24xf32, #tpu.memory_space<vmem>>, %arg10: memref<1x24xf32, #tpu.memory_space<vmem>>, %arg11: memref<1x24xf32, #tpu.memory_space<vmem>>, %arg12: memref<8x32xf32, #tpu.memory_space<vmem>>, %arg13: memref<9x24x24xf32, #tpu.memory_space<vmem>>, %arg14: memref<1x24xf32, #tpu.memory_space<vmem>>, %arg15: memref<1x24xf32, #tpu.memory_space<vmem>>, %arg16: memref<2x8xf32, #tpu.memory_space<vmem>>, %arg17: memref<24x10xf32, #tpu.memory_space<vmem>>, %arg18: memref<1x10xf32, #tpu.memory_space<vmem>>, %arg19: memref<2x10xf32, #tpu.memory_space<vmem>>, %arg20: memref<2x10x10x24xf32, #tpu.memory_space<vmem>>, %arg21: memref<2x6x6x24xf32, #tpu.memory_space<vmem>>, %arg22: memref<2x4x4x24xf32, #tpu.memory_space<vmem>>) attributes {dimension_semantics = [], scalar_prefetch = 0 : i64, scratch_operands = 3 : i64, tpu.core_type = #tpu.core_type<tc>} {
    %c0 = arith.constant 0 : index
    %c0_0 = arith.constant 0 : index
    %0 = vector.load %arg0[%c0, %c0_0] : memref<2048x27xf32, #tpu.memory_space<vmem>>, vector<2048x27xf32>
    %c0_1 = arith.constant 0 : index
    %c0_2 = arith.constant 0 : index
    %1 = vector.load %arg1[%c0_1, %c0_2] : memref<27x24xf32, #tpu.memory_space<vmem>>, vector<27x24xf32>
    %cst = arith.constant dense<0.000000e+00> : vector<2048x24xf32>
    %2 = tpu.matmul %0, %1, %cst {dimension_numbers = #tpu.dot_dimension_numbers<[1], [0], [0], [1], [0, 0, 1, 1], [], []>} : vector<2048x27xf32>, vector<27x24xf32>, vector<2048x24xf32> -> vector<2048x24xf32>
    %c0_3 = arith.constant 0 : index
    %c0_4 = arith.constant 0 : index
    %3 = vector.load %arg2[%c0_3, %c0_4] : memref<1x24xf32, #tpu.memory_space<vmem>>, vector<1x24xf32>
    %4 = vector.broadcast %3 : vector<1x24xf32> to vector<2048x24xf32>
    %5 = arith.mulf %2, %4 : vector<2048x24xf32>
    %c0_5 = arith.constant 0 : index
    %c0_6 = arith.constant 0 : index
    %6 = vector.load %arg3[%c0_5, %c0_6] : memref<1x24xf32, #tpu.memory_space<vmem>>, vector<1x24xf32>
    %7 = vector.broadcast %6 : vector<1x24xf32> to vector<2048x24xf32>
    %8 = arith.addf %5, %7 : vector<2048x24xf32>
    %cst_7 = arith.constant 0.000000e+00 : f32
    %9 = vector.broadcast %cst_7 : f32 to vector<2048x24xf32>
    %10 = arith.maximumf %8, %9 : vector<2048x24xf32>
    %cst_8 = arith.constant 0.000000e+00 : f32
    %11 = vector.broadcast %cst_8 : f32 to vector<2x10x10x24xf32>
    %c0_9 = arith.constant 0 : index
    %c0_10 = arith.constant 0 : index
    %c0_11 = arith.constant 0 : index
    %c0_12 = arith.constant 0 : index
    %12 = vector.load %arg20[%c0_9, %c0_10, %c0_11, %c0_12] : memref<2x10x10x24xf32, #tpu.memory_space<vmem>>, vector<2x10x10x24xf32>
    tpu.vector_store %arg20[%c0_9, %c0_10, %c0_11, %c0_12], %11 {strides = array<i32>} : memref<2x10x10x24xf32, #tpu.memory_space<vmem>>, vector<2x10x10x24xf32>,
    %c0_13 = arith.constant 0 : index
    %c0_14 = arith.constant 0 : index
    %13 = vector.load %arg4[%c0_13, %c0_14] : memref<64x1024xf32, #tpu.memory_space<vmem>>, vector<64x1024xf32>
    %14 = vector.extract_strided_slice %10 {offsets = [0, 0], sizes = [1024, 24], strides = [1, 1]} : vector<2048x24xf32> to vector<1024x24xf32>
    %cst_15 = arith.constant dense<0.000000e+00> : vector<64x24xf32>
    %15 = tpu.matmul %13, %14, %cst_15 {dimension_numbers = #tpu.dot_dimension_numbers<[1], [0], [0], [1], [0, 0, 1, 1], [], []>} : vector<64x1024xf32>, vector<1024x24xf32>, vector<64x24xf32> -> vector<64x24xf32>
    %16 = vector.shape_cast %15 : vector<64x24xf32> to vector<8x8x24xf32>
    %c0_16 = arith.constant 0 : index
    %c1 = arith.constant 1 : index
    %c1_17 = arith.constant 1 : index
    %c0_18 = arith.constant 0 : index
    %17 = vector.load %arg20[%c0_16, %c1, %c1_17, %c0_18] : memref<2x10x10x24xf32, #tpu.memory_space<vmem>>, vector<1x8x8x24xf32>
    %18 = vector.shape_cast %17 : vector<1x8x8x24xf32> to vector<8x8x24xf32>
    %19 = vector.shape_cast %16 : vector<8x8x24xf32> to vector<1x8x8x24xf32>
    tpu.vector_store %arg20[%c0_16, %c1, %c1_17, %c0_18], %19 {strides = array<i32>} : memref<2x10x10x24xf32, #tpu.memory_space<vmem>>, vector<1x8x8x24xf32>,
    %c0_19 = arith.constant 0 : index
    %c0_20 = arith.constant 0 : index
    %20 = vector.load %arg4[%c0_19, %c0_20] : memref<64x1024xf32, #tpu.memory_space<vmem>>, vector<64x1024xf32>
    %21 = vector.extract_strided_slice %10 {offsets = [1024, 0], sizes = [1024, 24], strides = [1, 1]} : vector<2048x24xf32> to vector<1024x24xf32>
    %cst_21 = arith.constant dense<0.000000e+00> : vector<64x24xf32>
    %22 = tpu.matmul %20, %21, %cst_21 {dimension_numbers = #tpu.dot_dimension_numbers<[1], [0], [0], [1], [0, 0, 1, 1], [], []>} : vector<64x1024xf32>, vector<1024x24xf32>, vector<64x24xf32> -> vector<64x24xf32>
    %23 = vector.shape_cast %22 : vector<64x24xf32> to vector<8x8x24xf32>
    %c1_22 = arith.constant 1 : index
    %c1_23 = arith.constant 1 : index
    %c1_24 = arith.constant 1 : index
    %c0_25 = arith.constant 0 : index
    %24 = vector.load %arg20[%c1_22, %c1_23, %c1_24, %c0_25] : memref<2x10x10x24xf32, #tpu.memory_space<vmem>>, vector<1x8x8x24xf32>
    %25 = vector.shape_cast %24 : vector<1x8x8x24xf32> to vector<8x8x24xf32>
    %26 = vector.shape_cast %23 : vector<8x8x24xf32> to vector<1x8x8x24xf32>
    tpu.vector_store %arg20[%c1_22, %c1_23, %c1_24, %c0_25], %26 {strides = array<i32>} : memref<2x10x10x24xf32, #tpu.memory_space<vmem>>, vector<1x8x8x24xf32>,
    %c0_26 = arith.constant 0 : index
    %c0_27 = arith.constant 0 : index
    %c0_28 = arith.constant 0 : index
    %c0_29 = arith.constant 0 : index
    %27 = vector.load %arg20[%c0_26, %c0_27, %c0_28, %c0_29] : memref<2x10x10x24xf32, #tpu.memory_space<vmem>>, vector<2x8x8x24xf32>
    %28 = vector.shape_cast %27 : vector<2x8x8x24xf32> to vector<128x24xf32>
    %c0_30 = arith.constant 0 : index
    %c0_31 = arith.constant 0 : index
    %c0_32 = arith.constant 0 : index
    %29 = vector.load %arg5[%c0_30, %c0_31, %c0_32] : memref<9x24x24xf32, #tpu.memory_space<vmem>>, vector<1x24x24xf32>
    %30 = vector.shape_cast %29 : vector<1x24x24xf32> to vector<24x24xf32>
    %cst_33 = arith.constant dense<0.000000e+00> : vector<128x24xf32>
    %31 = tpu.matmul %28, %30, %cst_33 {dimension_numbers = #tpu.dot_dimension_numbers<[1], [0], [0], [1], [0, 0, 1, 1], [], []>} : vector<128x24xf32>, vector<24x24xf32>, vector<128x24xf32> -> vector<128x24xf32>
    %c0_34 = arith.constant 0 : index
    %c0_35 = arith.constant 0 : index
    %c1_36 = arith.constant 1 : index
    %c0_37 = arith.constant 0 : index
    %32 = vector.load %arg20[%c0_34, %c0_35, %c1_36, %c0_37] : memref<2x10x10x24xf32, #tpu.memory_space<vmem>>, vector<2x8x8x24xf32>
    %33 = vector.shape_cast %32 : vector<2x8x8x24xf32> to vector<128x24xf32>
    %c1_38 = arith.constant 1 : index
    %c0_39 = arith.constant 0 : index
    %c0_40 = arith.constant 0 : index
    %34 = vector.load %arg5[%c1_38, %c0_39, %c0_40] : memref<9x24x24xf32, #tpu.memory_space<vmem>>, vector<1x24x24xf32>
    %35 = vector.shape_cast %34 : vector<1x24x24xf32> to vector<24x24xf32>
    %cst_41 = arith.constant dense<0.000000e+00> : vector<128x24xf32>
    %36 = tpu.matmul %33, %35, %cst_41 {dimension_numbers = #tpu.dot_dimension_numbers<[1], [0], [0], [1], [0, 0, 1, 1], [], []>} : vector<128x24xf32>, vector<24x24xf32>, vector<128x24xf32> -> vector<128x24xf32>
    %37 = arith.addf %31, %36 : vector<128x24xf32>
    %c0_42 = arith.constant 0 : index
    %c0_43 = arith.constant 0 : index
    %c2 = arith.constant 2 : index
    %c0_44 = arith.constant 0 : index
    %38 = vector.load %arg20[%c0_42, %c0_43, %c2, %c0_44] : memref<2x10x10x24xf32, #tpu.memory_space<vmem>>, vector<2x8x8x24xf32>
    %39 = vector.shape_cast %38 : vector<2x8x8x24xf32> to vector<128x24xf32>
    %c2_45 = arith.constant 2 : index
    %c0_46 = arith.constant 0 : index
    %c0_47 = arith.constant 0 : index
    %40 = vector.load %arg5[%c2_45, %c0_46, %c0_47] : memref<9x24x24xf32, #tpu.memory_space<vmem>>, vector<1x24x24xf32>
    %41 = vector.shape_cast %40 : vector<1x24x24xf32> to vector<24x24xf32>
    %cst_48 = arith.constant dense<0.000000e+00> : vector<128x24xf32>
    %42 = tpu.matmul %39, %41, %cst_48 {dimension_numbers = #tpu.dot_dimension_numbers<[1], [0], [0], [1], [0, 0, 1, 1], [], []>} : vector<128x24xf32>, vector<24x24xf32>, vector<128x24xf32> -> vector<128x24xf32>
    %43 = arith.addf %37, %42 : vector<128x24xf32>
    %c0_49 = arith.constant 0 : index
    %c1_50 = arith.constant 1 : index
    %c0_51 = arith.constant 0 : index
    %c0_52 = arith.constant 0 : index
    %44 = vector.load %arg20[%c0_49, %c1_50, %c0_51, %c0_52] : memref<2x10x10x24xf32, #tpu.memory_space<vmem>>, vector<2x8x8x24xf32>
    %45 = vector.shape_cast %44 : vector<2x8x8x24xf32> to vector<128x24xf32>
    %c3 = arith.constant 3 : index
    %c0_53 = arith.constant 0 : index
    %c0_54 = arith.constant 0 : index
    %46 = vector.load %arg5[%c3, %c0_53, %c0_54] : memref<9x24x24xf32, #tpu.memory_space<vmem>>, vector<1x24x24xf32>
    %47 = vector.shape_cast %46 : vector<1x24x24xf32> to vector<24x24xf32>
    %cst_55 = arith.constant dense<0.000000e+00> : vector<128x24xf32>
    %48 = tpu.matmul %45, %47, %cst_55 {dimension_numbers = #tpu.dot_dimension_numbers<[1], [0], [0], [1], [0, 0, 1, 1], [], []>} : vector<128x24xf32>, vector<24x24xf32>, vector<128x24xf32> -> vector<128x24xf32>
    %49 = arith.addf %43, %48 : vector<128x24xf32>
    %c0_56 = arith.constant 0 : index
    %c1_57 = arith.constant 1 : index
    %c1_58 = arith.constant 1 : index
    %c0_59 = arith.constant 0 : index
    %50 = vector.load %arg20[%c0_56, %c1_57, %c1_58, %c0_59] : memref<2x10x10x24xf32, #tpu.memory_space<vmem>>, vector<2x8x8x24xf32>
    %51 = vector.shape_cast %50 : vector<2x8x8x24xf32> to vector<128x24xf32>
    %c4 = arith.constant 4 : index
    %c0_60 = arith.constant 0 : index
    %c0_61 = arith.constant 0 : index
    %52 = vector.load %arg5[%c4, %c0_60, %c0_61] : memref<9x24x24xf32, #tpu.memory_space<vmem>>, vector<1x24x24xf32>
    %53 = vector.shape_cast %52 : vector<1x24x24xf32> to vector<24x24xf32>
    %cst_62 = arith.constant dense<0.000000e+00> : vector<128x24xf32>
    %54 = tpu.matmul %51, %53, %cst_62 {dimension_numbers = #tpu.dot_dimension_numbers<[1], [0], [0], [1], [0, 0, 1, 1], [], []>} : vector<128x24xf32>, vector<24x24xf32>, vector<128x24xf32> -> vector<128x24xf32>
    %55 = arith.addf %49, %54 : vector<128x24xf32>
    %c0_63 = arith.constant 0 : index
    %c1_64 = arith.constant 1 : index
    %c2_65 = arith.constant 2 : index
    %c0_66 = arith.constant 0 : index
    %56 = vector.load %arg20[%c0_63, %c1_64, %c2_65, %c0_66] : memref<2x10x10x24xf32, #tpu.memory_space<vmem>>, vector<2x8x8x24xf32>
    %57 = vector.shape_cast %56 : vector<2x8x8x24xf32> to vector<128x24xf32>
    %c5 = arith.constant 5 : index
    %c0_67 = arith.constant 0 : index
    %c0_68 = arith.constant 0 : index
    %58 = vector.load %arg5[%c5, %c0_67, %c0_68] : memref<9x24x24xf32, #tpu.memory_space<vmem>>, vector<1x24x24xf32>
    %59 = vector.shape_cast %58 : vector<1x24x24xf32> to vector<24x24xf32>
    %cst_69 = arith.constant dense<0.000000e+00> : vector<128x24xf32>
    %60 = tpu.matmul %57, %59, %cst_69 {dimension_numbers = #tpu.dot_dimension_numbers<[1], [0], [0], [1], [0, 0, 1, 1], [], []>} : vector<128x24xf32>, vector<24x24xf32>, vector<128x24xf32> -> vector<128x24xf32>
    %61 = arith.addf %55, %60 : vector<128x24xf32>
    %c0_70 = arith.constant 0 : index
    %c2_71 = arith.constant 2 : index
    %c0_72 = arith.constant 0 : index
    %c0_73 = arith.constant 0 : index
    %62 = vector.load %arg20[%c0_70, %c2_71, %c0_72, %c0_73] : memref<2x10x10x24xf32, #tpu.memory_space<vmem>>, vector<2x8x8x24xf32>
    %63 = vector.shape_cast %62 : vector<2x8x8x24xf32> to vector<128x24xf32>
    %c6 = arith.constant 6 : index
    %c0_74 = arith.constant 0 : index
    %c0_75 = arith.constant 0 : index
    %64 = vector.load %arg5[%c6, %c0_74, %c0_75] : memref<9x24x24xf32, #tpu.memory_space<vmem>>, vector<1x24x24xf32>
    %65 = vector.shape_cast %64 : vector<1x24x24xf32> to vector<24x24xf32>
    %cst_76 = arith.constant dense<0.000000e+00> : vector<128x24xf32>
    %66 = tpu.matmul %63, %65, %cst_76 {dimension_numbers = #tpu.dot_dimension_numbers<[1], [0], [0], [1], [0, 0, 1, 1], [], []>} : vector<128x24xf32>, vector<24x24xf32>, vector<128x24xf32> -> vector<128x24xf32>
    %67 = arith.addf %61, %66 : vector<128x24xf32>
    %c0_77 = arith.constant 0 : index
    %c2_78 = arith.constant 2 : index
    %c1_79 = arith.constant 1 : index
    %c0_80 = arith.constant 0 : index
    %68 = vector.load %arg20[%c0_77, %c2_78, %c1_79, %c0_80] : memref<2x10x10x24xf32, #tpu.memory_space<vmem>>, vector<2x8x8x24xf32>
    %69 = vector.shape_cast %68 : vector<2x8x8x24xf32> to vector<128x24xf32>
    %c7 = arith.constant 7 : index
    %c0_81 = arith.constant 0 : index
    %c0_82 = arith.constant 0 : index
    %70 = vector.load %arg5[%c7, %c0_81, %c0_82] : memref<9x24x24xf32, #tpu.memory_space<vmem>>, vector<1x24x24xf32>
    %71 = vector.shape_cast %70 : vector<1x24x24xf32> to vector<24x24xf32>
    %cst_83 = arith.constant dense<0.000000e+00> : vector<128x24xf32>
    %72 = tpu.matmul %69, %71, %cst_83 {dimension_numbers = #tpu.dot_dimension_numbers<[1], [0], [0], [1], [0, 0, 1, 1], [], []>} : vector<128x24xf32>, vector<24x24xf32>, vector<128x24xf32> -> vector<128x24xf32>
    %73 = arith.addf %67, %72 : vector<128x24xf32>
    %c0_84 = arith.constant 0 : index
    %c2_85 = arith.constant 2 : index
    %c2_86 = arith.constant 2 : index
    %c0_87 = arith.constant 0 : index
    %74 = vector.load %arg20[%c0_84, %c2_85, %c2_86, %c0_87] : memref<2x10x10x24xf32, #tpu.memory_space<vmem>>, vector<2x8x8x24xf32>
    %75 = vector.shape_cast %74 : vector<2x8x8x24xf32> to vector<128x24xf32>
    %c8 = arith.constant 8 : index
    %c0_88 = arith.constant 0 : index
    %c0_89 = arith.constant 0 : index
    %76 = vector.load %arg5[%c8, %c0_88, %c0_89] : memref<9x24x24xf32, #tpu.memory_space<vmem>>, vector<1x24x24xf32>
    %77 = vector.shape_cast %76 : vector<1x24x24xf32> to vector<24x24xf32>
    %cst_90 = arith.constant dense<0.000000e+00> : vector<128x24xf32>
    %78 = tpu.matmul %75, %77, %cst_90 {dimension_numbers = #tpu.dot_dimension_numbers<[1], [0], [0], [1], [0, 0, 1, 1], [], []>} : vector<128x24xf32>, vector<24x24xf32>, vector<128x24xf32> -> vector<128x24xf32>
    %79 = arith.addf %73, %78 : vector<128x24xf32>
    %c0_91 = arith.constant 0 : index
    %c0_92 = arith.constant 0 : index
    %80 = vector.load %arg6[%c0_91, %c0_92] : memref<1x24xf32, #tpu.memory_space<vmem>>, vector<1x24xf32>
    %81 = vector.broadcast %80 : vector<1x24xf32> to vector<128x24xf32>
    %82 = arith.mulf %79, %81 : vector<128x24xf32>
    %c0_93 = arith.constant 0 : index
    %c0_94 = arith.constant 0 : index
    %83 = vector.load %arg7[%c0_93, %c0_94] : memref<1x24xf32, #tpu.memory_space<vmem>>, vector<1x24xf32>
    %84 = vector.broadcast %83 : vector<1x24xf32> to vector<128x24xf32>
    %85 = arith.addf %82, %84 : vector<128x24xf32>
    %cst_95 = arith.constant 0.000000e+00 : f32
    %86 = vector.broadcast %cst_95 : f32 to vector<128x24xf32>
    %87 = arith.maximumf %85, %86 : vector<128x24xf32>
    %c0_96 = arith.constant 0 : index
    %c0_97 = arith.constant 0 : index
    %88 = vector.load %arg8[%c0_96, %c0_97] : memref<32x128xf32, #tpu.memory_space<vmem>>, vector<32x128xf32>
    %cst_98 = arith.constant dense<0.000000e+00> : vector<32x24xf32>
    %89 = tpu.matmul %88, %87, %cst_98 {dimension_numbers = #tpu.dot_dimension_numbers<[1], [0], [0], [1], [0, 0, 1, 1], [], []>} : vector<32x128xf32>, vector<128x24xf32>, vector<32x24xf32> -> vector<32x24xf32>
    %cst_99 = arith.constant 0.000000e+00 : f32
    %90 = vector.broadcast %cst_99 : f32 to vector<2x6x6x24xf32>
    %c0_100 = arith.constant 0 : index
    %c0_101 = arith.constant 0 : index
    %c0_102 = arith.constant 0 : index
    %c0_103 = arith.constant 0 : index
    %91 = vector.load %arg21[%c0_100, %c0_101, %c0_102, %c0_103] : memref<2x6x6x24xf32, #tpu.memory_space<vmem>>, vector<2x6x6x24xf32>
    tpu.vector_store %arg21[%c0_100, %c0_101, %c0_102, %c0_103], %90 {strides = array<i32>} : memref<2x6x6x24xf32, #tpu.memory_space<vmem>>, vector<2x6x6x24xf32>,
    %92 = vector.shape_cast %89 : vector<32x24xf32> to vector<2x4x4x24xf32>
    %c0_104 = arith.constant 0 : index
    %c1_105 = arith.constant 1 : index
    %c1_106 = arith.constant 1 : index
    %c0_107 = arith.constant 0 : index
    %93 = vector.load %arg21[%c0_104, %c1_105, %c1_106, %c0_107] : memref<2x6x6x24xf32, #tpu.memory_space<vmem>>, vector<2x4x4x24xf32>
    tpu.vector_store %arg21[%c0_104, %c1_105, %c1_106, %c0_107], %92 {strides = array<i32>} : memref<2x6x6x24xf32, #tpu.memory_space<vmem>>, vector<2x4x4x24xf32>,
    %c0_108 = arith.constant 0 : index
    %c0_109 = arith.constant 0 : index
    %c0_110 = arith.constant 0 : index
    %c0_111 = arith.constant 0 : index
    %94 = vector.load %arg21[%c0_108, %c0_109, %c0_110, %c0_111] : memref<2x6x6x24xf32, #tpu.memory_space<vmem>>, vector<2x4x4x24xf32>
    %95 = vector.shape_cast %94 : vector<2x4x4x24xf32> to vector<32x24xf32>
    %c0_112 = arith.constant 0 : index
    %c0_113 = arith.constant 0 : index
    %c0_114 = arith.constant 0 : index
    %96 = vector.load %arg9[%c0_112, %c0_113, %c0_114] : memref<9x24x24xf32, #tpu.memory_space<vmem>>, vector<1x24x24xf32>
    %97 = vector.shape_cast %96 : vector<1x24x24xf32> to vector<24x24xf32>
    %cst_115 = arith.constant dense<0.000000e+00> : vector<32x24xf32>
    %98 = tpu.matmul %95, %97, %cst_115 {dimension_numbers = #tpu.dot_dimension_numbers<[1], [0], [0], [1], [0, 0, 1, 1], [], []>} : vector<32x24xf32>, vector<24x24xf32>, vector<32x24xf32> -> vector<32x24xf32>
    %c0_116 = arith.constant 0 : index
    %c0_117 = arith.constant 0 : index
    %c1_118 = arith.constant 1 : index
    %c0_119 = arith.constant 0 : index
    %99 = vector.load %arg21[%c0_116, %c0_117, %c1_118, %c0_119] : memref<2x6x6x24xf32, #tpu.memory_space<vmem>>, vector<2x4x4x24xf32>
    %100 = vector.shape_cast %99 : vector<2x4x4x24xf32> to vector<32x24xf32>
    %c1_120 = arith.constant 1 : index
    %c0_121 = arith.constant 0 : index
    %c0_122 = arith.constant 0 : index
    %101 = vector.load %arg9[%c1_120, %c0_121, %c0_122] : memref<9x24x24xf32, #tpu.memory_space<vmem>>, vector<1x24x24xf32>
    %102 = vector.shape_cast %101 : vector<1x24x24xf32> to vector<24x24xf32>
    %cst_123 = arith.constant dense<0.000000e+00> : vector<32x24xf32>
    %103 = tpu.matmul %100, %102, %cst_123 {dimension_numbers = #tpu.dot_dimension_numbers<[1], [0], [0], [1], [0, 0, 1, 1], [], []>} : vector<32x24xf32>, vector<24x24xf32>, vector<32x24xf32> -> vector<32x24xf32>
    %104 = arith.addf %98, %103 : vector<32x24xf32>
    %c0_124 = arith.constant 0 : index
    %c0_125 = arith.constant 0 : index
    %c2_126 = arith.constant 2 : index
    %c0_127 = arith.constant 0 : index
    %105 = vector.load %arg21[%c0_124, %c0_125, %c2_126, %c0_127] : memref<2x6x6x24xf32, #tpu.memory_space<vmem>>, vector<2x4x4x24xf32>
    %106 = vector.shape_cast %105 : vector<2x4x4x24xf32> to vector<32x24xf32>
    %c2_128 = arith.constant 2 : index
    %c0_129 = arith.constant 0 : index
    %c0_130 = arith.constant 0 : index
    %107 = vector.load %arg9[%c2_128, %c0_129, %c0_130] : memref<9x24x24xf32, #tpu.memory_space<vmem>>, vector<1x24x24xf32>
    %108 = vector.shape_cast %107 : vector<1x24x24xf32> to vector<24x24xf32>
    %cst_131 = arith.constant dense<0.000000e+00> : vector<32x24xf32>
    %109 = tpu.matmul %106, %108, %cst_131 {dimension_numbers = #tpu.dot_dimension_numbers<[1], [0], [0], [1], [0, 0, 1, 1], [], []>} : vector<32x24xf32>, vector<24x24xf32>, vector<32x24xf32> -> vector<32x24xf32>
    %110 = arith.addf %104, %109 : vector<32x24xf32>
    %c0_132 = arith.constant 0 : index
    %c1_133 = arith.constant 1 : index
    %c0_134 = arith.constant 0 : index
    %c0_135 = arith.constant 0 : index
    %111 = vector.load %arg21[%c0_132, %c1_133, %c0_134, %c0_135] : memref<2x6x6x24xf32, #tpu.memory_space<vmem>>, vector<2x4x4x24xf32>
    %112 = vector.shape_cast %111 : vector<2x4x4x24xf32> to vector<32x24xf32>
    %c3_136 = arith.constant 3 : index
    %c0_137 = arith.constant 0 : index
    %c0_138 = arith.constant 0 : index
    %113 = vector.load %arg9[%c3_136, %c0_137, %c0_138] : memref<9x24x24xf32, #tpu.memory_space<vmem>>, vector<1x24x24xf32>
    %114 = vector.shape_cast %113 : vector<1x24x24xf32> to vector<24x24xf32>
    %cst_139 = arith.constant dense<0.000000e+00> : vector<32x24xf32>
    %115 = tpu.matmul %112, %114, %cst_139 {dimension_numbers = #tpu.dot_dimension_numbers<[1], [0], [0], [1], [0, 0, 1, 1], [], []>} : vector<32x24xf32>, vector<24x24xf32>, vector<32x24xf32> -> vector<32x24xf32>
    %116 = arith.addf %110, %115 : vector<32x24xf32>
    %c0_140 = arith.constant 0 : index
    %c1_141 = arith.constant 1 : index
    %c1_142 = arith.constant 1 : index
    %c0_143 = arith.constant 0 : index
    %117 = vector.load %arg21[%c0_140, %c1_141, %c1_142, %c0_143] : memref<2x6x6x24xf32, #tpu.memory_space<vmem>>, vector<2x4x4x24xf32>
    %118 = vector.shape_cast %117 : vector<2x4x4x24xf32> to vector<32x24xf32>
    %c4_144 = arith.constant 4 : index
    %c0_145 = arith.constant 0 : index
    %c0_146 = arith.constant 0 : index
    %119 = vector.load %arg9[%c4_144, %c0_145, %c0_146] : memref<9x24x24xf32, #tpu.memory_space<vmem>>, vector<1x24x24xf32>
    %120 = vector.shape_cast %119 : vector<1x24x24xf32> to vector<24x24xf32>
    %cst_147 = arith.constant dense<0.000000e+00> : vector<32x24xf32>
    %121 = tpu.matmul %118, %120, %cst_147 {dimension_numbers = #tpu.dot_dimension_numbers<[1], [0], [0], [1], [0, 0, 1, 1], [], []>} : vector<32x24xf32>, vector<24x24xf32>, vector<32x24xf32> -> vector<32x24xf32>
    %122 = arith.addf %116, %121 : vector<32x24xf32>
    %c0_148 = arith.constant 0 : index
    %c1_149 = arith.constant 1 : index
    %c2_150 = arith.constant 2 : index
    %c0_151 = arith.constant 0 : index
    %123 = vector.load %arg21[%c0_148, %c1_149, %c2_150, %c0_151] : memref<2x6x6x24xf32, #tpu.memory_space<vmem>>, vector<2x4x4x24xf32>
    %124 = vector.shape_cast %123 : vector<2x4x4x24xf32> to vector<32x24xf32>
    %c5_152 = arith.constant 5 : index
    %c0_153 = arith.constant 0 : index
    %c0_154 = arith.constant 0 : index
    %125 = vector.load %arg9[%c5_152, %c0_153, %c0_154] : memref<9x24x24xf32, #tpu.memory_space<vmem>>, vector<1x24x24xf32>
    %126 = vector.shape_cast %125 : vector<1x24x24xf32> to vector<24x24xf32>
    %cst_155 = arith.constant dense<0.000000e+00> : vector<32x24xf32>
    %127 = tpu.matmul %124, %126, %cst_155 {dimension_numbers = #tpu.dot_dimension_numbers<[1], [0], [0], [1], [0, 0, 1, 1], [], []>} : vector<32x24xf32>, vector<24x24xf32>, vector<32x24xf32> -> vector<32x24xf32>
    %128 = arith.addf %122, %127 : vector<32x24xf32>
    %c0_156 = arith.constant 0 : index
    %c2_157 = arith.constant 2 : index
    %c0_158 = arith.constant 0 : index
    %c0_159 = arith.constant 0 : index
    %129 = vector.load %arg21[%c0_156, %c2_157, %c0_158, %c0_159] : memref<2x6x6x24xf32, #tpu.memory_space<vmem>>, vector<2x4x4x24xf32>
    %130 = vector.shape_cast %129 : vector<2x4x4x24xf32> to vector<32x24xf32>
    %c6_160 = arith.constant 6 : index
    %c0_161 = arith.constant 0 : index
    %c0_162 = arith.constant 0 : index
    %131 = vector.load %arg9[%c6_160, %c0_161, %c0_162] : memref<9x24x24xf32, #tpu.memory_space<vmem>>, vector<1x24x24xf32>
    %132 = vector.shape_cast %131 : vector<1x24x24xf32> to vector<24x24xf32>
    %cst_163 = arith.constant dense<0.000000e+00> : vector<32x24xf32>
    %133 = tpu.matmul %130, %132, %cst_163 {dimension_numbers = #tpu.dot_dimension_numbers<[1], [0], [0], [1], [0, 0, 1, 1], [], []>} : vector<32x24xf32>, vector<24x24xf32>, vector<32x24xf32> -> vector<32x24xf32>
    %134 = arith.addf %128, %133 : vector<32x24xf32>
    %c0_164 = arith.constant 0 : index
    %c2_165 = arith.constant 2 : index
    %c1_166 = arith.constant 1 : index
    %c0_167 = arith.constant 0 : index
    %135 = vector.load %arg21[%c0_164, %c2_165, %c1_166, %c0_167] : memref<2x6x6x24xf32, #tpu.memory_space<vmem>>, vector<2x4x4x24xf32>
    %136 = vector.shape_cast %135 : vector<2x4x4x24xf32> to vector<32x24xf32>
    %c7_168 = arith.constant 7 : index
    %c0_169 = arith.constant 0 : index
    %c0_170 = arith.constant 0 : index
    %137 = vector.load %arg9[%c7_168, %c0_169, %c0_170] : memref<9x24x24xf32, #tpu.memory_space<vmem>>, vector<1x24x24xf32>
    %138 = vector.shape_cast %137 : vector<1x24x24xf32> to vector<24x24xf32>
    %cst_171 = arith.constant dense<0.000000e+00> : vector<32x24xf32>
    %139 = tpu.matmul %136, %138, %cst_171 {dimension_numbers = #tpu.dot_dimension_numbers<[1], [0], [0], [1], [0, 0, 1, 1], [], []>} : vector<32x24xf32>, vector<24x24xf32>, vector<32x24xf32> -> vector<32x24xf32>
    %140 = arith.addf %134, %139 : vector<32x24xf32>
    %c0_172 = arith.constant 0 : index
    %c2_173 = arith.constant 2 : index
    %c2_174 = arith.constant 2 : index
    %c0_175 = arith.constant 0 : index
    %141 = vector.load %arg21[%c0_172, %c2_173, %c2_174, %c0_175] : memref<2x6x6x24xf32, #tpu.memory_space<vmem>>, vector<2x4x4x24xf32>
    %142 = vector.shape_cast %141 : vector<2x4x4x24xf32> to vector<32x24xf32>
    %c8_176 = arith.constant 8 : index
    %c0_177 = arith.constant 0 : index
    %c0_178 = arith.constant 0 : index
    %143 = vector.load %arg9[%c8_176, %c0_177, %c0_178] : memref<9x24x24xf32, #tpu.memory_space<vmem>>, vector<1x24x24xf32>
    %144 = vector.shape_cast %143 : vector<1x24x24xf32> to vector<24x24xf32>
    %cst_179 = arith.constant dense<0.000000e+00> : vector<32x24xf32>
    %145 = tpu.matmul %142, %144, %cst_179 {dimension_numbers = #tpu.dot_dimension_numbers<[1], [0], [0], [1], [0, 0, 1, 1], [], []>} : vector<32x24xf32>, vector<24x24xf32>, vector<32x24xf32> -> vector<32x24xf32>
    %146 = arith.addf %140, %145 : vector<32x24xf32>
    %c0_180 = arith.constant 0 : index
    %c0_181 = arith.constant 0 : index
    %147 = vector.load %arg10[%c0_180, %c0_181] : memref<1x24xf32, #tpu.memory_space<vmem>>, vector<1x24xf32>
    %148 = vector.broadcast %147 : vector<1x24xf32> to vector<32x24xf32>
    %149 = arith.mulf %146, %148 : vector<32x24xf32>
    %c0_182 = arith.constant 0 : index
    %c0_183 = arith.constant 0 : index
    %150 = vector.load %arg11[%c0_182, %c0_183] : memref<1x24xf32, #tpu.memory_space<vmem>>, vector<1x24xf32>
    %151 = vector.broadcast %150 : vector<1x24xf32> to vector<32x24xf32>
    %152 = arith.addf %149, %151 : vector<32x24xf32>
    %cst_184 = arith.constant 0.000000e+00 : f32
    %153 = vector.broadcast %cst_184 : f32 to vector<32x24xf32>
    %154 = arith.maximumf %152, %153 : vector<32x24xf32>
    %c0_185 = arith.constant 0 : index
    %c0_186 = arith.constant 0 : index
    %155 = vector.load %arg12[%c0_185, %c0_186] : memref<8x32xf32, #tpu.memory_space<vmem>>, vector<8x32xf32>
    %cst_187 = arith.constant dense<0.000000e+00> : vector<8x24xf32>
    %156 = tpu.matmul %155, %154, %cst_187 {dimension_numbers = #tpu.dot_dimension_numbers<[1], [0], [0], [1], [0, 0, 1, 1], [], []>} : vector<8x32xf32>, vector<32x24xf32>, vector<8x24xf32> -> vector<8x24xf32>
    %cst_188 = arith.constant 0.000000e+00 : f32
    %157 = vector.broadcast %cst_188 : f32 to vector<2x4x4x24xf32>
    %c0_189 = arith.constant 0 : index
    %c0_190 = arith.constant 0 : index
    %c0_191 = arith.constant 0 : index
    %c0_192 = arith.constant 0 : index
    %158 = vector.load %arg22[%c0_189, %c0_190, %c0_191, %c0_192] : memref<2x4x4x24xf32, #tpu.memory_space<vmem>>, vector<2x4x4x24xf32>
    tpu.vector_store %arg22[%c0_189, %c0_190, %c0_191, %c0_192], %157 {strides = array<i32>} : memref<2x4x4x24xf32, #tpu.memory_space<vmem>>, vector<2x4x4x24xf32>,
    %159 = vector.shape_cast %156 : vector<8x24xf32> to vector<2x2x2x24xf32>
    %c0_193 = arith.constant 0 : index
    %c1_194 = arith.constant 1 : index
    %c1_195 = arith.constant 1 : index
    %c0_196 = arith.constant 0 : index
    %160 = vector.load %arg22[%c0_193, %c1_194, %c1_195, %c0_196] : memref<2x4x4x24xf32, #tpu.memory_space<vmem>>, vector<2x2x2x24xf32>
    tpu.vector_store %arg22[%c0_193, %c1_194, %c1_195, %c0_196], %159 {strides = array<i32>} : memref<2x4x4x24xf32, #tpu.memory_space<vmem>>, vector<2x2x2x24xf32>,
    %c0_197 = arith.constant 0 : index
    %c0_198 = arith.constant 0 : index
    %c0_199 = arith.constant 0 : index
    %c0_200 = arith.constant 0 : index
    %161 = vector.load %arg22[%c0_197, %c0_198, %c0_199, %c0_200] : memref<2x4x4x24xf32, #tpu.memory_space<vmem>>, vector<2x2x2x24xf32>
    %162 = vector.shape_cast %161 : vector<2x2x2x24xf32> to vector<8x24xf32>
    %c0_201 = arith.constant 0 : index
    %c0_202 = arith.constant 0 : index
    %c0_203 = arith.constant 0 : index
    %163 = vector.load %arg13[%c0_201, %c0_202, %c0_203] : memref<9x24x24xf32, #tpu.memory_space<vmem>>, vector<1x24x24xf32>
    %164 = vector.shape_cast %163 : vector<1x24x24xf32> to vector<24x24xf32>
    %cst_204 = arith.constant dense<0.000000e+00> : vector<8x24xf32>
    %165 = tpu.matmul %162, %164, %cst_204 {dimension_numbers = #tpu.dot_dimension_numbers<[1], [0], [0], [1], [0, 0, 1, 1], [], []>} : vector<8x24xf32>, vector<24x24xf32>, vector<8x24xf32> -> vector<8x24xf32>
    %c0_205 = arith.constant 0 : index
    %c0_206 = arith.constant 0 : index
    %c1_207 = arith.constant 1 : index
    %c0_208 = arith.constant 0 : index
    %166 = vector.load %arg22[%c0_205, %c0_206, %c1_207, %c0_208] : memref<2x4x4x24xf32, #tpu.memory_space<vmem>>, vector<2x2x2x24xf32>
    %167 = vector.shape_cast %166 : vector<2x2x2x24xf32> to vector<8x24xf32>
    %c1_209 = arith.constant 1 : index
    %c0_210 = arith.constant 0 : index
    %c0_211 = arith.constant 0 : index
    %168 = vector.load %arg13[%c1_209, %c0_210, %c0_211] : memref<9x24x24xf32, #tpu.memory_space<vmem>>, vector<1x24x24xf32>
    %169 = vector.shape_cast %168 : vector<1x24x24xf32> to vector<24x24xf32>
    %cst_212 = arith.constant dense<0.000000e+00> : vector<8x24xf32>
    %170 = tpu.matmul %167, %169, %cst_212 {dimension_numbers = #tpu.dot_dimension_numbers<[1], [0], [0], [1], [0, 0, 1, 1], [], []>} : vector<8x24xf32>, vector<24x24xf32>, vector<8x24xf32> -> vector<8x24xf32>
    %171 = arith.addf %165, %170 : vector<8x24xf32>
    %c0_213 = arith.constant 0 : index
    %c0_214 = arith.constant 0 : index
    %c2_215 = arith.constant 2 : index
    %c0_216 = arith.constant 0 : index
    %172 = vector.load %arg22[%c0_213, %c0_214, %c2_215, %c0_216] : memref<2x4x4x24xf32, #tpu.memory_space<vmem>>, vector<2x2x2x24xf32>
    %173 = vector.shape_cast %172 : vector<2x2x2x24xf32> to vector<8x24xf32>
    %c2_217 = arith.constant 2 : index
    %c0_218 = arith.constant 0 : index
    %c0_219 = arith.constant 0 : index
    %174 = vector.load %arg13[%c2_217, %c0_218, %c0_219] : memref<9x24x24xf32, #tpu.memory_space<vmem>>, vector<1x24x24xf32>
    %175 = vector.shape_cast %174 : vector<1x24x24xf32> to vector<24x24xf32>
    %cst_220 = arith.constant dense<0.000000e+00> : vector<8x24xf32>
    %176 = tpu.matmul %173, %175, %cst_220 {dimension_numbers = #tpu.dot_dimension_numbers<[1], [0], [0], [1], [0, 0, 1, 1], [], []>} : vector<8x24xf32>, vector<24x24xf32>, vector<8x24xf32> -> vector<8x24xf32>
    %177 = arith.addf %171, %176 : vector<8x24xf32>
    %c0_221 = arith.constant 0 : index
    %c1_222 = arith.constant 1 : index
    %c0_223 = arith.constant 0 : index
    %c0_224 = arith.constant 0 : index
    %178 = vector.load %arg22[%c0_221, %c1_222, %c0_223, %c0_224] : memref<2x4x4x24xf32, #tpu.memory_space<vmem>>, vector<2x2x2x24xf32>
    %179 = vector.shape_cast %178 : vector<2x2x2x24xf32> to vector<8x24xf32>
    %c3_225 = arith.constant 3 : index
    %c0_226 = arith.constant 0 : index
    %c0_227 = arith.constant 0 : index
    %180 = vector.load %arg13[%c3_225, %c0_226, %c0_227] : memref<9x24x24xf32, #tpu.memory_space<vmem>>, vector<1x24x24xf32>
    %181 = vector.shape_cast %180 : vector<1x24x24xf32> to vector<24x24xf32>
    %cst_228 = arith.constant dense<0.000000e+00> : vector<8x24xf32>
    %182 = tpu.matmul %179, %181, %cst_228 {dimension_numbers = #tpu.dot_dimension_numbers<[1], [0], [0], [1], [0, 0, 1, 1], [], []>} : vector<8x24xf32>, vector<24x24xf32>, vector<8x24xf32> -> vector<8x24xf32>
    %183 = arith.addf %177, %182 : vector<8x24xf32>
    %c0_229 = arith.constant 0 : index
    %c1_230 = arith.constant 1 : index
    %c1_231 = arith.constant 1 : index
    %c0_232 = arith.constant 0 : index
    %184 = vector.load %arg22[%c0_229, %c1_230, %c1_231, %c0_232] : memref<2x4x4x24xf32, #tpu.memory_space<vmem>>, vector<2x2x2x24xf32>
    %185 = vector.shape_cast %184 : vector<2x2x2x24xf32> to vector<8x24xf32>
    %c4_233 = arith.constant 4 : index
    %c0_234 = arith.constant 0 : index
    %c0_235 = arith.constant 0 : index
    %186 = vector.load %arg13[%c4_233, %c0_234, %c0_235] : memref<9x24x24xf32, #tpu.memory_space<vmem>>, vector<1x24x24xf32>
    %187 = vector.shape_cast %186 : vector<1x24x24xf32> to vector<24x24xf32>
    %cst_236 = arith.constant dense<0.000000e+00> : vector<8x24xf32>
    %188 = tpu.matmul %185, %187, %cst_236 {dimension_numbers = #tpu.dot_dimension_numbers<[1], [0], [0], [1], [0, 0, 1, 1], [], []>} : vector<8x24xf32>, vector<24x24xf32>, vector<8x24xf32> -> vector<8x24xf32>
    %189 = arith.addf %183, %188 : vector<8x24xf32>
    %c0_237 = arith.constant 0 : index
    %c1_238 = arith.constant 1 : index
    %c2_239 = arith.constant 2 : index
    %c0_240 = arith.constant 0 : index
    %190 = vector.load %arg22[%c0_237, %c1_238, %c2_239, %c0_240] : memref<2x4x4x24xf32, #tpu.memory_space<vmem>>, vector<2x2x2x24xf32>
    %191 = vector.shape_cast %190 : vector<2x2x2x24xf32> to vector<8x24xf32>
    %c5_241 = arith.constant 5 : index
    %c0_242 = arith.constant 0 : index
    %c0_243 = arith.constant 0 : index
    %192 = vector.load %arg13[%c5_241, %c0_242, %c0_243] : memref<9x24x24xf32, #tpu.memory_space<vmem>>, vector<1x24x24xf32>
    %193 = vector.shape_cast %192 : vector<1x24x24xf32> to vector<24x24xf32>
    %cst_244 = arith.constant dense<0.000000e+00> : vector<8x24xf32>
    %194 = tpu.matmul %191, %193, %cst_244 {dimension_numbers = #tpu.dot_dimension_numbers<[1], [0], [0], [1], [0, 0, 1, 1], [], []>} : vector<8x24xf32>, vector<24x24xf32>, vector<8x24xf32> -> vector<8x24xf32>
    %195 = arith.addf %189, %194 : vector<8x24xf32>
    %c0_245 = arith.constant 0 : index
    %c2_246 = arith.constant 2 : index
    %c0_247 = arith.constant 0 : index
    %c0_248 = arith.constant 0 : index
    %196 = vector.load %arg22[%c0_245, %c2_246, %c0_247, %c0_248] : memref<2x4x4x24xf32, #tpu.memory_space<vmem>>, vector<2x2x2x24xf32>
    %197 = vector.shape_cast %196 : vector<2x2x2x24xf32> to vector<8x24xf32>
    %c6_249 = arith.constant 6 : index
    %c0_250 = arith.constant 0 : index
    %c0_251 = arith.constant 0 : index
    %198 = vector.load %arg13[%c6_249, %c0_250, %c0_251] : memref<9x24x24xf32, #tpu.memory_space<vmem>>, vector<1x24x24xf32>
    %199 = vector.shape_cast %198 : vector<1x24x24xf32> to vector<24x24xf32>
    %cst_252 = arith.constant dense<0.000000e+00> : vector<8x24xf32>
    %200 = tpu.matmul %197, %199, %cst_252 {dimension_numbers = #tpu.dot_dimension_numbers<[1], [0], [0], [1], [0, 0, 1, 1], [], []>} : vector<8x24xf32>, vector<24x24xf32>, vector<8x24xf32> -> vector<8x24xf32>
    %201 = arith.addf %195, %200 : vector<8x24xf32>
    %c0_253 = arith.constant 0 : index
    %c2_254 = arith.constant 2 : index
    %c1_255 = arith.constant 1 : index
    %c0_256 = arith.constant 0 : index
    %202 = vector.load %arg22[%c0_253, %c2_254, %c1_255, %c0_256] : memref<2x4x4x24xf32, #tpu.memory_space<vmem>>, vector<2x2x2x24xf32>
    %203 = vector.shape_cast %202 : vector<2x2x2x24xf32> to vector<8x24xf32>
    %c7_257 = arith.constant 7 : index
    %c0_258 = arith.constant 0 : index
    %c0_259 = arith.constant 0 : index
    %204 = vector.load %arg13[%c7_257, %c0_258, %c0_259] : memref<9x24x24xf32, #tpu.memory_space<vmem>>, vector<1x24x24xf32>
    %205 = vector.shape_cast %204 : vector<1x24x24xf32> to vector<24x24xf32>
    %cst_260 = arith.constant dense<0.000000e+00> : vector<8x24xf32>
    %206 = tpu.matmul %203, %205, %cst_260 {dimension_numbers = #tpu.dot_dimension_numbers<[1], [0], [0], [1], [0, 0, 1, 1], [], []>} : vector<8x24xf32>, vector<24x24xf32>, vector<8x24xf32> -> vector<8x24xf32>
    %207 = arith.addf %201, %206 : vector<8x24xf32>
    %c0_261 = arith.constant 0 : index
    %c2_262 = arith.constant 2 : index
    %c2_263 = arith.constant 2 : index
    %c0_264 = arith.constant 0 : index
    %208 = vector.load %arg22[%c0_261, %c2_262, %c2_263, %c0_264] : memref<2x4x4x24xf32, #tpu.memory_space<vmem>>, vector<2x2x2x24xf32>
    %209 = vector.shape_cast %208 : vector<2x2x2x24xf32> to vector<8x24xf32>
    %c8_265 = arith.constant 8 : index
    %c0_266 = arith.constant 0 : index
    %c0_267 = arith.constant 0 : index
    %210 = vector.load %arg13[%c8_265, %c0_266, %c0_267] : memref<9x24x24xf32, #tpu.memory_space<vmem>>, vector<1x24x24xf32>
    %211 = vector.shape_cast %210 : vector<1x24x24xf32> to vector<24x24xf32>
    %cst_268 = arith.constant dense<0.000000e+00> : vector<8x24xf32>
    %212 = tpu.matmul %209, %211, %cst_268 {dimension_numbers = #tpu.dot_dimension_numbers<[1], [0], [0], [1], [0, 0, 1, 1], [], []>} : vector<8x24xf32>, vector<24x24xf32>, vector<8x24xf32> -> vector<8x24xf32>
    %213 = arith.addf %207, %212 : vector<8x24xf32>
    %c0_269 = arith.constant 0 : index
    %c0_270 = arith.constant 0 : index
    %214 = vector.load %arg14[%c0_269, %c0_270] : memref<1x24xf32, #tpu.memory_space<vmem>>, vector<1x24xf32>
    %215 = vector.broadcast %214 : vector<1x24xf32> to vector<8x24xf32>
    %216 = arith.mulf %213, %215 : vector<8x24xf32>
    %c0_271 = arith.constant 0 : index
    %c0_272 = arith.constant 0 : index
    %217 = vector.load %arg15[%c0_271, %c0_272] : memref<1x24xf32, #tpu.memory_space<vmem>>, vector<1x24xf32>
    %218 = vector.broadcast %217 : vector<1x24xf32> to vector<8x24xf32>
    %219 = arith.addf %216, %218 : vector<8x24xf32>
    %cst_273 = arith.constant 0.000000e+00 : f32
    %220 = vector.broadcast %cst_273 : f32 to vector<8x24xf32>
    %221 = arith.maximumf %219, %220 : vector<8x24xf32>
    %c0_274 = arith.constant 0 : index
    %c0_275 = arith.constant 0 : index
    %222 = vector.load %arg16[%c0_274, %c0_275] : memref<2x8xf32, #tpu.memory_space<vmem>>, vector<2x8xf32>
    %cst_276 = arith.constant dense<0.000000e+00> : vector<2x24xf32>
    %223 = tpu.matmul %222, %221, %cst_276 {dimension_numbers = #tpu.dot_dimension_numbers<[1], [0], [0], [1], [0, 0, 1, 1], [], []>} : vector<2x8xf32>, vector<8x24xf32>, vector<2x24xf32> -> vector<2x24xf32>
    %c0_277 = arith.constant 0 : index
    %c0_278 = arith.constant 0 : index
    %224 = vector.load %arg17[%c0_277, %c0_278] : memref<24x10xf32, #tpu.memory_space<vmem>>, vector<24x10xf32>
    %cst_279 = arith.constant dense<0.000000e+00> : vector<2x10xf32>
    %225 = tpu.matmul %223, %224, %cst_279 {dimension_numbers = #tpu.dot_dimension_numbers<[1], [0], [0], [1], [0, 0, 1, 1], [], []>} : vector<2x24xf32>, vector<24x10xf32>, vector<2x10xf32> -> vector<2x10xf32>
    %c0_280 = arith.constant 0 : index
    %c0_281 = arith.constant 0 : index
    %226 = vector.load %arg18[%c0_280, %c0_281] : memref<1x10xf32, #tpu.memory_space<vmem>>, vector<1x10xf32>
    %227 = vector.broadcast %226 : vector<1x10xf32> to vector<2x10xf32>
    %228 = arith.addf %225, %227 : vector<2x10xf32>
    %c0_282 = arith.constant 0 : index
    %c0_283 = arith.constant 0 : index
    %229 = vector.load %arg19[%c0_282, %c0_283] : memref<2x10xf32, #tpu.memory_space<vmem>>, vector<2x10xf32>
    tpu.vector_store %arg19[%c0_282, %c0_283], %228 {strides = array<i32>} : memref<2x10xf32, #tpu.memory_space<vmem>>, vector<2x10xf32>,
    return
  }
}

</mosaic_0001>

<bundles_post_ra>
// kernel: model_forward.1
= control target key start
LH: loop header
LB: loop body
LE: loop exit
PB: predicated region body
PF: predicated region fallthrough
CT: control target
= control target key end

     0   :  { %s15359_s0 = inlined_call_operand.vmem [shape: f32[2048,27], index: 0, kind: input, shape index: {}]   ;;  %s15360_s1 = inlined_call_operand.vmem [shape: f32[27,24], index: 1, kind: input, shape index: {}]   ;;  %s15361_s2 = inlined_call_operand.vmem [shape: f32[1,24], index: 2, kind: input, shape index: {}]   ;;  %s15362_s3 = inlined_call_operand.vmem [shape: f32[1,24], index: 3, kind: input, shape index: {}]   ;;  %s15363_s4 = inlined_call_operand.vmem [shape: f32[64,1024], index: 4, kind: input, shape index: {}]   ;;  %s15364_s5 = inlined_call_operand.vmem [shape: f32[9,24,24], index: 5, kind: input, shape index: {}]   ;;  %s15365_s6 = inlined_call_operand.vmem [shape: f32[1,24], index: 6, kind: input, shape index: {}]   ;;  %s15366_s7 = inlined_call_operand.vmem [shape: f32[1,24], index: 7, kind: input, shape index: {}]   ;;  %s15367_s8 = inlined_call_operand.vmem [shape: f32[32,128], index: 8, kind: input, shape index: {}]   ;;  %s15368_s9 = inlined_call_operand.vmem [shape: f32[9,24,24], index: 9, kind: input, shape index: {}]   ;;  %s15369_s10 = inlined_call_operand.vmem [shape: f32[1,24], index: 10, kind: input, shape index: {}]   ;;  %s15370_s11 = inlined_call_operand.vmem [shape: f32[1,24], index: 11, kind: input, shape index: {}]   ;;  %s15371_s12 = inlined_call_operand.vmem [shape: f32[8,32], index: 12, kind: input, shape index: {}]   ;;  %s15372_s13 = inlined_call_operand.vmem [shape: f32[9,24,24], index: 13, kind: input, shape index: {}]   ;;  %s15373_s14 = inlined_call_operand.vmem [shape: f32[1,24], index: 14, kind: input, shape index: {}]   ;;  %s15374_s15 = inlined_call_operand.vmem [shape: f32[1,24], index: 15, kind: input, shape index: {}]   ;;  %s15375_s16 = inlined_call_operand.vmem [shape: f32[2,8], index: 16, kind: input, shape index: {}]   ;;  %s15376_s17 = inlined_call_operand.vmem [shape: f32[24,10], index: 17, kind: input, shape index: {}]   ;;  %s15377_s18 = inlined_call_operand.vmem [shape: f32[1,10], index: 18, kind: input, shape index: {}]   ;;  %s15378_s19 = inlined_call_operand.hbm [shape: f32[2,10], index: 19, kind: output, shape index: {}]  }
   0x1   :  { %15408 = sst [smem:[#allocation30_spill]] %s15359_s0 }
   0x2   :  { %15409 = sst [smem:[#allocation31_spill]] %s15360_s1 }
   0x3   :  { %15410 = sst [smem:[#allocation32_spill]] %s15361_s2 }
   0x4   :  { %15411 = sst [smem:[#allocation33_spill]] %s15362_s3 }
   0x5   :  { %s15412_s20 = sld [smem:[#allocation31_spill]]  ;;  %vm1092_vm0 = vcmask 1042432   ;;  %vm323_vm1 = vcmask 220160  }
   0x6   :  { %s15413_s23 = sld [smem:[#allocation30_spill]] }
   0xb   :  { %v322_v0 = vld [vmem:[%s15412_s20 + $0x18] sm:$0x7]  ;;  %v321_v1 = vld [vmem:[%s15412_s20 + $0x10] sm:$0xff]  ;;  %v320_v3 = vld [vmem:[%s15412_s20 + $0x8] sm:$0xff] }
   0xc   :  { %10329 = vmatprep.subr.msk.mxu0 %vm1092_vm0, %v322_v0  ;;  %v63_v2 = vld [vmem:[%s15413_s23] sm:$0xff]  ;;  %v64_v5 = vld [vmem:[%s15413_s23 + $0x8] sm:$0xff]  ;;  %v65_v6 = vld [vmem:[%s15413_s23 + $0x10] sm:$0xff] }
   0xd   :  { %10330 = vmatpush3.msk.msra.mxu0 %vm1092_vm0, %v322_v0  ;;  %10337 = vmatprep.mubr.msk.f32.mxu0 %vm323_vm1, %v63_v2  ;;  %v319_v4 = vld [vmem:[%s15412_s20] sm:$0xff]  ;;  %v66_v7 = vld [vmem:[%s15413_s23 + $0x18] sm:$0xff]  ;;  %v68_v9 = vld [vmem:[%s15413_s23 + $0x28] sm:$0xff] }
   0xe   :  { %10331 = vmatprep.subr.mxu0 %v321_v1  ;;  %v67_v8 = vld [vmem:[%s15413_s23 + $0x20] sm:$0xff]  ;;  %v69_v10 = vld [vmem:[%s15413_s23 + $0x30] sm:$0xff]  ;;  %v70_v11 = vld [vmem:[%s15413_s23 + $0x38] sm:$0xff] }
   0xf   :  { %10332 = vmatpush3.msra.mxu0 %v321_v1  ;;  %v71_v12 = vld [vmem:[%s15413_s23 + $0x40] sm:$0xff]  ;;  %v72_v13 = vld [vmem:[%s15413_s23 + $0x48] sm:$0xff]  ;;  %v73_v14 = vld [vmem:[%s15413_s23 + $0x50] sm:$0xff] }
  0x10   :  { %10333 = vmatprep.subr.mxu0 %v320_v3  ;;  %v74_v15 = vld [vmem:[%s15413_s23 + $0x58] sm:$0xff] }
  0x11   :  { %10334 = vmatpush3.msra.mxu0 %v320_v3 }
  0x12   :  { %10335 = vmatprep.subr.mxu0 %v319_v4 }
  0x13   :  { %10336 = vmatpush3.msra.mxu0 %v319_v4 }
  0x14   :  { %10338 = vmatmul.mubr.msk.f32.vlgmr.msra.gmra.mxu0 %vm323_vm1, %v64_v5 }
  0x15   :  { %10340 = vmatprep.mubr.msk.f32.mxu0 %vm323_vm1, %v65_v6 }
  0x18   :  { %10341 = vmatmul.mubr.msk.f32.gmra.mxu0 %vm323_vm1, %v66_v7 }
  0x19   :  { %10343 = vmatprep.mubr.msk.f32.mxu0 %vm323_vm1, %v67_v8 }
  0x1c   :  { %10344 = vmatmul.mubr.msk.f32.gmra.mxu0 %vm323_vm1, %v68_v9 }
  0x1d   :  { %10346 = vmatprep.mubr.msk.f32.mxu0 %vm323_vm1, %v69_v10 }
  0x20   :  { %10347 = vmatmul.mubr.msk.f32.gmra.mxu0 %vm323_vm1, %v70_v11 }
  0x21   :  { %10349 = vmatprep.mubr.msk.f32.mxu0 %vm323_vm1, %v71_v12 }
  0x24   :  { %10350 = vmatmul.mubr.msk.f32.gmra.mxu0 %vm323_vm1, %v72_v13 }
  0x25   :  { %10352 = vmatprep.mubr.msk.f32.mxu0 %vm323_vm1, %v73_v14 }
  0x26   :  { %24 = vsyncpa [#allocation6], 0  ;;  %v75_v16 = vld [vmem:[%s15413_s23 + $0x60] sm:$0xff]  ;;  %v76_v17 = vld [vmem:[%s15413_s23 + $0x68] sm:$0xff]  ;;  %s15414_s30 = sld [smem:[#allocation32_spill]]  ;;  %vm3223_vm2 = vcmask 195584  }
  0x27   :  { %v77_v18 = vld [vmem:[%s15413_s23 + $0x70] sm:$0xff]  ;;  %v78_v19 = vld [vmem:[%s15413_s23 + $0x78] sm:$0xff]  ;;  %v79_v20 = vld [vmem:[%s15413_s23 + $0x80] sm:$0xff]  ;;  %s15415_s25 = sld [smem:[#allocation33_spill]]  ;;  %vm3225_vm3 = vcmask 189440   ;;  %vm6431_vm4 = vcmask 193536  }
  0x28   :  { %10353 = vmatmul.mubr.msk.f32.gmra.mxu0 %vm323_vm1, %v74_v15  ;;  %v80_v21 = vld [vmem:[%s15413_s23 + $0x88] sm:$0xff]  ;;  %v81_v22 = vld [vmem:[%s15413_s23 + $0x90] sm:$0xff]  ;;  %v82_v23 = vld [vmem:[%s15413_s23 + $0x98] sm:$0xff]  ;;  %vm6457_vm5 = vcmask 191488   ;;  %vm11350_vm6 = vmmov 0   ;;  %vm7574_vm7 = vcmask 261120  }
  0x29   :  { %10355 = vmatprep.mubr.msk.f32.mxu0 %vm323_vm1, %v75_v16  ;;  %v83_v24 = vld [vmem:[%s15413_s23 + $0xa0] sm:$0xff]  ;;  %v84_v25 = vld [vmem:[%s15413_s23 + $0xa8] sm:$0xff]  ;;  %v85_v26 = vld [vmem:[%s15413_s23 + $0xb0] sm:$0xff]  ;;  %vm8617_vm8 = vcmask 64512   ;;  %s11352_s0 = smov [#allocation5]   ;;  %vm8774_vm9 = vcmask 74752  }
  0x2a   :  { %v86_v27 = vld [vmem:[%s15413_s23 + $0xb8] sm:$0xff]  ;;  %v87_v28 = vld [vmem:[%s15413_s23 + $0xc0] sm:$0xff]  ;;  %v88_v29 = vld [vmem:[%s15413_s23 + $0xc8] sm:$0xff] }
  0x2b   :  { %v89_v30 = vld [vmem:[%s15413_s23 + $0xd0] sm:$0xff]  ;;  %v90_v31 = vld [vmem:[%s15413_s23 + $0xd8] sm:$0xff]  ;;  %v91_v32 = vld [vmem:[%s15413_s23 + $0xe0] sm:$0xff] }
  0x2c   :  { %10356 = vmatmul.mubr.msk.f32.gmra.mxu0 %vm323_vm1, %v76_v17  ;;  %v92_v33 = vld [vmem:[%s15413_s23 + $0xe8] sm:$0xff]  ;;  %v93_v34 = vld [vmem:[%s15413_s23 + $0xf0] sm:$0xff]  ;;  %v94_v35 = vld [vmem:[%s15413_s23 + $0xf8] sm:$0xff] }
  0x2d   :  { %10358 = vmatprep.mubr.msk.f32.mxu0 %vm323_vm1, %v77_v18  ;;  %v95_v36 = vld [vmem:[%s15413_s23 + $0x100] sm:$0xff]  ;;  %v96_v37 = vld [vmem:[%s15413_s23 + $0x108] sm:$0xff]  ;;  %v97_v38 = vld [vmem:[%s15413_s23 + $0x110] sm:$0xff] }
  0x2e   :  { %v98_v39 = vld [vmem:[%s15413_s23 + $0x118] sm:$0xff]  ;;  %v99_v40 = vld [vmem:[%s15413_s23 + $0x120] sm:$0xff]  ;;  %v100_v41 = vld [vmem:[%s15413_s23 + $0x128] sm:$0xff] }
  0x2f   :  { %v101_v42 = vld [vmem:[%s15413_s23 + $0x130] sm:$0xff]  ;;  %v102_v43 = vld [vmem:[%s15413_s23 + $0x138] sm:$0xff]  ;;  %v103_v44 = vld [vmem:[%s15413_s23 + $0x140] sm:$0xff] }
  0x30   :  { %10359 = vmatmul.mubr.msk.f32.gmra.mxu0 %vm323_vm1, %v78_v19  ;;  %v104_v45 = vld [vmem:[%s15413_s23 + $0x148] sm:$0xff]  ;;  %v105_v46 = vld [vmem:[%s15413_s23 + $0x150] sm:$0xff]  ;;  %v106_v47 = vld [vmem:[%s15413_s23 + $0x158] sm:$0xff] }
  0x31   :  { %10361 = vmatprep.mubr.msk.f32.mxu0 %vm323_vm1, %v79_v20  ;;  %v107_v48 = vld [vmem:[%s15413_s23 + $0x160] sm:$0xff]  ;;  %v108_v49 = vld [vmem:[%s15413_s23 + $0x168] sm:$0xff]  ;;  %v109_v50 = vld [vmem:[%s15413_s23 + $0x170] sm:$0xff] }
  0x32   :  { %v110_v51 = vld [vmem:[%s15413_s23 + $0x178] sm:$0xff]  ;;  %v111_v52 = vld [vmem:[%s15413_s23 + $0x180] sm:$0xff]  ;;  %v112_v53 = vld [vmem:[%s15413_s23 + $0x188] sm:$0xff] }
  0x33   :  { %v113_v54 = vld [vmem:[%s15413_s23 + $0x190] sm:$0xff]  ;;  %v114_v55 = vld [vmem:[%s15413_s23 + $0x198] sm:$0xff]  ;;  %v115_v56 = vld [vmem:[%s15413_s23 + $0x1a0] sm:$0xff] }
  0x34   :  { %10362 = vmatmul.mubr.msk.f32.gmra.mxu0 %vm323_vm1, %v80_v21  ;;  %v116_v57 = vld [vmem:[%s15413_s23 + $0x1a8] sm:$0xff]  ;;  %v117_v58 = vld [vmem:[%s15413_s23 + $0x1b0] sm:$0xff]  ;;  %v118_v59 = vld [vmem:[%s15413_s23 + $0x1b8] sm:$0xff] }
  0x35   :  { %10364 = vmatprep.mubr.msk.f32.mxu0 %vm323_vm1, %v81_v22  ;;  %v119_v60 = vld [vmem:[%s15413_s23 + $0x1c0] sm:$0xff]  ;;  %v120_v61 = vld [vmem:[%s15413_s23 + $0x1c8] sm:$0xff]  ;;  %v121_v62 = vld [vmem:[%s15413_s23 + $0x1d0] sm:$0xff] }
  0x36   :  { %v122_v63 = vld [vmem:[%s15413_s23 + $0x1d8] sm:$0xff]  ;;  %v123_v0 = vld [vmem:[%s15413_s23 + $0x1e0] sm:$0xff]  ;;  %v124_v1 = vld [vmem:[%s15413_s23 + $0x1e8] sm:$0xff] }
  0x37   :  { %v125_v2 = vld [vmem:[%s15413_s23 + $0x1f0] sm:$0xff]  ;;  %v126_v3 = vld [vmem:[%s15413_s23 + $0x1f8] sm:$0xff]  ;;  %v127_v4 = vld [vmem:[%s15413_s23 + $0x200] sm:$0xff] }
  0x38   :  { %10365 = vmatmul.mubr.msk.f32.gmra.mxu0 %vm323_vm1, %v82_v23  ;;  %v128_v5 = vld [vmem:[%s15413_s23 + $0x208] sm:$0xff]  ;;  %v129_v6 = vld [vmem:[%s15413_s23 + $0x210] sm:$0xff]  ;;  %v130_v7 = vld [vmem:[%s15413_s23 + $0x218] sm:$0xff] }
  0x39   :  { %10367 = vmatprep.mubr.msk.f32.mxu0 %vm323_vm1, %v83_v24  ;;  %v131_v8 = vld [vmem:[%s15413_s23 + $0x220] sm:$0xff]  ;;  %v132_v9 = vld [vmem:[%s15413_s23 + $0x228] sm:$0xff]  ;;  %v133_v10 = vld [vmem:[%s15413_s23 + $0x230] sm:$0xff] }
  0x3a   :  { %v134_v11 = vld [vmem:[%s15413_s23 + $0x238] sm:$0xff]  ;;  %v135_v12 = vld [vmem:[%s15413_s23 + $0x240] sm:$0xff]  ;;  %v136_v13 = vld [vmem:[%s15413_s23 + $0x248] sm:$0xff] }
  0x3b   :  { %v137_v14 = vld [vmem:[%s15413_s23 + $0x250] sm:$0xff]  ;;  %v138_v15 = vld [vmem:[%s15413_s23 + $0x258] sm:$0xff]  ;;  %v139_v16 = vld [vmem:[%s15413_s23 + $0x260] sm:$0xff] }
  0x3c   :  { %10368 = vmatmul.mubr.msk.f32.gmra.mxu0 %vm323_vm1, %v84_v25  ;;  %v140_v17 = vld [vmem:[%s15413_s23 + $0x268] sm:$0xff]  ;;  %v141_v18 = vld [vmem:[%s15413_s23 + $0x270] sm:$0xff]  ;;  %v142_v19 = vld [vmem:[%s15413_s23 + $0x278] sm:$0xff] }
  0x3d   :  { %10370 = vmatprep.mubr.msk.f32.mxu0 %vm323_vm1, %v85_v26  ;;  %v143_v20 = vld [vmem:[%s15413_s23 + $0x280] sm:$0xff]  ;;  %v144_v21 = vld [vmem:[%s15413_s23 + $0x288] sm:$0xff]  ;;  %v145_v22 = vld [vmem:[%s15413_s23 + $0x290] sm:$0xff] }
  0x3e   :  { %v146_v23 = vld [vmem:[%s15413_s23 + $0x298] sm:$0xff]  ;;  %v147_v24 = vld [vmem:[%s15413_s23 + $0x2a0] sm:$0xff]  ;;  %v148_v25 = vld [vmem:[%s15413_s23 + $0x2a8] sm:$0xff] }
  0x3f   :  { %v149_v26 = vld [vmem:[%s15413_s23 + $0x2b0] sm:$0xff] }
  0x40   :  { %10371 = vmatmul.mubr.msk.f32.gmra.mxu0 %vm323_vm1, %v86_v27  ;;  %v150_v27 = vld [vmem:[%s15413_s23 + $0x2b8] sm:$0xff] }
  0x41   :  { %10373 = vmatprep.mubr.msk.f32.mxu0 %vm323_vm1, %v87_v28  ;;  %v151_v28 = vld [vmem:[%s15413_s23 + $0x2c0] sm:$0xff] }
  0x44   :  { %10374 = vmatmul.mubr.msk.f32.gmra.mxu0 %vm323_vm1, %v88_v29  ;;  %v152_v29 = vld [vmem:[%s15413_s23 + $0x2c8] sm:$0xff] }
  0x45   :  { %10376 = vmatprep.mubr.msk.f32.mxu0 %vm323_vm1, %v89_v30  ;;  %v153_v30 = vld [vmem:[%s15413_s23 + $0x2d0] sm:$0xff] }
  0x48   :  { %10377 = vmatmul.mubr.msk.f32.gmra.mxu0 %vm323_vm1, %v90_v31  ;;  %v154_v31 = vld [vmem:[%s15413_s23 + $0x2d8] sm:$0xff] }
  0x49   :  { %10379 = vmatprep.mubr.msk.f32.mxu0 %vm323_vm1, %v91_v32  ;;  %v155_v32 = vld [vmem:[%s15413_s23 + $0x2e0] sm:$0xff] }
  0x4c   :  { %10380 = vmatmul.mubr.msk.f32.gmra.mxu0 %vm323_vm1, %v92_v33  ;;  %v156_v33 = vld [vmem:[%s15413_s23 + $0x2e8] sm:$0xff] }
  0x4d   :  { %10382 = vmatprep.mubr.msk.f32.mxu0 %vm323_vm1, %v93_v34  ;;  %v157_v34 = vld [vmem:[%s15413_s23 + $0x2f0] sm:$0xff] }
  0x50   :  { %10383 = vmatmul.mubr.msk.f32.gmra.mxu0 %vm323_vm1, %v94_v35  ;;  %v158_v35 = vld [vmem:[%s15413_s23 + $0x2f8] sm:$0xff] }
  0x51   :  { %10385 = vmatprep.mubr.msk.f32.mxu0 %vm323_vm1, %v95_v36  ;;  %v159_v36 = vld [vmem:[%s15413_s23 + $0x300] sm:$0xff] }
  0x54   :  { %10386 = vmatmul.mubr.msk.f32.gmra.mxu0 %vm323_vm1, %v96_v37  ;;  %v160_v37 = vld [vmem:[%s15413_s23 + $0x308] sm:$0xff] }
  0x55   :  { %10388 = vmatprep.mubr.msk.f32.mxu0 %vm323_vm1, %v97_v38  ;;  %v161_v38 = vld [vmem:[%s15413_s23 + $0x310] sm:$0xff] }
  0x58   :  { %10389 = vmatmul.mubr.msk.f32.gmra.mxu0 %vm323_vm1, %v98_v39 }
  0x59   :  { %10391 = vmatprep.mubr.msk.f32.mxu0 %vm323_vm1, %v99_v40  ;;  %v162_v40 = vld [vmem:[%s15413_s23 + $0x318] sm:$0xff] }
  0x5c   :  { %10392 = vmatmul.mubr.msk.f32.gmra.mxu0 %vm323_vm1, %v100_v41 }
  0x5d   :  { %10394 = vmatprep.mubr.msk.f32.mxu0 %vm323_vm1, %v101_v42  ;;  %v163_v42 = vld [vmem:[%s15413_s23 + $0x320] sm:$0xff] }
  0x60   :  { %10395 = vmatmul.mubr.msk.f32.gmra.mxu0 %vm323_vm1, %v102_v43  ;;  %v3266_v43 = vld [vmem:[%s15363_s4 + $0x8] sm:$0xff] }
  0x61   :  { %10397 = vmatprep.mubr.msk.f32.mxu0 %vm323_vm1, %v103_v44  ;;  %3393 = vmatprep.mubr.f32.mxu1 %v3266_v43 }
  0x64   :  { %10398 = vmatmul.mubr.msk.f32.gmra.mxu0 %vm323_vm1, %v104_v45  ;;  %v164_v45 = vld [vmem:[%s15413_s23 + $0x328] sm:$0xff] }
  0x65   :  { %10400 = vmatprep.mubr.msk.f32.mxu0 %vm323_vm1, %v105_v46 }
  0x68   :  { %10401 = vmatmul.mubr.msk.f32.gmra.mxu0 %vm323_vm1, %v106_v47  ;;  %v165_v47 = vld [vmem:[%s15413_s23 + $0x330] sm:$0xff] }
  0x69   :  { %10403 = vmatprep.mubr.msk.f32.mxu0 %vm323_vm1, %v107_v48 }
  0x6c   :  { %10404 = vmatmul.mubr.msk.f32.gmra.mxu0 %vm323_vm1, %v108_v49  ;;  %v166_v49 = vld [vmem:[%s15413_s23 + $0x338] sm:$0xff] }
  0x6d   :  { %10406 = vmatprep.mubr.msk.f32.mxu0 %vm323_vm1, %v109_v50 }
  0x70   :  { %10407 = vmatmul.mubr.msk.f32.gmra.mxu0 %vm323_vm1, %v110_v51  ;;  %v167_v51 = vld [vmem:[%s15413_s23 + $0x340] sm:$0xff] }
  0x71   :  { %10409 = vmatprep.mubr.msk.f32.mxu0 %vm323_vm1, %v111_v52 }
  0x74   :  { %10410 = vmatmul.mubr.msk.f32.gmra.mxu0 %vm323_vm1, %v112_v53  ;;  %v168_v53 = vld [vmem:[%s15413_s23 + $0x348] sm:$0xff] }
  0x75   :  { %10412 = vmatprep.mubr.msk.f32.mxu0 %vm323_vm1, %v113_v54 }
  0x78   :  { %10413 = vmatmul.mubr.msk.f32.gmra.mxu0 %vm323_vm1, %v114_v55  ;;  %v169_v55 = vld [vmem:[%s15413_s23 + $0x350] sm:$0xff] }
  0x79   :  { %10415 = vmatprep.mubr.msk.f32.mxu0 %vm323_vm1, %v115_v56 }
  0x7c   :  { %10416 = vmatmul.mubr.msk.f32.gmra.mxu0 %vm323_vm1, %v116_v57  ;;  %v170_v57 = vld [vmem:[%s15413_s23 + $0x358] sm:$0xff] }
  0x7d   :  { %10418 = vmatprep.mubr.msk.f32.mxu0 %vm323_vm1, %v117_v58 }
  0x80   :  { %10419 = vmatmul.mubr.msk.f32.gmra.mxu0 %vm323_vm1, %v118_v59  ;;  %v171_v59 = vld [vmem:[%s15413_s23 + $0x360] sm:$0xff] }
  0x81   :  { %10421 = vmatprep.mubr.msk.f32.mxu0 %vm323_vm1, %v119_v60 }
  0x84   :  { %10422 = vmatmul.mubr.msk.f32.gmra.mxu0 %vm323_vm1, %v120_v61  ;;  %v172_v61 = vld [vmem:[%s15413_s23 + $0x368] sm:$0xff] }
  0x85   :  { %10424 = vmatprep.mubr.msk.f32.mxu0 %vm323_vm1, %v121_v62 }
  0x88   :  { %10425 = vmatmul.mubr.msk.f32.gmra.mxu0 %vm323_vm1, %v122_v63  ;;  %v173_v63 = vld [vmem:[%s15413_s23 + $0x370] sm:$0xff] }
  0x89   :  { %10427 = vmatprep.mubr.msk.f32.mxu0 %vm323_vm1, %v123_v0 }
  0x8c   :  { %10428 = vmatmul.mubr.msk.f32.gmra.mxu0 %vm323_vm1, %v124_v1  ;;  %v174_v1 = vld [vmem:[%s15413_s23 + $0x378] sm:$0xff] }
  0x8d   :  { %10430 = vmatprep.mubr.msk.f32.mxu0 %vm323_vm1, %v125_v2 }
  0x90   :  { %10431 = vmatmul.mubr.msk.f32.gmra.mxu0 %vm323_vm1, %v126_v3  ;;  %v175_v3 = vld [vmem:[%s15413_s23 + $0x380] sm:$0xff] }
  0x91   :  { %10433 = vmatprep.mubr.msk.f32.mxu0 %vm323_vm1, %v127_v4 }
  0x94   :  { %10434 = vmatmul.mubr.msk.f32.gmra.mxu0 %vm323_vm1, %v128_v5  ;;  %v176_v5 = vld [vmem:[%s15413_s23 + $0x388] sm:$0xff] }
  0x95   :  { %10436 = vmatprep.mubr.msk.f32.mxu0 %vm323_vm1, %v129_v6 }
  0x98   :  { %10437 = vmatmul.mubr.msk.f32.gmra.mxu0 %vm323_vm1, %v130_v7  ;;  %v177_v7 = vld [vmem:[%s15413_s23 + $0x390] sm:$0xff] }
  0x99   :  { %10439 = vmatprep.mubr.msk.f32.mxu0 %vm323_vm1, %v131_v8 }
  0x9c   :  { %10440 = vmatmul.mubr.msk.f32.gmra.mxu0 %vm323_vm1, %v132_v9  ;;  %v178_v9 = vld [vmem:[%s15413_s23 + $0x398] sm:$0xff] }
  0x9d   :  { %10442 = vmatprep.mubr.msk.f32.mxu0 %vm323_vm1, %v133_v10 }
  0xa0   :  { %10443 = vmatmul.mubr.msk.f32.gmra.mxu0 %vm323_vm1, %v134_v11  ;;  %v179_v11 = vld [vmem:[%s15413_s23 + $0x3a0] sm:$0xff] }
  0xa1   :  { %10445 = vmatprep.mubr.msk.f32.mxu0 %vm323_vm1, %v135_v12 }
  0xa4   :  { %10446 = vmatmul.mubr.msk.f32.gmra.mxu0 %vm323_vm1, %v136_v13  ;;  %v180_v13 = vld [vmem:[%s15413_s23 + $0x3a8] sm:$0xff] }
  0xa5   :  { %10448 = vmatprep.mubr.msk.f32.mxu0 %vm323_vm1, %v137_v14 }
  0xa8   :  { %10449 = vmatmul.mubr.msk.f32.gmra.mxu0 %vm323_vm1, %v138_v15  ;;  %v181_v15 = vld [vmem:[%s15413_s23 + $0x3b0] sm:$0xff] }
  0xa9   :  { %10451 = vmatprep.mubr.msk.f32.mxu0 %vm323_vm1, %v139_v16 }
  0xac   :  { %10452 = vmatmul.mubr.msk.f32.gmra.mxu0 %vm323_vm1, %v140_v17  ;;  %v182_v17 = vld [vmem:[%s15413_s23 + $0x3b8] sm:$0xff] }
  0xad   :  { %10454 = vmatprep.mubr.msk.f32.mxu0 %vm323_vm1, %v141_v18 }
  0xb0   :  { %10455 = vmatmul.mubr.msk.f32.gmra.mxu0 %vm323_vm1, %v142_v19  ;;  %v183_v19 = vld [vmem:[%s15413_s23 + $0x3c0] sm:$0xff] }
  0xb1   :  { %10457 = vmatprep.mubr.msk.f32.mxu0 %vm323_vm1, %v143_v20 }
  0xb4   :  { %10458 = vmatmul.mubr.msk.f32.gmra.mxu0 %vm323_vm1, %v144_v21  ;;  %v184_v21 = vld [vmem:[%s15413_s23 + $0x3c8] sm:$0xff] }
  0xb5   :  { %10460 = vmatprep.mubr.msk.f32.mxu0 %vm323_vm1, %v145_v22 }
  0xb8   :  { %10461 = vmatmul.mubr.msk.f32.gmra.mxu0 %vm323_vm1, %v146_v23  ;;  %v185_v23 = vld [vmem:[%s15413_s23 + $0x3d0] sm:$0xff] }
  0xb9   :  { %10463 = vmatprep.mubr.msk.f32.mxu0 %vm323_vm1, %v147_v24 }
  0xbc   :  { %10464 = vmatmul.mubr.msk.f32.gmra.mxu0 %vm323_vm1, %v148_v25  ;;  %v186_v25 = vld [vmem:[%s15413_s23 + $0x3d8] sm:$0xff] }
  0xbd   :  { %10466 = vmatprep.mubr.msk.f32.mxu0 %vm323_vm1, %v149_v26 }
  0xc0   :  { %10467 = vmatmul.mubr.msk.f32.gmra.mxu0 %vm323_vm1, %v150_v27  ;;  %v187_v27 = vld [vmem:[%s15413_s23 + $0x3e0] sm:$0xff] }
  0xc1   :  { %10469 = vmatprep.mubr.msk.f32.mxu0 %vm323_vm1, %v151_v28 }
  0xc4   :  { %10470 = vmatmul.mubr.msk.f32.gmra.mxu0 %vm323_vm1, %v152_v29  ;;  %v188_v29 = vld [vmem:[%s15413_s23 + $0x3e8] sm:$0xff] }
  0xc5   :  { %10472 = vmatprep.mubr.msk.f32.mxu0 %vm323_vm1, %v153_v30 }
  0xc8   :  { %10473 = vmatmul.mubr.msk.f32.gmra.mxu0 %vm323_vm1, %v154_v31  ;;  %v189_v31 = vld [vmem:[%s15413_s23 + $0x3f0] sm:$0xff] }
  0xc9   :  { %10475 = vmatprep.mubr.msk.f32.mxu0 %vm323_vm1, %v155_v32 }
  0xcc   :  { %10476 = vmatmul.mubr.msk.f32.gmra.mxu0 %vm323_vm1, %v156_v33  ;;  %v12024_v33 = vld [vmem:[%s15414_s30] ss:$0 sm:$0xff] }
  0xcd   :  { %10478 = vmatprep.mubr.msk.f32.mxu0 %vm323_vm1, %v157_v34  ;;  %v190_v34 = vld [vmem:[%s15413_s23 + $0x3f8] sm:$0xff] }
  0xd0   :  { %10479 = vmatmul.mubr.msk.f32.gmra.mxu0 %vm323_vm1, %v158_v35 }
  0xd1   :  { %10481 = vmatprep.mubr.msk.f32.mxu0 %vm323_vm1, %v159_v36 }
  0xd4   :  { %v11859_v39 = vpop.f32.mrf.mxu0  ;;  %10482 = vmatmul.mubr.msk.f32.gmra.mxu0 %vm323_vm1, %v160_v37  ;;  %v191_v37 = vld [vmem:[%s15413_s23 + $0x400] sm:$0xff] }
  0xd5   :  { %10484 = vmatprep.mubr.msk.f32.mxu0 %vm323_vm1, %v161_v38 }
  0xd6   :  { %v11866_v41 = vpop.f32.mrf.mxu0 }
  0xd8   :  { %v11874_v44 = vpop.f32.mrf.mxu0  ;;  %10485 = vmatmul.mubr.msk.f32.gmra.mxu0 %vm323_vm1, %v162_v40 }
  0xd9   :  { %10487 = vmatprep.mubr.msk.f32.mxu0 %vm323_vm1, %v163_v42  ;;  %v12039_v42 = vld [vmem:[%s15415_s25] ss:$0 sm:$0xff] }
  0xda   :  { %v11881_v46 = vpop.f32.mrf.mxu0 }
  0xdc   :  { %v11886_v48 = vpop.f32.mrf.mxu0  ;;  %10488 = vmatmul.mubr.msk.f32.gmra.mxu0 %vm323_vm1, %v164_v45 }
  0xdd   :  { %10490 = vmatprep.mubr.msk.f32.mxu0 %vm323_vm1, %v165_v47  ;;  %v192_v47 = vld [vmem:[%s15413_s23 + $0x408] sm:$0xff] }
  0xde   :  { %v11893_v50 = vpop.f32.mrf.mxu0 }
  0xe0   :  { %v11898_v52 = vpop.f32.mrf.mxu0  ;;  %10491 = vmatmul.mubr.msk.f32.gmra.mxu0 %vm323_vm1, %v166_v49 }
  0xe1   :  { %10493 = vmatprep.mubr.msk.f32.mxu0 %vm323_vm1, %v167_v51 }
  0xe2   :  { %v11905_v54 = vpop.f32.mrf.mxu0 }
  0xe4   :  { %v11910_v56 = vpop.f32.mrf.mxu0  ;;  %10494 = vmatmul.mubr.msk.f32.gmra.mxu0 %vm323_vm1, %v168_v53  ;;  %v193_v53 = vld [vmem:[%s15413_s23 + $0x410] sm:$0xff] }
  0xe5   :  { %10496 = vmatprep.mubr.msk.f32.mxu0 %vm323_vm1, %v169_v55 }
  0xe6   :  { %v11917_v58 = vpop.f32.mrf.mxu0 }
  0xe8   :  { %v11922_v60 = vpop.f32.mrf.mxu0  ;;  %10497 = vmatmul.mubr.msk.f32.gmra.mxu0 %vm323_vm1, %v170_v57 }
  0xe9   :  { %10499 = vmatprep.mubr.msk.f32.mxu0 %vm323_vm1, %v171_v59 }
  0xea   :  { %v11929_v62 = vpop.f32.mrf.mxu0 }
  0xec   :  { %v11934_v0 = vpop.f32.mrf.mxu0  ;;  %10500 = vmatmul.mubr.msk.f32.gmra.mxu0 %vm323_vm1, %v172_v61 }
  0xed   :  { %10502 = vmatprep.mubr.msk.f32.mxu0 %vm323_vm1, %v173_v63  ;;  %v2461_v49 = vmul.f32 %v11934_v0, %v12024_v33 }
  0xee   :  { %v11941_v2 = vpop.f32.mrf.mxu0 }
  0xef   :  { %v2460_v63 = vmul.f32 %v12024_v33, %v11941_v2  ;;  %v2459_v2 = vmul.f32 %v11922_v60, %v12024_v33 }
  0xf0   :  { %v10360_v4 = vpop.f32.mrf.mxu0  ;;  %10503 = vmatmul.mubr.msk.f32.gmra.mxu0 %vm323_vm1, %v174_v1 }
  0xf1   :  { %10505 = vmatprep.mubr.msk.f32.mxu0 %vm323_vm1, %v175_v3  ;;  %v2463_v35 = vmul.f32 %v10360_v4, %v12024_v33  ;;  %v2723_v60 = vadd.f32 %v12039_v42, %v2460_v63 }
  0xf2   :  { %v1232_v6 = vpop.f32.mrf.mxu0 }
  0xf3   :  { %v2462_v38 = vmul.f32 %v12024_v33, %v1232_v6  ;;  %v2726_v55 = vadd.f32 %v12039_v42, %v2463_v35 }
  0xf4   :  { %v11954_v8 = vpop.f32.mrf.mxu0  ;;  %10506 = vmatmul.mubr.msk.f32.gmra.mxu0 %vm323_vm1, %v176_v5 }
  0xf5   :  { %10508 = vmatprep.mubr.msk.f32.mxu0 %vm323_vm1, %v177_v7  ;;  %v2725_v1 = vadd.f32 %v12039_v42, %v2462_v38  ;;  %v194_v7 = vld [vmem:[%s15413_s23 + $0x418] sm:$0xff] }
  0xf6   :  { %v11961_v10 = vpop.f32.mrf.mxu0 }
  0xf8   :  { %v11966_v12 = vpop.f32.mrf.mxu0  ;;  %10509 = vmatmul.mubr.msk.f32.gmra.mxu0 %vm323_vm1, %v178_v9  ;;  %v2724_v9 = vadd.f32 %v12039_v42, %v2461_v49 }
  0xf9   :  { %10511 = vmatprep.mubr.msk.f32.mxu0 %vm323_vm1, %v179_v11 }
  0xfa   :  { %v11973_v14 = vpop.f32.mrf.mxu0 }
  0xfc   :  { %v11978_v16 = vpop.f32.mrf.mxu0  ;;  %10512 = vmatmul.mubr.msk.f32.gmra.mxu0 %vm323_vm1, %v180_v13  ;;  %v2982_v13 = vmax.f32 %v2726_v55, 0.0 }
  0xfd   :  { %10514 = vmatprep.mubr.msk.f32.mxu0 %vm323_vm1, %v181_v15  ;;  %v195_v15 = vld [vmem:[%s15413_s23 + $0x420] sm:$0xff] }
  0xfe   :  { %v11985_v18 = vpop.f32.mrf.mxu0 }
 0x100   :  { %v11990_v20 = vpop.f32.mrf.mxu0  ;;  %10515 = vmatmul.mubr.msk.f32.gmra.mxu0 %vm323_vm1, %v182_v17 }
 0x101   :  { %10517 = vmatprep.mubr.msk.f32.mxu0 %vm323_vm1, %v183_v19 }
 0x102   :  { %v11997_v22 = vpop.f32.mrf.mxu0 }
 0x104   :  { %v10375_v24 = vpop.f32.mrf.mxu0  ;;  %10518 = vmatmul.mubr.msk.f32.gmra.mxu0 %vm323_vm1, %v184_v21 }
 0x105   :  { %10520 = vmatprep.mubr.msk.f32.mxu0 %vm323_vm1, %v185_v23  ;;  %v2458_v23 = vmul.f32 %v12024_v33, %v11929_v62  ;;  %v196_v62 = vld [vmem:[%s15413_s23 + $0x428] sm:$0xff] }
 0x106   :  { %v12007_v26 = vpop.f32.mrf.mxu0 }
 0x108   :  { %v10378_v28 = vpop.f32.mrf.mxu0  ;;  %10521 = vmatmul.mubr.msk.f32.gmra.mxu0 %vm323_vm1, %v186_v25 }
 0x109   :  { %10523 = vmatprep.mubr.msk.f32.mxu0 %vm323_vm1, %v187_v27  ;;  %v2475_v0 = vmul.f32 %v10378_v28, %v12024_v33  ;;  %v2981_v27 = vmax.f32 %v2725_v1, 0.0  ;;  %v2473_v28 = vmul.f32 %v10375_v24, %v12024_v33  ;;  %v197_v24 = vld [vmem:[%s15413_s23 + $0x430] sm:$0xff] }
 0x10a   :  { %v1292_v30 = vpop.f32.mrf.mxu0 }
 0x10b   :  { %v2474_v17 = vmul.f32 %v12024_v33, %v1292_v30 }
 0x10c   :  { %v10381_v32 = vpop.f32.mrf.mxu0  ;;  %10524 = vmatmul.mubr.msk.f32.gmra.mxu0 %vm323_vm1, %v188_v29  ;;  %v2738_v29 = vadd.f32 %v12039_v42, %v2475_v0 }
 0x10d   :  { %10526 = vmatprep.mubr.msk.f32.mxu0 %vm323_vm1, %v189_v31  ;;  %v2477_v43 = vmul.f32 %v10381_v32, %v12024_v33  ;;  %v2457_v31 = vmul.f32 %v11910_v56, %v12024_v33  ;;  %v2722_v32 = vadd.f32 %v12039_v42, %v2459_v2  ;;  %v2456_v56 = vmul.f32 %v12024_v33, %v11917_v58  ;;  %v198_v58 = vld [vmem:[%s15413_s23 + $0x438] sm:$0xff] }
 0x10e   :  { %v1302_v36 = vpop.f32.mrf.mxu0  ;;  %v2994_v49 = vmax.f32 %v2738_v29, 0.0  ;;  %v2451_v29 = vmul.f32 %v11874_v44, %v12024_v33  ;;  %v2450_v44 = vmul.f32 %v12024_v33, %v11881_v46  ;;  %v204_v46 = vld [vmem:[%s15413_s23 + $0x468] sm:$0xff] }
 0x10f   :  { %v2476_v57 = vmul.f32 %v12024_v33, %v1302_v36  ;;  %v2740_v4 = vadd.f32 %v12039_v42, %v2477_v43  ;;  %v2472_v36 = vmul.f32 %v12024_v33, %v12007_v26  ;;  %v2736_v26 = vadd.f32 %v12039_v42, %v2473_v28 }
 0x110   :  { %v10384_v40 = vpop.f32.mrf.mxu0  ;;  %10527 = vmatmul.mubr.msk.f32.gmra.mxu0 %vm323_vm1, %v190_v34  ;;  %v2980_v34 = vmax.f32 %v2724_v9, 0.0  ;;  %v2978_v55 = vmax.f32 %v2722_v32, 0.0  ;;  %v2719_v1 = vadd.f32 %v12039_v42, %v2456_v56  ;;  %v2466_v32 = vmul.f32 %v12024_v33, %v11973_v14 }
 0x111   :  { %v2479_v45 = vmul.f32 %v10384_v40, %v12024_v33  ;;  %10529 = vmatprep.mubr.msk.f32.mxu0 %vm323_vm1, %v191_v37  ;;  %v2739_v19 = vadd.f32 %v12039_v42, %v2476_v57  ;;  %v2996_v30 = vmax.f32 %v2740_v4, 0.0  ;;  %v2737_v37 = vadd.f32 %v12039_v42, %v2474_v17 }
 0x112   :  { %v1312_v51 = vpop.f32.mrf.mxu0  ;;  %v2721_v40 = vadd.f32 %v12039_v42, %v2458_v23  ;;  %v2465_v56 = vmul.f32 %v11954_v8, %v12024_v33  ;;  %v205_v8 = vld [vmem:[%s15413_s23 + $0x470] sm:$0xff] }
 0x113   :  { %v2478_v59 = vmul.f32 %v12024_v33, %v1312_v51  ;;  %v2742_v61 = vadd.f32 %v12039_v42, %v2479_v45  ;;  %v2995_v38 = vmax.f32 %v2739_v19, 0.0  ;;  %v2979_v45 = vmax.f32 %v2723_v60, 0.0 }
 0x114   :  { %v12059_v3 = vpop.f32.mrf.mxu0  ;;  %10530 = vmatmul.mubr.msk.f32.gmra.mxu0 %vm323_vm1, %v192_v47  ;;  %v2471_v47 = vmul.f32 %v11990_v20, %v12024_v33  ;;  %v2455_v51 = vmul.f32 %v11898_v52, %v12024_v33  ;;  %v199_v20 = vld [vmem:[%s15413_s23 + $0x440] sm:$0xff]  ;;  %v2993_v63 = vmax.f32 %v2737_v37, 0.0  ;;  %v2454_v52 = vmul.f32 %v12024_v33, %v11905_v54  ;;  %v200_v54 = vld [vmem:[%s15413_s23 + $0x448] sm:$0xff] }
 0x115   :  { %v2741_v5 = vadd.f32 %v12039_v42, %v2478_v59  ;;  %10532 = vmatprep.mubr.msk.f32.mxu0 %vm323_vm1, %v193_v53  ;;  %v2998_v6 = vmax.f32 %v2742_v61, 0.0  ;;  %v2720_v53 = vadd.f32 %v12039_v42, %v2457_v31  ;;  %v2470_v59 = vmul.f32 %v12024_v33, %v11997_v22 }
 0x116   :  { %v12072_v11 = vpop.f32.mrf.mxu0  ;;  %v2735_v61 = vadd.f32 %v12039_v42, %v2472_v36  ;;  %v2977_v4 = vmax.f32 %v2721_v40, 0.0  ;;  %v2734_v22 = vadd.f32 %v12039_v42, %v2471_v47  ;;  %v2718_v2 = vadd.f32 %v12039_v42, %v2455_v51 }
 0x117   :  { %9580 = vmatprep.subr.mxu1 %v2998_v6  ;;  %v2997_v21 = vmax.f32 %v2741_v5, 0.0  ;;  %v2469_v5 = vmul.f32 %v11978_v16, %v12024_v33  ;;  %v2992_v6 = vmax.f32 %v2736_v26, 0.0  ;;  %v2976_v9 = vmax.f32 %v2720_v53, 0.0  ;;  %v201_v16 = vld [vmem:[%s15413_s23 + $0x450] sm:$0xff] }
 0x118   :  { %v12082_v25 = vpop.f32.mrf.mxu0  ;;  %10533 = vmatmul.mubr.msk.f32.gmra.mxu0 %vm323_vm1, %v194_v7  ;;  %9581 = vmatpush3.msra.mxu1 %v2982_v13  ;;  %v2453_v7 = vmul.f32 %v11886_v48, %v12024_v33  ;;  %v2733_v17 = vadd.f32 %v12039_v42, %v2470_v59  ;;  %v2991_v19 = vmax.f32 %v2735_v61, 0.0  ;;  %v2452_v48 = vmul.f32 %v12024_v33, %v11893_v50  ;;  %v202_v50 = vld [vmem:[%s15413_s23 + $0x458] sm:$0xff] }
 0x119   :  { %9582 = vmatprep.subr.mxu1 %v2997_v21  ;;  %10535 = vmatprep.mubr.msk.f32.mxu0 %vm323_vm1, %v195_v15  ;;  %v2468_v15 = vmul.f32 %v12024_v33, %v11985_v18  ;;  %v2717_v21 = vadd.f32 %v12039_v42, %v2454_v52  ;;  %v2975_v60 = vmax.f32 %v2719_v1, 0.0  ;;  %v2732_v18 = vadd.f32 %v12039_v42, %v2469_v5 }
 0x11a   :  { %v12094_v35 = vpop.f32.mrf.mxu0  ;;  %9583 = vmatpush3.msra.mxu1 %v2981_v27  ;;  %v2467_v27 = vmul.f32 %v11966_v12, %v12024_v33  ;;  %v2990_v28 = vmax.f32 %v2734_v22, 0.0  ;;  %v203_v12 = vld [vmem:[%s15413_s23 + $0x460] sm:$0xff]  ;;  %v2715_v36 = vadd.f32 %v12039_v42, %v2452_v48  ;;  %v2714_v47 = vadd.f32 %v12039_v42, %v2451_v29 }
 0x11b   :  { %9584 = vmatprep.subr.mxu1 %v2996_v30  ;;  %v2716_v30 = vadd.f32 %v12039_v42, %v2453_v7  ;;  %v2988_v40 = vmax.f32 %v2732_v18, 0.0  ;;  %v2729_v51 = vadd.f32 %v12039_v42, %v2466_v32  ;;  %v2728_v61 = vadd.f32 %v12039_v42, %v2465_v56  ;;  %v3274_v18 = vld [vmem:[%s15363_s4 + $0x48] sm:$0xff] }
 0x11c   :  { %v12105_v43 = vpop.f32.mrf.mxu0  ;;  %10536 = vmatmul.mubr.msk.f32.gmra.mxu0 %vm323_vm1, %v196_v62  ;;  %9585 = vmatpush3.msra.mxu1 %v2980_v34  ;;  %v2974_v62 = vmax.f32 %v2718_v2, 0.0  ;;  %v2731_v34 = vadd.f32 %v12039_v42, %v2468_v15  ;;  %v2730_v14 = vadd.f32 %v12039_v42, %v2467_v27  ;;  %v2971_v59 = vmax.f32 %v2715_v36, 0.0  ;;  %v210_v27 = vld [vmem:[%s15413_s23 + $0x498] sm:$0xff] }
 0x11d   :  { %9586 = vmatprep.subr.mxu1 %v2995_v38  ;;  %10538 = vmatprep.mubr.msk.f32.mxu0 %vm323_vm1, %v197_v24  ;;  %v2989_v24 = vmax.f32 %v2733_v17, 0.0  ;;  %v2973_v38 = vmax.f32 %v2717_v21, 0.0  ;;  %v2972_v26 = vmax.f32 %v2716_v30, 0.0  ;;  %v2970_v52 = vmax.f32 %v2714_v47, 0.0  ;;  %v209_v17 = vld [vmem:[%s15413_s23 + $0x490] sm:$0xff]  ;;  %v3273_v30 = vld [vmem:[%s15363_s4 + $0x40] sm:$0xff] }
 0x11e   :  { %v12118_v57 = vpop.f32.mrf.mxu0  ;;  %9587 = vmatpush3.msra.mxu1 %v2979_v45  ;;  %v2449_v45 = vmul.f32 %v11859_v39, %v12024_v33  ;;  %v2987_v53 = vmax.f32 %v2731_v34, 0.0  ;;  %v2448_v39 = vmul.f32 %v12024_v33, %v11866_v41  ;;  %v2985_v22 = vmax.f32 %v2729_v51, 0.0  ;;  %v213_v34 = vld [vmem:[%s15413_s23 + $0x4b0] sm:$0xff]  ;;  %v214_v36 = vld [vmem:[%s15413_s23 + $0x4b8] sm:$0xff]  ;;  %v3298_v47 = vld [vmem:[%s15363_s4 + $0x108] sm:$0xff] }
 0x11f   :  { %9588 = vmatprep.subr.mxu1 %v2994_v49  ;;  %v2984_v2 = vmax.f32 %v2728_v61, 0.0  ;;  %v3297_v51 = vld [vmem:[%s15363_s4 + $0x100] sm:$0xff] }
 0x120   :  { %v12129_v0 = vpop.f32.mrf.mxu0  ;;  %10539 = vmatmul.mubr.msk.f32.gmra.mxu0 %vm323_vm1, %v198_v58  ;;  %9589 = vmatpush3.msra.mxu1 %v2978_v55  ;;  %v2464_v58 = vmul.f32 %v12024_v33, %v11961_v10  ;;  %v2713_v55 = vadd.f32 %v12039_v42, %v2450_v44  ;;  %v206_v10 = vld [vmem:[%s15413_s23 + $0x478] sm:$0xff]  ;;  %v2712_v41 = vadd.f32 %v12039_v42, %v2449_v45  ;;  %v3281_v44 = vld [vmem:[%s15363_s4 + $0x80] sm:$0xff]  ;;  %v216_v45 = vld [vmem:[%s15413_s23 + $0x4c8] sm:$0xff] }
 0x121   :  { %9590 = vmatprep.subr.mxu1 %v2993_v63  ;;  %10541 = vmatprep.mubr.msk.f32.mxu0 %vm323_vm1, %v199_v20  ;;  %v2986_v63 = vmax.f32 %v2730_v14, 0.0  ;;  %v215_v14 = vld [vmem:[%s15413_s23 + $0x4c0] sm:$0xff] }
 0x122   :  { %v12142_v13 = vpop.f32.mrf.mxu0  ;;  %9591 = vmatpush3.msra.mxu1 %v2977_v4  ;;  %v207_v4 = vld [vmem:[%s15413_s23 + $0x480] sm:$0xff]  ;;  %v2727_v5 = vadd.f32 %v12039_v42, %v2464_v58  ;;  %v2969_v7 = vmax.f32 %v2713_v55, 0.0 }
 0x123   :  { %9592 = vmatprep.subr.mxu1 %v2992_v6  ;;  %v2711_v6 = vadd.f32 %v12039_v42, %v2448_v39  ;;  %v3306_v39 = vld [vmem:[%s15363_s4 + $0x148] sm:$0xff] }
 0x124   :  { %v12153_v23 = vpop.f32.mrf.mxu0  ;;  %10542 = vmatmul.mubr.msk.f32.gmra.mxu0 %vm323_vm1, %v200_v54  ;;  %9593 = vmatpush3.msra.mxu1 %v2976_v9  ;;  %v208_v9 = vld [vmem:[%s15413_s23 + $0x488] sm:$0xff] }
 0x125   :  { %9594 = vmatprep.subr.mxu1 %v2991_v19  ;;  %10544 = vmatprep.mubr.msk.f32.mxu0 %vm323_vm1, %v201_v16  ;;  %v2968_v16 = vmax.f32 %v2712_v41, 0.0  ;;  %v2983_v19 = vmax.f32 %v2727_v5, 0.0  ;;  %v2967_v21 = vmax.f32 %v2711_v6, 0.0  ;;  %v3314_v41 = vld [vmem:[%s15363_s4 + $0x188] sm:$0xff]  ;;  %v222_v6 = vld [vmem:[%s15413_s23 + $0x4f8] sm:$0xff] }
 0x126   :  { %v12166_v31 = vpop.f32.mrf.mxu0  ;;  %9595 = vmatpush3.msra.mxu1 %v2975_v60  ;;  %v3265_v60 = vld [vmem:[%s15363_s4] sm:$0xff] }
 0x127   :  { %9596 = vmatprep.subr.mxu1 %v2990_v28 }
 0x128   :  { %v12177_v37 = vpop.f32.mrf.mxu0  ;;  %10545 = vmatmul.mubr.msk.f32.gmra.mxu0 %vm323_vm1, %v202_v50  ;;  %9597 = vmatpush3.msra.mxu1 %v2974_v62  ;;  %v211_v50 = vld [vmem:[%s15413_s23 + $0x4a0] sm:$0xff]  ;;  %v212_v62 = vld [vmem:[%s15413_s23 + $0x4a8] sm:$0xff] }
 0x129   :  { %9598 = vmatprep.subr.mxu1 %v2989_v24  ;;  %10547 = vmatprep.mubr.msk.f32.mxu0 %vm323_vm1, %v203_v12  ;;  %v3282_v12 = vld [vmem:[%s15363_s4 + $0x88] sm:$0xff] }
 0x12a   :  { %v12190_v49 = vpop.f32.mrf.mxu0  ;;  %9599 = vmatpush3.msra.mxu1 %v2973_v38  ;;  %v3290_v38 = vld [vmem:[%s15363_s4 + $0xc8] sm:$0xff] }
 0x12b   :  { %9600 = vmatprep.subr.mxu1 %v2988_v40 }
 0x12c   :  { %v12201_v20 = vpop.f32.mrf.mxu0  ;;  %10548 = vmatmul.mubr.msk.f32.gmra.mxu0 %vm323_vm1, %v204_v46  ;;  %9601 = vmatpush3.msra.mxu1 %v2972_v26  ;;  %v3289_v46 = vld [vmem:[%s15363_s4 + $0xc0] sm:$0xff] }
 0x12d   :  { %9602 = vmatprep.subr.mxu1 %v2987_v53  ;;  %10550 = vmatprep.mubr.msk.f32.mxu0 %vm323_vm1, %v205_v8  ;;  %v217_v8 = vld [vmem:[%s15413_s23 + $0x4d0] sm:$0xff]  ;;  %v218_v53 = vld [vmem:[%s15413_s23 + $0x4d8] sm:$0xff] }
 0x12e   :  { %v12210_v1 = vpop.f32.mrf.mxu0  ;;  %9603 = vmatpush3.msra.mxu1 %v2971_v59  ;;  %v219_v59 = vld [vmem:[%s15413_s23 + $0x4e0] sm:$0xff] }
 0x12f   :  { %9604 = vmatprep.subr.mxu1 %v2986_v63  ;;  %v3305_v63 = vld [vmem:[%s15363_s4 + $0x140] sm:$0xff] }
 0x130   :  { %v12217_v54 = vpop.f32.mrf.mxu0  ;;  %10551 = vmatmul.mubr.msk.f32.gmra.mxu0 %vm323_vm1, %v206_v10  ;;  %9605 = vmatpush3.msra.mxu1 %v2970_v52  ;;  %v220_v10 = vld [vmem:[%s15413_s23 + $0x4e8] sm:$0xff] }
 0x131   :  { %9606 = vmatprep.subr.mxu1 %v2985_v22  ;;  %10553 = vmatprep.mubr.msk.f32.mxu0 %vm323_vm1, %v207_v4  ;;  %v221_v4 = vld [vmem:[%s15413_s23 + $0x4f0] sm:$0xff]  ;;  %v3313_v22 = vld [vmem:[%s15363_s4 + $0x180] sm:$0xff] }
 0x132   :  { %v12224_v15 = vpop.f32.mrf.mxu0  ;;  %9607 = vmatpush3.msra.mxu1 %v2969_v7  ;;  %v3322_v7 = vld [vmem:[%s15363_s4 + $0x1c8] sm:$0xff] }
 0x133   :  { %9608 = vmatprep.subr.mxu1 %v2984_v2  ;;  %v2495_v2 = vmul.f32 %v12217_v54, %v12024_v33 }
 0x134   :  { %v12229_v48 = vpop.f32.mrf.mxu0  ;;  %10554 = vmatmul.mubr.msk.f32.gmra.mxu0 %vm323_vm1, %v208_v9  ;;  %9609 = vmatpush3.msra.mxu1 %v2968_v16  ;;  %v223_v16 = vld [vmem:[%s15413_s23 + $0x500] sm:$0xff] }
 0x135   :  { %9610 = vmatprep.subr.mxu1 %v2983_v19  ;;  %10556 = vmatprep.mubr.msk.f32.mxu0 %vm323_vm1, %v209_v17  ;;  %v2494_v17 = vmul.f32 %v12024_v33, %v12224_v15  ;;  %v3268_v15 = vld [vmem:[%s15363_s4 + $0x18] sm:$0xff] }
 0x136   :  { %v12242_v28 = vpop.f32.mrf.mxu0  ;;  %9611 = vmatpush3.msra.mxu1 %v2967_v21  ;;  %v3321_v21 = vld [vmem:[%s15363_s4 + $0x1c0] sm:$0xff] }
 0x137   :  { %3394 = vmatmul.mubr.f32.vlgmr.msra.gmra.mxu1 %v3265_v60 }
 0x138   :  { %v12247_v29 = vpop.f32.mrf.mxu0  ;;  %10557 = vmatmul.mubr.msk.f32.gmra.mxu0 %vm323_vm1, %v210_v27  ;;  %3398 = vmatprep.mubr.f32.mxu1 %v3274_v18  ;;  %v224_v27 = vld [vmem:[%s15413_s23 + $0x508] sm:$0xff]  ;;  %v2493_v18 = vmul.f32 %v12201_v20, %v12024_v33 }
 0x139   :  { %10559 = vmatprep.mubr.msk.f32.mxu0 %vm323_vm1, %v211_v50  ;;  %v2758_v50 = vadd.f32 %v12039_v42, %v2495_v2 }
 0x13a   :  { %v12260_v32 = vpop.f32.mrf.mxu0 }
 0x13b   :  { %3399 = vmatmul.mubr.f32.gmra.mxu1 %v3273_v30 }
 0x13c   :  { %v12265_v24 = vpop.f32.mrf.mxu0  ;;  %10560 = vmatmul.mubr.msk.f32.gmra.mxu0 %vm323_vm1, %v212_v62  ;;  %3403 = vmatprep.mubr.f32.mxu1 %v3282_v12  ;;  %v225_v62 = vld [vmem:[%s15413_s23 + $0x510] sm:$0xff] }
 0x13d   :  { %10562 = vmatprep.mubr.msk.f32.mxu0 %vm323_vm1, %v213_v34 }
 0x13e   :  { %v12278_v56 = vpop.f32.mrf.mxu0 }
 0x13f   :  { %3404 = vmatmul.mubr.f32.gmra.mxu1 %v3281_v44 }
 0x140   :  { %v12283_v40 = vpop.f32.mrf.mxu0  ;;  %10563 = vmatmul.mubr.msk.f32.gmra.mxu0 %vm323_vm1, %v214_v36  ;;  %3408 = vmatprep.mubr.f32.mxu1 %v3290_v38  ;;  %v2492_v36 = vmul.f32 %v12024_v33, %v12210_v1  ;;  %v2757_v38 = vadd.f32 %v12039_v42, %v2494_v17  ;;  %v226_v1 = vld [vmem:[%s15413_s23 + $0x518] sm:$0xff] }
 0x141   :  { %10565 = vmatprep.mubr.msk.f32.mxu0 %vm323_vm1, %v215_v14 }
 0x142   :  { %v12296_v26 = vpop.f32.mrf.mxu0 }
 0x143   :  { %3409 = vmatmul.mubr.f32.gmra.mxu1 %v3289_v46 }
 0x144   :  { %v12301_v58 = vpop.f32.mrf.mxu0  ;;  %10566 = vmatmul.mubr.msk.f32.gmra.mxu0 %vm323_vm1, %v216_v45  ;;  %3413 = vmatprep.mubr.f32.mxu1 %v3298_v47 }
 0x145   :  { %10568 = vmatprep.mubr.msk.f32.mxu0 %vm323_vm1, %v217_v8  ;;  %v2491_v8 = vmul.f32 %v12177_v37, %v12024_v33  ;;  %v2755_v37 = vadd.f32 %v12039_v42, %v2492_v36 }
 0x146   :  { %v12314_v55 = vpop.f32.mrf.mxu0 }
 0x147   :  { %3414 = vmatmul.mubr.f32.gmra.mxu1 %v3297_v51  ;;  %v2756_v51 = vadd.f32 %v12039_v42, %v2493_v18  ;;  %v2754_v2 = vadd.f32 %v12039_v42, %v2491_v8  ;;  %v2504_v17 = vmul.f32 %v12024_v33, %v12314_v55 }
 0x148   :  { %v10426_v61 = vpop.f32.mrf.mxu0  ;;  %10569 = vmatmul.mubr.msk.f32.gmra.mxu0 %vm323_vm1, %v218_v53  ;;  %3418 = vmatprep.mubr.f32.mxu1 %v3306_v39  ;;  %v3014_v53 = vmax.f32 %v2758_v50, 0.0  ;;  %v2487_v50 = vmul.f32 %v12129_v0, %v12024_v33  ;;  %v2486_v0 = vmul.f32 %v12024_v33, %v12142_v13  ;;  %v232_v13 = vld [vmem:[%s15413_s23 + $0x548] sm:$0xff] }
 0x149   :  { %10571 = vmatprep.mubr.msk.f32.mxu0 %vm323_vm1, %v219_v59  ;;  %v2507_v14 = vmul.f32 %v10426_v61, %v12024_v33  ;;  %v227_v59 = vld [vmem:[%s15413_s23 + $0x520] sm:$0xff] }
 0x14a   :  { %v1452_v52 = vpop.f32.mrf.mxu0  ;;  %v2750_v8 = vadd.f32 %v12039_v42, %v2487_v50 }
 0x14b   :  { %3419 = vmatmul.mubr.f32.gmra.mxu1 %v3305_v63  ;;  %v2506_v61 = vmul.f32 %v12024_v33, %v1452_v52  ;;  %v2770_v52 = vadd.f32 %v12039_v42, %v2507_v14 }
 0x14c   :  { %v10429_v5 = vpop.f32.mrf.mxu0  ;;  %10572 = vmatmul.mubr.msk.f32.gmra.mxu0 %vm323_vm1, %v220_v10  ;;  %3423 = vmatprep.mubr.f32.mxu1 %v3314_v41  ;;  %v2490_v41 = vmul.f32 %v12024_v33, %v12190_v49  ;;  %v228_v49 = vld [vmem:[%s15413_s23 + $0x528] sm:$0xff] }
 0x14d   :  { %10574 = vmatprep.mubr.msk.f32.mxu0 %vm323_vm1, %v221_v4  ;;  %v2509_v60 = vmul.f32 %v10429_v5, %v12024_v33  ;;  %v3013_v4 = vmax.f32 %v2757_v38, 0.0  ;;  %v3026_v18 = vmax.f32 %v2770_v52, 0.0  ;;  %v2483_v52 = vmul.f32 %v12082_v25, %v12024_v33 }
 0x14e   :  { %v1462_v9 = vpop.f32.mrf.mxu0  ;;  %v2482_v25 = vmul.f32 %v12024_v33, %v12094_v35  ;;  %v236_v35 = vld [vmem:[%s15413_s23 + $0x568] sm:$0xff] }
 0x14f   :  { %3424 = vmatmul.mubr.f32.gmra.mxu1 %v3313_v22  ;;  %v2508_v12 = vmul.f32 %v12024_v33, %v1462_v9  ;;  %v2772_v46 = vadd.f32 %v12039_v42, %v2509_v60  ;;  %v2505_v22 = vmul.f32 %v12301_v58, %v12024_v33  ;;  %v3012_v9 = vmax.f32 %v2756_v51, 0.0  ;;  %v229_v58 = vld [vmem:[%s15413_s23 + $0x530] sm:$0xff] }
 0x150   :  { %v10432_v19 = vpop.f32.mrf.mxu0  ;;  %10575 = vmatmul.mubr.msk.f32.gmra.mxu0 %vm323_vm1, %v222_v6  ;;  %3428 = vmatprep.mubr.f32.mxu1 %v3322_v7  ;;  %v2489_v7 = vmul.f32 %v12153_v23, %v12024_v33  ;;  %v2488_v23 = vmul.f32 %v12024_v33, %v12166_v31  ;;  %v2753_v60 = vadd.f32 %v12039_v42, %v2490_v41  ;;  %v230_v31 = vld [vmem:[%s15413_s23 + $0x538] sm:$0xff] }
 0x151   :  { %v2511_v54 = vmul.f32 %v10432_v19, %v12024_v33  ;;  %10577 = vmatprep.mubr.msk.f32.mxu0 %vm323_vm1, %v223_v16  ;;  %v2771_v63 = vadd.f32 %v12039_v42, %v2508_v12  ;;  %v3028_v6 = vmax.f32 %v2772_v46, 0.0  ;;  %v2769_v19 = vadd.f32 %v12039_v42, %v2506_v61 }
 0x152   :  { %v1472_v30 = vpop.f32.mrf.mxu0  ;;  %v2768_v55 = vadd.f32 %v12039_v42, %v2505_v22  ;;  %v2751_v38 = vadd.f32 %v12039_v42, %v2488_v23  ;;  %v3009_v14 = vmax.f32 %v2753_v60, 0.0  ;;  %v2497_v23 = vmul.f32 %v12229_v48, %v12024_v33  ;;  %v237_v48 = vld [vmem:[%s15413_s23 + $0x570] sm:$0xff] }
 0x153   :  { %v2774_v34 = vadd.f32 %v12039_v42, %v2511_v54  ;;  %v2510_v44 = vmul.f32 %v12024_v33, %v1472_v30  ;;  %3429 = vmatmul.mubr.f32.gmra.mxu1 %v3321_v21  ;;  %v3027_v21 = vmax.f32 %v2771_v63, 0.0  ;;  %v3011_v54 = vmax.f32 %v2755_v37, 0.0 }
 0x154   :  { %v12376_v20 = vpop.f32.mrf.mxu0  ;;  %10578 = vmatmul.mubr.msk.f32.gmra.mxu0 %vm323_vm1, %v224_v27  ;;  %3498 = vmatprep.mubr.f32.mxu1 %v3268_v15  ;;  %v2503_v15 = vmul.f32 %v12283_v40, %v12024_v33  ;;  %v2752_v30 = vadd.f32 %v12039_v42, %v2489_v7  ;;  %v231_v40 = vld [vmem:[%s15413_s23 + $0x540] sm:$0xff]  ;;  %v3025_v36 = vmax.f32 %v2769_v19, 0.0  ;;  %v3007_v41 = vmax.f32 %v2751_v38, 0.0 }
 0x155   :  { %v3030_v45 = vmax.f32 %v2774_v34, 0.0  ;;  %v2773_v47 = vadd.f32 %v12039_v42, %v2510_v44  ;;  %10580 = vmatprep.mubr.msk.f32.mxu0 %vm323_vm1, %v225_v62  ;;  %v3010_v62 = vmax.f32 %v2754_v2, 0.0  ;;  %v2502_v34 = vmul.f32 %v12024_v33, %v12296_v26 }
 0x156   :  { %v12389_v39 = vpop.f32.mrf.mxu0  ;;  %v2767_v44 = vadd.f32 %v12039_v42, %v2504_v17  ;;  %v2766_v26 = vadd.f32 %v12039_v42, %v2503_v15  ;;  %v3008_v51 = vmax.f32 %v2752_v30, 0.0  ;;  %v2498_v2 = vmul.f32 %v12024_v33, %v12260_v32 }
 0x157   :  { %9636 = vmatprep.subr.mxu1 %v3030_v45  ;;  %v3029_v10 = vmax.f32 %v2773_v47, 0.0  ;;  %v2501_v45 = vmul.f32 %v12265_v24, %v12024_v33  ;;  %v3024_v47 = vmax.f32 %v2768_v55, 0.0  ;;  %v233_v24 = vld [vmem:[%s15413_s23 + $0x550] sm:$0xff]  ;;  %v2765_v61 = vadd.f32 %v12039_v42, %v2502_v34 }
 0x158   :  { %v12399_v5 = vpop.f32.mrf.mxu0  ;;  %10581 = vmatmul.mubr.msk.f32.gmra.mxu0 %vm323_vm1, %v226_v1  ;;  %9637 = vmatpush3.msra.mxu1 %v3014_v53  ;;  %v2485_v1 = vmul.f32 %v12105_v43, %v12024_v33  ;;  %v3023_v63 = vmax.f32 %v2767_v44, 0.0  ;;  %v2484_v43 = vmul.f32 %v12024_v33, %v12118_v57  ;;  %v3022_v22 = vmax.f32 %v2766_v26, 0.0  ;;  %v234_v57 = vld [vmem:[%s15413_s23 + $0x558] sm:$0xff] }
 0x159   :  { %9638 = vmatprep.subr.mxu1 %v3029_v10  ;;  %10583 = vmatprep.mubr.msk.f32.mxu0 %vm323_vm1, %v227_v59  ;;  %v2500_v59 = vmul.f32 %v12024_v33, %v12278_v56  ;;  %v2749_v10 = vadd.f32 %v12039_v42, %v2486_v0  ;;  %v2764_v56 = vadd.f32 %v12039_v42, %v2501_v45 }
 0x15a   :  { %v12412_v16 = vpop.f32.mrf.mxu0  ;;  %9639 = vmatpush3.msra.mxu1 %v3013_v4  ;;  %v2499_v4 = vmul.f32 %v12247_v29, %v12024_v33  ;;  %v235_v29 = vld [vmem:[%s15413_s23 + $0x560] sm:$0xff]  ;;  %v2747_v17 = vadd.f32 %v12039_v42, %v2484_v43  ;;  %v2746_v15 = vadd.f32 %v12039_v42, %v2483_v52  ;;  %v2761_v50 = vadd.f32 %v12039_v42, %v2498_v2  ;;  %v3275_v52 = vld [vmem:[%s15363_s4 + $0x50] sm:$0xff] }
 0x15b   :  { %9640 = vmatprep.subr.mxu1 %v3028_v6  ;;  %v2748_v6 = vadd.f32 %v12039_v42, %v2485_v1  ;;  %v3005_v19 = vmax.f32 %v2749_v10, 0.0  ;;  %v3020_v60 = vmax.f32 %v2764_v56, 0.0  ;;  %v2760_v44 = vadd.f32 %v12039_v42, %v2497_v23  ;;  %v3267_v10 = vld [vmem:[%s15363_s4 + $0x10] sm:$0xff]  ;;  %v247_v23 = vld [vmem:[%s15413_s23 + $0x5c0] sm:$0xff] }
 0x15c   :  { %v12423_v27 = vpop.f32.mrf.mxu0  ;;  %10584 = vmatmul.mubr.msk.f32.gmra.mxu0 %vm323_vm1, %v228_v49  ;;  %9641 = vmatpush3.msra.mxu1 %v3012_v9  ;;  %v3006_v49 = vmax.f32 %v2750_v8, 0.0  ;;  %v2763_v9 = vadd.f32 %v12039_v42, %v2500_v59  ;;  %v2762_v32 = vadd.f32 %v12039_v42, %v2499_v4  ;;  %v3002_v0 = vmax.f32 %v2746_v15, 0.0  ;;  %v3276_v4 = vld [vmem:[%s15363_s4 + $0x58] sm:$0xff]  ;;  %v245_v2 = vld [vmem:[%s15413_s23 + $0x5b0] sm:$0xff] }
 0x15d   :  { %9642 = vmatprep.subr.mxu1 %v3027_v21  ;;  %10586 = vmatprep.mubr.msk.f32.mxu0 %vm323_vm1, %v229_v58  ;;  %v3021_v58 = vmax.f32 %v2765_v61, 0.0  ;;  %v3004_v55 = vmax.f32 %v2748_v6, 0.0  ;;  %v3017_v26 = vmax.f32 %v2761_v50, 0.0  ;;  %v3016_v8 = vmax.f32 %v2760_v44, 0.0  ;;  %v244_v6 = vld [vmem:[%s15413_s23 + $0x5a8] sm:$0xff]  ;;  %v250_v50 = vld [vmem:[%s15413_s23 + $0x5d8] sm:$0xff] }
 0x15e   :  { %v12436_v12 = vpop.f32.mrf.mxu0  ;;  %9643 = vmatpush3.msra.mxu1 %v3011_v54  ;;  %v2481_v54 = vmul.f32 %v12059_v3, %v12024_v33  ;;  %v3019_v30 = vmax.f32 %v2763_v9, 0.0  ;;  %v2480_v3 = vmul.f32 %v12024_v33, %v12072_v11  ;;  %v3307_v44 = vld [vmem:[%s15363_s4 + $0x150] sm:$0xff] }
 0x15f   :  { %9644 = vmatprep.subr.mxu1 %v3026_v18 }
 0x160   :  { %v12447_v46 = vpop.f32.mrf.mxu0  ;;  %10587 = vmatmul.mubr.msk.f32.gmra.mxu0 %vm323_vm1, %v230_v31  ;;  %9645 = vmatpush3.msra.mxu1 %v3010_v62  ;;  %v2496_v31 = vmul.f32 %v12024_v33, %v12242_v28  ;;  %v2745_v62 = vadd.f32 %v12039_v42, %v2482_v25  ;;  %v238_v28 = vld [vmem:[%s15413_s23 + $0x578] sm:$0xff]  ;;  %v2744_v11 = vadd.f32 %v12039_v42, %v2481_v54 }
 0x161   :  { %9646 = vmatprep.subr.mxu1 %v3025_v36  ;;  %10589 = vmatprep.mubr.msk.f32.mxu0 %vm323_vm1, %v231_v40  ;;  %v3003_v40 = vmax.f32 %v2747_v17, 0.0  ;;  %v3018_v36 = vmax.f32 %v2762_v32, 0.0  ;;  %v246_v25 = vld [vmem:[%s15413_s23 + $0x5b8] sm:$0xff] }
 0x162   :  { %v12460_v53 = vpop.f32.mrf.mxu0  ;;  %9647 = vmatpush3.msra.mxu1 %v3009_v14  ;;  %v239_v14 = vld [vmem:[%s15413_s23 + $0x580] sm:$0xff]  ;;  %v2759_v45 = vadd.f32 %v12039_v42, %v2496_v31  ;;  %v3292_v17 = vld [vmem:[%s15363_s4 + $0xd8] sm:$0xff]  ;;  %v3299_v31 = vld [vmem:[%s15363_s4 + $0x110] sm:$0xff] }
 0x163   :  { %9648 = vmatprep.subr.mxu1 %v3024_v47  ;;  %v2743_v47 = vadd.f32 %v12039_v42, %v2480_v3  ;;  %v241_v42 = vld [vmem:[%s15413_s23 + $0x590] sm:$0xff]  ;;  %v3300_v54 = vld [vmem:[%s15363_s4 + $0x118] sm:$0xff] }
 0x164   :  { %v12471_v37 = vpop.f32.mrf.mxu0  ;;  %10590 = vmatmul.mubr.msk.f32.gmra.mxu0 %vm323_vm1, %v232_v13  ;;  %9649 = vmatpush3.msra.mxu1 %v3008_v51  ;;  %v3001_v13 = vmax.f32 %v2745_v62, 0.0  ;;  %v240_v51 = vld [vmem:[%s15413_s23 + $0x588] sm:$0xff]  ;;  %v3015_v61 = vmax.f32 %v2759_v45, 0.0  ;;  %v251_v62 = vld [vmem:[%s15413_s23 + $0x5e0] sm:$0xff]  ;;  %v3315_v45 = vld [vmem:[%s15363_s4 + $0x190] sm:$0xff] }
 0x165   :  { %9650 = vmatprep.subr.mxu1 %v3023_v63  ;;  %10592 = vmatprep.mubr.msk.f32.mxu0 %vm323_vm1, %v233_v24  ;;  %v3000_v24 = vmax.f32 %v2744_v11, 0.0  ;;  %v2999_v63 = vmax.f32 %v2743_v47, 0.0  ;;  %v3324_v47 = vld [vmem:[%s15363_s4 + $0x1d8] sm:$0xff] }
 0x166   :  { %v12484_v7 = vpop.f32.mrf.mxu0  ;;  %9651 = vmatpush3.msra.mxu1 %v3007_v41  ;;  %v242_v41 = vld [vmem:[%s15413_s23 + $0x598] sm:$0xff] }
 0x167   :  { %9652 = vmatprep.subr.mxu1 %v3022_v22  ;;  %v243_v22 = vld [vmem:[%s15413_s23 + $0x5a0] sm:$0xff] }
 0x168   :  { %v12495_v21 = vpop.f32.mrf.mxu0  ;;  %10593 = vmatmul.mubr.msk.f32.gmra.mxu0 %vm323_vm1, %v234_v57  ;;  %9653 = vmatpush3.msra.mxu1 %v3006_v49  ;;  %v3284_v49 = vld [vmem:[%s15363_s4 + $0x98] sm:$0xff] }
 0x169   :  { %9654 = vmatprep.subr.mxu1 %v3021_v58  ;;  %10595 = vmatprep.mubr.msk.f32.mxu0 %vm323_vm1, %v235_v29  ;;  %v3283_v58 = vld [vmem:[%s15363_s4 + $0x90] sm:$0xff] }
 0x16a   :  { %v12508_v18 = vpop.f32.mrf.mxu0  ;;  %9655 = vmatpush3.msra.mxu1 %v3005_v19 }
 0x16b   :  { %9656 = vmatprep.subr.mxu1 %v3020_v60  ;;  %v3291_v60 = vld [vmem:[%s15363_s4 + $0xd0] sm:$0xff] }
 0x16c   :  { %v12519_v34 = vpop.f32.mrf.mxu0  ;;  %10596 = vmatmul.mubr.msk.f32.gmra.mxu0 %vm323_vm1, %v236_v35  ;;  %9657 = vmatpush3.msra.mxu1 %v3004_v55  ;;  %v248_v35 = vld [vmem:[%s15413_s23 + $0x5c8] sm:$0xff]  ;;  %v249_v55 = vld [vmem:[%s15413_s23 + $0x5d0] sm:$0xff] }
 0x16d   :  { %9658 = vmatprep.subr.mxu1 %v3019_v30  ;;  %10598 = vmatprep.mubr.msk.f32.mxu0 %vm323_vm1, %v237_v48  ;;  %v3308_v30 = vld [vmem:[%s15363_s4 + $0x158] sm:$0xff] }
 0x16e   :  { %v12528_v38 = vpop.f32.mrf.mxu0  ;;  %9659 = vmatpush3.msra.mxu1 %v3003_v40 }
 0x16f   :  { %9660 = vmatprep.subr.mxu1 %v3018_v36  ;;  %v252_v36 = vld [vmem:[%s15413_s23 + $0x5e8] sm:$0xff] }
 0x170   :  { %v12535_v1 = vpop.f32.mrf.mxu0  ;;  %10599 = vmatmul.mubr.msk.f32.gmra.mxu0 %vm323_vm1, %v238_v28  ;;  %9661 = vmatpush3.msra.mxu1 %v3002_v0  ;;  %v3316_v28 = vld [vmem:[%s15363_s4 + $0x198] sm:$0xff]  ;;  %v253_v0 = vld [vmem:[%s15413_s23 + $0x5f0] sm:$0xff] }
 0x171   :  { %9662 = vmatprep.subr.mxu1 %v3017_v26  ;;  %10601 = vmatprep.mubr.msk.f32.mxu0 %vm323_vm1, %v239_v14  ;;  %v254_v26 = vld [vmem:[%s15413_s23 + $0x5f8] sm:$0xff] }
 0x172   :  { %v12542_v59 = vpop.f32.mrf.mxu0  ;;  %9663 = vmatpush3.msra.mxu1 %v3001_v13  ;;  %v2527_v13 = vmul.f32 %v12535_v1, %v12024_v33  ;;  %v3323_v33 = vld [vmem:[%s15363_s4 + $0x1d0] sm:$0xff] }
 0x173   :  { %9664 = vmatprep.subr.mxu1 %v3016_v8 }
 0x174   :  { %v12547_v43 = vpop.f32.mrf.mxu0  ;;  %10602 = vmatmul.mubr.msk.f32.gmra.mxu0 %vm323_vm1, %v240_v51  ;;  %9665 = vmatpush3.msra.mxu1 %v3000_v24  ;;  %v255_v51 = vld [vmem:[%s15413_s23 + $0x600] sm:$0xff] }
 0x175   :  { %9666 = vmatprep.subr.mxu1 %v3015_v61  ;;  %10604 = vmatprep.mubr.msk.f32.mxu0 %vm323_vm1, %v241_v42  ;;  %v12670_v24 = vld [vmem:[%s15414_s30] ss:$0 sm:$0xff] }
 0x176   :  { %v12560_v56 = vpop.f32.mrf.mxu0  ;;  %9667 = vmatpush3.msra.mxu1 %v2999_v63  ;;  %v2526_v42 = vmul.f32 %v12670_v24, %v12542_v59  ;;  %v3270_v59 = vld [vmem:[%s15363_s4 + $0x28] sm:$0xff] }
 0x177   :  { %3499 = vmatmul.mubr.f32.vlgmr.msra.gmra.mxu1 %v3267_v10  ;;  %v256_v10 = vld [vmem:[%s15413_s23 + $0x608] sm:$0xff] }
 0x178   :  { %v12565_v57 = vpop.f32.mrf.mxu0  ;;  %10605 = vmatmul.mubr.msk.f32.gmra.mxu0 %vm323_vm1, %v242_v41  ;;  %3503 = vmatprep.mubr.f32.mxu1 %v3276_v4  ;;  %v2525_v41 = vmul.f32 %v12670_v24, %v12519_v34  ;;  %v12692_v4 = vld [vmem:[%s15415_s25] ss:$0 sm:$0xff]  ;;  %v2524_v34 = vmul.f32 %v12670_v24, %v12528_v38  ;;  %v258_v38 = vld [vmem:[%s15413_s23 + $0x618] sm:$0xff] }
 0x179   :  { %10607 = vmatprep.mubr.msk.f32.mxu0 %vm323_vm1, %v243_v22  ;;  %v2790_v22 = vadd.f32 %v12692_v4, %v2527_v13 }
 0x17a   :  { %v12578_v29 = vpop.f32.mrf.mxu0 }
 0x17b   :  { %3504 = vmatmul.mubr.f32.gmra.mxu1 %v3275_v52 }
 0x17c   :  { %v12583_v9 = vpop.f32.mrf.mxu0  ;;  %10608 = vmatmul.mubr.msk.f32.gmra.mxu0 %vm323_vm1, %v244_v6  ;;  %3508 = vmatprep.mubr.f32.mxu1 %v3284_v49  ;;  %v257_v6 = vld [vmem:[%s15413_s23 + $0x610] sm:$0xff] }
 0x17d   :  { %10610 = vmatprep.mubr.msk.f32.mxu0 %vm323_vm1, %v245_v2 }
 0x17e   :  { %v12596_v19 = vpop.f32.mrf.mxu0 }
 0x17f   :  { %3509 = vmatmul.mubr.f32.gmra.mxu1 %v3283_v58 }
 0x180   :  { %v12601_v32 = vpop.f32.mrf.mxu0  ;;  %10611 = vmatmul.mubr.msk.f32.gmra.mxu0 %vm323_vm1, %v246_v25  ;;  %3513 = vmatprep.mubr.f32.mxu1 %v3292_v17  ;;  %v2789_v25 = vadd.f32 %v12692_v4, %v2526_v42 }
 0x181   :  { %10613 = vmatprep.mubr.msk.f32.mxu0 %vm323_vm1, %v247_v23 }
 0x182   :  { %v12614_v15 = vpop.f32.mrf.mxu0 }
 0x183   :  { %3514 = vmatmul.mubr.f32.gmra.mxu1 %v3291_v60 }
 0x184   :  { %v12619_v48 = vpop.f32.mrf.mxu0  ;;  %10614 = vmatmul.mubr.msk.f32.gmra.mxu0 %vm323_vm1, %v248_v35  ;;  %3518 = vmatprep.mubr.f32.mxu1 %v3300_v54 }
 0x185   :  { %10616 = vmatprep.mubr.msk.f32.mxu0 %vm323_vm1, %v249_v55  ;;  %v2523_v55 = vmul.f32 %v12670_v24, %v12495_v21  ;;  %v2787_v21 = vadd.f32 %v12692_v4, %v2524_v34 }
 0x186   :  { %v12632_v3 = vpop.f32.mrf.mxu0 }
 0x187   :  { %3519 = vmatmul.mubr.f32.gmra.mxu1 %v3299_v31  ;;  %v2788_v31 = vadd.f32 %v12692_v4, %v2525_v41  ;;  %v2786_v13 = vadd.f32 %v12692_v4, %v2523_v55  ;;  %v2536_v42 = vmul.f32 %v12670_v24, %v12632_v3 }
 0x188   :  { %v10474_v40 = vpop.f32.mrf.mxu0  ;;  %10617 = vmatmul.mubr.msk.f32.gmra.mxu0 %vm323_vm1, %v250_v50  ;;  %3523 = vmatprep.mubr.f32.mxu1 %v3308_v30  ;;  %v3046_v50 = vmax.f32 %v2790_v22, 0.0  ;;  %v2519_v22 = vmul.f32 %v12670_v24, %v12447_v46  ;;  %v2518_v46 = vmul.f32 %v12670_v24, %v12460_v53  ;;  %v264_v53 = vld [vmem:[%s15413_s23 + $0x648] sm:$0xff] }
 0x189   :  { %10619 = vmatprep.mubr.msk.f32.mxu0 %vm323_vm1, %v251_v62  ;;  %v2539_v23 = vmul.f32 %v12670_v24, %v10474_v40  ;;  %v259_v62 = vld [vmem:[%s15413_s23 + $0x620] sm:$0xff] }
 0x18a   :  { %v1612_v11 = vpop.f32.mrf.mxu0  ;;  %v2782_v55 = vadd.f32 %v12692_v4, %v2519_v22 }
 0x18b   :  { %3524 = vmatmul.mubr.f32.gmra.mxu1 %v3307_v44  ;;  %v2538_v40 = vmul.f32 %v12670_v24, %v1612_v11  ;;  %v2802_v11 = vadd.f32 %v12692_v4, %v2539_v23 }
 0x18c   :  { %v10477_v14 = vpop.f32.mrf.mxu0  ;;  %10620 = vmatmul.mubr.msk.f32.gmra.mxu0 %vm323_vm1, %v252_v36  ;;  %3528 = vmatprep.mubr.f32.mxu1 %v3316_v28  ;;  %v2522_v28 = vmul.f32 %v12670_v24, %v12508_v18  ;;  %v260_v18 = vld [vmem:[%s15413_s23 + $0x628] sm:$0xff] }
 0x18d   :  { %10622 = vmatprep.mubr.msk.f32.mxu0 %vm323_vm1, %v253_v0  ;;  %v2541_v1 = vmul.f32 %v12670_v24, %v10477_v14  ;;  %v3045_v0 = vmax.f32 %v2789_v25, 0.0  ;;  %v3058_v41 = vmax.f32 %v2802_v11, 0.0  ;;  %v2515_v11 = vmul.f32 %v12670_v24, %v12399_v5 }
 0x18e   :  { %v1622_v8 = vpop.f32.mrf.mxu0  ;;  %v2514_v5 = vmul.f32 %v12670_v24, %v12412_v16  ;;  %v268_v16 = vld [vmem:[%s15413_s23 + $0x668] sm:$0xff] }
 0x18f   :  { %3529 = vmatmul.mubr.f32.gmra.mxu1 %v3315_v45  ;;  %v2540_v49 = vmul.f32 %v12670_v24, %v1622_v8  ;;  %v2804_v60 = vadd.f32 %v12692_v4, %v2541_v1  ;;  %v2537_v45 = vmul.f32 %v12670_v24, %v12619_v48  ;;  %v3044_v8 = vmax.f32 %v2788_v31, 0.0  ;;  %v261_v48 = vld [vmem:[%s15413_s23 + $0x630] sm:$0xff] }
 0x190   :  { %v10480_v61 = vpop.f32.mrf.mxu0  ;;  %10623 = vmatmul.mubr.msk.f32.gmra.mxu0 %vm323_vm1, %v254_v26  ;;  %3533 = vmatprep.mubr.f32.mxu1 %v3324_v47  ;;  %v2521_v47 = vmul.f32 %v12670_v24, %v12471_v37  ;;  %v2520_v37 = vmul.f32 %v12670_v24, %v12484_v7  ;;  %v2785_v1 = vadd.f32 %v12692_v4, %v2522_v28  ;;  %v262_v7 = vld [vmem:[%s15413_s23 + $0x638] sm:$0xff] }
 0x191   :  { %v2543_v63 = vmul.f32 %v12670_v24, %v10480_v61  ;;  %10625 = vmatprep.mubr.msk.f32.mxu0 %vm323_vm1, %v255_v51  ;;  %v2803_v44 = vadd.f32 %v12692_v4, %v2540_v49  ;;  %v3060_v26 = vmax.f32 %v2804_v60, 0.0  ;;  %v2801_v61 = vadd.f32 %v12692_v4, %v2538_v40 }
 0x192   :  { %v1632_v52 = vpop.f32.mrf.mxu0  ;;  %v2800_v3 = vadd.f32 %v12692_v4, %v2537_v45  ;;  %v2783_v25 = vadd.f32 %v12692_v4, %v2520_v37  ;;  %v3041_v23 = vmax.f32 %v2785_v1, 0.0  ;;  %v2529_v37 = vmul.f32 %v12670_v24, %v12547_v43  ;;  %v269_v43 = vld [vmem:[%s15413_s23 + $0x670] sm:$0xff] }
 0x193   :  { %v2806_v2 = vadd.f32 %v12692_v4, %v2543_v63  ;;  %v2542_v58 = vmul.f32 %v12670_v24, %v1632_v52  ;;  %3534 = vmatmul.mubr.f32.gmra.mxu1 %v3323_v33  ;;  %v3059_v33 = vmax.f32 %v2803_v44, 0.0  ;;  %v3043_v63 = vmax.f32 %v2787_v21, 0.0 }
 0x194   :  { %v12704_v17 = vpop.f32.mrf.mxu0  ;;  %10626 = vmatmul.mubr.msk.f32.gmra.mxu0 %vm323_vm1, %v256_v10  ;;  %3603 = vmatprep.mubr.f32.mxu1 %v3270_v59  ;;  %v2535_v59 = vmul.f32 %v12670_v24, %v12601_v32  ;;  %v2784_v52 = vadd.f32 %v12692_v4, %v2521_v47  ;;  %v263_v32 = vld [vmem:[%s15413_s23 + $0x640] sm:$0xff]  ;;  %v3057_v34 = vmax.f32 %v2801_v61, 0.0  ;;  %v3039_v28 = vmax.f32 %v2783_v25, 0.0 }
 0x195   :  { %v3062_v35 = vmax.f32 %v2806_v2, 0.0  ;;  %v2805_v54 = vadd.f32 %v12692_v4, %v2542_v58  ;;  %10628 = vmatprep.mubr.msk.f32.mxu0 %vm323_vm1, %v257_v6  ;;  %v3042_v6 = vmax.f32 %v2786_v13, 0.0  ;;  %v2534_v2 = vmul.f32 %v12670_v24, %v12614_v15 }
 0x196   :  { %v12717_v30 = vpop.f32.mrf.mxu0  ;;  %v2799_v58 = vadd.f32 %v12692_v4, %v2536_v42  ;;  %v2798_v15 = vadd.f32 %v12692_v4, %v2535_v59  ;;  %v3040_v31 = vmax.f32 %v2784_v52, 0.0  ;;  %v2530_v13 = vmul.f32 %v12670_v24, %v12578_v29 }
 0x197   :  { %9692 = vmatprep.subr.mxu1 %v3062_v35  ;;  %v3061_v36 = vmax.f32 %v2805_v54, 0.0  ;;  %v2533_v35 = vmul.f32 %v12670_v24, %v12583_v9  ;;  %v3056_v54 = vmax.f32 %v2800_v3, 0.0  ;;  %v265_v9 = vld [vmem:[%s15413_s23 + $0x650] sm:$0xff]  ;;  %v2797_v40 = vadd.f32 %v12692_v4, %v2534_v2 }
 0x198   :  { %v12727_v14 = vpop.f32.mrf.mxu0  ;;  %10629 = vmatmul.mubr.msk.f32.gmra.mxu0 %vm323_vm1, %v258_v38  ;;  %9693 = vmatpush3.msra.mxu1 %v3046_v50  ;;  %v2517_v38 = vmul.f32 %v12670_v24, %v12423_v27  ;;  %v3055_v44 = vmax.f32 %v2799_v58, 0.0  ;;  %v2516_v27 = vmul.f32 %v12670_v24, %v12436_v12  ;;  %v3054_v45 = vmax.f32 %v2798_v15, 0.0  ;;  %v266_v12 = vld [vmem:[%s15413_s23 + $0x658] sm:$0xff] }
 0x199   :  { %9694 = vmatprep.subr.mxu1 %v3061_v36  ;;  %10631 = vmatprep.mubr.msk.f32.mxu0 %vm323_vm1, %v259_v62  ;;  %v2532_v62 = vmul.f32 %v12670_v24, %v12596_v19  ;;  %v2781_v36 = vadd.f32 %v12692_v4, %v2518_v46  ;;  %v2796_v19 = vadd.f32 %v12692_v4, %v2533_v35 }
 0x19a   :  { %v12740_v51 = vpop.f32.mrf.mxu0  ;;  %9695 = vmatpush3.msra.mxu1 %v3045_v0  ;;  %v2531_v0 = vmul.f32 %v12670_v24, %v12565_v57  ;;  %v267_v57 = vld [vmem:[%s15413_s23 + $0x660] sm:$0xff]  ;;  %v2779_v42 = vadd.f32 %v12692_v4, %v2516_v27  ;;  %v2778_v59 = vadd.f32 %v12692_v4, %v2515_v11  ;;  %v2793_v22 = vadd.f32 %v12692_v4, %v2530_v13 }
 0x19b   :  { %9696 = vmatprep.subr.mxu1 %v3060_v26  ;;  %v2780_v26 = vadd.f32 %v12692_v4, %v2517_v38  ;;  %v3037_v61 = vmax.f32 %v2781_v36, 0.0  ;;  %v3052_v1 = vmax.f32 %v2796_v19, 0.0  ;;  %v2792_v58 = vadd.f32 %v12692_v4, %v2529_v37  ;;  %v3278_v19 = vld [vmem:[%s15363_s4 + $0x68] sm:$0xff] }
 0x19c   :  { %v12751_v10 = vpop.f32.mrf.mxu0  ;;  %10632 = vmatmul.mubr.msk.f32.gmra.mxu0 %vm323_vm1, %v260_v18  ;;  %9697 = vmatpush3.msra.mxu1 %v3044_v8  ;;  %v3038_v18 = vmax.f32 %v2782_v55, 0.0  ;;  %v2795_v8 = vadd.f32 %v12692_v4, %v2532_v62  ;;  %v2794_v29 = vadd.f32 %v12692_v4, %v2531_v0  ;;  %v3034_v46 = vmax.f32 %v2778_v59, 0.0  ;;  %v274_v0 = vld [vmem:[%s15413_s23 + $0x698] sm:$0xff]  ;;  %v3302_v59 = vld [vmem:[%s15363_s4 + $0x128] sm:$0xff] }
 0x19d   :  { %9698 = vmatprep.subr.mxu1 %v3059_v33  ;;  %10634 = vmatprep.mubr.msk.f32.mxu0 %vm323_vm1, %v261_v48  ;;  %v3053_v48 = vmax.f32 %v2797_v40, 0.0  ;;  %v3036_v3 = vmax.f32 %v2780_v26, 0.0  ;;  %v3049_v15 = vmax.f32 %v2793_v22, 0.0  ;;  %v3048_v55 = vmax.f32 %v2792_v58, 0.0  ;;  %v273_v40 = vld [vmem:[%s15413_s23 + $0x690] sm:$0xff]  ;;  %v3277_v26 = vld [vmem:[%s15363_s4 + $0x60] sm:$0xff] }
 0x19e   :  { %v12764_v49 = vpop.f32.mrf.mxu0  ;;  %9699 = vmatpush3.msra.mxu1 %v3043_v63  ;;  %v2513_v63 = vmul.f32 %v12670_v24, %v12376_v20  ;;  %v3051_v52 = vmax.f32 %v2795_v8, 0.0  ;;  %v2512_v20 = vmul.f32 %v12670_v24, %v12389_v39  ;;  %v277_v8 = vld [vmem:[%s15413_s23 + $0x6b0] sm:$0xff]  ;;  %v3301_v22 = vld [vmem:[%s15363_s4 + $0x120] sm:$0xff] }
 0x19f   :  { %9700 = vmatprep.subr.mxu1 %v3058_v41 }
 0x1a0   :  { %v12775_v60 = vpop.f32.mrf.mxu0  ;;  %10635 = vmatmul.mubr.msk.f32.gmra.mxu0 %vm323_vm1, %v262_v7  ;;  %9701 = vmatpush3.msra.mxu1 %v3042_v6  ;;  %v2528_v7 = vmul.f32 %v12670_v24, %v12560_v56  ;;  %v2777_v6 = vadd.f32 %v12692_v4, %v2514_v5  ;;  %v270_v56 = vld [vmem:[%s15413_s23 + $0x678] sm:$0xff]  ;;  %v2776_v39 = vadd.f32 %v12692_v4, %v2513_v63  ;;  %v3285_v5 = vld [vmem:[%s15363_s4 + $0xa0] sm:$0xff]  ;;  %v280_v63 = vld [vmem:[%s15413_s23 + $0x6c8] sm:$0xff] }
 0x1a1   :  { %9702 = vmatprep.subr.mxu1 %v3057_v34  ;;  %10637 = vmatprep.mubr.msk.f32.mxu0 %vm323_vm1, %v263_v32  ;;  %v3035_v32 = vmax.f32 %v2779_v42, 0.0  ;;  %v3050_v34 = vmax.f32 %v2794_v29, 0.0  ;;  %v278_v42 = vld [vmem:[%s15413_s23 + $0x6b8] sm:$0xff]  ;;  %v279_v29 = vld [vmem:[%s15413_s23 + $0x6c0] sm:$0xff] }
 0x1a2   :  { %v12788_v50 = vpop.f32.mrf.mxu0  ;;  %9703 = vmatpush3.msra.mxu1 %v3041_v23  ;;  %v271_v23 = vld [vmem:[%s15413_s23 + $0x680] sm:$0xff]  ;;  %v2791_v35 = vadd.f32 %v12692_v4, %v2528_v7 }
 0x1a3   :  { %9704 = vmatprep.subr.mxu1 %v3056_v54  ;;  %v2775_v54 = vadd.f32 %v12692_v4, %v2512_v20  ;;  %v3310_v20 = vld [vmem:[%s15363_s4 + $0x168] sm:$0xff] }
 0x1a4   :  { %v12799_v21 = vpop.f32.mrf.mxu0  ;;  %10638 = vmatmul.mubr.msk.f32.gmra.mxu0 %vm323_vm1, %v264_v53  ;;  %9705 = vmatpush3.msra.mxu1 %v3040_v31  ;;  %v3033_v53 = vmax.f32 %v2777_v6, 0.0  ;;  %v272_v31 = vld [vmem:[%s15413_s23 + $0x688] sm:$0xff] }
 0x1a5   :  { %9706 = vmatprep.subr.mxu1 %v3055_v44  ;;  %10640 = vmatprep.mubr.msk.f32.mxu0 %vm323_vm1, %v265_v9  ;;  %v3032_v9 = vmax.f32 %v2776_v39, 0.0  ;;  %v3047_v44 = vmax.f32 %v2791_v35, 0.0  ;;  %v3031_v27 = vmax.f32 %v2775_v54, 0.0  ;;  %v3318_v39 = vld [vmem:[%s15363_s4 + $0x1a8] sm:$0xff]  ;;  %v286_v54 = vld [vmem:[%s15413_s23 + $0x6f8] sm:$0xff] }
 0x1a6   :  { %v12812_v47 = vpop.f32.mrf.mxu0  ;;  %9707 = vmatpush3.msra.mxu1 %v3039_v28  ;;  %v3269_v28 = vld [vmem:[%s15363_s4 + $0x20] sm:$0xff] }
 0x1a7   :  { %9708 = vmatprep.subr.mxu1 %v3054_v45 }
 0x1a8   :  { %v12823_v33 = vpop.f32.mrf.mxu0  ;;  %10641 = vmatmul.mubr.msk.f32.gmra.mxu0 %vm323_vm1, %v266_v12  ;;  %9709 = vmatpush3.msra.mxu1 %v3038_v18  ;;  %v275_v12 = vld [vmem:[%s15413_s23 + $0x6a0] sm:$0xff]  ;;  %v276_v18 = vld [vmem:[%s15413_s23 + $0x6a8] sm:$0xff] }
 0x1a9   :  { %9710 = vmatprep.subr.mxu1 %v3053_v48  ;;  %10643 = vmatprep.mubr.msk.f32.mxu0 %vm323_vm1, %v267_v57  ;;  %v3286_v57 = vld [vmem:[%s15363_s4 + $0xa8] sm:$0xff] }
 0x1aa   :  { %v12836_v41 = vpop.f32.mrf.mxu0  ;;  %9711 = vmatpush3.msra.mxu1 %v3037_v61  ;;  %v3294_v61 = vld [vmem:[%s15363_s4 + $0xe8] sm:$0xff] }
 0x1ab   :  { %9712 = vmatprep.subr.mxu1 %v3052_v1 }
 0x1ac   :  { %v12847_v2 = vpop.f32.mrf.mxu0  ;;  %10644 = vmatmul.mubr.msk.f32.gmra.mxu0 %vm323_vm1, %v268_v16  ;;  %9713 = vmatpush3.msra.mxu1 %v3036_v3  ;;  %v3293_v16 = vld [vmem:[%s15363_s4 + $0xe0] sm:$0xff] }
 0x1ad   :  { %9714 = vmatprep.subr.mxu1 %v3051_v52  ;;  %10646 = vmatprep.mubr.msk.f32.mxu0 %vm323_vm1, %v269_v43  ;;  %v281_v43 = vld [vmem:[%s15413_s23 + $0x6d0] sm:$0xff]  ;;  %v282_v52 = vld [vmem:[%s15413_s23 + $0x6d8] sm:$0xff] }
 0x1ae   :  { %v12856_v25 = vpop.f32.mrf.mxu0  ;;  %9715 = vmatpush3.msra.mxu1 %v3035_v32  ;;  %v283_v32 = vld [vmem:[%s15413_s23 + $0x6e0] sm:$0xff] }
 0x1af   :  { %9716 = vmatprep.subr.mxu1 %v3050_v34  ;;  %v3309_v34 = vld [vmem:[%s15363_s4 + $0x160] sm:$0xff] }
 0x1b0   :  { %v12863_v38 = vpop.f32.mrf.mxu0  ;;  %10647 = vmatmul.mubr.msk.f32.gmra.mxu0 %vm323_vm1, %v270_v56  ;;  %9717 = vmatpush3.msra.mxu1 %v3034_v46  ;;  %v284_v56 = vld [vmem:[%s15413_s23 + $0x6e8] sm:$0xff] }
 0x1b1   :  { %9718 = vmatprep.subr.mxu1 %v3049_v15  ;;  %10649 = vmatprep.mubr.msk.f32.mxu0 %vm323_vm1, %v271_v23  ;;  %v285_v23 = vld [vmem:[%s15413_s23 + $0x6f0] sm:$0xff]  ;;  %v3317_v15 = vld [vmem:[%s15363_s4 + $0x1a0] sm:$0xff] }
 0x1b2   :  { %v12870_v62 = vpop.f32.mrf.mxu0  ;;  %9719 = vmatpush3.msra.mxu1 %v3033_v53  ;;  %v3326_v53 = vld [vmem:[%s15363_s4 + $0x1e8] sm:$0xff] }
 0x1b3   :  { %9720 = vmatprep.subr.mxu1 %v3048_v55  ;;  %v2559_v55 = vmul.f32 %v12670_v24, %v12863_v38 }
 0x1b4   :  { %v12875_v36 = vpop.f32.mrf.mxu0  ;;  %10650 = vmatmul.mubr.msk.f32.gmra.mxu0 %vm323_vm1, %v272_v31  ;;  %9721 = vmatpush3.msra.mxu1 %v3032_v9  ;;  %v287_v9 = vld [vmem:[%s15413_s23 + $0x700] sm:$0xff] }
 0x1b5   :  { %9722 = vmatprep.subr.mxu1 %v3047_v44  ;;  %10652 = vmatprep.mubr.msk.f32.mxu0 %vm323_vm1, %v273_v40  ;;  %v2558_v40 = vmul.f32 %v12670_v24, %v12870_v62  ;;  %v3272_v62 = vld [vmem:[%s15363_s4 + $0x38] sm:$0xff] }
 0x1b6   :  { %v12888_v45 = vpop.f32.mrf.mxu0  ;;  %9723 = vmatpush3.msra.mxu1 %v3031_v27  ;;  %v3325_v27 = vld [vmem:[%s15363_s4 + $0x1e0] sm:$0xff] }
 0x1b7   :  { %3604 = vmatmul.mubr.f32.vlgmr.msra.gmra.mxu1 %v3269_v28 }
 0x1b8   :  { %v12893_v11 = vpop.f32.mrf.mxu0  ;;  %10653 = vmatmul.mubr.msk.f32.gmra.mxu0 %vm323_vm1, %v274_v0  ;;  %3608 = vmatprep.mubr.f32.mxu1 %v3278_v19  ;;  %v288_v0 = vld [vmem:[%s15413_s23 + $0x708] sm:$0xff]  ;;  %v2557_v19 = vmul.f32 %v12670_v24, %v12847_v2 }
 0x1b9   :  { %10655 = vmatprep.mubr.msk.f32.mxu0 %vm323_vm1, %v275_v12  ;;  %v2822_v12 = vadd.f32 %v12692_v4, %v2559_v55 }
 0x1ba   :  { %v12906_v13 = vpop.f32.mrf.mxu0 }
 0x1bb   :  { %3609 = vmatmul.mubr.f32.gmra.mxu1 %v3277_v26 }
 0x1bc   :  { %v12911_v48 = vpop.f32.mrf.mxu0  ;;  %10656 = vmatmul.mubr.msk.f32.gmra.mxu0 %vm323_vm1, %v276_v18  ;;  %3613 = vmatprep.mubr.f32.mxu1 %v3286_v57  ;;  %v289_v18 = vld [vmem:[%s15413_s23 + $0x710] sm:$0xff] }
 0x1bd   :  { %10658 = vmatprep.mubr.msk.f32.mxu0 %vm323_vm1, %v277_v8 }
 0x1be   :  { %v12924_v37 = vpop.f32.mrf.mxu0 }
 0x1bf   :  { %3614 = vmatmul.mubr.f32.gmra.mxu1 %v3285_v5 }
 0x1c0   :  { %v12929_v1 = vpop.f32.mrf.mxu0  ;;  %10659 = vmatmul.mubr.msk.f32.gmra.mxu0 %vm323_vm1, %v278_v42  ;;  %3618 = vmatprep.mubr.f32.mxu1 %v3294_v61  ;;  %v2556_v42 = vmul.f32 %v12670_v24, %v12856_v25  ;;  %v2821_v61 = vadd.f32 %v12692_v4, %v2558_v40  ;;  %v290_v25 = vld [vmem:[%s15413_s23 + $0x718] sm:$0xff] }
 0x1c1   :  { %10661 = vmatprep.mubr.msk.f32.mxu0 %vm323_vm1, %v279_v29 }
 0x1c2   :  { %v12942_v3 = vpop.f32.mrf.mxu0 }
 0x1c3   :  { %3619 = vmatmul.mubr.f32.gmra.mxu1 %v3293_v16 }
 0x1c4   :  { %v12947_v7 = vpop.f32.mrf.mxu0  ;;  %10662 = vmatmul.mubr.msk.f32.gmra.mxu0 %vm323_vm1, %v280_v63  ;;  %3623 = vmatprep.mubr.f32.mxu1 %v3302_v59 }
 0x1c5   :  { %10664 = vmatprep.mubr.msk.f32.mxu0 %vm323_vm1, %v281_v43  ;;  %v2555_v43 = vmul.f32 %v12670_v24, %v12823_v33  ;;  %v2819_v33 = vadd.f32 %v12692_v4, %v2556_v42 }
 0x1c6   :  { %v12960_v6 = vpop.f32.mrf.mxu0 }
 0x1c7   :  { %3624 = vmatmul.mubr.f32.gmra.mxu1 %v3301_v22  ;;  %v2820_v22 = vadd.f32 %v12692_v4, %v2557_v19  ;;  %v2818_v55 = vadd.f32 %v12692_v4, %v2555_v43  ;;  %v2568_v40 = vmul.f32 %v12670_v24, %v12960_v6 }
 0x1c8   :  { %v10522_v58 = vpop.f32.mrf.mxu0  ;;  %10665 = vmatmul.mubr.msk.f32.gmra.mxu0 %vm323_vm1, %v282_v52  ;;  %3628 = vmatprep.mubr.f32.mxu1 %v3310_v20  ;;  %v3078_v52 = vmax.f32 %v2822_v12, 0.0  ;;  %v2551_v12 = vmul.f32 %v12670_v24, %v12775_v60  ;;  %v2550_v60 = vmul.f32 %v12670_v24, %v12788_v50  ;;  %v296_v50 = vld [vmem:[%s15413_s23 + $0x748] sm:$0xff] }
 0x1c9   :  { %10667 = vmatprep.mubr.msk.f32.mxu0 %vm323_vm1, %v283_v32  ;;  %v2571_v29 = vmul.f32 %v12670_v24, %v10522_v58  ;;  %v291_v32 = vld [vmem:[%s15413_s23 + $0x720] sm:$0xff] }
 0x1ca   :  { %v1772_v46 = vpop.f32.mrf.mxu0  ;;  %v2814_v43 = vadd.f32 %v12692_v4, %v2551_v12 }
 0x1cb   :  { %3629 = vmatmul.mubr.f32.gmra.mxu1 %v3309_v34  ;;  %v2570_v58 = vmul.f32 %v12670_v24, %v1772_v46  ;;  %v2834_v46 = vadd.f32 %v12692_v4, %v2571_v29 }
 0x1cc   :  { %v10525_v35 = vpop.f32.mrf.mxu0  ;;  %10668 = vmatmul.mubr.msk.f32.gmra.mxu0 %vm323_vm1, %v284_v56  ;;  %3633 = vmatprep.mubr.f32.mxu1 %v3318_v39  ;;  %v2554_v39 = vmul.f32 %v12670_v24, %v12836_v41  ;;  %v292_v41 = vld [vmem:[%s15413_s23 + $0x728] sm:$0xff] }
 0x1cd   :  { %10670 = vmatprep.mubr.msk.f32.mxu0 %vm323_vm1, %v285_v23  ;;  %v2573_v28 = vmul.f32 %v12670_v24, %v10525_v35  ;;  %v3077_v23 = vmax.f32 %v2821_v61, 0.0  ;;  %v3090_v19 = vmax.f32 %v2834_v46, 0.0  ;;  %v2547_v46 = vmul.f32 %v12670_v24, %v12727_v14 }
 0x1ce   :  { %v1782_v31 = vpop.f32.mrf.mxu0  ;;  %v2546_v14 = vmul.f32 %v12670_v24, %v12740_v51  ;;  %v300_v51 = vld [vmem:[%s15413_s23 + $0x768] sm:$0xff] }
 0x1cf   :  { %3634 = vmatmul.mubr.f32.gmra.mxu1 %v3317_v15  ;;  %v2572_v57 = vmul.f32 %v12670_v24, %v1782_v31  ;;  %v2836_v16 = vadd.f32 %v12692_v4, %v2573_v28  ;;  %v2569_v15 = vmul.f32 %v12670_v24, %v12947_v7  ;;  %v3076_v31 = vmax.f32 %v2820_v22, 0.0  ;;  %v293_v7 = vld [vmem:[%s15413_s23 + $0x730] sm:$0xff] }
 0x1d0   :  { %v10528_v44 = vpop.f32.mrf.mxu0  ;;  %10671 = vmatmul.mubr.msk.f32.gmra.mxu0 %vm323_vm1, %v286_v54  ;;  %3638 = vmatprep.mubr.f32.mxu1 %v3326_v53  ;;  %v2553_v53 = vmul.f32 %v12670_v24, %v12799_v21  ;;  %v2552_v21 = vmul.f32 %v12670_v24, %v12812_v47  ;;  %v2817_v28 = vadd.f32 %v12692_v4, %v2554_v39  ;;  %v294_v47 = vld [vmem:[%s15413_s23 + $0x738] sm:$0xff] }
 0x1d1   :  { %v2575_v38 = vmul.f32 %v12670_v24, %v10528_v44  ;;  %10673 = vmatprep.mubr.msk.f32.mxu0 %vm323_vm1, %v287_v9  ;;  %v2835_v34 = vadd.f32 %v12692_v4, %v2572_v57  ;;  %v3092_v54 = vmax.f32 %v2836_v16, 0.0  ;;  %v2833_v44 = vadd.f32 %v12692_v4, %v2570_v58 }
 0x1d2   :  { %v1792_v26 = vpop.f32.mrf.mxu0  ;;  %v2832_v6 = vadd.f32 %v12692_v4, %v2569_v15  ;;  %v2815_v61 = vadd.f32 %v12692_v4, %v2552_v21  ;;  %v3073_v29 = vmax.f32 %v2817_v28, 0.0  ;;  %v2561_v21 = vmul.f32 %v12670_v24, %v12875_v36  ;;  %v301_v36 = vld [vmem:[%s15413_s23 + $0x770] sm:$0xff] }
 0x1d3   :  { %v2838_v8 = vadd.f32 %v12692_v4, %v2575_v38  ;;  %v2574_v5 = vmul.f32 %v12670_v24, %v1792_v26  ;;  %3639 = vmatmul.mubr.f32.gmra.mxu1 %v3325_v27  ;;  %v3091_v27 = vmax.f32 %v2835_v34, 0.0  ;;  %v3075_v38 = vmax.f32 %v2819_v33, 0.0 }
 0x1d4   :  { %v13022_v2 = vpop.f32.mrf.mxu0  ;;  %10674 = vmatmul.mubr.msk.f32.gmra.mxu0 %vm323_vm1, %v288_v0  ;;  %3708 = vmatprep.mubr.f32.mxu1 %v3272_v62  ;;  %v2567_v62 = vmul.f32 %v12670_v24, %v12929_v1  ;;  %v2816_v26 = vadd.f32 %v12692_v4, %v2553_v53  ;;  %v295_v1 = vld [vmem:[%s15413_s23 + $0x740] sm:$0xff]  ;;  %v3089_v42 = vmax.f32 %v2833_v44, 0.0  ;;  %v3071_v39 = vmax.f32 %v2815_v61, 0.0 }
 0x1d5   :  { %v3094_v63 = vmax.f32 %v2838_v8, 0.0  ;;  %v2837_v59 = vadd.f32 %v12692_v4, %v2574_v5  ;;  %10676 = vmatprep.mubr.msk.f32.mxu0 %vm323_vm1, %v289_v18  ;;  %v3074_v18 = vmax.f32 %v2818_v55, 0.0  ;;  %v2566_v8 = vmul.f32 %v12670_v24, %v12942_v3  ;;  %v303_v61 = vld [vmem:[%s15413_s23 + $0x780] sm:$0xff] }
 0x1d6   :  { %v13035_v20 = vpop.f32.mrf.mxu0  ;;  %v2831_v5 = vadd.f32 %v12692_v4, %v2568_v40  ;;  %v2830_v3 = vadd.f32 %v12692_v4, %v2567_v62  ;;  %v3072_v22 = vmax.f32 %v2816_v26, 0.0  ;;  %v2562_v55 = vmul.f32 %v12670_v24, %v12906_v13 }
 0x1d7   :  { %9748 = vmatprep.subr.mxu1 %v3094_v63  ;;  %v3093_v56 = vmax.f32 %v2837_v59, 0.0  ;;  %v2565_v63 = vmul.f32 %v12670_v24, %v12911_v48  ;;  %v3088_v59 = vmax.f32 %v2832_v6, 0.0  ;;  %v297_v48 = vld [vmem:[%s15413_s23 + $0x750] sm:$0xff]  ;;  %v2829_v58 = vadd.f32 %v12692_v4, %v2566_v8 }
 0x1d8   :  { %v13045_v35 = vpop.f32.mrf.mxu0  ;;  %10677 = vmatmul.mubr.msk.f32.gmra.mxu0 %vm323_vm1, %v290_v25  ;;  %9749 = vmatpush3.msra.mxu1 %v3078_v52  ;;  %v2549_v25 = vmul.f32 %v12670_v24, %v12751_v10  ;;  %v3087_v34 = vmax.f32 %v2831_v5, 0.0  ;;  %v2548_v10 = vmul.f32 %v12670_v24, %v12764_v49  ;;  %v3086_v15 = vmax.f32 %v2830_v3, 0.0  ;;  %v298_v49 = vld [vmem:[%s15413_s23 + $0x758] sm:$0xff] }
 0x1d9   :  { %9750 = vmatprep.subr.mxu1 %v3093_v56  ;;  %10679 = vmatprep.mubr.msk.f32.mxu0 %vm323_vm1, %v291_v32  ;;  %v2564_v32 = vmul.f32 %v12670_v24, %v12924_v37  ;;  %v2813_v56 = vadd.f32 %v12692_v4, %v2550_v60  ;;  %v2828_v37 = vadd.f32 %v12692_v4, %v2565_v63 }
 0x1da   :  { %v13058_v9 = vpop.f32.mrf.mxu0  ;;  %9751 = vmatpush3.msra.mxu1 %v3077_v23  ;;  %v2563_v23 = vmul.f32 %v12670_v24, %v12893_v11  ;;  %v299_v11 = vld [vmem:[%s15413_s23 + $0x760] sm:$0xff]  ;;  %v2811_v40 = vadd.f32 %v12692_v4, %v2548_v10  ;;  %v2810_v62 = vadd.f32 %v12692_v4, %v2547_v46  ;;  %v2825_v12 = vadd.f32 %v12692_v4, %v2562_v55  ;;  %v3271_v10 = vld [vmem:[%s15363_s4 + $0x30] sm:$0xff] }
 0x1db   :  { %9752 = vmatprep.subr.mxu1 %v3092_v54  ;;  %v2812_v54 = vadd.f32 %v12692_v4, %v2549_v25  ;;  %v3069_v44 = vmax.f32 %v2813_v56, 0.0  ;;  %v3084_v28 = vmax.f32 %v2828_v37, 0.0  ;;  %v2824_v5 = vadd.f32 %v12692_v4, %v2561_v21  ;;  %v306_v56 = vld [vmem:[%s15413_s23 + $0x798] sm:$0xff]  ;;  %v307_v37 = vld [vmem:[%s15413_s23 + $0x7a0] sm:$0xff]  ;;  %v3279_v46 = vld [vmem:[%s15363_s4 + $0x70] sm:$0xff] }
 0x1dc   :  { %v13069_v0 = vpop.f32.mrf.mxu0  ;;  %10680 = vmatmul.mubr.msk.f32.gmra.mxu0 %vm323_vm1, %v292_v41  ;;  %9753 = vmatpush3.msra.mxu1 %v3076_v31  ;;  %v3070_v41 = vmax.f32 %v2814_v43, 0.0  ;;  %v2827_v31 = vadd.f32 %v12692_v4, %v2564_v32  ;;  %v2826_v13 = vadd.f32 %v12692_v4, %v2563_v23  ;;  %v3081_v63 = vmax.f32 %v2825_v12, 0.0  ;;  %v304_v43 = vld [vmem:[%s15413_s23 + $0x788] sm:$0xff]  ;;  %v309_v55 = vld [vmem:[%s15413_s23 + $0x7b0] sm:$0xff] }
 0x1dd   :  { %9754 = vmatprep.subr.mxu1 %v3091_v27  ;;  %10682 = vmatprep.mubr.msk.f32.mxu0 %vm323_vm1, %v293_v7  ;;  %v3085_v7 = vmax.f32 %v2829_v58, 0.0  ;;  %v3068_v6 = vmax.f32 %v2812_v54, 0.0  ;;  %v3080_v25 = vmax.f32 %v2824_v5, 0.0  ;;  %v308_v54 = vld [vmem:[%s15413_s23 + $0x7a8] sm:$0xff] }
 0x1de   :  { %v13082_v57 = vpop.f32.mrf.mxu0  ;;  %9755 = vmatpush3.msra.mxu1 %v3075_v38  ;;  %v2545_v38 = vmul.f32 %v12670_v24, %v12704_v17  ;;  %v3083_v26 = vmax.f32 %v2827_v31, 0.0  ;;  %v2544_v17 = vmul.f32 %v12670_v24, %v12717_v30  ;;  %v3066_v30 = vmax.f32 %v2810_v62, 0.0  ;;  %v312_v62 = vld [vmem:[%s15413_s23 + $0x7c8] sm:$0xff] }
 0x1df   :  { %9756 = vmatprep.subr.mxu1 %v3090_v19 }
 0x1e0   :  { %v13093_v16 = vpop.f32.mrf.mxu0  ;;  %10683 = vmatmul.mubr.msk.f32.gmra.mxu0 %vm323_vm1, %v294_v47  ;;  %9757 = vmatpush3.msra.mxu1 %v3074_v18  ;;  %v2560_v47 = vmul.f32 %v12670_v24, %v12888_v45  ;;  %v2809_v18 = vadd.f32 %v12692_v4, %v2546_v14  ;;  %v302_v45 = vld [vmem:[%s15413_s23 + $0x778] sm:$0xff]  ;;  %v2808_v24 = vadd.f32 %v12692_v4, %v2545_v38  ;;  %v3287_v14 = vld [vmem:[%s15363_s4 + $0xb0] sm:$0xff] }
 0x1e1   :  { %9758 = vmatprep.subr.mxu1 %v3089_v42  ;;  %10685 = vmatprep.mubr.msk.f32.mxu0 %vm323_vm1, %v295_v1  ;;  %v3067_v1 = vmax.f32 %v2811_v40, 0.0  ;;  %v3082_v42 = vmax.f32 %v2826_v13, 0.0  ;;  %v2807_v3 = vadd.f32 %v12692_v4, %v2544_v17  ;;  %v310_v40 = vld [vmem:[%s15413_s23 + $0x7b8] sm:$0xff]  ;;  %v311_v13 = vld [vmem:[%s15413_s23 + $0x7c0] sm:$0xff]  ;;  %v3295_v38 = vld [vmem:[%s15363_s4 + $0xf0] sm:$0xff] }
 0x1e2   :  { %v13106_v52 = vpop.f32.mrf.mxu0  ;;  %9759 = vmatpush3.msra.mxu1 %v3073_v29  ;;  %v2823_v29 = vadd.f32 %v12692_v4, %v2560_v47  ;;  %v305_v4 = vld [vmem:[%s15413_s23 + $0x790] sm:$0xff] }
 0x1e3   :  { %9760 = vmatprep.subr.mxu1 %v3088_v59  ;;  %v3065_v59 = vmax.f32 %v2809_v18, 0.0  ;;  %v3063_v58 = vmax.f32 %v2807_v3, 0.0  ;;  %v313_v47 = vld [vmem:[%s15413_s23 + $0x7d0] sm:$0xff]  ;;  %v314_v18 = vld [vmem:[%s15413_s23 + $0x7d8] sm:$0xff] }
 0x1e4   :  { %v13117_v33 = vpop.f32.mrf.mxu0  ;;  %10686 = vmatmul.mubr.msk.f32.gmra.mxu0 %vm323_vm1, %v296_v50  ;;  %9761 = vmatpush3.msra.mxu1 %v3072_v22  ;;  %v3064_v22 = vmax.f32 %v2808_v24, 0.0  ;;  %v3079_v32 = vmax.f32 %v2823_v29, 0.0  ;;  %v3303_v17 = vld [vmem:[%s15363_s4 + $0x130] sm:$0xff]  ;;  %v3320_v29 = vld [vmem:[%s15363_s4 + $0x1b8] sm:$0xff] }
 0x1e5   :  { %9762 = vmatprep.subr.mxu1 %v3087_v34  ;;  %10688 = vmatprep.mubr.msk.f32.mxu0 %vm323_vm1, %v297_v48  ;;  %v317_v3 = vld [vmem:[%s15413_s23 + $0x7f0] sm:$0xff] }
 0x1e6   :  { %v13130_v53 = vpop.f32.mrf.mxu0  ;;  %9763 = vmatpush3.msra.mxu1 %v3071_v39  ;;  %v3280_v39 = vld [vmem:[%s15363_s4 + $0x78] sm:$0xff] }
 0x1e7   :  { %9764 = vmatprep.subr.mxu1 %v3086_v15 }
 0x1e8   :  { %v13141_v27 = vpop.f32.mrf.mxu0  ;;  %10689 = vmatmul.mubr.msk.f32.gmra.mxu0 %vm323_vm1, %v298_v49  ;;  %9765 = vmatpush3.msra.mxu1 %v3070_v41  ;;  %v3288_v41 = vld [vmem:[%s15363_s4 + $0xb8] sm:$0xff] }
 0x1e9   :  { %9766 = vmatprep.subr.mxu1 %v3085_v7  ;;  %10691 = vmatprep.mubr.msk.f32.mxu0 %vm323_vm1, %v299_v11 }
 0x1ea   :  { %v13154_v19 = vpop.f32.mrf.mxu0  ;;  %9767 = vmatpush3.msra.mxu1 %v3069_v44  ;;  %v3296_v44 = vld [vmem:[%s15363_s4 + $0xf8] sm:$0xff] }
 0x1eb   :  { %9768 = vmatprep.subr.mxu1 %v3084_v28 }
 0x1ec   :  { %v13165_v8 = vpop.f32.mrf.mxu0  ;;  %10692 = vmatmul.mubr.msk.f32.gmra.mxu0 %vm323_vm1, %v300_v51  ;;  %9769 = vmatpush3.msra.mxu1 %v3068_v6  ;;  %v3304_v6 = vld [vmem:[%s15363_s4 + $0x138] sm:$0xff] }
 0x1ed   :  { %9770 = vmatprep.subr.mxu1 %v3083_v26  ;;  %10694 = vmatprep.mubr.msk.f32.mxu0 %vm323_vm1, %v301_v36 }
 0x1ee   :  { %v13174_v60 = vpop.f32.mrf.mxu0  ;;  %9771 = vmatpush3.msra.mxu1 %v3067_v1  ;;  %v3312_v1 = vld [vmem:[%s15363_s4 + $0x178] sm:$0xff] }
 0x1ef   :  { %9772 = vmatprep.subr.mxu1 %v3082_v42  ;;  %v315_v42 = vld [vmem:[%s15413_s23 + $0x7e0] sm:$0xff] }
 0x1f0   :  { %v13181_v50 = vpop.f32.mrf.mxu0  ;;  %10695 = vmatmul.mubr.msk.f32.gmra.mxu0 %vm323_vm1, %v302_v45  ;;  %9773 = vmatpush3.msra.mxu1 %v3066_v30  ;;  %v3311_v30 = vld [vmem:[%s15363_s4 + $0x170] sm:$0xff] }
 0x1f1   :  { %9774 = vmatprep.subr.mxu1 %v3081_v63  ;;  %10697 = vmatprep.mubr.msk.f32.mxu0 %vm323_vm1, %v303_v61  ;;  %v316_v61 = vld [vmem:[%s15413_s23 + $0x7e8] sm:$0xff] }
 0x1f2   :  { %v13188_v48 = vpop.f32.mrf.mxu0  ;;  %9775 = vmatpush3.msra.mxu1 %v3065_v59 }
 0x1f3   :  { %9776 = vmatprep.subr.mxu1 %v3080_v25 }
 0x1f4   :  { %v13193_v34 = vpop.f32.mrf.mxu0  ;;  %10698 = vmatmul.mubr.msk.f32.gmra.mxu0 %vm323_vm1, %v304_v43  ;;  %9777 = vmatpush3.msra.mxu1 %v3064_v22  ;;  %v3319_v43 = vld [vmem:[%s15363_s4 + $0x1b0] sm:$0xff]  ;;  %v318_v22 = vld [vmem:[%s15413_s23 + $0x7f8] sm:$0xff] }
 0x1f5   :  { %9778 = vmatprep.subr.mxu1 %v3079_v32  ;;  %10700 = vmatprep.mubr.msk.f32.mxu0 %vm323_vm1, %v305_v4  ;;  %v3328_v4 = vld [vmem:[%s15363_s4 + $0x1f8] sm:$0xff]  ;;  %v13323_v32 = vld [vmem:[%s15414_s30] ss:$0 sm:$0xff] }
 0x1f6   :  { %v13206_v23 = vpop.f32.mrf.mxu0  ;;  %9779 = vmatpush3.msra.mxu1 %v3063_v58  ;;  %v2591_v58 = vmul.f32 %v13323_v32, %v13181_v50  ;;  %v3759_v50 = vld [vmem:[%s15363_s4 + $0x8] sm:$0xff] }
 0x1f7   :  { %3709 = vmatmul.mubr.f32.vlgmr.msra.gmra.mxu1 %v3271_v10  ;;  %v13211_v15 = vpop.f32.mrf.mxu1 }
 0x1f8   :  { %v13213_v49 = vpop.f32.mrf.mxu0  ;;  %10701 = vmatmul.mubr.msk.f32.gmra.mxu0 %vm323_vm1, %v306_v56  ;;  %3713 = vmatprep.mubr.f32.mxu1 %v3280_v39  ;;  %v2590_v39 = vmul.f32 %v13323_v32, %v13188_v48  ;;  %v13345_v48 = vld [vmem:[%s15415_s25] ss:$0 sm:$0xff] }
 0x1f9   :  { %10703 = vmatprep.mubr.msk.f32.mxu0 %vm323_vm1, %v307_v37  ;;  %v13231_v31 = vpop.f32.mrf.mxu1 }
 0x1fa   :  { %v13226_v11 = vpop.f32.mrf.mxu0 }
 0x1fb   :  { %3714 = vmatmul.mubr.f32.gmra.mxu1 %v3279_v46  ;;  %v13251_v28 = vpop.f32.mrf.mxu1  ;;  %v3327_v46 = vld [vmem:[%s15363_s4 + $0x1f0] sm:$0xff] }
 0x1fc   :  { %v13233_v7 = vpop.f32.mrf.mxu0  ;;  %10704 = vmatmul.mubr.msk.f32.gmra.mxu0 %vm323_vm1, %v308_v54  ;;  %3718 = vmatprep.mubr.f32.mxu1 %v3288_v41 }
 0x1fd   :  { %10706 = vmatprep.mubr.msk.f32.mxu0 %vm323_vm1, %v309_v55  ;;  %v13271_v12 = vpop.f32.mrf.mxu1  ;;  %v2589_v55 = vmul.f32 %v13323_v32, %v13165_v8  ;;  %v2588_v8 = vmul.f32 %v13323_v32, %v13174_v60 }
 0x1fe   :  { %v13246_v21 = vpop.f32.mrf.mxu0 }
 0x1ff   :  { %3719 = vmatmul.mubr.f32.gmra.mxu1 %v3287_v14  ;;  %v13291_v45 = vpop.f32.mrf.mxu1  ;;  %v2854_v14 = vadd.f32 %v13345_v48, %v2591_v58 }
 0x200   :  { %v13253_v51 = vpop.f32.mrf.mxu0  ;;  %10707 = vmatmul.mubr.msk.f32.gmra.mxu0 %vm323_vm1, %v310_v40  ;;  %3723 = vmatprep.mubr.f32.mxu1 %v3296_v44 }
 0x201   :  { %10709 = vmatprep.mubr.msk.f32.mxu0 %vm323_vm1, %v311_v13  ;;  %v13307_v59 = vpop.f32.mrf.mxu1 }
 0x202   :  { %v13266_v36 = vpop.f32.mrf.mxu0 }
 0x203   :  { %3724 = vmatmul.mubr.f32.gmra.mxu1 %v3295_v38  ;;  %v13327_v56 = vpop.f32.mrf.mxu1 }
 0x204   :  { %v13273_v26 = vpop.f32.mrf.mxu0  ;;  %10710 = vmatmul.mubr.msk.f32.gmra.mxu0 %vm323_vm1, %v312_v62  ;;  %3728 = vmatprep.mubr.f32.mxu1 %v3304_v6  ;;  %v2853_v6 = vadd.f32 %v13345_v48, %v2590_v39 }
 0x205   :  { %10712 = vmatprep.mubr.msk.f32.mxu0 %vm323_vm1, %v313_v47  ;;  %v13351_v62 = vpop.f32.mrf.mxu1 }
 0x206   :  { %v13286_v5 = vpop.f32.mrf.mxu0  ;;  %v3109_v58 = vmax.f32 %v2853_v6, 0.0 }
 0x207   :  { %3729 = vmatmul.mubr.f32.gmra.mxu1 %v3303_v17 }
 0x208   :  { %v10570_v24 = vpop.f32.mrf.mxu0  ;;  %10713 = vmatmul.mubr.msk.f32.gmra.mxu0 %vm323_vm1, %v314_v18  ;;  %3733 = vmatprep.mubr.f32.mxu1 %v3312_v1 }
 0x209   :  { %10715 = vmatprep.mubr.msk.f32.mxu0 %vm323_vm1, %v315_v42  ;;  %v2603_v17 = vmul.f32 %v13323_v32, %v10570_v24  ;;  %v13368_v24 = vpop.f32.mrf.mxu1 }
 0x20a   :  { %v1932_v63 = vpop.f32.mrf.mxu0  ;;  %15416 = vst [vmem:[#allocation8_spill] sm:$0xff] %v13368_v24 }
 0x20b   :  { %3734 = vmatmul.mubr.f32.gmra.mxu1 %v3311_v30  ;;  %v2587_v30 = vmul.f32 %v13323_v32, %v13141_v27  ;;  %v2602_v60 = vmul.f32 %v13323_v32, %v1932_v63  ;;  %v2866_v63 = vadd.f32 %v13345_v48, %v2603_v17 }
 0x20c   :  { %v10573_v25 = vpop.f32.mrf.mxu0  ;;  %10716 = vmatmul.mubr.msk.f32.gmra.mxu0 %vm323_vm1, %v316_v61  ;;  %3738 = vmatprep.mubr.f32.mxu1 %v3320_v29  ;;  %v2852_v61 = vadd.f32 %v13345_v48, %v2589_v55  ;;  %v3110_v29 = vmax.f32 %v2854_v14, 0.0  ;;  %v13386_v55 = vpop.f32.mrf.mxu1  ;;  %v2584_v14 = vmul.f32 %v13323_v32, %v13130_v53 }
 0x20d   :  { %10718 = vmatprep.mubr.msk.f32.mxu0 %vm323_vm1, %v317_v3  ;;  %v2605_v54 = vmul.f32 %v13323_v32, %v10573_v25  ;;  %15417 = vst [vmem:[#allocation9_spill] sm:$0xff] %v13386_v55 }
 0x20e   :  { %v1942_v10 = vpop.f32.mrf.mxu0 }
 0x20f   :  { %3739 = vmatmul.mubr.f32.gmra.mxu1 %v3319_v43  ;;  %v2604_v44 = vmul.f32 %v13323_v32, %v1942_v10  ;;  %v2868_v18 = vadd.f32 %v13345_v48, %v2605_v54  ;;  %v2601_v10 = vmul.f32 %v13323_v32, %v13273_v26  ;;  %v3108_v54 = vmax.f32 %v2852_v61, 0.0 }
 0x210   :  { %v10576_v37 = vpop.f32.mrf.mxu0  ;;  %10719 = vmatmul.mubr.msk.f32.gmra.mxu0 %vm323_vm1, %v318_v22  ;;  %3743 = vmatprep.mubr.f32.mxu1 %v3328_v4  ;;  %v2586_v22 = vmul.f32 %v13323_v32, %v13154_v19  ;;  %v2851_v4 = vadd.f32 %v13345_v48, %v2588_v8  ;;  %v2583_v8 = vmul.f32 %v13323_v32, %v13093_v16 }
 0x211   :  { %v2607_v41 = vmul.f32 %v13323_v32, %v10576_v37  ;;  %v2867_v25 = vadd.f32 %v13345_v48, %v2604_v44  ;;  %v3124_v39 = vmax.f32 %v2868_v18, 0.0  ;;  %v2585_v37 = vmul.f32 %v13323_v32, %v13117_v33 }
 0x212   :  { %v1952_v40 = vpop.f32.mrf.mxu0  ;;  %v2849_v33 = vadd.f32 %v13345_v48, %v2586_v22  ;;  %v2598_v18 = vmul.f32 %v13323_v32, %v13266_v36  ;;  %v2847_v16 = vadd.f32 %v13345_v48, %v2584_v14  ;;  %v2846_v22 = vadd.f32 %v13345_v48, %v2583_v8 }
 0x213   :  { %v2870_v13 = vadd.f32 %v13345_v48, %v2607_v41  ;;  %v2606_v38 = vmul.f32 %v13323_v32, %v1952_v40  ;;  %3744 = vmatmul.mubr.f32.gmra.mxu1 %v3327_v46  ;;  %v2850_v46 = vadd.f32 %v13345_v48, %v2587_v30  ;;  %v2600_v41 = vmul.f32 %v13323_v32, %v13286_v5 }
 0x214   :  { %v13356_v47 = vpop.f32.mrf.mxu0  ;;  %3886 = vmatprep.mubr.f32.mxu1 %v3759_v50  ;;  %v2865_v50 = vadd.f32 %v13345_v48, %v2602_v60  ;;  %v3123_v26 = vmax.f32 %v2867_v25, 0.0  ;;  %v3107_v40 = vmax.f32 %v2851_v4, 0.0  ;;  %v2864_v5 = vadd.f32 %v13345_v48, %v2601_v10 }
 0x215   :  { %v3126_v1 = vmax.f32 %v2870_v13, 0.0  ;;  %v2869_v42 = vadd.f32 %v13345_v48, %v2606_v38  ;;  %v2599_v13 = vmul.f32 %v13323_v32, %v13253_v51  ;;  %v3122_v38 = vmax.f32 %v2866_v63, 0.0 }
 0x216   :  { %v13364_v3 = vpop.f32.mrf.mxu0  ;;  %v2848_v6 = vadd.f32 %v13345_v48, %v2585_v37  ;;  %v3106_v17 = vmax.f32 %v2850_v46, 0.0  ;;  %v3121_v51 = vmax.f32 %v2865_v50, 0.0  ;;  %v2582_v30 = vmul.f32 %v13323_v32, %v13106_v52 }
 0x217   :  { %9804 = vmatprep.subr.mxu1 %v3126_v1  ;;  %v3125_v43 = vmax.f32 %v2869_v42, 0.0  ;;  %v2863_v1 = vadd.f32 %v13345_v48, %v2600_v41  ;;  %v13404_v42 = vpop.f32.mrf.mxu1  ;;  %v3105_v61 = vmax.f32 %v2849_v33, 0.0  ;;  %v2597_v60 = vmul.f32 %v13323_v32, %v13233_v7 }
 0x218   :  { %v13373_v27 = vpop.f32.mrf.mxu0  ;;  %9805 = vmatpush3.msra.mxu1 %v3110_v29  ;;  %15418 = vst [vmem:[#allocation10_spill] sm:$0xff] %v13404_v42  ;;  %v2862_v36 = vadd.f32 %v13345_v48, %v2599_v13  ;;  %v3120_v25 = vmax.f32 %v2864_v5, 0.0  ;;  %v3104_v4 = vmax.f32 %v2848_v6, 0.0  ;;  %v2861_v10 = vadd.f32 %v13345_v48, %v2598_v18 }
 0x219   :  { %9806 = vmatprep.subr.mxu1 %v3125_v43  ;;  %v2581_v43 = vmul.f32 %v13323_v32, %v13069_v0  ;;  %v3119_v7 = vmax.f32 %v2863_v1, 0.0  ;;  %v13422_v63 = vpop.f32.mrf.mxu1  ;;  %v2845_v0 = vadd.f32 %v13345_v48, %v2582_v30  ;;  %v3103_v37 = vmax.f32 %v2847_v16, 0.0 }
 0x21a   :  { %v13381_v19 = vpop.f32.mrf.mxu0  ;;  %9807 = vmatpush3.msra.mxu1 %v3109_v58  ;;  %v2596_v58 = vmul.f32 %v13323_v32, %v13246_v21  ;;  %15419 = vst [vmem:[#allocation11_spill] sm:$0xff] %v13422_v63  ;;  %v2860_v21 = vadd.f32 %v13345_v48, %v2597_v60  ;;  %v3118_v41 = vmax.f32 %v2862_v36, 0.0  ;;  %v2579_v50 = vmul.f32 %v13323_v32, %v13045_v35  ;;  %v9200_v60 = vld [vmem:[%s15364_s5 + $0xd0] sm:$0xff] }
 0x21b   :  { %9808 = vmatprep.subr.mxu1 %v3124_v39  ;;  %v2580_v39 = vmul.f32 %v13323_v32, %v13082_v57  ;;  %v3102_v14 = vmax.f32 %v2846_v22, 0.0  ;;  %v2594_v33 = vmul.f32 %v13323_v32, %v13226_v11  ;;  %v13440_v13 = vpop.f32.mrf.mxu1  ;;  %v2578_v5 = vmul.f32 %v13323_v32, %v13058_v9  ;;  %10961 = vmatprep.subr.mxu0 %v9200_v60 }
 0x21c   :  { %v13391_v44 = vpop.f32.mrf.mxu0  ;;  %9809 = vmatpush3.msra.mxu1 %v3108_v54  ;;  %v2595_v54 = vmul.f32 %v13323_v32, %v13213_v49  ;;  %v3117_v49 = vmax.f32 %v2861_v10, 0.0  ;;  %15420 = vst [vmem:[#allocation12_spill] sm:$0xff] %v13440_v13  ;;  %v2593_v6 = vmul.f32 %v13323_v32, %v13193_v34  ;;  %v2577_v18 = vmul.f32 %v13323_v32, %v13022_v2 }
 0x21d   :  { %9810 = vmatprep.subr.mxu1 %v3123_v26  ;;  %v2844_v26 = vadd.f32 %v13345_v48, %v2581_v43  ;;  %v2843_v35 = vadd.f32 %v13345_v48, %v2580_v39  ;;  %v2842_v1 = vadd.f32 %v13345_v48, %v2579_v50  ;;  %v2592_v30 = vmul.f32 %v13323_v32, %v13206_v23 }
 0x21e   :  { %v13399_v53 = vpop.f32.mrf.mxu0  ;;  %9811 = vmatpush3.msra.mxu1 %v3107_v40  ;;  %v2859_v40 = vadd.f32 %v13345_v48, %v2596_v58  ;;  %v2858_v11 = vadd.f32 %v13345_v48, %v2595_v54  ;;  %v2857_v16 = vadd.f32 %v13345_v48, %v2594_v33  ;;  %v2576_v2 = vmul.f32 %v13323_v32, %v13035_v20 }
 0x21f   :  { %9812 = vmatprep.subr.mxu1 %v3122_v38  ;;  %v3101_v38 = vmax.f32 %v2845_v0, 0.0  ;;  %v2841_v36 = vadd.f32 %v13345_v48, %v2578_v5  ;;  %v2856_v23 = vadd.f32 %v13345_v48, %v2593_v6  ;;  %10962 = vmatpush3.msra.mxu0 %v9200_v60  ;;  %v3098_v58 = vmax.f32 %v2842_v1, 0.0  ;;  %v3767_v5 = vld [vmem:[%s15363_s4 + $0x48] sm:$0xff] }
 0x220   :  { %v13409_v29 = vpop.f32.mrf.mxu0  ;;  %9813 = vmatpush3.msra.mxu1 %v3106_v17  ;;  %v3116_v17 = vmax.f32 %v2860_v21, 0.0  ;;  %v3115_v34 = vmax.f32 %v2859_v40, 0.0  ;;  %v3114_v22 = vmax.f32 %v2858_v11, 0.0  ;;  %v2855_v20 = vadd.f32 %v13345_v48, %v2592_v30  ;;  %v3766_v11 = vld [vmem:[%s15363_s4 + $0x40] sm:$0xff] }
 0x221   :  { %9814 = vmatprep.subr.mxu1 %v3121_v51  ;;  %v3100_v51 = vmax.f32 %v2844_v26, 0.0  ;;  %v2839_v0 = vadd.f32 %v13345_v48, %v2576_v2  ;;  %v3112_v21 = vmax.f32 %v2856_v23, 0.0  ;;  %v3774_v30 = vld [vmem:[%s15363_s4 + $0x80] sm:$0xff] }
 0x222   :  { %v13417_v52 = vpop.f32.mrf.mxu0  ;;  %9815 = vmatpush3.msra.mxu1 %v3105_v61  ;;  %v13458_v61 = vpop.f32.mrf.mxu1  ;;  %v3111_v26 = vmax.f32 %v2855_v20, 0.0  ;;  %v3799_v20 = vld [vmem:[%s15363_s4 + $0x148] sm:$0xff] }
 0x223   :  { %9816 = vmatprep.subr.mxu1 %v3120_v25  ;;  %15421 = vst [vmem:[#allocation13_spill] sm:$0xff] %v13458_v61  ;;  %v3099_v25 = vmax.f32 %v2843_v35, 0.0  ;;  %v3095_v33 = vmax.f32 %v2839_v0, 0.0 }
 0x224   :  { %v13427_v46 = vpop.f32.mrf.mxu0  ;;  %9817 = vmatpush3.msra.mxu1 %v3104_v4  ;;  %v2840_v4 = vadd.f32 %v13345_v48, %v2577_v18  ;;  %v13473_v39 = vpop.f32.mrf.mxu1 }
 0x225   :  { %9818 = vmatprep.subr.mxu1 %v3119_v7  ;;  %v3113_v7 = vmax.f32 %v2857_v16, 0.0  ;;  %15422 = vst [vmem:[#allocation14_spill] sm:$0xff] %v13473_v39  ;;  %v3783_v16 = vld [vmem:[%s15363_s4 + $0xc8] sm:$0xff] }
 0x226   :  { %v13435_v57 = vpop.f32.mrf.mxu0  ;;  %9819 = vmatpush3.msra.mxu1 %v3103_v37  ;;  %v3097_v37 = vmax.f32 %v2841_v36, 0.0  ;;  %v3782_v36 = vld [vmem:[%s15363_s4 + $0xc0] sm:$0xff] }
 0x227   :  { %9820 = vmatprep.subr.mxu1 %v3118_v41  ;;  %v3096_v41 = vmax.f32 %v2840_v4, 0.0 }
 0x228   :  { %v13445_v8 = vpop.f32.mrf.mxu0  ;;  %9821 = vmatpush3.msra.mxu1 %v3102_v14  ;;  %v13476_v14 = vpop.f32.mrf.mxu1 }
 0x229   :  { %9822 = vmatprep.subr.mxu1 %v3117_v49  ;;  %15423 = vst [vmem:[#allocation15_spill] sm:$0xff] %v13476_v14  ;;  %v3758_v49 = vld [vmem:[%s15363_s4] sm:$0xff] }
 0x22a   :  { %v13453_v9 = vpop.f32.mrf.mxu0  ;;  %9823 = vmatpush3.msra.mxu1 %v3101_v38 }
 0x22b   :  { %9824 = vmatprep.subr.mxu1 %v3116_v17  ;;  %v3775_v17 = vld [vmem:[%s15363_s4 + $0x88] sm:$0xff] }
 0x22c   :  { %v13466_v43 = vpop.f32.mrf.mxu0  ;;  %9825 = vmatpush3.msra.mxu1 %v3100_v51 }
 0x22d   :  { %9826 = vmatprep.subr.mxu1 %v3115_v34 }
 0x22e   :  { %v13470_v10 = vpop.f32.mrf.mxu0  ;;  %9827 = vmatpush3.msra.mxu1 %v3099_v25  ;;  %v3791_v25 = vld [vmem:[%s15363_s4 + $0x108] sm:$0xff] }
 0x22f   :  { %9828 = vmatprep.subr.mxu1 %v3114_v22 }
 0x230   :  { %v10600_v54 = vpop.f32.mrf.mxu0  ;;  %9829 = vmatpush3.msra.mxu1 %v3098_v58  ;;  %v3790_v58 = vld [vmem:[%s15363_s4 + $0x100] sm:$0xff] }
 0x231   :  { %9830 = vmatprep.subr.mxu1 %v3113_v7 }
 0x232   :  { %v2032_v50 = vpop.f32.mrf.mxu0  ;;  %9831 = vmatpush3.msra.mxu1 %v3097_v37 }
 0x233   :  { %9832 = vmatprep.subr.mxu1 %v3112_v21  ;;  %v3798_v21 = vld [vmem:[%s15363_s4 + $0x140] sm:$0xff] }
 0x234   :  { %v13478_v40 = vpop.f32.mrf.mxu0  ;;  %9833 = vmatpush3.msra.mxu1 %v3096_v41  ;;  %v3807_v41 = vld [vmem:[%s15363_s4 + $0x188] sm:$0xff] }
 0x235   :  { %9834 = vmatprep.subr.mxu1 %v3111_v26 }
 0x236   :  { %v13486_v35 = vpop.f32.mrf.mxu0  ;;  %9835 = vmatpush3.msra.mxu1 %v3095_v33 }
 0x237   :  { %3887 = vmatmul.mubr.f32.vlgmr.msra.gmra.mxu1 %v3758_v49  ;;  %v13488_v38 = vpop.f32.mrf.mxu1 }
 0x238   :  { %v13490_v6 = vpop.f32.mrf.mxu0  ;;  %3891 = vmatprep.mubr.f32.mxu1 %v3767_v5  ;;  %v3806_v5 = vld [vmem:[%s15363_s4 + $0x180] sm:$0xff] }
 0x239   :  { %v13500_v1 = vpop.f32.mrf.mxu1 }
 0x23a   :  { %v13498_v18 = vpop.f32.mrf.mxu0 }
 0x23b   :  { %3892 = vmatmul.mubr.f32.gmra.mxu1 %v3766_v11  ;;  %v13512_v60 = vpop.f32.mrf.mxu1  ;;  %v3815_v11 = vld [vmem:[%s15363_s4 + $0x1c8] sm:$0xff] }
 0x23c   :  { %v13502_v51 = vpop.f32.mrf.mxu0  ;;  %3896 = vmatprep.mubr.f32.mxu1 %v3775_v17  ;;  %v2623_v17 = vmul.f32 %v13323_v32, %v10600_v54  ;;  %v3761_v54 = vld [vmem:[%s15363_s4 + $0x18] sm:$0xff] }
 0x23d   :  { %v13524_v22 = vpop.f32.mrf.mxu1 }
 0x23e   :  { %v13510_v34 = vpop.f32.mrf.mxu0 }
 0x23f   :  { %3897 = vmatmul.mubr.f32.gmra.mxu1 %v3774_v30  ;;  %v13534_v0 = vpop.f32.mrf.mxu1 }
 0x240   :  { %v13514_v2 = vpop.f32.mrf.mxu0  ;;  %3901 = vmatprep.mubr.f32.mxu1 %v3783_v16 }
 0x241   :  { %v13542_v33 = vpop.f32.mrf.mxu1 }
 0x242   :  { %v13522_v23 = vpop.f32.mrf.mxu0 }
 0x243   :  { %3902 = vmatmul.mubr.f32.gmra.mxu1 %v3782_v36  ;;  %v13551_v16 = vpop.f32.mrf.mxu1  ;;  %v2622_v36 = vmul.f32 %v13323_v32, %v2032_v50 }
 0x244   :  { %v10615_v4 = vpop.f32.mrf.mxu0  ;;  %3906 = vmatprep.mubr.f32.mxu1 %v3791_v25  ;;  %15424 = vst [vmem:[#allocation16_spill] sm:$0xff] %v13551_v16 }
 0x245   :  { %v13573_v61 = vadd.f32 %v13345_v48, %v2622_v36 }
 0x246   :  { %v13532_v7 = vpop.f32.mrf.mxu0 }
 0x247   :  { %3907 = vmatmul.mubr.f32.gmra.mxu1 %v3790_v58  ;;  %v3814_v58 = vld [vmem:[%s15363_s4 + $0x1c0] sm:$0xff] }
 0x248   :  { %v10618_v37 = vpop.f32.mrf.mxu0  ;;  %3911 = vmatprep.mubr.f32.mxu1 %v3799_v20 }
 0x24a   :  { %v2092_v26 = vpop.f32.mrf.mxu0 }
 0x24b   :  { %3912 = vmatmul.mubr.f32.gmra.mxu1 %v3798_v21 }
 0x24c   :  { %v10621_v49 = vpop.f32.mrf.mxu0  ;;  %3916 = vmatprep.mubr.f32.mxu1 %v3807_v41  ;;  %v2621_v41 = vmul.f32 %v13323_v32, %v13466_v43  ;;  %v2635_v43 = vmul.f32 %v13323_v32, %v10618_v37 }
 0x24d   :  { %v2637_v20 = vmul.f32 %v13323_v32, %v10621_v49 }
 0x24e   :  { %v2102_v30 = vpop.f32.mrf.mxu0  ;;  %v13589_v36 = vadd.f32 %v13345_v48, %v2621_v41  ;;  %v2633_v41 = vmul.f32 %v13323_v32, %v10615_v4 }
 0x24f   :  { %3917 = vmatmul.mubr.f32.gmra.mxu1 %v3806_v5  ;;  %v2886_v5 = vadd.f32 %v13345_v48, %v2623_v17  ;;  %v2636_v14 = vmul.f32 %v13323_v32, %v2102_v30  ;;  %v13579_v17 = vadd.f32 %v13345_v48, %v2637_v20 }
 0x250   :  { %v10624_v25 = vpop.f32.mrf.mxu0  ;;  %3921 = vmatprep.mubr.f32.mxu1 %v3815_v11  ;;  %v2620_v11 = vmul.f32 %v13323_v32, %v13470_v10 }
 0x251   :  { %v2639_v21 = vmul.f32 %v13323_v32, %v10624_v25  ;;  %v13570_v25 = vpop.f32.mrf.mxu1  ;;  %v13598_v20 = vadd.f32 %v13345_v48, %v2636_v14  ;;  %v15383_v14 = vmov 0.0  }
 0x252   :  { %v2112_v50 = vpop.f32.mrf.mxu0  ;;  %15425 = vst [vmem:[#allocation17_spill] sm:$0xff] %v13570_v25  ;;  %v13594_v37 = vadd.f32 %v13345_v48, %v2620_v11  ;;  %3227 = vst.msk [vmem:[#allocation2 + $0x10] sm:$0xff] %vm3223_vm2, %v15383_v14  ;;  %v3140_v11 = vmax.f32 %v13589_v36, 0.0 }
 0x253   :  { %v2902_v39 = vadd.f32 %v13345_v48, %v2639_v21  ;;  %v2638_v49 = vmul.f32 %v13323_v32, %v2112_v50  ;;  %3922 = vmatmul.mubr.f32.gmra.mxu1 %v3814_v58  ;;  %v2619_v21 = vmul.f32 %v13323_v32, %v13445_v8  ;;  %v13586_v58 = vmul.f32 %v13323_v32, %v13453_v9  ;;  %v13600_v8 = vpop.f32.mrf.mxu1 }
 0x254   :  { %v13575_v13 = vpop.f32.mrf.mxu0  ;;  %3991 = vmatprep.mubr.f32.mxu1 %v3761_v54  ;;  %v3142_v50 = vmax.f32 %v2886_v5, 0.0  ;;  %15426 = vst [vmem:[#allocation18_spill] sm:$0xff] %v13600_v8  ;;  %v3141_v9 = vmax.f32 %v13573_v61, 0.0  ;;  %v13607_v5 = vadd.f32 %v13345_v48, %v2635_v43  ;;  %3228 = vst.msk [vmem:[#allocation2 + $0x18] sm:$0x3] %vm3225_vm3, %v15383_v14  ;;  %v2617_v61 = vmul.f32 %v13323_v32, %v13427_v46 }
 0x255   :  { %v3158_v10 = vmax.f32 %v2902_v39, 0.0  ;;  %v2901_v30 = vadd.f32 %v13345_v48, %v2638_v49  ;;  %v2634_v39 = vmul.f32 %v13323_v32, %v2092_v26  ;;  %v3156_v26 = vmax.f32 %v13579_v17, 0.0  ;;  %3224 = vst.msk [vmem:[#allocation2] sm:$0xff] %vm3223_vm2, %v15383_v14  ;;  %3229 = vst.msk [vmem:[#allocation2 + $0x20] sm:$0xff] %vm3223_vm2, %v15383_v14 }
 0x256   :  { %v13591_v54 = vpop.f32.mrf.mxu0  ;;  %3226 = vst.msk [vmem:[#allocation2 + $0x8] sm:$0x3] %vm3225_vm3, %v15383_v14  ;;  %3230 = vst.msk [vmem:[#allocation2 + $0x28] sm:$0x3] %vm3225_vm3, %v15383_v14  ;;  %v2882_v4 = vadd.f32 %v13345_v48, %v2619_v21  ;;  %v2632_v17 = vmul.f32 %v13323_v32, %v13532_v7  ;;  %v2616_v46 = vmul.f32 %v13323_v32, %v13435_v57  ;;  %v3139_v36 = vmax.f32 %v13594_v37, 0.0 }
 0x257   :  { %v3157_v49 = vmax.f32 %v2901_v30, 0.0  ;;  %9860 = vmatprep.subr.mxu1 %v3158_v10  ;;  %3231 = vst.msk [vmem:[#allocation2 + $0x30] sm:$0xff] %vm3223_vm2, %v15383_v14  ;;  %3233 = vst.msk [vmem:[#allocation2 + $0x40] sm:$0xff] %vm3223_vm2, %v15383_v14  ;;  %v2897_v10 = vadd.f32 %v13345_v48, %v2634_v39  ;;  %v3155_v30 = vmax.f32 %v13598_v20, 0.0  ;;  %v2881_v21 = vadd.f32 %v13345_v48, %v13586_v58 }
 0x258   :  { %v13603_v63 = vpop.f32.mrf.mxu0  ;;  %9861 = vmatpush3.msra.mxu1 %v3142_v50  ;;  %3232 = vst.msk [vmem:[#allocation2 + $0x38] sm:$0x3] %vm3225_vm3, %v15383_v14  ;;  %3234 = vst.msk [vmem:[#allocation2 + $0x48] sm:$0x3] %vm3225_vm3, %v15383_v14  ;;  %v13700_v50 = vpop.f32.mrf.mxu1  ;;  %v2631_v7 = vmul.f32 %v13323_v32, %v13514_v2  ;;  %v2896_v39 = vadd.f32 %v13345_v48, %v2633_v41  ;;  %v3154_v20 = vmax.f32 %v13607_v5, 0.0 }
 0x259   :  { %9862 = vmatprep.subr.mxu1 %v3157_v49  ;;  %3235 = vst.msk [vmem:[#allocation2 + $0x50] sm:$0xff] %vm3223_vm2, %v15383_v14  ;;  %3237 = vst.msk [vmem:[#allocation2 + $0x60] sm:$0xff] %vm3223_vm2, %v15383_v14  ;;  %v2880_v57 = vadd.f32 %v13345_v48, %v2617_v61  ;;  %v2630_v37 = vmul.f32 %v13323_v32, %v13522_v23  ;;  %v3153_v2 = vmax.f32 %v2897_v10, 0.0 }
 0x25a   :  { %3236 = vst.msk [vmem:[#allocation2 + $0x58] sm:$0x3] %vm3225_vm3, %v15383_v14  ;;  %3238 = vst.msk [vmem:[#allocation2 + $0x68] sm:$0x3] %vm3225_vm3, %v15383_v14  ;;  %v13694_v43 = vpop.f32.mrf.mxu0  ;;  %9863 = vmatpush3.msra.mxu1 %v3141_v9  ;;  %v2615_v9 = vmul.f32 %v13323_v32, %v13409_v29  ;;  %v13721_v41 = vpop.f32.mrf.mxu1  ;;  %v2614_v5 = vmul.f32 %v13323_v32, %v13417_v52  ;;  %v2879_v29 = vadd.f32 %v13345_v48, %v2616_v46 }
 0x25b   :  { %3239 = vst.msk [vmem:[#allocation2 + $0x70] sm:$0xff] %vm3223_vm2, %v15383_v14  ;;  %3241 = vst.msk [vmem:[#allocation2 + $0x80] sm:$0xff] %vm3223_vm2, %v15383_v14  ;;  %9864 = vmatprep.subr.mxu1 %v3156_v26  ;;  %v3138_v26 = vmax.f32 %v2882_v4, 0.0  ;;  %v2629_v4 = vmul.f32 %v13323_v32, %v13502_v51  ;;  %v2894_v23 = vadd.f32 %v13345_v48, %v2631_v7 }
 0x25c   :  { %3240 = vst.msk [vmem:[#allocation2 + $0x78] sm:$0x3] %vm3225_vm3, %v15383_v14  ;;  %3242 = vst.msk [vmem:[#allocation2 + $0x88] sm:$0x3] %vm3225_vm3, %v15383_v14  ;;  %v13707_v49 = vpop.f32.mrf.mxu0  ;;  %9865 = vmatpush3.msra.mxu1 %v3140_v11  ;;  %v2895_v11 = vadd.f32 %v13345_v48, %v2632_v17  ;;  %v2613_v17 = vmul.f32 %v13323_v32, %v13391_v44  ;;  %v2878_v10 = vadd.f32 %v13345_v48, %v2615_v9 }
 0x25d   :  { %3243 = vst.msk [vmem:[#allocation2 + $0x90] sm:$0xff] %vm3223_vm2, %v15383_v14  ;;  %3245 = vst.msk [vmem:[#allocation2 + $0xa0] sm:$0xff] %vm3223_vm2, %v15383_v14  ;;  %9866 = vmatprep.subr.mxu1 %v3155_v30  ;;  %v3137_v30 = vmax.f32 %v2881_v21, 0.0  ;;  %v2628_v46 = vmul.f32 %v13323_v32, %v13510_v34  ;;  %v2893_v21 = vadd.f32 %v13345_v48, %v2630_v37 }
 0x25e   :  { %3244 = vst.msk [vmem:[#allocation2 + $0x98] sm:$0x3] %vm3225_vm3, %v15383_v14  ;;  %3246 = vst.msk [vmem:[#allocation2 + $0xa8] sm:$0x3] %vm3225_vm3, %v15383_v14  ;;  %v13716_v58 = vpop.f32.mrf.mxu0  ;;  %9867 = vmatpush3.msra.mxu1 %v3139_v36  ;;  %v3152_v36 = vmax.f32 %v2896_v39, 0.0  ;;  %v3151_v51 = vmax.f32 %v2895_v11, 0.0  ;;  %v2612_v7 = vmul.f32 %v13323_v32, %v13399_v53  ;;  %v2877_v44 = vadd.f32 %v13345_v48, %v2614_v5 }
 0x25f   :  { %3247 = vst.msk [vmem:[#allocation2 + $0xb0] sm:$0xff] %vm3223_vm2, %v15383_v14  ;;  %3249 = vst.msk [vmem:[#allocation2 + $0xc0] sm:$0xff] %vm3223_vm2, %v15383_v14  ;;  %9868 = vmatprep.subr.mxu1 %v3154_v20  ;;  %v3136_v20 = vmax.f32 %v2880_v57, 0.0  ;;  %v3135_v39 = vmax.f32 %v2879_v29, 0.0  ;;  %v2627_v57 = vmul.f32 %v13323_v32, %v13490_v6  ;;  %v2892_v34 = vadd.f32 %v13345_v48, %v2629_v4 }
 0x260   :  { %3248 = vst.msk [vmem:[#allocation2 + $0xb8] sm:$0x3] %vm3225_vm3, %v15383_v14  ;;  %3250 = vst.msk [vmem:[#allocation2 + $0xc8] sm:$0x3] %vm3225_vm3, %v15383_v14  ;;  %v13726_v61 = vpop.f32.mrf.mxu0  ;;  %9869 = vmatpush3.msra.mxu1 %v3138_v26  ;;  %v13739_v26 = vpop.f32.mrf.mxu1  ;;  %v2611_v37 = vmul.f32 %v13323_v32, %v13373_v27  ;;  %v2876_v11 = vadd.f32 %v13345_v48, %v2613_v17  ;;  %v2626_v5 = vmul.f32 %v13323_v32, %v13498_v18 }
 0x261   :  { %3251 = vst.msk [vmem:[#allocation2 + $0xd0] sm:$0xff] %vm3223_vm2, %v15383_v14  ;;  %3253 = vst.msk [vmem:[#allocation2 + $0xe0] sm:$0xff] %vm3223_vm2, %v15383_v14  ;;  %9870 = vmatprep.subr.mxu1 %v3153_v2  ;;  %v3150_v2 = vmax.f32 %v2894_v23, 0.0  ;;  %v2891_v29 = vadd.f32 %v13345_v48, %v2628_v46  ;;  %v3149_v6 = vmax.f32 %v2893_v21, 0.0  ;;  %v2610_v4 = vmul.f32 %v13323_v32, %v13381_v19  ;;  %v9199_v46 = vld [vmem:[%s15364_s5 + $0xc8] sm:$0xff] }
 0x262   :  { %3252 = vst.msk [vmem:[#allocation2 + $0xd8] sm:$0x3] %vm3225_vm3, %v15383_v14  ;;  %3254 = vst.msk [vmem:[#allocation2 + $0xe8] sm:$0x3] %vm3225_vm3, %v15383_v14  ;;  %v13734_v52 = vpop.f32.mrf.mxu0  ;;  %9871 = vmatpush3.msra.mxu1 %v3137_v30  ;;  %v3134_v30 = vmax.f32 %v2878_v10, 0.0  ;;  %v2875_v27 = vadd.f32 %v13345_v48, %v2612_v7  ;;  %v3133_v23 = vmax.f32 %v2877_v44, 0.0  ;;  %v2625_v10 = vmul.f32 %v13323_v32, %v13478_v40 }
 0x263   :  { %3255 = vst.msk [vmem:[#allocation2 + $0xf0] sm:$0xff] %vm3223_vm2, %v15383_v14  ;;  %3257 = vst.msk [vmem:[#allocation2 + $0x100] sm:$0xff] %vm3223_vm2, %v15383_v14  ;;  %9872 = vmatprep.subr.mxu1 %v3152_v36  ;;  %v13757_v36 = vpop.f32.mrf.mxu1  ;;  %v2890_v18 = vadd.f32 %v13345_v48, %v2627_v57  ;;  %v2609_v19 = vmul.f32 %v13323_v32, %v13356_v47  ;;  %v2874_v21 = vadd.f32 %v13345_v48, %v2611_v37  ;;  %v9198_v47 = vld [vmem:[%s15364_s5 + $0xc0] sm:$0xff] }
 0x264   :  { %3256 = vst.msk [vmem:[#allocation2 + $0xf8] sm:$0x3] %vm3225_vm3, %v15383_v14  ;;  %3258 = vst.msk [vmem:[#allocation2 + $0x108] sm:$0x3] %vm3225_vm3, %v15383_v14  ;;  %v13744_v9 = vpop.f32.mrf.mxu0  ;;  %9873 = vmatpush3.msra.mxu1 %v3136_v20  ;;  %v3148_v20 = vmax.f32 %v2892_v34, 0.0  ;;  %10963 = vmatprep.subr.mxu0 %v9199_v46  ;;  %v2624_v40 = vmul.f32 %v13323_v32, %v13486_v35  ;;  %v2889_v44 = vadd.f32 %v13345_v48, %v2626_v5 }
 0x265   :  { %3259 = vst.msk [vmem:[#allocation2 + $0x110] sm:$0xff] %vm3223_vm2, %v15383_v14  ;;  %3261 = vst.msk [vmem:[#allocation2 + $0x120] sm:$0xff] %vm3223_vm2, %v15383_v14  ;;  %9874 = vmatprep.subr.mxu1 %v3151_v51  ;;  %v3132_v51 = vmax.f32 %v2876_v11, 0.0  ;;  %v13778_v57 = vpop.f32.mrf.mxu1  ;;  %10964 = vmatpush3.msra.mxu0 %v9199_v46  ;;  %v2608_v34 = vmul.f32 %v13323_v32, %v13364_v3  ;;  %v3131_v37 = vmax.f32 %v2875_v27, 0.0 }
 0x266   :  { %3260 = vst.msk [vmem:[#allocation2 + $0x118] sm:$0x3] %vm3225_vm3, %v15383_v14  ;;  %3262 = vst.msk [vmem:[#allocation2 + $0x128] sm:$0x3] %vm3225_vm3, %v15383_v14  ;;  %v13752_v53 = vpop.f32.mrf.mxu0  ;;  %9875 = vmatpush3.msra.mxu1 %v3135_v39  ;;  %v3147_v39 = vmax.f32 %v2891_v29, 0.0  ;;  %10965 = vmatprep.subr.mxu0 %v9198_v47  ;;  %v2888_v35 = vadd.f32 %v13345_v48, %v2625_v10  ;;  %v2872_v5 = vadd.f32 %v13345_v48, %v2609_v19 }
 0x267   :  { %3263 = vst.msk [vmem:[#allocation2 + $0x130] sm:$0xff] %vm3223_vm2, %v15383_v14  ;;  %15427 = vst [vmem:[#allocation19_spill] sm:$0xff] %v13700_v50  ;;  %9876 = vmatprep.subr.mxu1 %v3150_v2  ;;  %v2873_v2 = vadd.f32 %v13345_v48, %v2610_v4  ;;  %10966 = vmatpush3.msra.mxu0 %v9198_v47  ;;  %v3130_v29 = vmax.f32 %v2874_v21, 0.0  ;;  %v2887_v3 = vadd.f32 %v13345_v48, %v2624_v40  ;;  %v13793_v27 = vpop.f32.mrf.mxu1  ;;  %v3769_v47 = vld [vmem:[%s15363_s4 + $0x58] sm:$0xff] }
 0x268   :  { %3264 = vst.msk [vmem:[#allocation2 + $0x138] sm:$0x3] %vm3225_vm3, %v15383_v14  ;;  %15428 = vst [vmem:[#allocation20_spill] sm:$0xff] %v13721_v41  ;;  %v13762_v17 = vpop.f32.mrf.mxu0  ;;  %9877 = vmatpush3.msra.mxu1 %v3134_v30  ;;  %v3146_v30 = vmax.f32 %v2890_v18, 0.0  ;;  %v3145_v4 = vmax.f32 %v2889_v44, 0.0  ;;  %v3144_v10 = vmax.f32 %v2888_v35, 0.0 }
 0x269   :  { %15429 = vst [vmem:[#allocation21_spill] sm:$0xff] %v13739_v26  ;;  %15430 = vst [vmem:[#allocation22_spill] sm:$0xff] %v13757_v36  ;;  %9878 = vmatprep.subr.mxu1 %v3149_v6  ;;  %v3128_v18 = vmax.f32 %v2872_v5, 0.0  ;;  %v3143_v19 = vmax.f32 %v2887_v3, 0.0  ;;  %v13796_v21 = vpop.f32.mrf.mxu1  ;;  %v3760_v44 = vld [vmem:[%s15363_s4 + $0x10] sm:$0xff] }
 0x26a   :  { %v13773_v7 = vpop.f32.mrf.mxu0  ;;  %9879 = vmatpush3.msra.mxu1 %v3133_v23  ;;  %15431 = vst [vmem:[#allocation23_spill] sm:$0xff] %v13778_v57  ;;  %15432 = vst [vmem:[#allocation24_spill] sm:$0xff] %v13793_v27  ;;  %v2871_v23 = vadd.f32 %v13345_v48, %v2608_v34  ;;  %v3768_v35 = vld [vmem:[%s15363_s4 + $0x50] sm:$0xff] }
 0x26b   :  { %9880 = vmatprep.subr.mxu1 %v3148_v20  ;;  %v3129_v20 = vmax.f32 %v2873_v2, 0.0  ;;  %15433 = vst [vmem:[#allocation25_spill] sm:$0xff] %v13796_v21 }
 0x26c   :  { %v13786_v11 = vpop.f32.mrf.mxu0  ;;  %9881 = vmatpush3.msra.mxu1 %v3132_v51 }
 0x26d   :  { %9882 = vmatprep.subr.mxu1 %v3147_v39  ;;  %v3127_v39 = vmax.f32 %v2871_v23, 0.0  ;;  %v3785_v23 = vld [vmem:[%s15363_s4 + $0xd8] sm:$0xff] }
 0x26e   :  { %v13790_v6 = vpop.f32.mrf.mxu0  ;;  %9883 = vmatpush3.msra.mxu1 %v3131_v37 }
 0x26f   :  { %9884 = vmatprep.subr.mxu1 %v3146_v30  ;;  %v3777_v30 = vld [vmem:[%s15363_s4 + $0x98] sm:$0xff] }
 0x270   :  { %v10648_v46 = vpop.f32.mrf.mxu0  ;;  %9885 = vmatpush3.msra.mxu1 %v3130_v29 }
 0x271   :  { %9886 = vmatprep.subr.mxu1 %v3145_v4  ;;  %v3776_v4 = vld [vmem:[%s15363_s4 + $0x90] sm:$0xff]  ;;  %v2655_v26 = vmul.f32 %v13323_v32, %v10648_v46  ;;  %v3763_v46 = vld [vmem:[%s15363_s4 + $0x28] sm:$0xff] }
 0x272   :  { %v2192_v51 = vpop.f32.mrf.mxu0  ;;  %9887 = vmatpush3.msra.mxu1 %v3129_v20 }
 0x273   :  { %9888 = vmatprep.subr.mxu1 %v3144_v10 }
 0x274   :  { %v13798_v40 = vpop.f32.mrf.mxu0  ;;  %9889 = vmatpush3.msra.mxu1 %v3128_v18 }
 0x275   :  { %9890 = vmatprep.subr.mxu1 %v3143_v19  ;;  %v3784_v19 = vld [vmem:[%s15363_s4 + $0xd0] sm:$0xff] }
 0x276   :  { %v13806_v34 = vpop.f32.mrf.mxu0  ;;  %9891 = vmatpush3.msra.mxu1 %v3127_v39  ;;  %v3793_v39 = vld [vmem:[%s15363_s4 + $0x118] sm:$0xff] }
 0x277   :  { %3992 = vmatmul.mubr.f32.vlgmr.msra.gmra.mxu1 %v3760_v44  ;;  %v13808_v2 = vpop.f32.mrf.mxu1 }
 0x278   :  { %v13810_v37 = vpop.f32.mrf.mxu0  ;;  %3996 = vmatprep.mubr.f32.mxu1 %v3769_v47 }
 0x279   :  { %v13820_v29 = vpop.f32.mrf.mxu1 }
 0x27a   :  { %v13818_v5 = vpop.f32.mrf.mxu0 }
 0x27b   :  { %3997 = vmatmul.mubr.f32.gmra.mxu1 %v3768_v35  ;;  %v13832_v10 = vpop.f32.mrf.mxu1 }
 0x27c   :  { %v13822_v3 = vpop.f32.mrf.mxu0  ;;  %4001 = vmatprep.mubr.f32.mxu1 %v3777_v30  ;;  %v3792_v30 = vld [vmem:[%s15363_s4 + $0x110] sm:$0xff] }
 0x27d   :  { %v13844_v47 = vpop.f32.mrf.mxu1 }
 0x27e   :  { %v13830_v20 = vpop.f32.mrf.mxu0 }
 0x27f   :  { %4002 = vmatmul.mubr.f32.gmra.mxu1 %v3776_v4  ;;  %v3801_v4 = vld [vmem:[%s15363_s4 + $0x158] sm:$0xff]  ;;  %v13854_v14 = vpop.f32.mrf.mxu1 }
 0x280   :  { %v13834_v18 = vpop.f32.mrf.mxu0  ;;  %4006 = vmatprep.mubr.f32.mxu1 %v3785_v23  ;;  %15434 = vst [vmem:[#allocation26_spill] sm:$0xff] %v13854_v14 }
 0x281   :  { %v13862_v57 = vpop.f32.mrf.mxu1 }
 0x282   :  { %v13842_v44 = vpop.f32.mrf.mxu0  ;;  %15435 = vst [vmem:[#allocation27_spill] sm:$0xff] %v13862_v57 }
 0x283   :  { %4007 = vmatmul.mubr.f32.gmra.mxu1 %v3784_v19  ;;  %v3800_v19 = vld [vmem:[%s15363_s4 + $0x150] sm:$0xff]  ;;  %v13871_v42 = vpop.f32.mrf.mxu1 }
 0x284   :  { %v10663_v35 = vpop.f32.mrf.mxu0  ;;  %4011 = vmatprep.mubr.f32.mxu1 %v3793_v39  ;;  %v3809_v39 = vld [vmem:[%s15363_s4 + $0x198] sm:$0xff]  ;;  %15436 = vst [vmem:[#allocation28_spill] sm:$0xff] %v13871_v42  ;;  %v2918_v42 = vadd.f32 %v13345_v48, %v2655_v26 }
 0x286   :  { %v13852_v23 = vpop.f32.mrf.mxu0 }
 0x287   :  { %4012 = vmatmul.mubr.f32.gmra.mxu1 %v3792_v30  ;;  %v3808_v30 = vld [vmem:[%s15363_s4 + $0x190] sm:$0xff] }
 0x288   :  { %v10666_v21 = vpop.f32.mrf.mxu0  ;;  %4016 = vmatprep.mubr.f32.mxu1 %v3801_v4  ;;  %v3817_v4 = vld [vmem:[%s15363_s4 + $0x1d8] sm:$0xff] }
 0x289   :  { %v2667_v26 = vmul.f32 %v13323_v32, %v10666_v21 }
 0x28a   :  { %v2252_v27 = vpop.f32.mrf.mxu0 }
 0x28b   :  { %4017 = vmatmul.mubr.f32.gmra.mxu1 %v3800_v19  ;;  %v2654_v19 = vmul.f32 %v13323_v32, %v2192_v51 }
 0x28c   :  { %v10669_v36 = vpop.f32.mrf.mxu0  ;;  %4021 = vmatprep.mubr.f32.mxu1 %v3809_v39  ;;  %v3816_v39 = vld [vmem:[%s15363_s4 + $0x1d0] sm:$0xff] }
 0x28d   :  { %v2669_v8 = vmul.f32 %v13323_v32, %v10669_v36  ;;  %v13888_v36 = vpop.f32.mrf.mxu1  ;;  %v2917_v14 = vadd.f32 %v13345_v48, %v2654_v19 }
 0x28e   :  { %v2262_v41 = vpop.f32.mrf.mxu0  ;;  %15437 = vst [vmem:[#allocation29_spill] sm:$0xff] %v13888_v36  ;;  %v3174_v36 = vmax.f32 %v2918_v42, 0.0  ;;  %v2665_v42 = vmul.f32 %v13323_v32, %v10663_v35 }
 0x28f   :  { %4022 = vmatmul.mubr.f32.gmra.mxu1 %v3808_v30  ;;  %v2653_v30 = vmul.f32 %v13323_v32, %v13786_v11  ;;  %v2932_v11 = vadd.f32 %v13345_v48, %v2669_v8  ;;  %v13905_v21 = vpop.f32.mrf.mxu1 }
 0x290   :  { %v10672_v50 = vpop.f32.mrf.mxu0  ;;  %4026 = vmatprep.mubr.f32.mxu1 %v3817_v4  ;;  %v2668_v4 = vmul.f32 %v13323_v32, %v2262_v41 }
 0x291   :  { %v2671_v55 = vmul.f32 %v13323_v32, %v10672_v50  ;;  %v2652_v50 = vmul.f32 %v13323_v32, %v13790_v6  ;;  %v2666_v6 = vmul.f32 %v13323_v32, %v2252_v27  ;;  %v3188_v27 = vmax.f32 %v2932_v11, 0.0 }
 0x292   :  { %v2272_v51 = vpop.f32.mrf.mxu0  ;;  %v2931_v19 = vadd.f32 %v13345_v48, %v2668_v4  ;;  %v13917_v4 = vld [vmem:[%s15414_s30] ss:$0 sm:$0xff] }
 0x293   :  { %v2934_v24 = vadd.f32 %v13345_v48, %v2671_v55  ;;  %v2670_v57 = vmul.f32 %v13323_v32, %v2272_v51  ;;  %4027 = vmatmul.mubr.f32.gmra.mxu1 %v3816_v39  ;;  %v2651_v39 = vmul.f32 %v13323_v32, %v13762_v17  ;;  %v2916_v51 = vadd.f32 %v13345_v48, %v2653_v30 }
 0x294   :  { %v13893_v25 = vpop.f32.mrf.mxu0  ;;  %4096 = vmatprep.mubr.f32.mxu1 %v3763_v46  ;;  %v2915_v8 = vadd.f32 %v13345_v48, %v2652_v50  ;;  %v2930_v30 = vadd.f32 %v13345_v48, %v2667_v26  ;;  %v2929_v35 = vadd.f32 %v13345_v48, %v2666_v6  ;;  %v13927_v26 = vpop.f32.mrf.mxu1  ;;  %v2648_v11 = vmul.f32 %v13917_v4, %v13752_v53 }
 0x295   :  { %v3190_v41 = vmax.f32 %v2934_v24, 0.0  ;;  %v2933_v55 = vadd.f32 %v13345_v48, %v2670_v57  ;;  %v2650_v24 = vmul.f32 %v13323_v32, %v13773_v7  ;;  %v3173_v57 = vmax.f32 %v2917_v14, 0.0 }
 0x296   :  { %v13901_v16 = vpop.f32.mrf.mxu0  ;;  %v2649_v7 = vmul.f32 %v13917_v4, %v13744_v9  ;;  %v2914_v50 = vadd.f32 %v13345_v48, %v2651_v39  ;;  %v3172_v14 = vmax.f32 %v2916_v51, 0.0  ;;  %v2664_v32 = vmul.f32 %v13917_v4, %v13852_v23  ;;  %v13934_v9 = vld [vmem:[%s15415_s25] ss:$0 sm:$0xff] }
 0x297   :  { %v3189_v46 = vmax.f32 %v2933_v55, 0.0  ;;  %9916 = vmatprep.subr.mxu1 %v3190_v41  ;;  %v2913_v55 = vadd.f32 %v13934_v9, %v2650_v24  ;;  %v3171_v39 = vmax.f32 %v2915_v8, 0.0  ;;  %v2663_v48 = vmul.f32 %v13917_v4, %v13834_v18  ;;  %v13950_v18 = vpop.f32.mrf.mxu1 }
 0x298   :  { %v13910_v17 = vpop.f32.mrf.mxu0  ;;  %9917 = vmatpush3.msra.mxu1 %v3174_v36  ;;  %v3187_v36 = vmax.f32 %v2931_v19, 0.0  ;;  %v2928_v23 = vadd.f32 %v13934_v9, %v2665_v42  ;;  %v3186_v6 = vmax.f32 %v2930_v30, 0.0  ;;  %v2647_v53 = vmul.f32 %v13917_v4, %v13726_v61 }
 0x299   :  { %9918 = vmatprep.subr.mxu1 %v3189_v46  ;;  %v2912_v19 = vadd.f32 %v13934_v9, %v2649_v7  ;;  %v3170_v46 = vmax.f32 %v2914_v50, 0.0  ;;  %v2662_v24 = vmul.f32 %v13917_v4, %v13842_v44  ;;  %v2927_v8 = vadd.f32 %v13934_v9, %v2664_v32 }
 0x29a   :  { %v13922_v41 = vpop.f32.mrf.mxu0  ;;  %9919 = vmatpush3.msra.mxu1 %v3173_v57  ;;  %v2646_v42 = vmul.f32 %v13917_v4, %v13734_v52  ;;  %v2911_v61 = vadd.f32 %v13934_v9, %v2648_v11  ;;  %v3169_v30 = vmax.f32 %v2913_v55, 0.0  ;;  %v2661_v50 = vmul.f32 %v13917_v4, %v13822_v3  ;;  %v13968_v3 = vpop.f32.mrf.mxu1 }
 0x29b   :  { %9920 = vmatprep.subr.mxu1 %v3188_v27  ;;  %v3185_v27 = vmax.f32 %v2929_v35, 0.0  ;;  %v2926_v44 = vadd.f32 %v13934_v9, %v2663_v48  ;;  %v2645_v32 = vmul.f32 %v13917_v4, %v13707_v49  ;;  %v2910_v35 = vadd.f32 %v13934_v9, %v2647_v53 }
 0x29c   :  { %v13937_v51 = vpop.f32.mrf.mxu0  ;;  %9921 = vmatpush3.msra.mxu1 %v3172_v14  ;;  %v3184_v14 = vmax.f32 %v2928_v23, 0.0  ;;  %v2660_v11 = vmul.f32 %v13917_v4, %v13830_v20  ;;  %v2925_v55 = vadd.f32 %v13934_v9, %v2662_v24  ;;  %v2644_v48 = vmul.f32 %v13917_v4, %v13716_v58 }
 0x29d   :  { %9922 = vmatprep.subr.mxu1 %v3187_v36  ;;  %v3168_v36 = vmax.f32 %v2912_v19, 0.0  ;;  %v2909_v49 = vadd.f32 %v13934_v9, %v2646_v42  ;;  %v3167_v23 = vmax.f32 %v2911_v61, 0.0  ;;  %v2659_v53 = vmul.f32 %v13917_v4, %v13810_v37  ;;  %v13986_v37 = vpop.f32.mrf.mxu1 }
 0x29e   :  { %v13945_v57 = vpop.f32.mrf.mxu0  ;;  %9923 = vmatpush3.msra.mxu1 %v3171_v39  ;;  %v3183_v39 = vmax.f32 %v2927_v8, 0.0  ;;  %v2924_v20 = vadd.f32 %v13934_v9, %v2661_v50  ;;  %v3182_v19 = vmax.f32 %v2926_v44, 0.0  ;;  %v2908_v24 = vadd.f32 %v13934_v9, %v2645_v32 }
 0x29f   :  { %9924 = vmatprep.subr.mxu1 %v3186_v6  ;;  %v3166_v8 = vmax.f32 %v2910_v35, 0.0  ;;  %v2923_v42 = vadd.f32 %v13934_v9, %v2660_v11  ;;  %v3181_v61 = vmax.f32 %v2925_v55, 0.0  ;;  %v3165_v50 = vmax.f32 %v2909_v49, 0.0 }
 0x2a0   :  { %v13955_v7 = vpop.f32.mrf.mxu0  ;;  %9925 = vmatpush3.msra.mxu1 %v3170_v46  ;;  %v2643_v46 = vmul.f32 %v13917_v4, %v13603_v63  ;;  %v2907_v63 = vadd.f32 %v13934_v9, %v2644_v48  ;;  %v3180_v32 = vmax.f32 %v2924_v20, 0.0  ;;  %v2641_v35 = vmul.f32 %v13917_v4, %v13575_v13 }
 0x2a1   :  { %9926 = vmatprep.subr.mxu1 %v3185_v27  ;;  %v2658_v27 = vmul.f32 %v13917_v4, %v13818_v5  ;;  %v2922_v5 = vadd.f32 %v13934_v9, %v2659_v53  ;;  %v3164_v11 = vmax.f32 %v2908_v24, 0.0  ;;  %v2656_v55 = vmul.f32 %v13917_v4, %v13806_v34 }
 0x2a2   :  { %v13963_v52 = vpop.f32.mrf.mxu0  ;;  %9927 = vmatpush3.msra.mxu1 %v3169_v30  ;;  %v2642_v30 = vmul.f32 %v13917_v4, %v13694_v43  ;;  %v3179_v48 = vmax.f32 %v2923_v42, 0.0  ;;  %v2640_v49 = vmul.f32 %v13917_v4, %v13591_v54  ;;  %v2904_v34 = vadd.f32 %v13934_v9, %v2641_v35 }
 0x2a3   :  { %9928 = vmatprep.subr.mxu1 %v3184_v14  ;;  %v2657_v14 = vmul.f32 %v13917_v4, %v13798_v40  ;;  %v14004_v40 = vpop.f32.mrf.mxu1 }
 0x2a4   :  { %v13973_v6 = vpop.f32.mrf.mxu0  ;;  %9929 = vmatpush3.msra.mxu1 %v3168_v36  ;;  %v2906_v36 = vadd.f32 %v13934_v9, %v2643_v46  ;;  %v2905_v13 = vadd.f32 %v13934_v9, %v2642_v30  ;;  %v2903_v42 = vadd.f32 %v13934_v9, %v2640_v49  ;;  %v9614_v30 = vadd.f32 %v13231_v31, %v13211_v15 }
 0x2a5   :  { %9930 = vmatprep.subr.mxu1 %v3183_v39  ;;  %v2921_v39 = vadd.f32 %v13934_v9, %v2658_v27  ;;  %v2920_v20 = vadd.f32 %v13934_v9, %v2657_v14  ;;  %v14016_v54 = vpop.f32.mrf.mxu1  ;;  %v9676_v49 = vadd.f32 %v13542_v33, %v13534_v0  ;;  %v9623_v0 = vadd.f32 %v13351_v62, %v13327_v56  ;;  %v15438_v33 = vld [vmem:[#allocation16_spill] sm:$0xff] }
 0x2a6   :  { %v13981_v58 = vpop.f32.mrf.mxu0  ;;  %9931 = vmatpush3.msra.mxu1 %v3167_v23  ;;  %v3163_v23 = vmax.f32 %v2907_v63, 0.0  ;;  %v3162_v46 = vmax.f32 %v2906_v36, 0.0  ;;  %v9670_v63 = vadd.f32 %v13500_v1, %v13488_v38  ;;  %v9617_v36 = vadd.f32 %v13271_v12, %v13251_v28  ;;  %v3771_v28 = vld [vmem:[%s15363_s4 + $0x68] sm:$0xff] }
 0x2a7   :  { %9932 = vmatprep.subr.mxu1 %v3182_v19  ;;  %v3178_v19 = vmax.f32 %v2922_v5, 0.0  ;;  %v3177_v27 = vmax.f32 %v2921_v39, 0.0  ;;  %v3176_v14 = vmax.f32 %v2920_v20, 0.0  ;;  %v3160_v5 = vmax.f32 %v2904_v34, 0.0  ;;  %v15439_v34 = vld [vmem:[#allocation17_spill] sm:$0xff] }
 0x2a8   :  { %v13991_v44 = vpop.f32.mrf.mxu0  ;;  %9933 = vmatpush3.msra.mxu1 %v3166_v8  ;;  %v2919_v8 = vadd.f32 %v13934_v9, %v2656_v55  ;;  %v3159_v15 = vmax.f32 %v2903_v42, 0.0  ;;  %v3501_v31 = vadd.f32 %v9670_v63, %v9614_v30  ;;  %v9673_v38 = vadd.f32 %v13524_v22, %v13512_v60  ;;  %v3762_v55 = vld [vmem:[%s15363_s4 + $0x20] sm:$0xff]  ;;  %v3787_v56 = vld [vmem:[%s15363_s4 + $0xe8] sm:$0xff] }
 0x2a9   :  { %9934 = vmatprep.subr.mxu1 %v3181_v61  ;;  %v3161_v61 = vmax.f32 %v2905_v13, 0.0  ;;  %v9726_v39 = vadd.f32 %v13820_v29, %v13808_v2  ;;  %v9620_v60 = vadd.f32 %v13307_v59, %v13291_v45  ;;  %v3770_v29 = vld [vmem:[%s15363_s4 + $0x60] sm:$0xff]  ;;  %v3779_v45 = vld [vmem:[%s15363_s4 + $0xa8] sm:$0xff] }
 0x2aa   :  { %v13999_v43 = vpop.f32.mrf.mxu0  ;;  %9935 = vmatpush3.msra.mxu1 %v3165_v50  ;;  %v3175_v35 = vmax.f32 %v2919_v8, 0.0  ;;  %v15441_v30 = vld [vmem:[#allocation27_spill] sm:$0xff] }
 0x2ab   :  { %9936 = vmatprep.subr.mxu1 %v3180_v32  ;;  %v3606_v2 = vadd.f32 %v9726_v39, %v3501_v31  ;;  %v15444_v39 = vld [vmem:[#allocation18_spill] sm:$0xff] }
 0x2ac   :  { %v14009_v53 = vpop.f32.mrf.mxu0  ;;  %9937 = vmatpush3.msra.mxu1 %v3164_v11  ;;  %v14029_v11 = vpop.f32.mrf.mxu1 }
 0x2ad   :  { %9938 = vmatprep.subr.mxu1 %v3179_v48  ;;  %v3506_v48 = vadd.f32 %v9673_v38, %v9617_v36  ;;  %v15442_v36 = vld [vmem:[#allocation8_spill] sm:$0xff] }
 0x2ae   :  { %v14013_v24 = vpop.f32.mrf.mxu0  ;;  %9939 = vmatpush3.msra.mxu1 %v3163_v23  ;;  %v9729_v23 = vadd.f32 %v13844_v47, %v13832_v10  ;;  %v3778_v47 = vld [vmem:[%s15363_s4 + $0xa0] sm:$0xff] }
 0x2af   :  { %9940 = vmatprep.subr.mxu1 %v3178_v19 }
 0x2b0   :  { %v14023_v50 = vpop.f32.mrf.mxu0  ;;  %9941 = vmatpush3.msra.mxu1 %v3162_v46  ;;  %v9679_v46 = vadd.f32 %v15439_v34, %v15438_v33  ;;  %v3611_v10 = vadd.f32 %v9729_v23, %v3506_v48  ;;  %v15448_v34 = vld [vmem:[#allocation10_spill] sm:$0xff] }
 0x2b1   :  { %9942 = vmatprep.subr.mxu1 %v3177_v27  ;;  %v3511_v27 = vadd.f32 %v9676_v49, %v9620_v60  ;;  %v3786_v49 = vld [vmem:[%s15363_s4 + $0xe0] sm:$0xff] }
 0x2b2   :  { %v14025_v32 = vpop.f32.mrf.mxu0  ;;  %9943 = vmatpush3.msra.mxu1 %v3161_v61  ;;  %v15440_v61 = vld [vmem:[#allocation26_spill] sm:$0xff]  ;;  %v3516_v38 = vadd.f32 %v9679_v46, %v9623_v0  ;;  %v15449_v46 = vld [vmem:[#allocation11_spill] sm:$0xff] }
 0x2b3   :  { %9944 = vmatprep.subr.mxu1 %v3176_v14  ;;  %v9732_v63 = vadd.f32 %v15441_v30, %v15440_v61 }
 0x2b4   :  { %v14033_v1 = vpop.f32.mrf.mxu0  ;;  %9945 = vmatpush3.msra.mxu1 %v3160_v5 }
 0x2b5   :  { %9946 = vmatprep.subr.mxu1 %v3175_v35  ;;  %v3616_v48 = vadd.f32 %v9732_v63, %v3511_v27  ;;  %v15450_v27 = vld [vmem:[#allocation20_spill] sm:$0xff] }
 0x2b6   :  { %v14043_v12 = vpop.f32.mrf.mxu0  ;;  %9947 = vmatpush3.msra.mxu1 %v3159_v15  ;;  %v15443_v15 = vld [vmem:[#allocation9_spill] sm:$0xff] }
 0x2b7   :  { %4097 = vmatmul.mubr.f32.vlgmr.msra.gmra.mxu1 %v3762_v55  ;;  %v9780_v22 = vpop.f32.mrf.mxu1  ;;  %v9626_v31 = vadd.f32 %v15443_v15, %v15442_v36  ;;  %v3803_v36 = vld [vmem:[%s15363_s4 + $0x168] sm:$0xff] }
 0x2b8   :  { %v14049_v13 = vpop.f32.mrf.mxu0  ;;  %4101 = vmatprep.mubr.f32.mxu1 %v3771_v28  ;;  %v15445_v28 = vld [vmem:[#allocation19_spill] sm:$0xff] }
 0x2b9   :  { %v9781_v59 = vpop.f32.mrf.mxu1  ;;  %v9682_v60 = vadd.f32 %v15445_v28, %v15444_v39  ;;  %v15453_v39 = vld [vmem:[#allocation13_spill] sm:$0xff] }
 0x2ba   :  { %v14059_v20 = vpop.f32.mrf.mxu0  ;;  %v9782_v19 = vadd.f32 %v9781_v59, %v9780_v22  ;;  %v3795_v59 = vld [vmem:[%s15363_s4 + $0x128] sm:$0xff] }
 0x2bb   :  { %4102 = vmatmul.mubr.f32.gmra.mxu1 %v3770_v29  ;;  %v9783_v8 = vpop.f32.mrf.mxu1  ;;  %v15447_v29 = vld [vmem:[#allocation29_spill] sm:$0xff]  ;;  %v3521_v63 = vadd.f32 %v9682_v60, %v9626_v31 }
 0x2bc   :  { %v14065_v42 = vpop.f32.mrf.mxu0  ;;  %4106 = vmatprep.mubr.f32.mxu1 %v3779_v45  ;;  %v3711_v14 = vadd.f32 %v9782_v19, %v3606_v2  ;;  %v15446_v2 = vld [vmem:[#allocation28_spill] sm:$0xff] }
 0x2bd   :  { %v9784_v62 = vpop.f32.mrf.mxu1  ;;  %v9735_v23 = vadd.f32 %v15447_v29, %v15446_v2  ;;  %v15454_v2 = vld [vmem:[#allocation22_spill] sm:$0xff]  ;;  %v15455_v29 = vld [vmem:[#allocation23_spill] sm:$0xff] }
 0x2be   :  { %v14075_v5 = vpop.f32.mrf.mxu0  ;;  %3750 = vst.msk [vmem:[#allocation2 + $0x11] sm:$0xff] %vm3223_vm2, %v3711_v14  ;;  %v9785_v35 = vadd.f32 %v9784_v62, %v9783_v8  ;;  %v9629_v8 = vadd.f32 %v15449_v46, %v15448_v34  ;;  %v9738_v62 = vadd.f32 %v13927_v26, %v13905_v21  ;;  %v9688_v21 = vadd.f32 %v15455_v29, %v15454_v2 }
 0x2bf   :  { %4107 = vmatmul.mubr.f32.gmra.mxu1 %v3778_v47  ;;  %v9786_v55 = vpop.f32.mrf.mxu1  ;;  %v15451_v47 = vld [vmem:[#allocation21_spill] sm:$0xff]  ;;  %v3621_v14 = vadd.f32 %v9735_v23, %v3516_v38  ;;  %v15452_v38 = vld [vmem:[#allocation12_spill] sm:$0xff] }
 0x2c0   :  { %v14082_v22 = vpop.f32.mrf.mxu0  ;;  %4111 = vmatprep.mubr.f32.mxu1 %v3787_v56  ;;  %v3716_v45 = vadd.f32 %v9785_v35, %v3611_v10  ;;  %v9685_v61 = vadd.f32 %v15451_v47, %v15450_v27  ;;  %v3794_v56 = vld [vmem:[%s15363_s4 + $0x120] sm:$0xff]  ;;  %v9632_v28 = vadd.f32 %v15453_v39, %v15452_v38  ;;  %v15456_v27 = vld [vmem:[#allocation14_spill] sm:$0xff] }
 0x2c1   :  { %v9787_v19 = vpop.f32.mrf.mxu1  ;;  %v3802_v23 = vld [vmem:[%s15363_s4 + $0x160] sm:$0xff] }
 0x2c2   :  { %v14092_v0 = vpop.f32.mrf.mxu0  ;;  %3751 = vst.msk [vmem:[#allocation2 + $0x21] sm:$0xff] %vm3223_vm2, %v3716_v45  ;;  %v9788_v33 = vadd.f32 %v9787_v19, %v9786_v55  ;;  %v3526_v60 = vadd.f32 %v9685_v61, %v9629_v8  ;;  %v9741_v45 = vadd.f32 %v13968_v3, %v13950_v18  ;;  %v3811_v19 = vld [vmem:[%s15363_s4 + $0x1a8] sm:$0xff]  ;;  %v15457_v47 = vld [vmem:[#allocation15_spill] sm:$0xff] }
 0x2c3   :  { %4112 = vmatmul.mubr.f32.gmra.mxu1 %v3786_v49  ;;  %v9789_v30 = vpop.f32.mrf.mxu1  ;;  %v9635_v61 = vadd.f32 %v15457_v47, %v15456_v27  ;;  %v15458_v18 = vld [vmem:[#allocation24_spill] sm:$0xff]  ;;  %v15459_v3 = vld [vmem:[#allocation25_spill] sm:$0xff] }
 0x2c4   :  { %v14099_v10 = vpop.f32.mrf.mxu0  ;;  %4116 = vmatprep.mubr.f32.mxu1 %v3795_v59  ;;  %v3721_v35 = vadd.f32 %v9788_v33, %v3616_v48  ;;  %v3626_v48 = vadd.f32 %v9738_v62, %v3521_v63  ;;  %v3631_v62 = vadd.f32 %v9741_v45, %v3526_v60 }
 0x2c5   :  { %v9790_v15 = vpop.f32.mrf.mxu1 }
 0x2c6   :  { %v14109_v55 = vpop.f32.mrf.mxu0  ;;  %3752 = vst.msk [vmem:[#allocation2 + $0x31] sm:$0xff] %vm3223_vm2, %v3721_v35  ;;  %v9791_v31 = vadd.f32 %v9790_v15, %v9789_v30  ;;  %v9691_v30 = vadd.f32 %v15459_v3, %v15458_v18  ;;  %v3810_v35 = vld [vmem:[%s15363_s4 + $0x1a0] sm:$0xff] }
 0x2c7   :  { %4117 = vmatmul.mubr.f32.gmra.mxu1 %v3794_v56  ;;  %v9792_v49 = vpop.f32.mrf.mxu1 }
 0x2c8   :  { %v14116_v26 = vpop.f32.mrf.mxu0  ;;  %4121 = vmatprep.mubr.f32.mxu1 %v3803_v36  ;;  %v3726_v59 = vadd.f32 %v9791_v31, %v3621_v14  ;;  %v3531_v14 = vadd.f32 %v9688_v21, %v9632_v28  ;;  %v9744_v36 = vadd.f32 %v14004_v40, %v13986_v37  ;;  %v3819_v31 = vld [vmem:[%s15363_s4 + $0x1e8] sm:$0xff]  ;;  %v2687_v28 = vmul.f32 %v13917_v4, %v14023_v50  ;;  %v3818_v50 = vld [vmem:[%s15363_s4 + $0x1e0] sm:$0xff] }
 0x2c9   :  { %v9793_v33 = vpop.f32.mrf.mxu1  ;;  %v14126_v34 = vld [vmem:[#allocation2 + $0x22] sm:$0xff]  ;;  %v3536_v2 = vadd.f32 %v9691_v30, %v9635_v61  ;;  %v2686_v40 = vmul.f32 %v13917_v4, %v14025_v32  ;;  %v3765_v32 = vld [vmem:[%s15363_s4 + $0x38] sm:$0xff] }
 0x2ca   :  { %v14128_v46 = vpop.f32.mrf.mxu0  ;;  %3753 = vst.msk [vmem:[#allocation2 + $0x41] sm:$0xff] %vm3223_vm2, %v3726_v59  ;;  %v9794_v8 = vadd.f32 %v9793_v33, %v9792_v49  ;;  %10967 = vmatprep.mubr.msk.f32.mxu0 %vm3223_vm2, %v14126_v34  ;;  %v3636_v21 = vadd.f32 %v9744_v36, %v3531_v14  ;;  %v2950_v27 = vadd.f32 %v13934_v9, %v2687_v28 }
 0x2cb   :  { %4122 = vmatmul.mubr.f32.gmra.mxu1 %v3802_v23  ;;  %v9795_v63 = vpop.f32.mrf.mxu1  ;;  %v2949_v30 = vadd.f32 %v13934_v9, %v2686_v40 }
 0x2cc   :  { %v10717_v56 = vpop.f32.mrf.mxu0  ;;  %4126 = vmatprep.mubr.f32.mxu1 %v3811_v19  ;;  %v3731_v15 = vadd.f32 %v9794_v8, %v3626_v48  ;;  %v9747_v48 = vadd.f32 %v14029_v11, %v14016_v54  ;;  %v2685_v8 = vmul.f32 %v13917_v4, %v14009_v53  ;;  %v2684_v53 = vmul.f32 %v13917_v4, %v14013_v24 }
 0x2cd   :  { %v9796_v38 = vpop.f32.mrf.mxu1  ;;  %v14145_v39 = vld [vmem:[#allocation2 + $0x32] sm:$0xff]  ;;  %v2701_v45 = vmul.f32 %v13917_v4, %v10717_v56  ;;  %v2699_v56 = vmul.f32 %v13917_v4, %v14116_v26  ;;  %v3206_v28 = vmax.f32 %v2950_v27, 0.0  ;;  %v3205_v40 = vmax.f32 %v2949_v30, 0.0 }
 0x2ce   :  { %15460 = vst [vmem:[#allocation16_spill] sm:$0xff] %v14145_v39  ;;  %v2422_v60 = vpop.f32.mrf.mxu0  ;;  %3754 = vst.msk [vmem:[#allocation2 + $0x51] sm:$0xff] %vm3223_vm2, %v3731_v15  ;;  %v9797_v49 = vadd.f32 %v9796_v38, %v9795_v63  ;;  %10968 = vmatmul.mubr.msk.f32.vlgmr.msra.gmra.mxu0 %vm3223_vm2, %v14145_v39  ;;  %v3641_v63 = vadd.f32 %v9747_v48, %v3536_v2  ;;  %v2683_v38 = vmul.f32 %v13917_v4, %v13991_v44 }
 0x2cf   :  { %4127 = vmatmul.mubr.f32.gmra.mxu1 %v3810_v35  ;;  %v9798_v37 = vpop.f32.mrf.mxu1  ;;  %v2700_v11 = vmul.f32 %v13917_v4, %v2422_v60  ;;  %v2948_v24 = vadd.f32 %v13934_v9, %v2685_v8  ;;  %v2698_v60 = vmul.f32 %v13917_v4, %v14128_v46  ;;  %v2947_v44 = vadd.f32 %v13934_v9, %v2684_v53 }
 0x2d0   :  { %v10720_v29 = vpop.f32.mrf.mxu0  ;;  %4131 = vmatprep.mubr.f32.mxu1 %v3819_v31  ;;  %v3736_v23 = vadd.f32 %v9797_v49, %v3631_v62  ;;  %v2964_v62 = vadd.f32 %v13934_v9, %v2701_v45  ;;  %v2946_v45 = vadd.f32 %v13934_v9, %v2683_v38  ;;  %v2695_v27 = vmul.f32 %v13917_v4, %v14082_v22 }
 0x2d1   :  { %v2703_v59 = vmul.f32 %v13917_v4, %v10720_v29  ;;  %v9799_v19 = vpop.f32.mrf.mxu1  ;;  %v14161_v33 = vld [vmem:[#allocation2 + $0x42] sm:$0xff]  ;;  %v2963_v49 = vadd.f32 %v13934_v9, %v2700_v11  ;;  %v3203_v8 = vmax.f32 %v2947_v44, 0.0  ;;  %v2678_v53 = vmul.f32 %v13917_v4, %v13963_v52 }
 0x2d2   :  { %15461 = vst [vmem:[#allocation17_spill] sm:$0xff] %v14161_v33  ;;  %v2432_v47 = vpop.f32.mrf.mxu0  ;;  %3755 = vst.msk [vmem:[#allocation2 + $0x61] sm:$0xff] %vm3223_vm2, %v3736_v23  ;;  %v9800_v54 = vadd.f32 %v9799_v19, %v9798_v37  ;;  %10970 = vmatprep.mubr.msk.f32.mxu0 %vm3223_vm2, %v14161_v33  ;;  %v2682_v37 = vmul.f32 %v13917_v4, %v13999_v43  ;;  %v3220_v48 = vmax.f32 %v2964_v62, 0.0  ;;  %v3204_v43 = vmax.f32 %v2948_v24, 0.0 }
 0x2d3   :  { %v2966_v61 = vadd.f32 %v13934_v9, %v2703_v59  ;;  %v2702_v18 = vmul.f32 %v13917_v4, %v2432_v47  ;;  %4132 = vmatmul.mubr.f32.gmra.mxu1 %v3818_v50  ;;  %v9801_v3 = vpop.f32.mrf.mxu1  ;;  %v2962_v50 = vadd.f32 %v13934_v9, %v2699_v56  ;;  %v2681_v23 = vmul.f32 %v13917_v4, %v13973_v6 }
 0x2d4   :  { %v3741_v14 = vadd.f32 %v9800_v54, %v3636_v21  ;;  %4201 = vmatprep.mubr.f32.mxu1 %v3765_v32  ;;  %v2697_v21 = vmul.f32 %v13917_v4, %v14099_v10  ;;  %v2696_v10 = vmul.f32 %v13917_v4, %v14109_v55  ;;  %v2961_v59 = vadd.f32 %v13934_v9, %v2698_v60 }
 0x2d5   :  { %v3222_v35 = vmax.f32 %v2966_v61, 0.0  ;;  %v2965_v36 = vadd.f32 %v13934_v9, %v2702_v18  ;;  %v14182_v15 = vld [vmem:[#allocation2 + $0x52] sm:$0xff]  ;;  %v9802_v31 = vpop.f32.mrf.mxu1  ;;  %v3219_v19 = vmax.f32 %v2963_v49, 0.0  ;;  %v2680_v32 = vmul.f32 %v13917_v4, %v13981_v58 }
 0x2d6   :  { %15462 = vst [vmem:[#allocation26_spill] sm:$0xff] %v14182_v15  ;;  %3756 = vst.msk [vmem:[#allocation2 + $0x71] sm:$0xff] %vm3223_vm2, %v3741_v14  ;;  %10971 = vmatmul.mubr.msk.f32.gmra.mxu0 %vm3223_vm2, %v14182_v15  ;;  %v9803_v26 = vadd.f32 %v9802_v31, %v9801_v3  ;;  %v2945_v6 = vadd.f32 %v13934_v9, %v2682_v37  ;;  %v2960_v47 = vadd.f32 %v13934_v9, %v2697_v21 }
 0x2d7   :  { %v3221_v2 = vmax.f32 %v2965_v36, 0.0  ;;  %9972 = vmatprep.subr.mxu1 %v3222_v35  ;;  %v3218_v54 = vmax.f32 %v2962_v50, 0.0  ;;  %v2679_v55 = vmul.f32 %v13917_v4, %v13955_v7  ;;  %v2944_v61 = vadd.f32 %v13934_v9, %v2681_v23 }
 0x2d8   :  { %9973 = vmatpush3.msra.mxu1 %v3206_v28  ;;  %v3746_v29 = vadd.f32 %v9803_v26, %v3641_v63  ;;  %v3202_v18 = vmax.f32 %v2946_v45, 0.0  ;;  %v2694_v58 = vmul.f32 %v13917_v4, %v14092_v0  ;;  %v2959_v22 = vadd.f32 %v13934_v9, %v2696_v10 }
 0x2d9   :  { %9974 = vmatprep.subr.mxu1 %v3221_v2  ;;  %v14199_v46 = vld [vmem:[#allocation2 + $0x62] sm:$0xff]  ;;  %v3217_v3 = vmax.f32 %v2961_v59, 0.0  ;;  %v2943_v30 = vadd.f32 %v13934_v9, %v2680_v32  ;;  %v3201_v7 = vmax.f32 %v2945_v6, 0.0  ;;  %v2693_v63 = vmul.f32 %v13917_v4, %v14065_v42 }
 0x2da   :  { %15463 = vst [vmem:[#allocation27_spill] sm:$0xff] %v14199_v46  ;;  %9975 = vmatpush3.msra.mxu1 %v3205_v40  ;;  %3757 = vst.msk [vmem:[#allocation2 + $0x81] sm:$0xff] %vm3223_vm2, %v3746_v29  ;;  %10973 = vmatprep.mubr.msk.f32.mxu0 %vm3223_vm2, %v14199_v46  ;;  %v2958_v14 = vadd.f32 %v13934_v9, %v2695_v27  ;;  %v3216_v56 = vmax.f32 %v2960_v47, 0.0  ;;  %v2677_v0 = vmul.f32 %v13917_v4, %v13937_v51 }
 0x2db   :  { %9976 = vmatprep.subr.mxu1 %v3220_v48  ;;  %v2942_v35 = vadd.f32 %v13934_v9, %v2679_v55  ;;  %v3200_v36 = vmax.f32 %v2944_v61, 0.0  ;;  %v2692_v52 = vmul.f32 %v13917_v4, %v14075_v5  ;;  %v2957_v42 = vadd.f32 %v13934_v9, %v2694_v58  ;;  %v3764_v61 = vld [vmem:[%s15363_s4 + $0x30] sm:$0xff]  ;;  %v9050_v58 = vld [vmem:[%s15364_s5 + $0x20] sm:$0xff] }
 0x2dc   :  { %9977 = vmatpush3.msra.mxu1 %v3204_v43  ;;  %v3215_v31 = vmax.f32 %v2959_v22, 0.0  ;;  %v2676_v38 = vmul.f32 %v13917_v4, %v13945_v57  ;;  %v2941_v24 = vadd.f32 %v13934_v9, %v2678_v53  ;;  %v3199_v51 = vmax.f32 %v2943_v30, 0.0  ;;  %v3772_v22 = vld [vmem:[%s15363_s4 + $0x70] sm:$0xff]  ;;  %v3781_v53 = vld [vmem:[%s15363_s4 + $0xb8] sm:$0xff] }
 0x2dd   :  { %9978 = vmatprep.subr.mxu1 %v3219_v19  ;;  %v14216_v11 = vld [vmem:[#allocation2 + $0x72] sm:$0xff]  ;;  %v2691_v28 = vmul.f32 %v13917_v4, %v14049_v13  ;;  %v2956_v26 = vadd.f32 %v13934_v9, %v2693_v63  ;;  %v3214_v60 = vmax.f32 %v2958_v14, 0.0  ;;  %v2675_v5 = vmul.f32 %v13917_v4, %v13910_v17 }
 0x2de   :  { %15464 = vst [vmem:[#allocation8_spill] sm:$0xff] %v14216_v11  ;;  %9979 = vmatpush3.msra.mxu1 %v3203_v8  ;;  %10974 = vmatmul.mubr.msk.f32.gmra.mxu0 %vm3223_vm2, %v14216_v11  ;;  %v2940_v49 = vadd.f32 %v13934_v9, %v2677_v0  ;;  %v3198_v2 = vmax.f32 %v2942_v35, 0.0  ;;  %v2690_v57 = vmul.f32 %v13917_v4, %v14059_v20  ;;  %v3213_v44 = vmax.f32 %v2957_v42, 0.0  ;;  %v3789_v63 = vld [vmem:[%s15363_s4 + $0xf8] sm:$0xff] }
 0x2df   :  { %9980 = vmatprep.subr.mxu1 %v3218_v54  ;;  %v2955_v37 = vadd.f32 %v13934_v9, %v2692_v52  ;;  %v2674_v13 = vmul.f32 %v13917_v4, %v13922_v41  ;;  %v2939_v40 = vadd.f32 %v13934_v9, %v2676_v38  ;;  %v3197_v29 = vmax.f32 %v2941_v24, 0.0  ;;  %v3797_v0 = vld [vmem:[%s15363_s4 + $0x138] sm:$0xff] }
 0x2e0   :  { %9981 = vmatpush3.msra.mxu1 %v3202_v18  ;;  %v2689_v17 = vmul.f32 %v13917_v4, %v14033_v1  ;;  %v2954_v21 = vadd.f32 %v13934_v9, %v2691_v28  ;;  %v3212_v50 = vmax.f32 %v2956_v26, 0.0  ;;  %v2673_v20 = vmul.f32 %v13917_v4, %v13893_v25  ;;  %v9051_v18 = vld [vmem:[%s15364_s5 + $0x28] sm:$0xff]  ;;  %v3805_v52 = vld [vmem:[%s15363_s4 + $0x178] sm:$0xff] }
 0x2e1   :  { %9982 = vmatprep.subr.mxu1 %v3217_v3  ;;  %v14232_v62 = vld [vmem:[#allocation2 + $0x82] sm:$0xff]  ;;  %v2938_v48 = vadd.f32 %v13934_v9, %v2675_v5  ;;  %v3196_v23 = vmax.f32 %v2940_v49, 0.0  ;;  %v2688_v41 = vmul.f32 %v13917_v4, %v14043_v12  ;;  %v2953_v45 = vadd.f32 %v13934_v9, %v2690_v57  ;;  %v9049_v3 = vld [vmem:[%s15364_s5 + $0x18] sm:$0xff] }
 0x2e2   :  { %15465 = vst [vmem:[#allocation9_spill] sm:$0xff] %v14232_v62  ;;  %9983 = vmatpush3.msra.mxu1 %v3201_v7  ;;  %10976 = vmatprep.mubr.msk.f32.mxu0 %vm3223_vm2, %v14232_v62  ;;  %v3211_v43 = vmax.f32 %v2955_v37, 0.0  ;;  %v2672_v1 = vmul.f32 %v13917_v4, %v13901_v16  ;;  %v2937_v10 = vadd.f32 %v13934_v9, %v2674_v13  ;;  %v3195_v59 = vmax.f32 %v2939_v40, 0.0  ;;  %v3780_v7 = vld [vmem:[%s15363_s4 + $0xb0] sm:$0xff]  ;;  %v3813_v38 = vld [vmem:[%s15363_s4 + $0x1b8] sm:$0xff]  ;;  %v4270_v5 = vld [vmem:[#allocation2 + $0x1] sm:$0xff] }
 0x2e3   :  { %9984 = vmatprep.subr.mxu1 %v3216_v56  ;;  %v2952_v25 = vadd.f32 %v13934_v9, %v2689_v17  ;;  %v3210_v19 = vmax.f32 %v2954_v21, 0.0  ;;  %v2936_v32 = vadd.f32 %v13934_v9, %v2673_v20  ;;  %v3194_v6 = vmax.f32 %v2938_v48, 0.0  ;;  %v3788_v56 = vld [vmem:[%s15363_s4 + $0xf0] sm:$0xff]  ;;  %v3821_v28 = vld [vmem:[%s15363_s4 + $0x1f8] sm:$0xff]  ;;  %v14346_v57 = vld [vmem:[#allocation2 + $0x21] sm:$0xff] }
 0x2e4   :  { %9985 = vmatpush3.msra.mxu1 %v3200_v36  ;;  %v2951_v12 = vadd.f32 %v13934_v9, %v2688_v41  ;;  %v3209_v8 = vmax.f32 %v2953_v45, 0.0  ;;  %v2935_v27 = vadd.f32 %v13934_v9, %v2672_v1  ;;  %v3193_v47 = vmax.f32 %v2937_v10, 0.0  ;;  %v3773_v9 = vld [vmem:[%s15363_s4 + $0x78] sm:$0xff]  ;;  %v3796_v36 = vld [vmem:[%s15363_s4 + $0x130] sm:$0xff]  ;;  %15467 = vst [vmem:[#allocation19_spill] sm:$0xff] %v14346_v57  ;;  %v14356_v13 = vld [vmem:[#allocation2 + $0x41] sm:$0xff] }
 0x2e5   :  { %9986 = vmatprep.subr.mxu1 %v3215_v31  ;;  %v3208_v16 = vmax.f32 %v2952_v25, 0.0  ;;  %v3192_v4 = vmax.f32 %v2936_v32, 0.0  ;;  %v3804_v31 = vld [vmem:[%s15363_s4 + $0x170] sm:$0xff]  ;;  %15469 = vst [vmem:[#allocation29_spill] sm:$0xff] %v14356_v13  ;;  %v14366_v17 = vld [vmem:[#allocation2 + $0x61] sm:$0xff] }
 0x2e6   :  { %9987 = vmatpush3.msra.mxu1 %v3199_v51  ;;  %v3207_v54 = vmax.f32 %v2951_v12, 0.0  ;;  %v3191_v55 = vmax.f32 %v2935_v27, 0.0  ;;  %v3812_v51 = vld [vmem:[%s15363_s4 + $0x1b0] sm:$0xff]  ;;  %15471 = vst [vmem:[#allocation11_spill] sm:$0xff] %v14366_v17  ;;  %v4278_v25 = vld [vmem:[#allocation2 + $0xa1] sm:$0xff] }
 0x2e7   :  { %9988 = vmatprep.subr.mxu1 %v3214_v60  ;;  %v3820_v60 = vld [vmem:[%s15363_s4 + $0x1f0] sm:$0xff]  ;;  %v4268_v27 = vld [vmem:[%s15364_s5 + $0x8] sm:$0xff] }
 0x2e8   :  { %9989 = vmatpush3.msra.mxu1 %v3198_v2  ;;  %v14342_v2 = vld [vmem:[#allocation2 + $0x11] sm:$0xff] }
 0x2e9   :  { %9990 = vmatprep.subr.mxu1 %v3213_v44  ;;  %15466 = vst [vmem:[#allocation18_spill] sm:$0xff] %v14342_v2  ;;  %v14352_v44 = vld [vmem:[#allocation2 + $0x31] sm:$0xff] }
 0x2ea   :  { %9991 = vmatpush3.msra.mxu1 %v3197_v29  ;;  %15468 = vst [vmem:[#allocation28_spill] sm:$0xff] %v14352_v44  ;;  %v14362_v29 = vld [vmem:[#allocation2 + $0x51] sm:$0xff] }
 0x2eb   :  { %9992 = vmatprep.subr.mxu1 %v3212_v50  ;;  %15470 = vst [vmem:[#allocation10_spill] sm:$0xff] %v14362_v29  ;;  %v14372_v50 = vld [vmem:[#allocation2 + $0x71] sm:$0xff] }
 0x2ec   :  { %9993 = vmatpush3.msra.mxu1 %v3196_v23  ;;  %15472 = vst [vmem:[#allocation20_spill] sm:$0xff] %v14372_v50 }
 0x2ed   :  { %9994 = vmatprep.subr.mxu1 %v3211_v43 }
 0x2ee   :  { %9995 = vmatpush3.msra.mxu1 %v3195_v59 }
 0x2ef   :  { %9996 = vmatprep.subr.mxu1 %v3210_v19  ;;  %v4269_v19 = vld [vmem:[%s15364_s5 + $0x10] sm:$0xff] }
 0x2f0   :  { %9997 = vmatpush3.msra.mxu1 %v3194_v6  ;;  %v6058_v6 = vld [vmem:[#allocation2 + $0x92] sm:$0xff] }
 0x2f1   :  { %9998 = vmatprep.subr.mxu1 %v3209_v8  ;;  %10977 = vmatmul.mubr.msk.f32.gmra.mxu0 %vm3223_vm2, %v6058_v6 }
 0x2f2   :  { %9999 = vmatpush3.msra.mxu1 %v3193_v47 }
 0x2f3   :  { %10000 = vmatprep.subr.mxu1 %v3208_v16 }
 0x2f4   :  { %10001 = vmatpush3.msra.mxu1 %v3192_v4  ;;  %v4267_v4 = vld [vmem:[%s15364_s5] sm:$0xff] }
 0x2f5   :  { %10002 = vmatprep.subr.mxu1 %v3207_v54 }
 0x2f6   :  { %10003 = vmatpush3.msra.mxu1 %v3191_v55 }
 0x2f7   :  { %4202 = vmatmul.mubr.f32.vlgmr.msra.gmra.mxu1 %v3764_v61  ;;  %10721 = vmatprep.subr.mxu1 %v9051_v18  ;;  %v14294_v30 = vpop.f32.mrf.mxu1 }
 0x2f8   :  { %4206 = vmatprep.mubr.f32.mxu1 %v3773_v9  ;;  %10722 = vmatpush3.msra.mxu1 %v9051_v18  ;;  %v14404_v18 = vld [vmem:[%s15364_s5 + $0x40] sm:$0xff] }
 0x2f9   :  { %10723 = vmatprep.subr.mxu1 %v9050_v58  ;;  %v14302_v14 = vpop.f32.mrf.mxu1 }
 0x2fa   :  { %10724 = vmatpush3.msra.mxu1 %v9050_v58 }
 0x2fb   :  { %4207 = vmatmul.mubr.f32.gmra.mxu1 %v3772_v22  ;;  %10725 = vmatprep.subr.mxu1 %v9049_v3  ;;  %v14310_v35 = vpop.f32.mrf.mxu1 }
 0x2fc   :  { %4211 = vmatprep.mubr.f32.mxu1 %v3781_v53  ;;  %10726 = vmatpush3.msra.mxu1 %v9049_v3 }
 0x2fd   :  { %v14318_v42 = vpop.f32.mrf.mxu1  ;;  %10751 = vmatprep.subr.mxu1 %v4269_v19 }
 0x2ff   :  { %4212 = vmatmul.mubr.f32.gmra.mxu1 %v3780_v7  ;;  %v14326_v24 = vpop.f32.mrf.mxu1 }
 0x300   :  { %4216 = vmatprep.mubr.f32.mxu1 %v3789_v63 }
 0x301   :  { %v14334_v26 = vpop.f32.mrf.mxu1 }
 0x302   :  { %v9844_v33 = vadd.f32 %v14334_v26, %v14326_v24 }
 0x303   :  { %4217 = vmatmul.mubr.f32.gmra.mxu1 %v3788_v56  ;;  %v14339_v49 = vpop.f32.mrf.mxu1 }
 0x304   :  { %4221 = vmatprep.mubr.f32.mxu1 %v3797_v0 }
 0x305   :  { %v14348_v37 = vpop.f32.mrf.mxu1 }
 0x307   :  { %4222 = vmatmul.mubr.f32.gmra.mxu1 %v3796_v36  ;;  %v14358_v40 = vpop.f32.mrf.mxu1 }
 0x308   :  { %4226 = vmatprep.mubr.f32.mxu1 %v3805_v52 }
 0x309   :  { %v14368_v21 = vpop.f32.mrf.mxu1 }
 0x30b   :  { %4227 = vmatmul.mubr.f32.gmra.mxu1 %v3804_v31  ;;  %v14376_v20 = vpop.f32.mrf.mxu1 }
 0x30c   :  { %4231 = vmatprep.mubr.f32.mxu1 %v3813_v38 }
 0x30d   :  { %v14378_v48 = vpop.f32.mrf.mxu1 }
 0x30f   :  { %4232 = vmatmul.mubr.f32.gmra.mxu1 %v3812_v51  ;;  %v14380_v23 = vpop.f32.mrf.mxu1 }
 0x310   :  { %4236 = vmatprep.mubr.f32.mxu1 %v3821_v28 }
 0x311   :  { %v14382_v41 = vpop.f32.mrf.mxu1 }
 0x313   :  { %4237 = vmatmul.mubr.f32.gmra.mxu1 %v3820_v60  ;;  %v14384_v45 = vpop.f32.mrf.mxu1 }
 0x314   :  { %10727 = vmatprep.mubr.msk.f32.mxu1 %vm3223_vm2, %v4270_v5 }
 0x315   :  { %v14386_v43 = vpop.f32.mrf.mxu1 }
 0x317   :  { %10728 = vmatmul.mubr.msk.f32.vlgmr.msra.gmra.mxu1 %vm3223_vm2, %v14342_v2 }
 0x318   :  { %10730 = vmatprep.mubr.msk.f32.mxu1 %vm3223_vm2, %v14346_v57  ;;  %10752 = vmatpush3.msra.mxu1 %v4269_v19 }
 0x319   :  { %10753 = vmatprep.subr.mxu1 %v4268_v27 }
 0x31a   :  { %10754 = vmatpush3.msra.mxu1 %v4268_v27  ;;  %v9838_v27 = vadd.f32 %v14302_v14, %v14294_v30 }
 0x31b   :  { %10731 = vmatmul.mubr.msk.f32.gmra.mxu1 %vm3223_vm2, %v14352_v44  ;;  %10755 = vmatprep.subr.mxu1 %v4267_v4 }
 0x31c   :  { %10733 = vmatprep.mubr.msk.f32.mxu1 %vm3223_vm2, %v14356_v13  ;;  %10756 = vmatpush3.msra.mxu1 %v4267_v4 }
 0x31d   :  { %10781 = vmatprep.subr.mxu1 %v14404_v18 }
 0x31f   :  { %10734 = vmatmul.mubr.msk.f32.gmra.mxu1 %vm3223_vm2, %v14362_v29  ;;  %v9841_v29 = vadd.f32 %v14318_v42, %v14310_v35  ;;  %v9847_v42 = vadd.f32 %v14348_v37, %v14339_v49 }
 0x320   :  { %10736 = vmatprep.mubr.msk.f32.mxu1 %vm3223_vm2, %v14366_v17 }
 0x323   :  { %10737 = vmatmul.mubr.msk.f32.gmra.mxu1 %vm3223_vm2, %v14372_v50 }
 0x324   :  { %10739 = vmatprep.mubr.msk.f32.mxu1 %vm3223_vm2, %v4278_v25 }
 0x337   :  { %v9892_v1 = vpop.f32.mrf.mxu1 }
 0x339   :  { %v9893_v10 = vpop.f32.mrf.mxu1 }
 0x33a   :  { %v9894_v4 = vadd.f32 %v9893_v10, %v9892_v1 }
 0x33b   :  { %v9895_v59 = vpop.f32.mrf.mxu1 }
 0x33c   :  { %v3994_v13 = vadd.f32 %v9894_v4, %v9838_v27 }
 0x33d   :  { %v9896_v32 = vpop.f32.mrf.mxu1 }
 0x33e   :  { %v9897_v44 = vadd.f32 %v9896_v32, %v9895_v59 }
 0x33f   :  { %v9898_v12 = vpop.f32.mrf.mxu1 }
 0x340   :  { %v3999_v39 = vadd.f32 %v9897_v44, %v9841_v29 }
 0x341   :  { %v9899_v8 = vpop.f32.mrf.mxu1 }
 0x342   :  { %v9900_v30 = vadd.f32 %v9899_v8, %v9898_v12  ;;  %v9853_v12 = vadd.f32 %v14378_v48, %v14376_v20  ;;  %v9856_v48 = vadd.f32 %v14382_v41, %v14380_v23  ;;  %v9859_v41 = vadd.f32 %v14386_v43, %v14384_v45 }
 0x343   :  { %v9901_v47 = vpop.f32.mrf.mxu1 }
 0x345   :  { %v9902_v16 = vpop.f32.mrf.mxu1 }
 0x347   :  { %v9904_v54 = vpop.f32.mrf.mxu1 }
 0x349   :  { %v9905_v55 = vpop.f32.mrf.mxu1 }
 0x34a   :  { %v9906_v26 = vadd.f32 %v9905_v55, %v9904_v54 }
 0x34b   :  { %v14399_v61 = vpop.f32.mrf.mxu1 }
 0x34d   :  { %v14407_v9 = vpop.f32.mrf.mxu1 }
 0x34f   :  { %v14409_v58 = vpop.f32.mrf.mxu1 }
 0x351   :  { %v14411_v22 = vpop.f32.mrf.mxu1 }
 0x353   :  { %v14413_v3 = vpop.f32.mrf.mxu1 }
 0x355   :  { %v14415_v53 = vpop.f32.mrf.mxu1 }
 0x377   :  { %v9948_v7 = vpop.f32.mrf.mxu1 }
 0x379   :  { %v9949_v63 = vpop.f32.mrf.mxu1 }
 0x37a   :  { %v9950_v50 = vadd.f32 %v9949_v63, %v9948_v7 }
 0x37b   :  { %v9951_v56 = vpop.f32.mrf.mxu1 }
 0x37c   :  { %v4099_v2 = vadd.f32 %v9950_v50, %v3994_v13  ;;  %v4004_v13 = vadd.f32 %v9900_v30, %v9844_v33  ;;  %v9903_v50 = vadd.f32 %v9902_v16, %v9901_v47 }
 0x37d   :  { %v9952_v0 = vpop.f32.mrf.mxu1 }
 0x37e   :  { %v9953_v11 = vadd.f32 %v9952_v0, %v9951_v56 }
 0x37f   :  { %v9954_v36 = vpop.f32.mrf.mxu1 }
 0x380   :  { %v4104_v10 = vadd.f32 %v9953_v11, %v3999_v39  ;;  %v9850_v39 = vadd.f32 %v14368_v21, %v14358_v40  ;;  %v4009_v11 = vadd.f32 %v9903_v50, %v9847_v42  ;;  %v9909_v40 = vadd.f32 %v14407_v9, %v14399_v61  ;;  %v4251_v42 = vld [vmem:[#allocation2] sm:$0xff] }
 0x381   :  { %v9955_v52 = vpop.f32.mrf.mxu1  ;;  %v9912_v9 = vadd.f32 %v14411_v22, %v14409_v58  ;;  %v9915_v22 = vadd.f32 %v14415_v53, %v14413_v3 }
 0x382   :  { %v9956_v7 = vadd.f32 %v9955_v52, %v9954_v36  ;;  %v4014_v8 = vadd.f32 %v9906_v26, %v9850_v39  ;;  %v4019_v61 = vadd.f32 %v9909_v40, %v9853_v12  ;;  %v9105_v39 = vld [vmem:[%s15364_s5 + $0x58] sm:$0xff]  ;;  %v14546_v26 = vld [vmem:[#allocation2 + $0x60] sm:$0xff] }
 0x383   :  { %v9957_v31 = vpop.f32.mrf.mxu1  ;;  %v4024_v58 = vadd.f32 %v9912_v9, %v9856_v48  ;;  %v4029_v43 = vadd.f32 %v9915_v22, %v9859_v41  ;;  %v4676_v40 = vld [vmem:[#allocation2 + $0x2] sm:$0xff]  ;;  %v15474_v48 = vld [vmem:[#allocation17_spill] sm:$0xff]  ;;  %v15478_v22 = vld [vmem:[#allocation18_spill] sm:$0xff] }
 0x384   :  { %v4109_v59 = vadd.f32 %v9956_v7, %v4004_v13  ;;  %v4684_v9 = vld [vmem:[#allocation2 + $0xa2] sm:$0xff] }
 0x385   :  { %v9958_v38 = vpop.f32.mrf.mxu1 }
 0x386   :  { %v9959_v32 = vadd.f32 %v9958_v38, %v9957_v31 }
 0x387   :  { %v9960_v51 = vpop.f32.mrf.mxu1 }
 0x388   :  { %v4114_v49 = vadd.f32 %v9959_v32, %v4009_v11  ;;  %v14523_v32 = vld [vmem:[#allocation2 + $0x20] sm:$0xff] }
 0x389   :  { %v9961_v28 = vpop.f32.mrf.mxu1  ;;  %v14538_v11 = vld [vmem:[#allocation2 + $0x40] sm:$0xff] }
 0x38a   :  { %v9962_v33 = vadd.f32 %v9961_v28, %v9960_v51 }
 0x38b   :  { %v9963_v60 = vpop.f32.mrf.mxu1 }
 0x38c   :  { %v4119_v55 = vadd.f32 %v9962_v33, %v4014_v8 }
 0x38d   :  { %v9964_v5 = vpop.f32.mrf.mxu1 }
 0x38e   :  { %v9965_v56 = vadd.f32 %v9964_v5, %v9963_v60 }
 0x38f   :  { %v14417_v25 = vpop.f32.mrf.mxu1 }
 0x390   :  { %v4124_v51 = vadd.f32 %v9965_v56, %v4019_v61  ;;  %v9103_v56 = vld [vmem:[%s15364_s5 + $0x48] sm:$0xff]  ;;  %v15476_v61 = vld [vmem:[#allocation27_spill] sm:$0xff] }
 0x391   :  { %v14419_v19 = vpop.f32.mrf.mxu1 }
 0x392   :  { %v9968_v28 = vadd.f32 %v14419_v19, %v14417_v25 }
 0x393   :  { %v14421_v6 = vpop.f32.mrf.mxu1 }
 0x394   :  { %v4129_v4 = vadd.f32 %v9968_v28, %v4024_v58  ;;  %v9122_v28 = vld [vmem:[%s15364_s5 + $0x60] sm:$0xff]  ;;  %v6066_v58 = vld [vmem:[#allocation2 + $0x132] sm:$0xff] }
 0x395   :  { %v14425_v62 = vpop.f32.mrf.mxu1 }
 0x396   :  { %v9971_v30 = vadd.f32 %v14425_v62, %v14421_v6 }
 0x398   :  { %v4134_v7 = vadd.f32 %v9971_v30, %v4029_v43  ;;  %v9141_v30 = vld [vmem:[%s15364_s5 + $0x78] sm:$0xff] }
 0x399   :  { %v15482_v43 = vld [vmem:[#allocation10_spill] sm:$0xff] }
 0x3b7   :  { %v10004_v17 = vpop.f32.mrf.mxu1 }
 0x3b9   :  { %v10005_v57 = vpop.f32.mrf.mxu1 }
 0x3ba   :  { %v10006_v46 = vadd.f32 %v10005_v57, %v10004_v17 }
 0x3bb   :  { %v10007_v15 = vpop.f32.mrf.mxu1 }
 0x3bc   :  { %v4204_v14 = vadd.f32 %v10006_v46, %v4099_v2 }
 0x3bd   :  { %v10008_v1 = vpop.f32.mrf.mxu1 }
 0x3be   :  { %4243 = vst.msk [vmem:[#allocation2 + $0xb1] sm:$0xff] %vm3223_vm2, %v4204_v14  ;;  %v10009_v63 = vadd.f32 %v10008_v1, %v10007_v15 }
 0x3bf   :  { %v10010_v35 = vpop.f32.mrf.mxu1 }
 0x3c0   :  { %v4209_v57 = vadd.f32 %v10009_v63, %v4104_v10 }
 0x3c1   :  { %v10011_v17 = vpop.f32.mrf.mxu1 }
 0x3c2   :  { %4244 = vst.msk [vmem:[#allocation2 + $0xc1] sm:$0xff] %vm3223_vm2, %v4209_v57  ;;  %v10012_v24 = vadd.f32 %v10011_v17, %v10010_v35  ;;  %v14512_v57 = vld [vmem:[#allocation2 + $0x10] sm:$0xff] }
 0x3c3   :  { %v10013_v46 = vpop.f32.mrf.mxu1 }
 0x3c4   :  { %v4214_v15 = vadd.f32 %v10012_v24, %v4109_v59  ;;  %v9085_v59 = vld [vmem:[%s15364_s5 + $0x38] sm:$0xff]  ;;  %v9084_v24 = vld [vmem:[%s15364_s5 + $0x30] sm:$0xff] }
 0x3c5   :  { %v10014_v2 = vpop.f32.mrf.mxu1  ;;  %v14437_v44 = vld [vmem:[#allocation2 + $0xb1] sm:$0xff] }
 0x3c6   :  { %4245 = vst.msk [vmem:[#allocation2 + $0xd1] sm:$0xff] %vm3223_vm2, %v4214_v15  ;;  %v10015_v37 = vadd.f32 %v10014_v2, %v10013_v46  ;;  %10740 = vmatmul.mubr.msk.f32.gmra.mxu1 %vm3223_vm2, %v14437_v44  ;;  %v14531_v46 = vld [vmem:[#allocation2 + $0x30] sm:$0xff]  ;;  %v4259_v15 = vld [vmem:[#allocation2 + $0xa0] sm:$0xff] }
 0x3c7   :  { %v10016_v29 = vpop.f32.mrf.mxu1  ;;  %v14550_v2 = vld [vmem:[#allocation2 + $0x70] sm:$0xff] }
 0x3c8   :  { %v4219_v21 = vadd.f32 %v10015_v37, %v4114_v49  ;;  %v4260_v49 = vld [vmem:[#allocation2 + $0xb0] sm:$0xff] }
 0x3c9   :  { %v10017_v47 = vpop.f32.mrf.mxu1  ;;  %v14446_v16 = vld [vmem:[#allocation2 + $0xc1] sm:$0xff] }
 0x3ca   :  { %v14448_v54 = vld [vmem:[#allocation2 + $0xc2] sm:$0xff]  ;;  %4246 = vst.msk [vmem:[#allocation2 + $0xe1] sm:$0xff] %vm3223_vm2, %v4219_v21  ;;  %v10018_v0 = vadd.f32 %v10017_v47, %v10016_v29  ;;  %10742 = vmatprep.mubr.msk.f32.mxu1 %vm3223_vm2, %v14446_v16  ;;  %v14581_v47 = vld [vmem:[#allocation2 + $0x12] sm:$0xff] }
 0x3cb   :  { %10979 = vmatprep.mubr.msk.f32.mxu0 %vm3223_vm2, %v14448_v54  ;;  %v10019_v20 = vpop.f32.mrf.mxu1  ;;  %v14556_v33 = vld [vmem:[#allocation2 + $0xc0] sm:$0xff] }
 0x3cc   :  { %v4224_v36 = vadd.f32 %v10018_v0, %v4119_v55  ;;  %v9104_v55 = vld [vmem:[%s15364_s5 + $0x50] sm:$0xff] }
 0x3cd   :  { %v10020_v52 = vpop.f32.mrf.mxu1  ;;  %v14459_v31 = vld [vmem:[#allocation2 + $0xd1] sm:$0xff] }
 0x3ce   :  { %v14461_v38 = vld [vmem:[#allocation2 + $0xd2] sm:$0xff]  ;;  %4247 = vst.msk [vmem:[#allocation2 + $0xf1] sm:$0xff] %vm3223_vm2, %v4224_v36  ;;  %v10021_v60 = vadd.f32 %v10020_v52, %v10019_v20  ;;  %10743 = vmatmul.mubr.msk.f32.gmra.mxu1 %vm3223_vm2, %v14459_v31  ;;  %v15473_v20 = vld [vmem:[#allocation16_spill] sm:$0xff] }
 0x3cf   :  { %10980 = vmatmul.mubr.msk.f32.gmra.mxu0 %vm3223_vm2, %v14461_v38  ;;  %v10022_v23 = vpop.f32.mrf.mxu1  ;;  %v14560_v37 = vld [vmem:[#allocation2 + $0xd0] sm:$0xff]  ;;  %v15477_v36 = vld [vmem:[#allocation8_spill] sm:$0xff] }
 0x3d0   :  { %v4229_v5 = vadd.f32 %v10021_v60, %v4124_v51  ;;  %v9124_v0 = vld [vmem:[%s15364_s5 + $0x70] sm:$0xff]  ;;  %v9123_v51 = vld [vmem:[%s15364_s5 + $0x68] sm:$0xff] }
 0x3d1   :  { %v10023_v27 = vpop.f32.mrf.mxu1  ;;  %v14474_v25 = vld [vmem:[#allocation2 + $0xe1] sm:$0xff]  ;;  %v14607_v52 = vld [vmem:[#allocation2 + $0xb2] sm:$0xff] }
 0x3d2   :  { %v14476_v19 = vld [vmem:[#allocation2 + $0xe2] sm:$0xff]  ;;  %4248 = vst.msk [vmem:[#allocation2 + $0x101] sm:$0xff] %vm3223_vm2, %v4229_v5  ;;  %v10024_v14 = vadd.f32 %v10023_v27, %v10022_v23  ;;  %10745 = vmatprep.mubr.msk.f32.mxu1 %vm3223_vm2, %v14474_v25  ;;  %v15479_v27 = vld [vmem:[#allocation19_spill] sm:$0xff] }
 0x3d3   :  { %10982 = vmatprep.mubr.msk.f32.mxu0 %vm3223_vm2, %v14476_v19  ;;  %v10025_v45 = vpop.f32.mrf.mxu1  ;;  %v14564_v29 = vld [vmem:[#allocation2 + $0xe0] sm:$0xff]  ;;  %v9143_v60 = vld [vmem:[%s15364_s5 + $0x88] sm:$0xff] }
 0x3d4   :  { %v4234_v3 = vadd.f32 %v10024_v14, %v4129_v4  ;;  %v14646_v23 = vld [vmem:[#allocation2 + $0x80] sm:$0xff] }
 0x3d5   :  { %v10026_v53 = vpop.f32.mrf.mxu1  ;;  %v14485_v1 = vld [vmem:[#allocation2 + $0xf1] sm:$0xff]  ;;  %v9142_v5 = vld [vmem:[%s15364_s5 + $0x80] sm:$0xff] }
 0x3d6   :  { %v14487_v10 = vld [vmem:[#allocation2 + $0xf2] sm:$0xff]  ;;  %4249 = vst.msk [vmem:[#allocation2 + $0x111] sm:$0xff] %vm3223_vm2, %v4234_v3  ;;  %v10027_v62 = vadd.f32 %v10026_v53, %v10025_v45  ;;  %10746 = vmatmul.mubr.msk.f32.gmra.mxu1 %vm3223_vm2, %v14485_v1  ;;  %v15480_v4 = vld [vmem:[#allocation28_spill] sm:$0xff]  ;;  %v15481_v45 = vld [vmem:[#allocation29_spill] sm:$0xff] }
 0x3d7   :  { %10983 = vmatmul.mubr.msk.f32.gmra.mxu0 %vm3223_vm2, %v14487_v10  ;;  %v14568_v12 = vld [vmem:[#allocation2 + $0xf0] sm:$0xff]  ;;  %v9162_v14 = vld [vmem:[%s15364_s5 + $0xa0] sm:$0xff] }
 0x3d8   :  { %v4239_v6 = vadd.f32 %v10027_v62, %v4134_v7  ;;  %v15483_v3 = vld [vmem:[#allocation11_spill] sm:$0xff]  ;;  %v15484_v53 = vld [vmem:[#allocation20_spill] sm:$0xff] }
 0x3d9   :  { %v14494_v63 = vld [vmem:[#allocation2 + $0x101] sm:$0xff] }
 0x3da   :  { %v14496_v35 = vld [vmem:[#allocation2 + $0x102] sm:$0xff]  ;;  %4250 = vst.msk [vmem:[#allocation2 + $0x121] sm:$0xff] %vm3223_vm2, %v4239_v6  ;;  %10748 = vmatprep.mubr.msk.f32.mxu1 %vm3223_vm2, %v14494_v63 }
 0x3db   :  { %10985 = vmatprep.mubr.msk.f32.mxu0 %vm3223_vm2, %v14496_v35  ;;  %v14572_v8 = vld [vmem:[#allocation2 + $0x100] sm:$0xff] }
 0x3dc   :  { %v14691_v7 = vld [vmem:[#allocation2 + $0x81] sm:$0xff] }
 0x3dd   :  { %v14503_v13 = vld [vmem:[#allocation2 + $0x111] sm:$0xff]  ;;  %v11307_v6 = vld [vmem:[#allocation2 + $0x22] sm:$0xff] }
 0x3de   :  { %v14505_v50 = vld [vmem:[#allocation2 + $0x112] sm:$0xff]  ;;  %10749 = vmatmul.mubr.msk.f32.gmra.mxu1 %vm3223_vm2, %v14503_v13 }
 0x3df   :  { %10986 = vmatmul.mubr.msk.f32.gmra.mxu0 %vm3223_vm2, %v14505_v50  ;;  %10757 = vmatprep.mubr.msk.f32.mxu1 %vm3223_vm2, %v4251_v42  ;;  %v14576_v21 = vld [vmem:[#allocation2 + $0x110] sm:$0xff] }
 0x3e0   :  { %v11308_v42 = vld [vmem:[#allocation2 + $0x32] sm:$0xff] }
 0x3e1   :  { %v14514_v17 = vld [vmem:[#allocation2 + $0x122] sm:$0xff] }
 0x3e2   :  { %10758 = vmatmul.mubr.msk.f32.vlgmr.msra.gmra.mxu1 %vm3223_vm2, %v14512_v57  ;;  %10988 = vmatprep.mubr.msk.f32.mxu0 %vm3223_vm2, %v14514_v17  ;;  %v14663_v41 = vld [vmem:[#allocation2 + $0x120] sm:$0xff] }
 0x3e3   :  { %10760 = vmatprep.mubr.msk.f32.mxu1 %vm3223_vm2, %v14523_v32  ;;  %10782 = vmatpush3.msra.mxu1 %v14404_v18  ;;  %v14542_v18 = vld [vmem:[#allocation2 + $0x50] sm:$0xff]  ;;  %v14709_v62 = vld [vmem:[#allocation2 + $0x121] sm:$0xff] }
 0x3e4   :  { %10783 = vmatprep.subr.mxu1 %v9085_v59  ;;  %10989 = vmatmul.mubr.msk.f32.gmra.mxu0 %vm3223_vm2, %v6066_v58 }
 0x3e5   :  { %10784 = vmatpush3.msra.mxu1 %v9085_v59  ;;  %v9181_v59 = vld [vmem:[%s15364_s5 + $0xb8] sm:$0xff] }
 0x3e6   :  { %10761 = vmatmul.mubr.msk.f32.gmra.mxu1 %vm3223_vm2, %v14531_v46  ;;  %10785 = vmatprep.subr.mxu1 %v9084_v24 }
 0x3e7   :  { %10763 = vmatprep.mubr.msk.f32.mxu1 %vm3223_vm2, %v14538_v11  ;;  %10786 = vmatpush3.msra.mxu1 %v9084_v24  ;;  %v14734_v24 = vpop.f32.mrf.mxu1 }
 0x3e8   :  { %10811 = vmatprep.subr.mxu1 %v9105_v39 }
 0x3ea   :  { %10764 = vmatmul.mubr.msk.f32.gmra.mxu1 %vm3223_vm2, %v14542_v18 }
 0x3eb   :  { %10766 = vmatprep.mubr.msk.f32.mxu1 %vm3223_vm2, %v14546_v26 }
 0x3ee   :  { %10767 = vmatmul.mubr.msk.f32.gmra.mxu1 %vm3223_vm2, %v14550_v2 }
 0x3ef   :  { %10769 = vmatprep.mubr.msk.f32.mxu1 %vm3223_vm2, %v4259_v15  ;;  %v14740_v15 = vpop.f32.mrf.mxu1 }
 0x3f2   :  { %10770 = vmatmul.mubr.msk.f32.gmra.mxu1 %vm3223_vm2, %v4260_v49 }
 0x3f3   :  { %10772 = vmatprep.mubr.msk.f32.mxu1 %vm3223_vm2, %v14556_v33 }
 0x3f6   :  { %10773 = vmatmul.mubr.msk.f32.gmra.mxu1 %vm3223_vm2, %v14560_v37 }
 0x3f7   :  { %10775 = vmatprep.mubr.msk.f32.mxu1 %vm3223_vm2, %v14564_v29 }
 0x3fa   :  { %10776 = vmatmul.mubr.msk.f32.gmra.mxu1 %vm3223_vm2, %v14568_v12 }
 0x3fb   :  { %10778 = vmatprep.mubr.msk.f32.mxu1 %vm3223_vm2, %v14572_v8 }
 0x3fe   :  { %10779 = vmatmul.mubr.msk.f32.gmra.mxu1 %vm3223_vm2, %v14576_v21 }
 0x3ff   :  { %10787 = vmatprep.mubr.msk.f32.mxu1 %vm3223_vm2, %v4676_v40 }
 0x402   :  { %10788 = vmatmul.mubr.msk.f32.vlgmr.msra.gmra.mxu1 %vm3223_vm2, %v14581_v47 }
 0x403   :  { %10790 = vmatprep.mubr.msk.f32.mxu1 %vm3223_vm2, %v14126_v34  ;;  %10812 = vmatpush3.msra.mxu1 %v9105_v39  ;;  %v15475_v34 = vld [vmem:[#allocation26_spill] sm:$0xff]  ;;  %v15485_v39 = vld [vmem:[#allocation9_spill] sm:$0xff] }
 0x404   :  { %10813 = vmatprep.subr.mxu1 %v9104_v55 }
 0x405   :  { %10814 = vmatpush3.msra.mxu1 %v9104_v55 }
 0x406   :  { %10791 = vmatmul.mubr.msk.f32.gmra.mxu1 %vm3223_vm2, %v15473_v20  ;;  %10815 = vmatprep.subr.mxu1 %v9103_v56 }
 0x407   :  { %10793 = vmatprep.mubr.msk.f32.mxu1 %vm3223_vm2, %v15474_v48  ;;  %10816 = vmatpush3.msra.mxu1 %v9103_v56  ;;  %v5829_v56 = vld [vmem:[#allocation2 + $0x91] sm:$0xff] }
 0x408   :  { %10841 = vmatprep.subr.mxu1 %v9124_v0 }
 0x40a   :  { %10794 = vmatmul.mubr.msk.f32.gmra.mxu1 %vm3223_vm2, %v15475_v34 }
 0x40b   :  { %10796 = vmatprep.mubr.msk.f32.mxu1 %vm3223_vm2, %v15476_v61 }
 0x40e   :  { %10797 = vmatmul.mubr.msk.f32.gmra.mxu1 %vm3223_vm2, %v15477_v36 }
 0x40f   :  { %10799 = vmatprep.mubr.msk.f32.mxu1 %vm3223_vm2, %v4684_v9 }
 0x412   :  { %10800 = vmatmul.mubr.msk.f32.gmra.mxu1 %vm3223_vm2, %v14607_v52 }
 0x413   :  { %10802 = vmatprep.mubr.msk.f32.mxu1 %vm3223_vm2, %v14448_v54 }
 0x416   :  { %10803 = vmatmul.mubr.msk.f32.gmra.mxu1 %vm3223_vm2, %v14461_v38 }
 0x417   :  { %10805 = vmatprep.mubr.msk.f32.mxu1 %vm3223_vm2, %v14476_v19 }
 0x41a   :  { %10806 = vmatmul.mubr.msk.f32.gmra.mxu1 %vm3223_vm2, %v14487_v10 }
 0x41b   :  { %10808 = vmatprep.mubr.msk.f32.mxu1 %vm3223_vm2, %v14496_v35 }
 0x41e   :  { %10809 = vmatmul.mubr.msk.f32.gmra.mxu1 %vm3223_vm2, %v14505_v50 }
 0x41f   :  { %10817 = vmatprep.mubr.msk.f32.mxu1 %vm3223_vm2, %v14512_v57  ;;  %v9160_v57 = vld [vmem:[%s15364_s5 + $0x90] sm:$0xff] }
 0x422   :  { %10818 = vmatmul.mubr.msk.f32.vlgmr.msra.gmra.mxu1 %vm3223_vm2, %v14523_v32 }
 0x423   :  { %10820 = vmatprep.mubr.msk.f32.mxu1 %vm3223_vm2, %v14531_v46  ;;  %10842 = vmatpush3.msra.mxu1 %v9124_v0 }
 0x424   :  { %10843 = vmatprep.subr.mxu1 %v9123_v51 }
 0x425   :  { %10844 = vmatpush3.msra.mxu1 %v9123_v51 }
 0x426   :  { %10821 = vmatmul.mubr.msk.f32.gmra.mxu1 %vm3223_vm2, %v14538_v11  ;;  %10845 = vmatprep.subr.mxu1 %v9122_v28 }
 0x427   :  { %10823 = vmatprep.mubr.msk.f32.mxu1 %vm3223_vm2, %v14542_v18  ;;  %10846 = vmatpush3.msra.mxu1 %v9122_v28 }
 0x428   :  { %10871 = vmatprep.subr.mxu1 %v9143_v60 }
 0x42a   :  { %10824 = vmatmul.mubr.msk.f32.gmra.mxu1 %vm3223_vm2, %v14546_v26 }
 0x42b   :  { %10826 = vmatprep.mubr.msk.f32.mxu1 %vm3223_vm2, %v14550_v2 }
 0x42e   :  { %10827 = vmatmul.mubr.msk.f32.gmra.mxu1 %vm3223_vm2, %v14646_v23 }
 0x42f   :  { %10829 = vmatprep.mubr.msk.f32.mxu1 %vm3223_vm2, %v4260_v49  ;;  %v14746_v49 = vpop.f32.mrf.mxu1 }
 0x431   :  { %v14752_v40 = vpop.f32.mrf.mxu1 }
 0x432   :  { %10830 = vmatmul.mubr.msk.f32.gmra.mxu1 %vm3223_vm2, %v14556_v33 }
 0x433   :  { %10832 = vmatprep.mubr.msk.f32.mxu1 %vm3223_vm2, %v14560_v37 }
 0x436   :  { %10833 = vmatmul.mubr.msk.f32.gmra.mxu1 %vm3223_vm2, %v14564_v29 }
 0x437   :  { %10835 = vmatprep.mubr.msk.f32.mxu1 %vm3223_vm2, %v14568_v12 }
 0x43a   :  { %10836 = vmatmul.mubr.msk.f32.gmra.mxu1 %vm3223_vm2, %v14572_v8 }
 0x43b   :  { %10838 = vmatprep.mubr.msk.f32.mxu1 %vm3223_vm2, %v14576_v21 }
 0x43e   :  { %10839 = vmatmul.mubr.msk.f32.gmra.mxu1 %vm3223_vm2, %v14663_v41 }
 0x43f   :  { %10847 = vmatprep.mubr.msk.f32.mxu1 %vm3223_vm2, %v15478_v22 }
 0x442   :  { %10848 = vmatmul.mubr.msk.f32.vlgmr.msra.gmra.mxu1 %vm3223_vm2, %v15479_v27 }
 0x443   :  { %10850 = vmatprep.mubr.msk.f32.mxu1 %vm3223_vm2, %v15480_v4  ;;  %10872 = vmatpush3.msra.mxu1 %v9143_v60 }
 0x444   :  { %10873 = vmatprep.subr.mxu1 %v9142_v5 }
 0x445   :  { %10874 = vmatpush3.msra.mxu1 %v9142_v5 }
 0x446   :  { %10851 = vmatmul.mubr.msk.f32.gmra.mxu1 %vm3223_vm2, %v15481_v45  ;;  %10875 = vmatprep.subr.mxu1 %v9141_v30 }
 0x447   :  { %10853 = vmatprep.mubr.msk.f32.mxu1 %vm3223_vm2, %v15482_v43  ;;  %10876 = vmatpush3.msra.mxu1 %v9141_v30 }
 0x448   :  { %10901 = vmatprep.subr.mxu1 %v9162_v14 }
 0x44a   :  { %10854 = vmatmul.mubr.msk.f32.gmra.mxu1 %vm3223_vm2, %v15483_v3 }
 0x44b   :  { %10856 = vmatprep.mubr.msk.f32.mxu1 %vm3223_vm2, %v15484_v53 }
 0x44e   :  { %10857 = vmatmul.mubr.msk.f32.gmra.mxu1 %vm3223_vm2, %v14691_v7 }
 0x44f   :  { %10859 = vmatprep.mubr.msk.f32.mxu1 %vm3223_vm2, %v14437_v44  ;;  %v9161_v44 = vld [vmem:[%s15364_s5 + $0x98] sm:$0xff] }
 0x452   :  { %10860 = vmatmul.mubr.msk.f32.gmra.mxu1 %vm3223_vm2, %v14446_v16 }
 0x453   :  { %10862 = vmatprep.mubr.msk.f32.mxu1 %vm3223_vm2, %v14459_v31 }
 0x456   :  { %10863 = vmatmul.mubr.msk.f32.gmra.mxu1 %vm3223_vm2, %v14474_v25 }
 0x457   :  { %10865 = vmatprep.mubr.msk.f32.mxu1 %vm3223_vm2, %v14485_v1 }
 0x45a   :  { %10866 = vmatmul.mubr.msk.f32.gmra.mxu1 %vm3223_vm2, %v14494_v63 }
 0x45b   :  { %10868 = vmatprep.mubr.msk.f32.mxu1 %vm3223_vm2, %v14503_v13 }
 0x45e   :  { %10869 = vmatmul.mubr.msk.f32.gmra.mxu1 %vm3223_vm2, %v14709_v62 }
 0x45f   :  { %10877 = vmatprep.mubr.msk.f32.mxu1 %vm3223_vm2, %v14581_v47 }
 0x462   :  { %10878 = vmatmul.mubr.msk.f32.vlgmr.msra.gmra.mxu1 %vm3223_vm2, %v11307_v6 }
 0x463   :  { %10880 = vmatprep.mubr.msk.f32.mxu1 %vm3223_vm2, %v11308_v42  ;;  %10902 = vmatpush3.msra.mxu1 %v9162_v14 }
 0x464   :  { %10903 = vmatprep.subr.mxu1 %v9161_v44 }
 0x465   :  { %10904 = vmatpush3.msra.mxu1 %v9161_v44 }
 0x466   :  { %10881 = vmatmul.mubr.msk.f32.gmra.mxu1 %vm3223_vm2, %v15474_v48  ;;  %10905 = vmatprep.subr.mxu1 %v9160_v57 }
 0x467   :  { %10883 = vmatprep.mubr.msk.f32.mxu1 %vm3223_vm2, %v15475_v34  ;;  %10906 = vmatpush3.msra.mxu1 %v9160_v57 }
 0x468   :  { %10931 = vmatprep.subr.mxu1 %v9181_v59 }
 0x46a   :  { %10884 = vmatmul.mubr.msk.f32.gmra.mxu1 %vm3223_vm2, %v15476_v61 }
 0x46b   :  { %10886 = vmatprep.mubr.msk.f32.mxu1 %vm3223_vm2, %v15477_v36 }
 0x46e   :  { %10887 = vmatmul.mubr.msk.f32.gmra.mxu1 %vm3223_vm2, %v15485_v39 }
 0x46f   :  { %10889 = vmatprep.mubr.msk.f32.mxu1 %vm3223_vm2, %v14607_v52 }
 0x472   :  { %10890 = vmatmul.mubr.msk.f32.gmra.mxu1 %vm3223_vm2, %v14448_v54  ;;  %v14758_v54 = vpop.f32.mrf.mxu1 }
 0x473   :  { %10892 = vmatprep.mubr.msk.f32.mxu1 %vm3223_vm2, %v14461_v38  ;;  %v9180_v38 = vld [vmem:[%s15364_s5 + $0xb0] sm:$0xff] }
 0x476   :  { %10893 = vmatmul.mubr.msk.f32.gmra.mxu1 %vm3223_vm2, %v14476_v19  ;;  %v14767_v19 = vpop.f32.mrf.mxu1 }
 0x477   :  { %10895 = vmatprep.mubr.msk.f32.mxu1 %vm3223_vm2, %v14487_v10  ;;  %v9179_v10 = vld [vmem:[%s15364_s5 + $0xa8] sm:$0xff] }
 0x47a   :  { %10896 = vmatmul.mubr.msk.f32.gmra.mxu1 %vm3223_vm2, %v14496_v35  ;;  %v14776_v35 = vpop.f32.mrf.mxu1 }
 0x47b   :  { %10898 = vmatprep.mubr.msk.f32.mxu1 %vm3223_vm2, %v14505_v50 }
 0x47c   :  { %v14782_v50 = vpop.f32.mrf.mxu1 }
 0x47e   :  { %10899 = vmatmul.mubr.msk.f32.gmra.mxu1 %vm3223_vm2, %v14514_v17  ;;  %v5600_v17 = vld [vmem:[#allocation2 + $0x90] sm:$0xff] }
 0x47f   :  { %10907 = vmatprep.mubr.msk.f32.mxu1 %vm3223_vm2, %v14523_v32 }
 0x482   :  { %10908 = vmatmul.mubr.msk.f32.vlgmr.msra.gmra.mxu1 %vm3223_vm2, %v14531_v46 }
 0x483   :  { %10910 = vmatprep.mubr.msk.f32.mxu1 %vm3223_vm2, %v14538_v11  ;;  %10932 = vmatpush3.msra.mxu1 %v9181_v59 }
 0x484   :  { %10933 = vmatprep.subr.mxu1 %v9180_v38 }
 0x485   :  { %10934 = vmatpush3.msra.mxu1 %v9180_v38 }
 0x486   :  { %10911 = vmatmul.mubr.msk.f32.gmra.mxu1 %vm3223_vm2, %v14542_v18  ;;  %10935 = vmatprep.subr.mxu1 %v9179_v10  ;;  %v10741_v32 = vpop.f32.mrf.mxu1 }
 0x487   :  { %10913 = vmatprep.mubr.msk.f32.mxu1 %vm3223_vm2, %v14546_v26  ;;  %10936 = vmatpush3.msra.mxu1 %v9179_v10 }
 0x488   :  { %v14791_v46 = vpop.f32.mrf.mxu1 }
 0x48a   :  { %10914 = vmatmul.mubr.msk.f32.gmra.mxu1 %vm3223_vm2, %v14550_v2  ;;  %v5608_v2 = vld [vmem:[#allocation2 + $0x130] sm:$0xff] }
 0x48b   :  { %10916 = vmatprep.mubr.msk.f32.mxu1 %vm3223_vm2, %v14646_v23 }
 0x48e   :  { %10917 = vmatmul.mubr.msk.f32.gmra.mxu1 %vm3223_vm2, %v5600_v17  ;;  %v10744_v11 = vpop.f32.mrf.mxu1 }
 0x48f   :  { %10919 = vmatprep.mubr.msk.f32.mxu1 %vm3223_vm2, %v14556_v33 }
 0x490   :  { %v14797_v18 = vpop.f32.mrf.mxu1 }
 0x492   :  { %10920 = vmatmul.mubr.msk.f32.gmra.mxu1 %vm3223_vm2, %v14560_v37 }
 0x493   :  { %10922 = vmatprep.mubr.msk.f32.mxu1 %vm3223_vm2, %v14564_v29 }
 0x496   :  { %10923 = vmatmul.mubr.msk.f32.gmra.mxu1 %vm3223_vm2, %v14568_v12  ;;  %v10747_v26 = vpop.f32.mrf.mxu1 }
 0x497   :  { %10925 = vmatprep.mubr.msk.f32.mxu1 %vm3223_vm2, %v14572_v8 }
 0x498   :  { %v14807_v33 = vpop.f32.mrf.mxu1 }
 0x49a   :  { %10926 = vmatmul.mubr.msk.f32.gmra.mxu1 %vm3223_vm2, %v14576_v21 }
 0x49b   :  { %10928 = vmatprep.mubr.msk.f32.mxu1 %vm3223_vm2, %v14663_v41 }
 0x49e   :  { %v10750_v37 = vpop.f32.mrf.mxu1  ;;  %10929 = vmatmul.mubr.msk.f32.gmra.mxu1 %vm3223_vm2, %v5608_v2 }
 0x49f   :  { %10937 = vmatprep.mubr.msk.f32.mxu1 %vm3223_vm2, %v15479_v27 }
 0x4a0   :  { %v14812_v29 = vpop.f32.mrf.mxu1 }
 0x4a2   :  { %v10759_v12 = vpop.f32.mrf.mxu1  ;;  %10938 = vmatmul.mubr.msk.f32.vlgmr.msra.gmra.mxu1 %vm3223_vm2, %v15480_v4 }
 0x4a3   :  { %10940 = vmatprep.mubr.msk.f32.mxu1 %vm3223_vm2, %v15481_v45  ;;  %v4603_v41 = vadd.f32 %v10759_v12, %v14734_v24 }
 0x4a4   :  { %v14818_v8 = vpop.f32.mrf.mxu1 }
 0x4a6   :  { %v10762_v21 = vpop.f32.mrf.mxu1  ;;  %10941 = vmatmul.mubr.msk.f32.gmra.mxu1 %vm3223_vm2, %v15482_v43 }
 0x4a7   :  { %10943 = vmatprep.mubr.msk.f32.mxu1 %vm3223_vm2, %v15483_v3  ;;  %v4613_v5 = vadd.f32 %v10762_v21, %v14746_v49 }
 0x4a8   :  { %v14824_v47 = vpop.f32.mrf.mxu1 }
 0x4aa   :  { %v10765_v55 = vpop.f32.mrf.mxu1  ;;  %10944 = vmatmul.mubr.msk.f32.gmra.mxu1 %vm3223_vm2, %v15484_v53 }
 0x4ab   :  { %10946 = vmatprep.mubr.msk.f32.mxu1 %vm3223_vm2, %v14691_v7  ;;  %v4623_v30 = vadd.f32 %v10765_v55, %v14758_v54 }
 0x4ac   :  { %v14830_v0 = vpop.f32.mrf.mxu1 }
 0x4ae   :  { %v10768_v20 = vpop.f32.mrf.mxu1  ;;  %10947 = vmatmul.mubr.msk.f32.gmra.mxu1 %vm3223_vm2, %v5829_v56 }
 0x4af   :  { %10949 = vmatprep.mubr.msk.f32.mxu1 %vm3223_vm2, %v14446_v16  ;;  %v4633_v3 = vadd.f32 %v10768_v20, %v14776_v35 }
 0x4b0   :  { %v4627_v48 = vpop.f32.mrf.mxu1 }
 0x4b1   :  { %v4628_v56 = vadd.f32 %v4627_v48, %v14782_v50 }
 0x4b2   :  { %v10771_v34 = vpop.f32.mrf.mxu1  ;;  %10950 = vmatmul.mubr.msk.f32.gmra.mxu1 %vm3223_vm2, %v14459_v31  ;;  %v5837_v31 = vld [vmem:[#allocation2 + $0x131] sm:$0xff] }
 0x4b3   :  { %v4643_v61 = vadd.f32 %v10771_v34, %v10741_v32  ;;  %10952 = vmatprep.mubr.msk.f32.mxu1 %vm3223_vm2, %v14474_v25 }
 0x4b4   :  { %v4637_v9 = vpop.f32.mrf.mxu1 }
 0x4b6   :  { %v10774_v36 = vpop.f32.mrf.mxu1  ;;  %10953 = vmatmul.mubr.msk.f32.gmra.mxu1 %vm3223_vm2, %v14485_v1 }
 0x4b7   :  { %v4653_v52 = vadd.f32 %v10774_v36, %v10744_v11  ;;  %10955 = vmatprep.mubr.msk.f32.mxu1 %vm3223_vm2, %v14494_v63 }
 0x4b8   :  { %v4647_v51 = vpop.f32.mrf.mxu1 }
 0x4ba   :  { %v10777_v16 = vpop.f32.mrf.mxu1  ;;  %10956 = vmatmul.mubr.msk.f32.gmra.mxu1 %vm3223_vm2, %v14503_v13 }
 0x4bb   :  { %v4663_v28 = vadd.f32 %v10777_v16, %v10747_v26  ;;  %10958 = vmatprep.mubr.msk.f32.mxu1 %vm3223_vm2, %v14709_v62 }
 0x4bc   :  { %v4657_v25 = vpop.f32.mrf.mxu1 }
 0x4bd   :  { %v4658_v50 = vadd.f32 %v4657_v25, %v14807_v33 }
 0x4be   :  { %v10780_v60 = vpop.f32.mrf.mxu1  ;;  %10959 = vmatmul.mubr.msk.f32.gmra.mxu1 %vm3223_vm2, %v5837_v31 }
 0x4bf   :  { %v4673_v23 = vadd.f32 %v10780_v60, %v10750_v37 }
 0x4c0   :  { %v4667_v1 = vpop.f32.mrf.mxu1 }
 0x4c2   :  { %v10789_v58 = vpop.f32.mrf.mxu1 }
 0x4c3   :  { %v4890_v63 = vadd.f32 %v10789_v58, %v4603_v41  ;;  %v4648_v41 = vadd.f32 %v4647_v51, %v14797_v18 }
 0x4c4   :  { %v14849_v22 = vpop.f32.mrf.mxu1 }
 0x4c6   :  { %v10792_v13 = vpop.f32.mrf.mxu1 }
 0x4c7   :  { %v4892_v27 = vadd.f32 %v10792_v13, %v4613_v5 }
 0x4c8   :  { %v14852_v4 = vpop.f32.mrf.mxu1 }
 0x4ca   :  { %v10795_v14 = vpop.f32.mrf.mxu1 }
 0x4cb   :  { %v4894_v45 = vadd.f32 %v10795_v14, %v4623_v30 }
 0x4cc   :  { %v14855_v43 = vpop.f32.mrf.mxu1 }
 0x4ce   :  { %v10798_v53 = vpop.f32.mrf.mxu1 }
 0x4cf   :  { %v4896_v7 = vadd.f32 %v10798_v53, %v4633_v3 }
 0x4d0   :  { %v4840_v62 = vpop.f32.mrf.mxu1 }
 0x4d1   :  { %v4895_v34 = vadd.f32 %v4840_v62, %v4628_v56 }
 0x4d2   :  { %v10801_v44 = vpop.f32.mrf.mxu1 }
 0x4d3   :  { %v4898_v6 = vadd.f32 %v10801_v44, %v4643_v61 }
 0x4d4   :  { %v4850_v42 = vpop.f32.mrf.mxu1 }
 0x4d6   :  { %v10804_v57 = vpop.f32.mrf.mxu1 }
 0x4d7   :  { %v4900_v59 = vadd.f32 %v10804_v57, %v4653_v52  ;;  %v4638_v52 = vadd.f32 %v4637_v9, %v14791_v46  ;;  %v4668_v46 = vadd.f32 %v4667_v1, %v14812_v29 }
 0x4d8   :  { %v4860_v24 = vpop.f32.mrf.mxu1 }
 0x4d9   :  { %v4897_v31 = vadd.f32 %v4850_v42, %v4638_v52  ;;  %v4899_v5 = vadd.f32 %v4860_v24, %v4648_v41 }
 0x4da   :  { %v10807_v39 = vpop.f32.mrf.mxu1 }
 0x4db   :  { %v4902_v49 = vadd.f32 %v10807_v39, %v4663_v28 }
 0x4dc   :  { %v4870_v38 = vpop.f32.mrf.mxu1 }
 0x4dd   :  { %v4901_v14 = vadd.f32 %v4870_v38, %v4658_v50 }
 0x4de   :  { %v10810_v10 = vpop.f32.mrf.mxu1 }
 0x4df   :  { %v4904_v54 = vadd.f32 %v10810_v10, %v4673_v23 }
 0x4e0   :  { %v4880_v17 = vpop.f32.mrf.mxu1 }
 0x4e2   :  { %v10819_v32 = vpop.f32.mrf.mxu1 }
 0x4e3   :  { %v5119_v11 = vadd.f32 %v10819_v32, %v4890_v63 }
 0x4e4   :  { %v14858_v26 = vpop.f32.mrf.mxu1 }
 0x4e6   :  { %v10822_v35 = vpop.f32.mrf.mxu1 }
 0x4e7   :  { %v5121_v2 = vadd.f32 %v10822_v35, %v4892_v27 }
 0x4e8   :  { %v5049_v37 = vpop.f32.mrf.mxu1 }
 0x4ea   :  { %v10825_v12 = vpop.f32.mrf.mxu1 }
 0x4eb   :  { %v5123_v21 = vadd.f32 %v10825_v12, %v4894_v45 }
 0x4ec   :  { %v5059_v55 = vpop.f32.mrf.mxu1 }
 0x4ee   :  { %v10828_v20 = vpop.f32.mrf.mxu1 }
 0x4ef   :  { %v5125_v61 = vadd.f32 %v10828_v20, %v4896_v7  ;;  %v4903_v7 = vadd.f32 %v4880_v17, %v4668_v46 }
 0x4f0   :  { %v5069_v36 = vpop.f32.mrf.mxu1 }
 0x4f1   :  { %v5124_v16 = vadd.f32 %v5069_v36, %v4895_v34 }
 0x4f2   :  { %v10831_v28 = vpop.f32.mrf.mxu1 }
 0x4f3   :  { %v5127_v60 = vadd.f32 %v10831_v28, %v4898_v6  ;;  %v4608_v6 = vadd.f32 %v14824_v47, %v14752_v40 }
 0x4f4   :  { %v5079_v23 = vpop.f32.mrf.mxu1 }
 0x4f5   :  { %v5126_v58 = vadd.f32 %v5079_v23, %v4897_v31  ;;  %v4891_v33 = vadd.f32 %v14852_v4, %v4608_v6 }
 0x4f6   :  { %v10834_v63 = vpop.f32.mrf.mxu1 }
 0x4f7   :  { %v5129_v13 = vadd.f32 %v10834_v63, %v4900_v59  ;;  %v4618_v59 = vadd.f32 %v14830_v0, %v14767_v19  ;;  %v5120_v24 = vadd.f32 %v5049_v37, %v4891_v33 }
 0x4f8   :  { %v5089_v27 = vpop.f32.mrf.mxu1 }
 0x4f9   :  { %v5128_v48 = vadd.f32 %v5089_v27, %v4899_v5  ;;  %v4893_v39 = vadd.f32 %v14855_v43, %v4618_v59 }
 0x4fa   :  { %v10837_v30 = vpop.f32.mrf.mxu1 }
 0x4fb   :  { %v5131_v45 = vadd.f32 %v10837_v30, %v4902_v49  ;;  %v5122_v10 = vadd.f32 %v5059_v55, %v4893_v39 }
 0x4fc   :  { %v5099_v3 = vpop.f32.mrf.mxu1 }
 0x4fd   :  { %v5130_v9 = vadd.f32 %v5099_v3, %v4901_v14  ;;  %v9221_v14 = vld [vmem:[%s15368_s9 + $0x28] sm:$0xff] }
 0x4fe   :  { %v10840_v53 = vpop.f32.mrf.mxu1  ;;  %11029 = vmatprep.subr.mxu0 %v9221_v14 }
 0x4ff   :  { %v5133_v62 = vadd.f32 %v10840_v53, %v4904_v54  ;;  %11030 = vmatpush3.msra.mxu0 %v9221_v14 }
 0x500   :  { %v5109_v44 = vpop.f32.mrf.mxu1 }
 0x501   :  { %v5132_v18 = vadd.f32 %v5109_v44, %v4903_v7 }
 0x502   :  { %v10849_v51 = vpop.f32.mrf.mxu1 }
 0x503   :  { %v5348_v42 = vadd.f32 %v10849_v51, %v5119_v11 }
 0x504   :  { %v5268_v57 = vpop.f32.mrf.mxu1 }
 0x506   :  { %v10852_v25 = vpop.f32.mrf.mxu1 }
 0x507   :  { %v5350_v29 = vadd.f32 %v10852_v25, %v5121_v2 }
 0x508   :  { %v5278_v1 = vpop.f32.mrf.mxu1 }
 0x509   :  { %v5349_v49 = vadd.f32 %v5278_v1, %v5120_v24 }
 0x50a   :  { %v10855_v38 = vpop.f32.mrf.mxu1 }
 0x50b   :  { %v5352_v54 = vadd.f32 %v10855_v38, %v5123_v21  ;;  %v4598_v21 = vadd.f32 %v14818_v8, %v14740_v15  ;;  %v6342_v15 = vld [vmem:[%s15367_s8] sm:$0xff] }
 0x50c   :  { %v5288_v17 = vpop.f32.mrf.mxu1  ;;  %11023 = vmatprep.mubr.f32.mxu1 %v6342_v15 }
 0x50d   :  { %v5351_v32 = vadd.f32 %v5288_v17, %v5122_v10 }
 0x50e   :  { %v10858_v40 = vpop.f32.mrf.mxu1 }
 0x50f   :  { %v5354_v47 = vadd.f32 %v10858_v40, %v5125_v61  ;;  %v4889_v61 = vadd.f32 %v14849_v22, %v4598_v21 }
 0x510   :  { %v5298_v11 = vpop.f32.mrf.mxu1 }
 0x511   :  { %v5353_v35 = vadd.f32 %v5298_v11, %v5124_v16  ;;  %v5118_v31 = vadd.f32 %v14858_v26, %v4889_v61 }
 0x512   :  { %v10861_v4 = vpop.f32.mrf.mxu1 }
 0x513   :  { %v5356_v12 = vadd.f32 %v10861_v4, %v5127_v60  ;;  %v5347_v41 = vadd.f32 %v5268_v57, %v5118_v31 }
 0x514   :  { %v5308_v56 = vpop.f32.mrf.mxu1 }
 0x515   :  { %v5355_v20 = vadd.f32 %v5308_v56, %v5126_v58 }
 0x516   :  { %v10864_v19 = vpop.f32.mrf.mxu1 }
 0x517   :  { %v5358_v0 = vadd.f32 %v10864_v19, %v5129_v13 }
 0x518   :  { %v5318_v2 = vpop.f32.mrf.mxu1 }
 0x519   :  { %v5357_v37 = vadd.f32 %v5318_v2, %v5128_v48 }
 0x51a   :  { %v10867_v34 = vpop.f32.mrf.mxu1 }
 0x51b   :  { %v5360_v43 = vadd.f32 %v10867_v34, %v5131_v45  ;;  %v9220_v45 = vld [vmem:[%s15368_s9 + $0x20] sm:$0xff] }
 0x51c   :  { %v5328_v36 = vpop.f32.mrf.mxu1  ;;  %11031 = vmatprep.subr.mxu0 %v9220_v45 }
 0x51d   :  { %v5359_v55 = vadd.f32 %v5328_v36, %v5130_v9  ;;  %11032 = vmatpush3.msra.mxu0 %v9220_v45 }
 0x51e   :  { %v10870_v52 = vpop.f32.mrf.mxu1 }
 0x51f   :  { %v14874_v28 = vadd.f32 %v10870_v52, %v5133_v62 }
 0x520   :  { %v5338_v16 = vpop.f32.mrf.mxu1 }
 0x521   :  { %v14877_v60 = vadd.f32 %v5338_v16, %v5132_v18 }
 0x522   :  { %v10879_v23 = vpop.f32.mrf.mxu1 }
 0x523   :  { %v5577_v58 = vadd.f32 %v10879_v23, %v5348_v42 }
 0x524   :  { %v5497_v63 = vpop.f32.mrf.mxu1 }
 0x525   :  { %v5576_v5 = vadd.f32 %v5497_v63, %v5347_v41 }
 0x526   :  { %v10882_v13 = vpop.f32.mrf.mxu1 }
 0x527   :  { %v5579_v27 = vadd.f32 %v10882_v13, %v5350_v29 }
 0x528   :  { %v5507_v50 = vpop.f32.mrf.mxu1 }
 0x529   :  { %v5578_v8 = vadd.f32 %v5507_v50, %v5349_v49 }
 0x52a   :  { %v10885_v22 = vpop.f32.mrf.mxu1 }
 0x52b   :  { %v5581_v48 = vadd.f32 %v10885_v22, %v5352_v54 }
 0x52c   :  { %v5517_v30 = vpop.f32.mrf.mxu1 }
 0x52d   :  { %v5580_v26 = vadd.f32 %v5517_v30, %v5351_v32 }
 0x52e   :  { %v10888_v3 = vpop.f32.mrf.mxu1 }
 0x52f   :  { %v14888_v46 = vadd.f32 %v10888_v3, %v5354_v47 }
 0x530   :  { %v5527_v9 = vpop.f32.mrf.mxu1 }
 0x531   :  { %v14890_v53 = vadd.f32 %v5527_v9, %v5353_v35 }
 0x532   :  { %v10891_v7 = vpop.f32.mrf.mxu1 }
 0x533   :  { %v14892_v62 = vadd.f32 %v10891_v7, %v5356_v12 }
 0x534   :  { %v5537_v44 = vpop.f32.mrf.mxu1 }
 0x535   :  { %v14894_v18 = vadd.f32 %v5537_v44, %v5355_v20  ;;  %v14916_v20 = vpop.f32.mrf.mxu0 }
 0x536   :  { %v10894_v51 = vpop.f32.mrf.mxu1  ;;  %15487 = vst [vmem:[#allocation12_spill] sm:$0xff] %v14916_v20 }
 0x537   :  { %v14896_v6 = vadd.f32 %v10894_v51, %v5358_v0  ;;  %v14918_v2 = vpop.f32.mrf.mxu0 }
 0x538   :  { %v5547_v42 = vpop.f32.mrf.mxu1  ;;  %15488 = vst [vmem:[#allocation13_spill] sm:$0xff] %v14918_v2 }
 0x539   :  { %v14898_v57 = vadd.f32 %v5547_v42, %v5357_v37  ;;  %v14920_v34 = vpop.f32.mrf.mxu0 }
 0x53a   :  { %v10897_v33 = vpop.f32.mrf.mxu1 }
 0x53b   :  { %v5589_v25 = vadd.f32 %v10897_v33, %v5360_v43  ;;  %v14922_v21 = vpop.f32.mrf.mxu0 }
 0x53c   :  { %v5557_v59 = vpop.f32.mrf.mxu1  ;;  %15489 = vst [vmem:[#allocation22_spill] sm:$0xff] %v14922_v21 }
 0x53d   :  { %v5588_v24 = vadd.f32 %v5557_v59, %v5359_v55  ;;  %v14924_v52 = vpop.f32.mrf.mxu0 }
 0x53e   :  { %v10900_v29 = vpop.f32.mrf.mxu1 }
 0x53f   :  { %v14926_v31 = vpop.f32.mrf.mxu0  ;;  %v5591_v42 = vadd.f32 %v10900_v29, %v14874_v28 }
 0x540   :  { %v5567_v1 = vpop.f32.mrf.mxu1 }
 0x541   :  { %v14930_v41 = vpop.f32.mrf.mxu0 }
 0x542   :  { %v10909_v39 = vpop.f32.mrf.mxu1 }
 0x543   :  { %v14900_v49 = vadd.f32 %v10909_v39, %v5577_v58 }
 0x544   :  { %v5727_v38 = vpop.f32.mrf.mxu1 }
 0x545   :  { %v14902_v10 = vadd.f32 %v5727_v38, %v5576_v5  ;;  %v14936_v5 = vpop.f32.mrf.mxu0 }
 0x546   :  { %v10912_v54 = vpop.f32.mrf.mxu1 }
 0x547   :  { %15486 = vst [vmem:[#allocation21_spill] sm:$0xff] %v14902_v10  ;;  %v14904_v17 = vadd.f32 %v10912_v54, %v5579_v27  ;;  %v10981_v50 = vpop.f32.mrf.mxu0  ;;  %v5590_v54 = vadd.f32 %v5567_v1, %v14877_v60 }
 0x548   :  { %v5737_v32 = vpop.f32.mrf.mxu1 }
 0x549   :  { %v14906_v40 = vadd.f32 %v5737_v32, %v5578_v8  ;;  %v6225_v22 = vpop.f32.mrf.mxu0 }
 0x54a   :  { %v10915_v47 = vpop.f32.mrf.mxu1 }
 0x54b   :  { %v14908_v11 = vadd.f32 %v10915_v47, %v5581_v48  ;;  %v10984_v30 = vpop.f32.mrf.mxu0 }
 0x54c   :  { %v5747_v35 = vpop.f32.mrf.mxu1 }
 0x54d   :  { %v14910_v4 = vadd.f32 %v5747_v35, %v5580_v26  ;;  %v6235_v45 = vpop.f32.mrf.mxu0 }
 0x54e   :  { %v14912_v12 = vpop.f32.mrf.mxu1 }
 0x54f   :  { %v10987_v9 = vpop.f32.mrf.mxu0 }
 0x550   :  { %v14914_v56 = vpop.f32.mrf.mxu1 }
 0x551   :  { %v6245_v39 = vpop.f32.mrf.mxu0 }
 0x552   :  { %v10921_v19 = vpop.f32.mrf.mxu1 }
 0x553   :  { %v10990_v21 = vpop.f32.mrf.mxu0  ;;  %v5815_v28 = vadd.f32 %v10921_v19, %v14892_v62  ;;  %v5813_v19 = vadd.f32 %v14912_v12, %v14888_v46 }
 0x554   :  { %v5767_v0 = vpop.f32.mrf.mxu1 }
 0x555   :  { %v5814_v60 = vadd.f32 %v5767_v0, %v14894_v18  ;;  %v6255_v1 = vpop.f32.mrf.mxu0  ;;  %v14962_v18 = vld [vmem:[%s15366_s7] ss:$0 sm:$0xff] }
 0x556   :  { %v10924_v37 = vpop.f32.mrf.mxu1 }
 0x557   :  { %v5817_v32 = vadd.f32 %v10924_v37, %v14896_v6  ;;  %v14953_v6 = vld [vmem:[%s15365_s6] ss:$0 sm:$0xff] }
 0x558   :  { %v5777_v43 = vpop.f32.mrf.mxu1 }
 0x559   :  { %v5816_v2 = vadd.f32 %v5777_v43, %v14898_v57 }
 0x55a   :  { %v10927_v36 = vpop.f32.mrf.mxu1 }
 0x55b   :  { %v5819_v44 = vadd.f32 %v10927_v36, %v5589_v25 }
 0x55c   :  { %v5787_v55 = vpop.f32.mrf.mxu1 }
 0x55d   :  { %v5818_v33 = vadd.f32 %v5787_v55, %v5588_v24 }
 0x55e   :  { %v10930_v61 = vpop.f32.mrf.mxu1 }
 0x55f   :  { %v5821_v47 = vadd.f32 %v10930_v61, %v5591_v42 }
 0x560   :  { %v5797_v16 = vpop.f32.mrf.mxu1 }
 0x562   :  { %v14928_v23 = vpop.f32.mrf.mxu1 }
 0x564   :  { %v14932_v58 = vpop.f32.mrf.mxu1 }
 0x565   :  { %15490 = vst [vmem:[#allocation23_spill] sm:$0xff] %v14932_v58  ;;  %v5820_v58 = vadd.f32 %v5797_v16, %v5590_v54  ;;  %v5812_v16 = vadd.f32 %v14914_v56, %v14890_v53 }
 0x566   :  { %v14934_v63 = vpop.f32.mrf.mxu1 }
 0x568   :  { %v14938_v13 = vpop.f32.mrf.mxu1 }
 0x56a   :  { %v14940_v27 = vpop.f32.mrf.mxu1 }
 0x56b   :  { %v6040_v53 = vadd.f32 %v14940_v27, %v14908_v11 }
 0x56c   :  { %v14942_v15 = vpop.f32.mrf.mxu1 }
 0x56d   :  { %v6269_v27 = vadd.f32 %v14924_v52, %v6040_v53  ;;  %v6036_v52 = vadd.f32 %v14928_v23, %v14900_v49  ;;  %v9239_v53 = vld [vmem:[%s15368_s9 + $0x58] sm:$0xff] }
 0x56e   :  { %v10948_v8 = vpop.f32.mrf.mxu1 }
 0x570   :  { %v5986_v48 = vpop.f32.mrf.mxu1 }
 0x572   :  { %v10951_v26 = vpop.f32.mrf.mxu1 }
 0x573   :  { %v6044_v57 = vadd.f32 %v10951_v26, %v5815_v28  ;;  %v15493_v28 = vld [vmem:[#allocation22_spill] sm:$0xff] }
 0x574   :  { %v5996_v14 = vpop.f32.mrf.mxu1 }
 0x576   :  { %v10954_v3 = vpop.f32.mrf.mxu1 }
 0x577   :  { %v6046_v10 = vadd.f32 %v10954_v3, %v5817_v32  ;;  %v6041_v3 = vadd.f32 %v5986_v48, %v5812_v16 }
 0x578   :  { %v6006_v7 = vpop.f32.mrf.mxu1 }
 0x579   :  { %v6045_v29 = vadd.f32 %v6006_v7, %v5816_v2  ;;  %v6275_v37 = vadd.f32 %v10984_v30, %v6046_v10  ;;  %v6043_v2 = vadd.f32 %v5996_v14, %v5814_v60  ;;  %v6273_v30 = vadd.f32 %v10981_v50, %v6044_v57  ;;  %v15495_v57 = vld [vmem:[#allocation13_spill] sm:$0xff] }
 0x57a   :  { %v10957_v51 = vpop.f32.mrf.mxu1  ;;  %v6270_v48 = vadd.f32 %v14936_v5, %v6041_v3  ;;  %v6037_v5 = vadd.f32 %v14938_v13, %v14906_v40  ;;  %v15491_v13 = vld [vmem:[#allocation21_spill] sm:$0xff] }
 0x57b   :  { %v6048_v59 = vadd.f32 %v10957_v51, %v5819_v44  ;;  %v6274_v0 = vadd.f32 %v6235_v45, %v6045_v29  ;;  %v6298_v46 = vmul.f32 %v14953_v6, %v6275_v37  ;;  %v6272_v45 = vadd.f32 %v6225_v22, %v6043_v2  ;;  %v6476_v3 = vld [vmem:[%s15368_s9 + $0x10] sm:$0xff] }
 0x57c   :  { %v6016_v38 = vpop.f32.mrf.mxu1  ;;  %v6296_v50 = vmul.f32 %v14953_v6, %v6273_v30  ;;  %v6039_v22 = vadd.f32 %v14942_v15, %v14910_v4  ;;  %v6293_v32 = vmul.f32 %v14953_v6, %v6270_v48 }
 0x57d   :  { %v6047_v35 = vadd.f32 %v6016_v38, %v5818_v33  ;;  %v6277_v25 = vadd.f32 %v10987_v9, %v6048_v59  ;;  %v6297_v9 = vmul.f32 %v14953_v6, %v6274_v0  ;;  %v6321_v33 = vadd.f32 %v14962_v18, %v6298_v46 }
 0x57e   :  { %v10960_v20 = vpop.f32.mrf.mxu1  ;;  %v6295_v59 = vmul.f32 %v14953_v6, %v6272_v45  ;;  %v6319_v4 = vadd.f32 %v14962_v18, %v6296_v50  ;;  %v6268_v15 = vadd.f32 %v14926_v31, %v6039_v22  ;;  %v15492_v31 = vld [vmem:[#allocation23_spill] sm:$0xff]  ;;  %v6316_v49 = vadd.f32 %v14962_v18, %v6293_v32 }
 0x57f   :  { %v6050_v36 = vadd.f32 %v10960_v20, %v5821_v47  ;;  %v6276_v55 = vadd.f32 %v6245_v39, %v6047_v35  ;;  %v6300_v43 = vmul.f32 %v14953_v6, %v6277_v25  ;;  %v6320_v11 = vadd.f32 %v14962_v18, %v6297_v9  ;;  %v9219_v45 = vld [vmem:[%s15368_s9 + $0x18] sm:$0xff]  ;;  %v6475_v9 = vld [vmem:[%s15368_s9 + $0x8] sm:$0xff] }
 0x580   :  { %v6026_v24 = vpop.f32.mrf.mxu1  ;;  %v6337_v54 = vmax.f32 %v6321_v33, 0.0  ;;  %v6292_v35 = vmul.f32 %v14953_v6, %v6269_v27  ;;  %v6335_v25 = vmax.f32 %v6319_v4, 0.0  ;;  %v6291_v29 = vmul.f32 %v14953_v6, %v6268_v15  ;;  %11033 = vmatprep.subr.mxu0 %v9219_v45  ;;  %v9238_v4 = vld [vmem:[%s15368_s9 + $0x50] sm:$0xff] }
 0x581   :  { %v6279_v44 = vadd.f32 %v10990_v21, %v6050_v36  ;;  %v6049_v51 = vadd.f32 %v6026_v24, %v5820_v58  ;;  %v6299_v21 = vmul.f32 %v14953_v6, %v6276_v55  ;;  %v6042_v58 = vadd.f32 %v10948_v8, %v5813_v19  ;;  %11034 = vmatpush3.msra.mxu0 %v9219_v45  ;;  %v9272_v45 = vld [vmem:[%s15368_s9 + $0xc0] sm:$0xff] }
 0x582   :  { %v6323_v14 = vadd.f32 %v14962_v18, %v6300_v43  ;;  %v6336_v47 = vmax.f32 %v6320_v11, 0.0  ;;  %v6035_v36 = vadd.f32 %v15492_v31, %v15491_v13  ;;  %v6266_v24 = vadd.f32 %v15493_v28, %v6037_v5  ;;  %v9253_v31 = vld [vmem:[%s15368_s9 + $0x88] sm:$0xff] }
 0x583   :  { %v6302_v20 = vmul.f32 %v14953_v6, %v6279_v44  ;;  %v6278_v62 = vadd.f32 %v6255_v1, %v6049_v51  ;;  %v6322_v42 = vadd.f32 %v14962_v18, %v6299_v21  ;;  %v6271_v56 = vadd.f32 %v14930_v41, %v6042_v58 }
 0x584   :  { %v6339_v8 = vmax.f32 %v6323_v14, 0.0  ;;  %v6038_v41 = vadd.f32 %v14934_v63, %v14904_v17  ;;  %v6318_v17 = vadd.f32 %v14962_v18, %v6295_v59  ;;  %v6315_v60 = vadd.f32 %v14962_v18, %v6292_v35 }
 0x585   :  { %v6301_v61 = vmul.f32 %v14953_v6, %v6278_v62  ;;  %v6325_v10 = vadd.f32 %v14962_v18, %v6302_v20  ;;  %v6338_v39 = vmax.f32 %v6322_v42, 0.0  ;;  %v6294_v38 = vmul.f32 %v14953_v6, %v6271_v56  ;;  %v9232_v42 = vld [vmem:[%s15368_s9 + $0x40] sm:$0xff] }
 0x586   :  { %v6267_v63 = vadd.f32 %v14920_v34, %v6038_v41  ;;  %v6334_v55 = vmax.f32 %v6318_v17, 0.0  ;;  %v15494_v34 = vld [vmem:[#allocation12_spill] sm:$0xff]  ;;  %v6264_v1 = vadd.f32 %v15495_v57, %v6035_v36  ;;  %v6289_v37 = vmul.f32 %v14953_v6, %v6266_v24  ;;  %11053 = vmatprep.subr.mxu0 %v9232_v42  ;;  %v9230_v17 = vld [vmem:[%s15368_s9 + $0x30] sm:$0xff] }
 0x587   :  { %v6341_v12 = vmax.f32 %v6325_v10, 0.0  ;;  %v6324_v26 = vadd.f32 %v14962_v18, %v6301_v61  ;;  %v6317_v40 = vadd.f32 %v14962_v18, %v6294_v38  ;;  %v6265_v23 = vadd.f32 %v15494_v34, %v6036_v52  ;;  %v9231_v38 = vld [vmem:[%s15368_s9 + $0x38] sm:$0xff]  ;;  %v9245_v24 = vld [vmem:[%s15368_s9 + $0x68] sm:$0xff]  ;;  %v9244_v34 = vld [vmem:[%s15368_s9 + $0x60] sm:$0xff] }
 0x588   :  { %v6290_v44 = vmul.f32 %v14953_v6, %v6267_v63  ;;  %v6332_v43 = vmax.f32 %v6316_v49, 0.0  ;;  %v6314_v20 = vadd.f32 %v14962_v18, %v6291_v29  ;;  %v6331_v19 = vmax.f32 %v6315_v60, 0.0  ;;  %v9237_v63 = vld [vmem:[%s15368_s9 + $0x48] sm:$0xff]  ;;  %v9260_v57 = vld [vmem:[%s15368_s9 + $0xa0] sm:$0xff] }
 0x589   :  { %10991 = vmatprep.subr.mxu1 %v6341_v12  ;;  %v6340_v7 = vmax.f32 %v6324_v26, 0.0  ;;  %v6333_v51 = vmax.f32 %v6317_v40, 0.0  ;;  %v6288_v62 = vmul.f32 %v14953_v6, %v6265_v23  ;;  %v6287_v0 = vmul.f32 %v14953_v6, %v6264_v1  ;;  %v6344_v26 = vld [vmem:[%s15367_s8 + $0x10] sm:$0xff]  ;;  %v9251_v23 = vld [vmem:[%s15368_s9 + $0x78] sm:$0xff] }
 0x58a   :  { %10992 = vmatpush3.msra.mxu1 %v6341_v12  ;;  %v6313_v2 = vadd.f32 %v14962_v18, %v6290_v44  ;;  %v6330_v21 = vmax.f32 %v6314_v20, 0.0  ;;  %v6312_v61 = vadd.f32 %v14962_v18, %v6289_v37  ;;  %v6343_v12 = vld [vmem:[%s15367_s8 + $0x8] sm:$0xff]  ;;  %v15496_v14 = vmov 0.0   ;;  %v9246_v40 = vld [vmem:[%s15368_s9 + $0x70] sm:$0xff]  ;;  %v9267_v37 = vld [vmem:[%s15368_s9 + $0xb8] sm:$0xff] }
 0x58b   :  { %10993 = vmatprep.subr.mxu1 %v6340_v7  ;;  %v6311_v16 = vadd.f32 %v14962_v18, %v6288_v62  ;;  %v6310_v30 = vadd.f32 %v14962_v18, %v6287_v0  ;;  %v6345_v18 = vld [vmem:[%s15367_s8 + $0x18] sm:$0xff]  ;;  %6435 = vst.msk [vmem:[#allocation3 + $0x18] sm:$0x3f] %vm6431_vm4, %v15496_v14  ;;  %6436 = vst.msk [vmem:[#allocation3 + $0x20] sm:$0x3f] %vm6431_vm4, %v15496_v14 }
 0x58c   :  { %10994 = vmatpush3.msra.mxu1 %v6340_v7  ;;  %v6329_v10 = vmax.f32 %v6313_v2, 0.0  ;;  %v6328_v58 = vmax.f32 %v6312_v61, 0.0  ;;  %6432 = vst.msk [vmem:[#allocation3] sm:$0x3f] %vm6431_vm4, %v15496_v14  ;;  %6433 = vst.msk [vmem:[#allocation3 + $0x8] sm:$0x3f] %vm6431_vm4, %v15496_v14 }
 0x58d   :  { %10995 = vmatprep.subr.mxu1 %v6339_v8  ;;  %v6327_v46 = vmax.f32 %v6311_v16, 0.0  ;;  %v6326_v6 = vmax.f32 %v6310_v30, 0.0  ;;  %6434 = vst.msk [vmem:[#allocation3 + $0x10] sm:$0x3f] %vm6431_vm4, %v15496_v14  ;;  %6437 = vst.msk [vmem:[#allocation3 + $0x28] sm:$0x3f] %vm6431_vm4, %v15496_v14 }
 0x58e   :  { %10996 = vmatpush3.msra.mxu1 %v6339_v8  ;;  %6438 = vst.msk [vmem:[#allocation3 + $0x30] sm:$0x3f] %vm6431_vm4, %v15496_v14  ;;  %6439 = vst.msk [vmem:[#allocation3 + $0x38] sm:$0x3f] %vm6431_vm4, %v15496_v14  ;;  %v6474_v7 = vld [vmem:[%s15368_s9] sm:$0xff]  ;;  %v9259_v62 = vld [vmem:[%s15368_s9 + $0x98] sm:$0xff] }
 0x58f   :  { %10997 = vmatprep.subr.mxu1 %v6338_v39  ;;  %6440 = vst.msk [vmem:[#allocation3 + $0x40] sm:$0x3f] %vm6431_vm4, %v15496_v14  ;;  %6441 = vst.msk [vmem:[#allocation3 + $0x48] sm:$0x3f] %vm6431_vm4, %v15496_v14  ;;  %v9266_v2 = vld [vmem:[%s15368_s9 + $0xb0] sm:$0xff]  ;;  %v9265_v16 = vld [vmem:[%s15368_s9 + $0xa8] sm:$0xff] }
 0x590   :  { %10998 = vmatpush3.msra.mxu1 %v6338_v39  ;;  %6442 = vst.msk [vmem:[#allocation3 + $0x50] sm:$0x3f] %vm6431_vm4, %v15496_v14  ;;  %6443 = vst.msk [vmem:[#allocation3 + $0x58] sm:$0x3f] %vm6431_vm4, %v15496_v14 }
 0x591   :  { %10999 = vmatprep.subr.mxu1 %v6337_v54  ;;  %7648 = vst.msk [vmem:[#allocation4] sm:$0xf] %vm6457_vm5, %v15496_v14  ;;  %7649 = vst.msk [vmem:[#allocation4 + $0x4] sm:$0xf] %vm6457_vm5, %v15496_v14 }
 0x592   :  { %11000 = vmatpush3.msra.mxu1 %v6337_v54  ;;  %7650 = vst.msk [vmem:[#allocation4 + $0x8] sm:$0xf] %vm6457_vm5, %v15496_v14  ;;  %7651 = vst.msk [vmem:[#allocation4 + $0xc] sm:$0xf] %vm6457_vm5, %v15496_v14 }
 0x593   :  { %11001 = vmatprep.subr.mxu1 %v6336_v47  ;;  %7652 = vst.msk [vmem:[#allocation4 + $0x10] sm:$0xf] %vm6457_vm5, %v15496_v14  ;;  %7653 = vst.msk [vmem:[#allocation4 + $0x14] sm:$0xf] %vm6457_vm5, %v15496_v14 }
 0x594   :  { %11002 = vmatpush3.msra.mxu1 %v6336_v47  ;;  %7654 = vst.msk [vmem:[#allocation4 + $0x18] sm:$0xf] %vm6457_vm5, %v15496_v14  ;;  %7655 = vst.msk [vmem:[#allocation4 + $0x1c] sm:$0xf] %vm6457_vm5, %v15496_v14 }
 0x595   :  { %11003 = vmatprep.subr.mxu1 %v6335_v25 }
 0x596   :  { %11004 = vmatpush3.msra.mxu1 %v6335_v25 }
 0x597   :  { %11005 = vmatprep.subr.mxu1 %v6334_v55 }
 0x598   :  { %11006 = vmatpush3.msra.mxu1 %v6334_v55  ;;  %v9252_v55 = vld [vmem:[%s15368_s9 + $0x80] sm:$0xff] }
 0x599   :  { %11007 = vmatprep.subr.mxu1 %v6333_v51 }
 0x59a   :  { %11008 = vmatpush3.msra.mxu1 %v6333_v51 }
 0x59b   :  { %11009 = vmatprep.subr.mxu1 %v6332_v43 }
 0x59c   :  { %11010 = vmatpush3.msra.mxu1 %v6332_v43 }
 0x59d   :  { %11011 = vmatprep.subr.mxu1 %v6331_v19 }
 0x59e   :  { %11012 = vmatpush3.msra.mxu1 %v6331_v19 }
 0x59f   :  { %11013 = vmatprep.subr.mxu1 %v6330_v21 }
 0x5a0   :  { %11014 = vmatpush3.msra.mxu1 %v6330_v21  ;;  %v9258_v21 = vld [vmem:[%s15368_s9 + $0x90] sm:$0xff] }
 0x5a1   :  { %11015 = vmatprep.subr.mxu1 %v6329_v10 }
 0x5a2   :  { %11016 = vmatpush3.msra.mxu1 %v6329_v10 }
 0x5a3   :  { %11017 = vmatprep.subr.mxu1 %v6328_v58 }
 0x5a4   :  { %11018 = vmatpush3.msra.mxu1 %v6328_v58 }
 0x5a5   :  { %11019 = vmatprep.subr.mxu1 %v6327_v46 }
 0x5a6   :  { %11020 = vmatpush3.msra.mxu1 %v6327_v46 }
 0x5a7   :  { %11021 = vmatprep.subr.mxu1 %v6326_v6 }
 0x5a8   :  { %11022 = vmatpush3.msra.mxu1 %v6326_v6  ;;  %v9274_v6 = vld [vmem:[%s15368_s9 + $0xd0] sm:$0xff] }
 0x5a9   :  { %11024 = vmatmul.mubr.f32.vlgmr.msra.gmra.mxu1 %v6343_v12  ;;  %11041 = vmatprep.subr.mxu1 %v6476_v3 }
 0x5aa   :  { %11026 = vmatprep.mubr.f32.mxu1 %v6344_v26  ;;  %11042 = vmatpush3.msra.mxu1 %v6476_v3  ;;  %v9273_v26 = vld [vmem:[%s15368_s9 + $0xc8] sm:$0xff]  ;;  %s8782_s9 = sshll.u32 %s11352_s0, 4  ;;  %s8783_s9 = int_to_ptr.vmem [resolvable:$true] %s8782_s9 }
 0x5ab   :  { %11043 = vmatprep.subr.mxu1 %v6475_v9  ;;  %p11332_p1 = scmp.lt.s32.totalorder %s8783_s9, %s8783_s9 }
 0x5ac   :  { %11044 = vmatpush3.msra.mxu1 %v6475_v9 }
 0x5ad   :  { %11027 = vmatmul.mubr.f32.gmra.mxu1 %v6345_v18  ;;  %11045 = vmatprep.subr.mxu1 %v6474_v7 }
 0x5ae   :  { %11046 = vmatpush3.msra.mxu1 %v6474_v7 }
 0x5af   :  { %11065 = vmatprep.subr.mxu1 %v9239_v53 }
 0x669   :  { %v11025_v56 = vpop.f32.mrf.mxu1 }
 0x66a   :  { %v6449_v50 = vcombine.high %v11025_v56, %v11025_v56  ;;  %6460 = vst.msk [vmem:[#allocation3 + $0x19] sm:$0xf] %vm6457_vm5, %v11025_v56 }
 0x66b   :  { %v6412_v8 = vpop.f32.mrf.mxu1 }
 0x66c   :  { %6461 = vst.msk [vmem:[#allocation3 + $0x21] sm:$0xf] %vm6457_vm5, %v6449_v50  ;;  %v6448_v33 = vcombine.high %v6412_v8, %v6412_v8  ;;  %6458 = vst.msk [vmem:[#allocation3 + $0x9] sm:$0xf] %vm6457_vm5, %v6412_v8 }
 0x66d   :  { %v11028_v22 = vpop.f32.mrf.mxu1 }
 0x66e   :  { %6459 = vst.msk [vmem:[#allocation3 + $0x11] sm:$0xf] %vm6457_vm5, %v6448_v33  ;;  %v6451_v48 = vcombine.high %v11028_v22, %v11028_v22  ;;  %6464 = vst.msk [vmem:[#allocation3 + $0x49] sm:$0xf] %vm6457_vm5, %v11028_v22 }
 0x66f   :  { %v6422_v59 = vpop.f32.mrf.mxu1 }
 0x670   :  { %6465 = vst.msk [vmem:[#allocation3 + $0x51] sm:$0xf] %vm6457_vm5, %v6451_v48  ;;  %v6450_v39 = vcombine.high %v6422_v59, %v6422_v59  ;;  %6462 = vst.msk [vmem:[#allocation3 + $0x39] sm:$0xf] %vm6457_vm5, %v6422_v59 }
 0x672   :  { %6463 = vst.msk [vmem:[#allocation3 + $0x41] sm:$0xf] %vm6457_vm5, %v6450_v39 }
 0x673   :  { %v11247_v11 = vld [vmem:[#allocation3 + $0x1] ss:$8 sps:$4 sm:$0xff]  }
 0x674   :  { %v11248_v41 = vld [vmem:[#allocation3] ss:$8 sps:$4 sm:$0xff]   ;;  %11035 = vmatprep.mubr.msk.f32.mxu0 %vm3223_vm2, %v11247_v11 }
 0x675   :  { %v11249_v27 = vld [vmem:[#allocation3 + $0x11] ss:$8 sps:$4 sm:$0xff]   ;;  %11047 = vmatprep.mubr.msk.f32.mxu1 %vm3223_vm2, %v11248_v41  ;;  %v11255_v52 = vld [vmem:[#allocation3 + $0x2] ss:$8 sps:$4 sm:$0xff]  }
 0x676   :  { %v11250_v54 = vld [vmem:[#allocation3 + $0x10] ss:$8 sps:$4 sm:$0xff]   ;;  %11036 = vmatmul.mubr.msk.f32.vlgmr.msra.gmra.mxu0 %vm3223_vm2, %v11249_v27  ;;  %v11273_v58 = vld [vmem:[#allocation3 + $0x20] ss:$8 sps:$4 sm:$0xff]  }
 0x677   :  { %v11251_v5 = vld [vmem:[#allocation3 + $0x31] ss:$8 sps:$4 sm:$0xff]   ;;  %11048 = vmatmul.mubr.msk.f32.vlgmr.msra.gmra.mxu1 %vm3223_vm2, %v11250_v54  ;;  %11054 = vmatpush3.msra.mxu0 %v9232_v42  ;;  %v11274_v30 = vld [vmem:[#allocation3 + $0x21] ss:$8 sps:$4 sm:$0xff]  }
 0x678   :  { %v11252_v15 = vld [vmem:[#allocation3 + $0x30] ss:$8 sps:$4 sm:$0xff]   ;;  %11038 = vmatprep.mubr.msk.f32.mxu0 %vm3223_vm2, %v11251_v5  ;;  %11066 = vmatpush3.msra.mxu1 %v9239_v53  ;;  %v11280_v7 = vld [vmem:[#allocation3 + $0x22] ss:$8 sps:$4 sm:$0xff]  }
 0x679   :  { %v11253_v32 = vld [vmem:[#allocation3 + $0x41] ss:$8 sps:$4 sm:$0xff]   ;;  %11050 = vmatprep.mubr.msk.f32.mxu1 %vm3223_vm2, %v11252_v15  ;;  %11055 = vmatprep.subr.mxu0 %v9231_v38  ;;  %v11257_v25 = vld [vmem:[#allocation3 + $0x12] ss:$8 sps:$4 sm:$0xff]  }
 0x67a   :  { %v11254_v47 = vld [vmem:[#allocation3 + $0x40] ss:$8 sps:$4 sm:$0xff]   ;;  %11039 = vmatmul.mubr.msk.f32.gmra.mxu0 %vm3223_vm2, %v11253_v32  ;;  %11067 = vmatprep.subr.mxu1 %v9238_v4  ;;  %v11259_v36 = vld [vmem:[#allocation3 + $0x32] ss:$8 sps:$4 sm:$0xff]  }
 0x67b   :  { %11051 = vmatmul.mubr.msk.f32.gmra.mxu1 %vm3223_vm2, %v11254_v47  ;;  %11056 = vmatpush3.msra.mxu0 %v9231_v38  ;;  %v11256_v35 = vld [vmem:[#allocation3 + $0x8] ss:$8 sps:$4 sm:$0xff]   ;;  %v11258_v13 = vld [vmem:[#allocation3 + $0x18] ss:$8 sps:$4 sm:$0xff]  }
 0x67c   :  { %11059 = vmatprep.mubr.msk.f32.mxu0 %vm3223_vm2, %v11255_v52  ;;  %11068 = vmatpush3.msra.mxu1 %v9238_v4  ;;  %v11260_v28 = vld [vmem:[#allocation3 + $0x38] ss:$8 sps:$4 sm:$0xff]   ;;  %v11262_v49 = vld [vmem:[#allocation3 + $0x48] ss:$8 sps:$4 sm:$0xff]  }
 0x67d   :  { %11071 = vmatprep.mubr.msk.f32.mxu1 %vm3223_vm2, %v11256_v35  ;;  %11057 = vmatprep.subr.mxu0 %v9230_v17  ;;  %v11261_v29 = vld [vmem:[#allocation3 + $0x42] ss:$8 sps:$4 sm:$0xff]   ;;  %v11271_v61 = vld [vmem:[#allocation3 + $0x10] ss:$8 sps:$4 sm:$0xff]  }
 0x67e   :  { %11069 = vmatprep.subr.mxu1 %v9237_v63  ;;  %11058 = vmatpush3.msra.mxu0 %v9230_v17  ;;  %v11263_v44 = vld [vmem:[#allocation3 + $0x9] ss:$8 sps:$4 sm:$0xff]   ;;  %v11265_v60 = vld [vmem:[#allocation3 + $0x19] ss:$8 sps:$4 sm:$0xff]  }
 0x67f   :  { %11070 = vmatpush3.msra.mxu1 %v9237_v63  ;;  %11060 = vmatmul.mubr.msk.f32.vlgmr.msra.gmra.mxu0 %vm3223_vm2, %v11257_v25  ;;  %v11264_v51 = vld [vmem:[#allocation3 + $0xa] ss:$8 sps:$4 sm:$0xff]   ;;  %v11266_v1 = vld [vmem:[#allocation3 + $0x1a] ss:$8 sps:$4 sm:$0xff]  }
 0x680   :  { %11072 = vmatmul.mubr.msk.f32.vlgmr.msra.gmra.mxu1 %vm3223_vm2, %v11258_v13  ;;  %11062 = vmatprep.mubr.msk.f32.mxu0 %vm3223_vm2, %v11259_v36  ;;  %v11267_v43 = vld [vmem:[#allocation3 + $0x39] ss:$8 sps:$4 sm:$0xff]   ;;  %v11269_v19 = vld [vmem:[#allocation3 + $0x49] ss:$8 sps:$4 sm:$0xff]  }
 0x681   :  { %11074 = vmatprep.mubr.msk.f32.mxu1 %vm3223_vm2, %v11260_v28  ;;  %11077 = vmatprep.subr.mxu0 %v9246_v40  ;;  %v11268_v20 = vld [vmem:[#allocation3 + $0x3a] ss:$8 sps:$4 sm:$0xff]   ;;  %v11270_v0 = vld [vmem:[#allocation3 + $0x4a] ss:$8 sps:$4 sm:$0xff]  }
 0x682   :  { %11089 = vmatprep.subr.mxu1 %v9253_v31  ;;  %11078 = vmatpush3.msra.mxu0 %v9246_v40  ;;  %v11272_v10 = vld [vmem:[#allocation3 + $0x11] ss:$8 sps:$4 sm:$0xff]   ;;  %v11275_v46 = vld [vmem:[#allocation3 + $0x40] ss:$8 sps:$4 sm:$0xff]  }
 0x683   :  { %11090 = vmatpush3.msra.mxu1 %v9253_v31  ;;  %11063 = vmatmul.mubr.msk.f32.gmra.mxu0 %vm3223_vm2, %v11261_v29  ;;  %v11276_v12 = vld [vmem:[#allocation3 + $0x41] ss:$8 sps:$4 sm:$0xff]   ;;  %v11277_v18 = vld [vmem:[#allocation3 + $0x50] ss:$8 sps:$4 sm:$0xff]  }
 0x684   :  { %11075 = vmatmul.mubr.msk.f32.gmra.mxu1 %vm3223_vm2, %v11262_v49  ;;  %11079 = vmatprep.subr.mxu0 %v9245_v24  ;;  %v11278_v3 = vld [vmem:[#allocation3 + $0x51] ss:$8 sps:$4 sm:$0xff]   ;;  %v11281_v42 = vld [vmem:[#allocation3 + $0x42] ss:$8 sps:$4 sm:$0xff]  }
 0x685   :  { %11091 = vmatprep.subr.mxu1 %v9252_v55  ;;  %11080 = vmatpush3.msra.mxu0 %v9245_v24  ;;  %v11279_v9 = vld [vmem:[#allocation3 + $0x12] ss:$8 sps:$4 sm:$0xff]  }
 0x686   :  { %11083 = vmatprep.mubr.msk.f32.mxu0 %vm3223_vm2, %v11263_v44  ;;  %11092 = vmatpush3.msra.mxu1 %v9252_v55  ;;  %v11282_v53 = vld [vmem:[#allocation3 + $0x52] ss:$8 sps:$4 sm:$0xff]  }
 0x687   :  { %11095 = vmatprep.mubr.msk.f32.mxu1 %vm3223_vm2, %v11264_v51  ;;  %11081 = vmatprep.subr.mxu0 %v9244_v34 }
 0x688   :  { %11093 = vmatprep.subr.mxu1 %v9251_v23  ;;  %11082 = vmatpush3.msra.mxu0 %v9244_v34 }
 0x689   :  { %11094 = vmatpush3.msra.mxu1 %v9251_v23  ;;  %11084 = vmatmul.mubr.msk.f32.vlgmr.msra.gmra.mxu0 %vm3223_vm2, %v11265_v60 }
 0x68a   :  { %11096 = vmatmul.mubr.msk.f32.vlgmr.msra.gmra.mxu1 %vm3223_vm2, %v11266_v1  ;;  %11086 = vmatprep.mubr.msk.f32.mxu0 %vm3223_vm2, %v11267_v43 }
 0x68b   :  { %11098 = vmatprep.mubr.msk.f32.mxu1 %vm3223_vm2, %v11268_v20  ;;  %11101 = vmatprep.subr.mxu0 %v9260_v57 }
 0x68c   :  { %11113 = vmatprep.subr.mxu1 %v9267_v37  ;;  %11102 = vmatpush3.msra.mxu0 %v9260_v57 }
 0x68d   :  { %11114 = vmatpush3.msra.mxu1 %v9267_v37  ;;  %11087 = vmatmul.mubr.msk.f32.gmra.mxu0 %vm3223_vm2, %v11269_v19 }
 0x68e   :  { %11099 = vmatmul.mubr.msk.f32.gmra.mxu1 %vm3223_vm2, %v11270_v0  ;;  %11103 = vmatprep.subr.mxu0 %v9259_v62 }
 0x68f   :  { %11115 = vmatprep.subr.mxu1 %v9266_v2  ;;  %11104 = vmatpush3.msra.mxu0 %v9259_v62 }
 0x690   :  { %11107 = vmatprep.mubr.msk.f32.mxu0 %vm3223_vm2, %v11271_v61  ;;  %11116 = vmatpush3.msra.mxu1 %v9266_v2 }
 0x691   :  { %11119 = vmatprep.mubr.msk.f32.mxu1 %vm3223_vm2, %v11272_v10  ;;  %11105 = vmatprep.subr.mxu0 %v9258_v21 }
 0x692   :  { %11117 = vmatprep.subr.mxu1 %v9265_v16  ;;  %11106 = vmatpush3.msra.mxu0 %v9258_v21 }
 0x693   :  { %11118 = vmatpush3.msra.mxu1 %v9265_v16  ;;  %11108 = vmatmul.mubr.msk.f32.vlgmr.msra.gmra.mxu0 %vm3223_vm2, %v11273_v58 }
 0x694   :  { %11120 = vmatmul.mubr.msk.f32.vlgmr.msra.gmra.mxu1 %vm3223_vm2, %v11274_v30  ;;  %11110 = vmatprep.mubr.msk.f32.mxu0 %vm3223_vm2, %v11275_v46 }
 0x695   :  { %11122 = vmatprep.mubr.msk.f32.mxu1 %vm3223_vm2, %v11276_v12  ;;  %11125 = vmatprep.subr.mxu0 %v9274_v6 }
 0x696   :  { %11126 = vmatpush3.msra.mxu0 %v9274_v6  ;;  %11137 = vmatprep.subr.mxu1 %v15496_v14 }
 0x697   :  { %11111 = vmatmul.mubr.msk.f32.gmra.mxu0 %vm3223_vm2, %v11277_v18  ;;  %11127 = vmatprep.subr.mxu0 %v9273_v26 }
 0x698   :  { %11123 = vmatmul.mubr.msk.f32.gmra.mxu1 %vm3223_vm2, %v11278_v3  ;;  %11128 = vmatpush3.msra.mxu0 %v9273_v26 }
 0x699   :  { %11131 = vmatprep.mubr.msk.f32.mxu0 %vm3223_vm2, %v11279_v9  ;;  %11129 = vmatprep.subr.mxu0 %v9272_v45 }
 0x69a   :  { %11130 = vmatpush3.msra.mxu0 %v9272_v45  ;;  %11145 = vmatprep.mubr.msk.f32.mxu1 %vm11350_vm6, %v15496_v14 }
 0x69b   :  { %11132 = vmatmul.mubr.msk.f32.vlgmr.msra.gmra.mxu0 %vm3223_vm2, %v11280_v7  ;;  %11157 = vmatprep.subr.mxu0 %v15496_v14 }
 0x69c   :  { %11134 = vmatprep.mubr.msk.f32.mxu0 %vm3223_vm2, %v11281_v42 }
 0x69f   :  { %11135 = vmatmul.mubr.msk.f32.gmra.mxu0 %vm3223_vm2, %v11282_v53  ;;  %v9279_v53 = vld [vmem:[%s15369_s10] ss:$0 sm:$0xff] }
 0x6a0   :  { %11163 = vmatprep.mubr.msk.f32.mxu0 %vm11350_vm6, %v15496_v14 }
 0x736   :  { %v11037_v56 = vpop.f32.mrf.mxu0 }
 0x737   :  { %v11049_v50 = vpop.f32.mrf.mxu1 }
 0x738   :  { %v6575_v8 = vpop.f32.mrf.mxu0  ;;  %v6686_v47 = vadd.f32 %v11049_v50, %v11037_v56 }
 0x739   :  { %v6680_v33 = vpop.f32.mrf.mxu1 }
 0x73a   :  { %v11040_v22 = vpop.f32.mrf.mxu0  ;;  %v6681_v63 = vadd.f32 %v6680_v33, %v6575_v8 }
 0x73b   :  { %v11052_v48 = vpop.f32.mrf.mxu1 }
 0x73c   :  { %v6585_v59 = vpop.f32.mrf.mxu0  ;;  %v6696_v35 = vadd.f32 %v11052_v48, %v11040_v22 }
 0x73d   :  { %v6690_v39 = vpop.f32.mrf.mxu1 }
 0x73e   :  { %v6691_v31 = vadd.f32 %v6690_v39, %v6585_v59 }
 0x73f   :  { %v11061_v11 = vpop.f32.mrf.mxu0 }
 0x740   :  { %v11073_v41 = vpop.f32.mrf.mxu1  ;;  %v6817_v25 = vadd.f32 %v11061_v11, %v6686_v47  ;;  %v9280_v11 = vld [vmem:[%s15370_s11] ss:$0 sm:$0xff] }
 0x741   :  { %v6797_v27 = vpop.f32.mrf.mxu0 }
 0x742   :  { %v6918_v38 = vpop.f32.mrf.mxu1  ;;  %v6816_v36 = vadd.f32 %v6797_v27, %v6681_v63  ;;  %v6938_v55 = vadd.f32 %v11073_v41, %v6817_v25  ;;  %v9284_v63 = vld [vmem:[%s15372_s13 + $0x28] sm:$0xff]  ;;  %v9283_v25 = vld [vmem:[%s15372_s13 + $0x20] sm:$0xff] }
 0x743   :  { %v11064_v54 = vpop.f32.mrf.mxu0 }
 0x744   :  { %v11076_v4 = vpop.f32.mrf.mxu1  ;;  %v6819_v28 = vadd.f32 %v11064_v54, %v6696_v35  ;;  %v6937_v23 = vadd.f32 %v6918_v38, %v6816_v36  ;;  %v7689_v35 = vld [vmem:[%s15372_s13 + $0x10] sm:$0xff]  ;;  %v11351_v36 = vmov 1983009808  }
 0x745   :  { %v6807_v5 = vpop.f32.mrf.mxu0  ;;  %11158 = vmatpush3.msra.mxu0 %v7689_v35  ;;  %v9312_v35 = vld [vmem:[%s15372_s13 + $0xc8] sm:$0xff] }
 0x746   :  { %v6928_v15 = vpop.f32.mrf.mxu1  ;;  %v6818_v49 = vadd.f32 %v6807_v5, %v6691_v31  ;;  %v6940_v44 = vadd.f32 %v11076_v4, %v6819_v28  ;;  %11159 = vmatprep.subr.mxu0 %v15496_v14  ;;  %v7687_v31 = vld [vmem:[%s15372_s13] sm:$0xff]  ;;  %v7659_v28 = vunpack.c.l.s4 %v11351_v36 }
 0x748   :  { %v6939_v57 = vadd.f32 %v6928_v15, %v6818_v49 }
 0x749   :  { %v11085_v32 = vpop.f32.mrf.mxu0 }
 0x74a   :  { %v11097_v17 = vpop.f32.mrf.mxu1  ;;  %v7059_v51 = vadd.f32 %v11085_v32, %v6938_v55 }
 0x74b   :  { %v7039_v52 = vpop.f32.mrf.mxu0 }
 0x74c   :  { %v7160_v40 = vpop.f32.mrf.mxu1  ;;  %v7058_v1 = vadd.f32 %v7039_v52, %v6937_v23  ;;  %v7180_v62 = vadd.f32 %v11097_v17, %v7059_v51  ;;  %v7573_v52 = vld [vmem:[%s15371_s12] sm:$0xff] }
 0x74d   :  { %v11088_v13 = vpop.f32.mrf.mxu0 }
 0x74e   :  { %v11100_v24 = vpop.f32.mrf.mxu1  ;;  %v7061_v37 = vadd.f32 %v11088_v13, %v6940_v44  ;;  %v7179_v21 = vadd.f32 %v7160_v40, %v7058_v1  ;;  %v7688_v40 = vld [vmem:[%s15372_s13 + $0x8] sm:$0xff]  ;;  %v9282_v13 = vld [vmem:[%s15372_s13 + $0x18] sm:$0xff] }
 0x74f   :  { %v7049_v29 = vpop.f32.mrf.mxu0  ;;  %11160 = vmatpush3.msra.mxu0 %v7688_v40 }
 0x750   :  { %v7170_v34 = vpop.f32.mrf.mxu1  ;;  %v7060_v19 = vadd.f32 %v7049_v29, %v6939_v57  ;;  %v7182_v61 = vadd.f32 %v11100_v24, %v7061_v37  ;;  %11161 = vmatprep.subr.mxu0 %v15496_v14  ;;  %v7661_v24 = vlaneseq  ;;  %v7660_v29 = vunpack.c.0.s8 %v7659_v28 }
 0x751   :  { %11162 = vmatpush3.msra.mxu0 %v7687_v31  ;;  %v8692_v31 = vld [vmem:[%s15376_s17 + $0x8] sm:$0xff] }
 0x752   :  { %v7181_v58 = vadd.f32 %v7170_v34, %v7060_v19  ;;  %11175 = vmatprep.subr.mxu0 %v15496_v14  ;;  %v7662_v55 = vshrl.u32 %v7661_v24, 7  ;;  %v9289_v19 = vld [vmem:[%s15372_s13 + $0x40] sm:$0xff] }
 0x753   :  { %v11109_v60 = vpop.f32.mrf.mxu0 }
 0x754   :  { %v11121_v43 = vpop.f32.mrf.mxu1  ;;  %v7302_v10 = vadd.f32 %v11109_v60, %v7180_v62  ;;  %v7663_v49 = vsub.s32 %v7660_v29, %v7662_v55 }
 0x755   :  { %v7282_v20 = vpop.f32.mrf.mxu0 }
 0x756   :  { %v7403_v2 = vpop.f32.mrf.mxu1  ;;  %v7301_v30 = vadd.f32 %v7282_v20, %v7179_v21  ;;  %v7423_v26 = vadd.f32 %v11121_v43, %v7302_v10  ;;  %v9288_v10 = vld [vmem:[%s15372_s13 + $0x38] sm:$0xff] }
 0x757   :  { %v11112_v0 = vpop.f32.mrf.mxu0 }
 0x758   :  { %v7304_v46 = vadd.f32 %v11112_v0, %v7182_v61  ;;  %v11124_v6 = vpop.f32.mrf.mxu1  ;;  %v7422_v45 = vadd.f32 %v7403_v2, %v7301_v30  ;;  %v9293_v2 = vld [vmem:[%s15372_s13 + $0x58] sm:$0xff] }
 0x759   :  { %v7292_v16 = vpop.f32.mrf.mxu0 }
 0x75a   :  { %v7303_v18 = vadd.f32 %v7292_v16, %v7181_v58  ;;  %v7425_v9 = vadd.f32 %v11124_v6, %v7304_v46  ;;  %v7413_v42 = vpop.f32.mrf.mxu1  ;;  %v9292_v46 = vld [vmem:[%s15372_s13 + $0x50] sm:$0xff] }
 0x75b   :  { %v11133_v12 = vpop.f32.mrf.mxu0  ;;  %v9287_v6 = vld [vmem:[%s15372_s13 + $0x30] sm:$0xff] }
 0x75c   :  { %v7544_v7 = vadd.f32 %v11133_v12, %v7423_v26  ;;  %v7424_v50 = vadd.f32 %v7413_v42, %v7303_v18  ;;  %v9291_v12 = vld [vmem:[%s15372_s13 + $0x48] sm:$0xff] }
 0x75d   :  { %v7524_v3 = vpop.f32.mrf.mxu0 }
 0x75e   :  { %v7543_v8 = vadd.f32 %v7524_v3, %v7422_v45  ;;  %v7555_v48 = vmul.f32 %v9279_v53, %v7544_v7  ;;  %v9297_v45 = vld [vmem:[%s15372_s13 + $0x70] sm:$0xff]  ;;  %v9301_v7 = vld [vmem:[%s15372_s13 + $0x88] sm:$0xff] }
 0x75f   :  { %v11136_v56 = vpop.f32.mrf.mxu0 }
 0x760   :  { %v7546_v33 = vadd.f32 %v11136_v56, %v7425_v9  ;;  %v7554_v41 = vmul.f32 %v9279_v53, %v7543_v8  ;;  %v7566_v54 = vadd.f32 %v9280_v11, %v7555_v48  ;;  %v9295_v8 = vld [vmem:[%s15372_s13 + $0x60] sm:$0xff] }
 0x761   :  { %v7534_v22 = vpop.f32.mrf.mxu0 }
 0x762   :  { %v7557_v59 = vmul.f32 %v9279_v53, %v7546_v33  ;;  %v7545_v39 = vadd.f32 %v7534_v22, %v7424_v50  ;;  %v7565_v15 = vadd.f32 %v9280_v11, %v7554_v41  ;;  %v7570_v47 = vmax.f32 %v7566_v54, 0.0  ;;  %v9300_v50 = vld [vmem:[%s15372_s13 + $0x80] sm:$0xff]  ;;  %v9299_v33 = vld [vmem:[%s15372_s13 + $0x78] sm:$0xff] }
 0x763   :  { %v9309_v41 = vld [vmem:[%s15372_s13 + $0xb8] sm:$0xff] }
 0x764   :  { %v7568_v27 = vadd.f32 %v9280_v11, %v7557_v59  ;;  %v7556_v38 = vmul.f32 %v9279_v53, %v7545_v39  ;;  %v7569_v17 = vmax.f32 %v7565_v15, 0.0  ;;  %v9296_v53 = vld [vmem:[%s15372_s13 + $0x68] sm:$0xff]  ;;  %v9305_v39 = vld [vmem:[%s15372_s13 + $0xa0] sm:$0xff] }
 0x765   :  { %v9307_v15 = vld [vmem:[%s15372_s13 + $0xa8] sm:$0xff] }
 0x766   :  { %v7572_v4 = vmax.f32 %v7568_v27, 0.0  ;;  %v7567_v5 = vadd.f32 %v9280_v11, %v7556_v38  ;;  %v9304_v38 = vld [vmem:[%s15372_s13 + $0x98] sm:$0xff] }
 0x768   :  { %v7571_v32 = vmax.f32 %v7567_v5, 0.0  ;;  %11138 = vmatpush3.msra.mxu1 %v7572_v4  ;;  %v9308_v4 = vld [vmem:[%s15372_s13 + $0xb0] sm:$0xff] }
 0x769   :  { %11139 = vmatprep.subr.mxu1 %v15496_v14  ;;  %v9303_v5 = vld [vmem:[%s15372_s13 + $0x90] sm:$0xff] }
 0x76a   :  { %11140 = vmatpush3.msra.mxu1 %v7571_v32 }
 0x76b   :  { %11141 = vmatprep.subr.mxu1 %v15496_v14 }
 0x76c   :  { %11142 = vmatpush3.msra.mxu1 %v7570_v47 }
 0x76d   :  { %11143 = vmatprep.subr.mxu1 %v15496_v14 }
 0x76e   :  { %11144 = vmatpush3.msra.mxu1 %v7569_v17 }
 0x76f   :  { %11146 = vmatmul.mubr.msk.f32.vlgmr.msra.gmra.mxu1 %vm7574_vm7, %v7573_v52  ;;  %11148 = vmatprep.subr.mxu1 %v15496_v14  ;;  %v9313_v52 = vld [vmem:[%s15372_s13 + $0xd0] sm:$0xff] }
 0x770   :  { %11154 = vmatprep.mubr.msk.f32.mxu1 %vm11350_vm6, %v15496_v14  ;;  %11149 = vmatpush3.msra.mxu1 %v9284_v63 }
 0x771   :  { %11150 = vmatprep.subr.mxu1 %v15496_v14 }
 0x772   :  { %11151 = vmatpush3.msra.mxu1 %v9283_v25  ;;  %v9311_v25 = vld [vmem:[%s15372_s13 + $0xc0] sm:$0xff] }
 0x773   :  { %11152 = vmatprep.subr.mxu1 %v15496_v14 }
 0x774   :  { %11153 = vmatpush3.msra.mxu1 %v9282_v13  ;;  %v8693_v13 = vld [vmem:[%s15376_s17 + $0x10] sm:$0xff] }
 0x775   :  { %11166 = vmatprep.subr.mxu1 %v15496_v14 }
 0x82f   :  { %v7644_v34 = vpop.f32.mrf.mxu1 }
 0x830   :  { %v7657_v23 = vcombine.high %v7644_v34, %v7644_v34  ;;  %v7664_v44 = vrot.slane %v7644_v34, %v7663_v49 }
 0x831   :  { %v11147_v51 = vpop.f32.mrf.mxu1 }
 0x832   :  { %v7671_v60 = vrot.slane %v7657_v23, %v7663_v49  ;;  %v7672_v57 = vcombine.high %v7664_v44, %v7664_v44  ;;  %7679 = vst.msk [vmem:[#allocation4 + $0x5] sm:$0x3] %vm3225_vm3, %v7664_v44 }
 0x834   :  { %v7673_v1 = vcombine.high %v7671_v60, %v7671_v60  ;;  %7680 = vst.msk [vmem:[#allocation4 + $0x9] sm:$0x3] %vm3225_vm3, %v7672_v57  ;;  %7681 = vst.msk [vmem:[#allocation4 + $0x15] sm:$0x3] %vm3225_vm3, %v7671_v60 }
 0x836   :  { %7682 = vst.msk [vmem:[#allocation4 + $0x19] sm:$0x3] %vm3225_vm3, %v7673_v1 }
 0x839   :  { %v11309_v37 = vld.sshfl [vmem:[#allocation4 + $0x1] sm:$0xf pattern:$0x76325410] }
 0x83a   :  { %v11311_v43 = vld.sshfl [vmem:[#allocation4] sm:$0xf pattern:$0x76325410] }
 0x83b   :  { %v11310_v20 = vld.sshfl [vmem:[#allocation4 + $0x11] sm:$0xf pattern:$0x76325410] }
 0x83c   :  { %v11312_v62 = vld.sshfl [vmem:[#allocation4 + $0x10] sm:$0xf pattern:$0x76325410]  ;;  %v7718_v61 = vcombine.low %v11309_v37, %v11310_v20 }
 0x83d   :  { %v11313_v0 = vld.sshfl [vmem:[#allocation4 + $0x12] sm:$0xf pattern:$0x76325410]  ;;  %v7811_v16 = vcombine.low %v11311_v43, %v11312_v62 }
 0x83e   :  { %v11314_v21 = vld.sshfl [vmem:[#allocation4 + $0x14] sm:$0xf pattern:$0x76325410]  ;;  %11155 = vmatmul.mubr.msk.f32.vlgmr.msra.gmra.mxu1 %vm3223_vm2, %v7718_v61 }
 0x83f   :  { %v11315_v58 = vld.sshfl [vmem:[#allocation4 + $0x2] sm:$0xf pattern:$0x76325410]  ;;  %11164 = vmatmul.mubr.msk.f32.vlgmr.msra.gmra.mxu0 %vm3223_vm2, %v7811_v16  ;;  %11167 = vmatpush3.msra.mxu1 %v9289_v19  ;;  %v9315_v16 = vld [vmem:[%s15373_s14] ss:$0 sm:$0xff] }
 0x840   :  { %v11316_v30 = vld.sshfl [vmem:[#allocation4 + $0x4] sm:$0xf pattern:$0x76325410]  ;;  %11176 = vmatpush3.msra.mxu0 %v9293_v2  ;;  %11168 = vmatprep.subr.mxu1 %v15496_v14  ;;  %v7912_v26 = vcombine.low %v11315_v58, %v11313_v0 }
 0x841   :  { %11177 = vmatprep.subr.mxu0 %v15496_v14  ;;  %11169 = vmatpush3.msra.mxu1 %v9288_v10  ;;  %v11317_v18 = vld.sshfl [vmem:[#allocation4 + $0x15] sm:$0xf pattern:$0x76325410]  ;;  %v8014_v3 = vcombine.low %v11316_v30, %v11314_v21  ;;  %v9316_v30 = vld [vmem:[%s15374_s15] ss:$0 sm:$0xff] }
 0x842   :  { %11178 = vmatpush3.msra.mxu0 %v9292_v46  ;;  %11170 = vmatprep.subr.mxu1 %v15496_v14  ;;  %v11318_v9 = vld.sshfl [vmem:[#allocation4 + $0x16] sm:$0xf pattern:$0x76325410] }
 0x843   :  { %11179 = vmatprep.subr.mxu0 %v15496_v14  ;;  %11171 = vmatpush3.msra.mxu1 %v9287_v6  ;;  %v11319_v42 = vld.sshfl [vmem:[#allocation4 + $0x5] sm:$0xf pattern:$0x76325410] }
 0x844   :  { %11172 = vmatprep.mubr.msk.f32.mxu1 %vm11350_vm6, %v15496_v14  ;;  %11180 = vmatpush3.msra.mxu0 %v9291_v12  ;;  %v11320_v56 = vld.sshfl [vmem:[#allocation4 + $0x6] sm:$0xf pattern:$0x76325410]  ;;  %v8116_v22 = vcombine.low %v11319_v42, %v11317_v18  ;;  %v8616_v18 = vld [vmem:[%s15375_s16] sm:$0x3] }
 0x845   :  { %11181 = vmatprep.mubr.msk.f32.mxu0 %vm11350_vm6, %v15496_v14  ;;  %11173 = vmatmul.mubr.msk.f32.vlgmr.msra.gmra.mxu1 %vm3223_vm2, %v7912_v26  ;;  %v11321_v48 = vld.sshfl [vmem:[#allocation4 + $0x18] sm:$0xf pattern:$0x76325410]  ;;  %v8218_v59 = vcombine.low %v11320_v56, %v11318_v9  ;;  %s11327_s16 = scalar_lea.vmem %s8783_s9, 32 }
 0x846   :  { %11182 = vmatmul.mubr.msk.f32.vlgmr.msra.gmra.mxu0 %vm3223_vm2, %v8014_v3  ;;  %11184 = vmatprep.subr.mxu1 %v15496_v14  ;;  %v11322_v11 = vld.sshfl [vmem:[#allocation4 + $0x19] sm:$0xf pattern:$0x76325410]  ;;  %v8691_v3 = vld [vmem:[%s15376_s17] sm:$0xff]  ;;  %p11328_p0 = scmp.ne.s32.totalorder %s8783_s9, %s11327_s16  ;;  %p11333_p2 = scmp.lt.s32.totalorder %s11327_s16, %s11327_s16 }
 0x847   :  { %11193 = vmatprep.subr.mxu0 %v15496_v14  ;;  %11185 = vmatpush3.msra.mxu1 %v9297_v45  ;;  %v11323_v27 = vld.sshfl [vmem:[#allocation4 + $0x8] sm:$0xf pattern:$0x76325410] }
 0x848   :  { %11194 = vmatpush3.msra.mxu0 %v9301_v7  ;;  %11186 = vmatprep.subr.mxu1 %v15496_v14  ;;  %v11324_v54 = vld.sshfl [vmem:[#allocation4 + $0x9] sm:$0xf pattern:$0x76325410]  ;;  %v8321_v47 = vcombine.low %v11323_v27, %v11321_v48  ;;  %v9318_v7 = vld [vmem:[%s15377_s18] ss:$0 sm:$0xff]  ;;  %p11334_p3 = por %p11333_p2, %p11332_p1 }
 0x849   :  { %11195 = vmatprep.subr.mxu0 %v15496_v14  ;;  %11187 = vmatpush3.msra.mxu1 %v9296_v53  ;;  %v11325_v32 = vld.sshfl [vmem:[#allocation4 + $0x1a] sm:$0xf pattern:$0x76325410]  ;;  %v8423_v17 = vcombine.low %v11324_v54, %v11322_v11 }
 0x84a   :  { %11196 = vmatpush3.msra.mxu0 %v9300_v50  ;;  %11188 = vmatprep.subr.mxu1 %v15496_v14  ;;  %v11326_v63 = vld.sshfl [vmem:[#allocation4 + $0xa] sm:$0xf pattern:$0x76325410]  ;;  %p11335_p4 = pnand %p11334_p3, %p11328_p0 }
 0x84b   :  { %11197 = vmatprep.subr.mxu0 %v15496_v14  ;;  %11189 = vmatpush3.msra.mxu1 %v9295_v8  ;;  %v8525_v40 = vcombine.low %v11326_v63, %v11325_v32 }
 0x84c   :  { %11190 = vmatprep.mubr.msk.f32.mxu1 %vm11350_vm6, %v15496_v14  ;;  %11198 = vmatpush3.msra.mxu0 %v9299_v33 }
 0x84d   :  { %11199 = vmatprep.mubr.msk.f32.mxu0 %vm11350_vm6, %v15496_v14  ;;  %11191 = vmatmul.mubr.msk.f32.vlgmr.msra.gmra.mxu1 %vm3223_vm2, %v8116_v22 }
 0x84e   :  { %11200 = vmatmul.mubr.msk.f32.vlgmr.msra.gmra.mxu0 %vm3223_vm2, %v8218_v59  ;;  %11202 = vmatprep.subr.mxu1 %v15496_v14 }
 0x84f   :  { %11211 = vmatprep.subr.mxu0 %v15496_v14  ;;  %11203 = vmatpush3.msra.mxu1 %v9305_v39 }
 0x850   :  { %11212 = vmatpush3.msra.mxu0 %v9309_v41  ;;  %11204 = vmatprep.subr.mxu1 %v15496_v14 }
 0x851   :  { %11213 = vmatprep.subr.mxu0 %v15496_v14  ;;  %11205 = vmatpush3.msra.mxu1 %v9304_v38 }
 0x852   :  { %11214 = vmatpush3.msra.mxu0 %v9308_v4  ;;  %11206 = vmatprep.subr.mxu1 %v15496_v14 }
 0x853   :  { %11215 = vmatprep.subr.mxu0 %v15496_v14  ;;  %11207 = vmatpush3.msra.mxu1 %v9303_v5 }
 0x854   :  { %11208 = vmatprep.mubr.msk.f32.mxu1 %vm11350_vm6, %v15496_v14  ;;  %11216 = vmatpush3.msra.mxu0 %v9307_v15 }
 0x855   :  { %11217 = vmatprep.mubr.msk.f32.mxu0 %vm11350_vm6, %v15496_v14  ;;  %11209 = vmatmul.mubr.msk.f32.vlgmr.msra.gmra.mxu1 %vm3223_vm2, %v8321_v47 }
 0x856   :  { %11218 = vmatmul.mubr.msk.f32.vlgmr.msra.gmra.mxu0 %vm3223_vm2, %v8423_v17  ;;  %11220 = vmatprep.subr.mxu1 %v15496_v14 }
 0x857   :  { %11221 = vmatpush3.msra.mxu1 %v9313_v52  ;;  %11226 = vmatprep.mubr.msk.f32.mxu1 %vm11350_vm6, %v15496_v14 }
 0x858   :  { %11222 = vmatprep.subr.mxu1 %v15496_v14  ;;  %11234 = vmatprep.subr.mxu0 %v15496_v14 }
 0x859   :  { %11223 = vmatpush3.msra.mxu1 %v9312_v35  ;;  %11240 = vmatprep.mubr.msk.f32.mxu0 %vm11350_vm6, %v15496_v14 }
 0x85a   :  { %11224 = vmatprep.subr.mxu1 %v15496_v14  ;;  %11235 = vmatpush3.msra.mxu0 %v8693_v13 }
 0x85b   :  { %11225 = vmatpush3.msra.mxu1 %v9311_v25  ;;  %11236 = vmatprep.subr.mxu0 %v15496_v14 }
 0x85c   :  { %11227 = vmatmul.mubr.msk.f32.vlgmr.msra.gmra.mxu1 %vm3223_vm2, %v8525_v40  ;;  %11229 = vmatprep.subr.mxu1 %v15496_v14 }
 0x85d   :  { %11231 = vmatprep.mubr.msk.f32.mxu1 %vm11350_vm6, %v15496_v14  ;;  %11237 = vmatpush3.msra.mxu0 %v8692_v31 }
 0x85e   :  { %11238 = vmatprep.subr.mxu0 %v15496_v14 }
 0x85f   :  { %11239 = vmatpush3.msra.mxu0 %v8691_v3 }
 0x8fe   :  { %v7787_v36 = vpop.f32.mrf.mxu1 }
 0x8ff   :  { %v7880_v28 = vpop.f32.mrf.mxu0 }
 0x900   :  { %v11156_v24 = vpop.f32.mrf.mxu1  ;;  %v7881_v44 = vadd.f32 %v7880_v28, %v7787_v36 }
 0x901   :  { %v11165_v29 = vpop.f32.mrf.mxu0 }
 0x905   :  { %v7981_v55 = vpop.f32.mrf.mxu1 }
 0x906   :  { %v8083_v49 = vpop.f32.mrf.mxu0  ;;  %v7985_v51 = vadd.f32 %v7981_v55, %v7881_v44 }
 0x907   :  { %v11174_v34 = vpop.f32.mrf.mxu1 }
 0x908   :  { %v11183_v23 = vpop.f32.mrf.mxu0  ;;  %v8087_v1 = vadd.f32 %v8083_v49, %v7985_v51 }
 0x90d   :  { %v8185_v60 = vpop.f32.mrf.mxu1 }
 0x90e   :  { %v8287_v57 = vpop.f32.mrf.mxu0  ;;  %v8189_v20 = vadd.f32 %v8185_v60, %v8087_v1 }
 0x90f   :  { %v11192_v37 = vpop.f32.mrf.mxu1 }
 0x910   :  { %v11201_v43 = vpop.f32.mrf.mxu0  ;;  %v8291_v62 = vadd.f32 %v8287_v57, %v8189_v20 }
 0x915   :  { %v8390_v19 = vpop.f32.mrf.mxu1 }
 0x916   :  { %v8492_v2 = vpop.f32.mrf.mxu0  ;;  %v8394_v14 = vadd.f32 %v8390_v19, %v8291_v62 }
 0x917   :  { %v11210_v0 = vpop.f32.mrf.mxu1 }
 0x918   :  { %v11219_v21 = vpop.f32.mrf.mxu0  ;;  %v8496_v61 = vadd.f32 %v8492_v2, %v8394_v14 }
 0x91c   :  { %v8594_v10 = vpop.f32.mrf.mxu1 }
 0x91d   :  { %v8598_v58 = vadd.f32 %v8594_v10, %v8496_v61 }
 0x91e   :  { %v11228_v46 = vpop.f32.mrf.mxu1 }
 0x91f   :  { %v8606_v6 = vmul.f32 %v9315_v16, %v8598_v58 }
 0x921   :  { %v8614_v12 = vadd.f32 %v9316_v30, %v8606_v6 }
 0x923   :  { %v8615_v26 = vmax.f32 %v8614_v12, 0.0 }
 0x925   :  { %11230 = vmatpush3.msra.mxu1 %v8615_v26 }
 0x926   :  { %11232 = vmatmul.mubr.msk.f32.vlgmr.msra.gmra.mxu1 %vm8617_vm8, %v8616_v18 }
 0x9e6   :  { %v8687_v45 = vpop.f32.mrf.mxu1 }
 0x9e7   :  { %11241 = vmatmul.mubr.msk.f32.vlgmr.msra.gmra.mxu0 %vm3223_vm2, %v8687_v45 }
 0x9e8   :  { %v11233_v9 = vpop.f32.mrf.mxu1 }
 0xaa7   :  { %v8770_v42 = vpop.f32.mrf.mxu0 }
 0xaa8   :  { %v8771_v53 = vadd.f32 %v9318_v7, %v8770_v42 }
 0xaa9   :  { %v11242_v56 = vpop.f32.mrf.mxu0 }
 0xaaa   :  { %8775 = vst.msk [vmem:[#allocation5] sm:$0x3] %vm8774_vm9, %v8771_v53 }
 0xaab   :  { %11338 = shalt.err (!%p11335_p4)
}
 0xaac   :  { %8785 = dma.vmem_to_hbm [thread:$0]  %s8783_s9, 32, %s15378_s19, [#allocation6]  }
 0xaad   :  { %11347 = dma.done.wait [#allocation6], 32  }
 0xaae   :  { %11348 = vsyncadd [#allocation6], 4294967264 }
 0xaaf   :  { %8789 = vsyncpa [#allocation6], 1 }

</bundles_post_ra>
